<compile_context>
chip_gen: v7x
topology: tpu7x:2x2x1
jax: 0.10.0
libtpu: 0.0.40
codegen_flags: <defaults>
</compile_context>

<pallas_src>
import numpy as np
import jax
import jax.numpy as jnp
from jax.experimental import pallas as pl
from jax.experimental.pallas import tpu as pltpu

# ------------------------- scaled-down generator config ---------------------
SIZE = 16
STYLE_DIM = 32
LOG_SIZE = 4                        # log2(SIZE)
N_LATENT = 2 * LOG_SIZE - 2         # == Generator.n_latent (6)
CHANNELS = {4: 32, 8: 16, 16: 16}
LRELU_SLOPE = 0.2
FLR_SCALE = float(np.sqrt(2.0))     # FusedLeakyReLU scale

# per-axis factor of the 2D blur kernel (outer([1,3,3,1]) / 16, i.e. kernel*4)
_K1 = np.array([1.0, 3.0, 3.0, 1.0], np.float64)
_K1 = _K1 / _K1.sum() * 2.0         # [1, 3, 3, 1] / 4


# --------------------- numpy spatial-operator builders ----------------------
def _shift_1d(n, k):
    # "same" 3x3 conv tap along one axis: out[i] = x[i + k - 1] (zero outside).
    m = np.zeros((n, n), np.float32)
    for i in range(n):
        s = i + k - 1
        if 0 <= s < n:
            m[i, s] = 1.0
    return m


def _uptap_1d(n, k):
    # stride-2 transposed-conv tap (pre-blur): prep = pad_2(dilate_2(x)),
    # out[p] = prep[p + k], p in [0, 2n+1).
    m = np.zeros((2 * n + 1, n), np.float32)
    for p in range(2 * n + 1):
        q = p + k
        if q >= 2 and (q - 2) % 2 == 0:
            s = (q - 2) // 2
            if 0 <= s < n:
                m[p, s] = 1.0
    return m


def _blur_after_up_1d(n):
    # 4-tap blur, pad (1,1): length 2n+1 -> 2n.
    m = np.zeros((2 * n, 2 * n + 1), np.float32)
    for p in range(2 * n):
        for t in range(4):
            q = p + t - 1
            if 0 <= q < 2 * n + 1:
                m[p, q] += _K1[t]
    return m


def _upsample_1d(n):
    # upfirdn: up=2, pad=(2,1), 4-tap kernel*2-per-axis: length n -> 2n.
    m = np.zeros((2 * n, n), np.float32)
    for p in range(2 * n):
        for t in range(4):
            q = p + t - 2
            if 0 <= q < 2 * n and q % 2 == 0:
                m[p, q // 2] += _K1[t]
    return m


def _conv_taps_same(n):
    # (9, n*n, n*n): transposed gather operators for a 3x3 "same" conv on n x n.
    gs = []
    for kh in range(3):
        for kw in range(3):
            g = np.kron(_shift_1d(n, kh), _shift_1d(n, kw))
            gs.append(g.T)
    return np.stack(gs).astype(np.float32)


def _conv_taps_up(n):
    # (9, n*n, (2n)*(2n)): stride-2 transposed-conv tap gather with the
    # [1,3,3,1] (x4), pad (1,1) blur folded in; transposed for x @ G.
    blur = _blur_after_up_1d(n)
    gs = []
    for kh in range(3):
        for kw in range(3):
            gh = blur @ _uptap_1d(n, kh)
            gw = blur @ _uptap_1d(n, kw)
            gs.append(np.kron(gh, gw).T)
    return np.stack(gs).astype(np.float32)


def _upsample_op(n):
    # (n*n, (2n)*(2n)): skip-path upfirdn2d(up=2, pad=(2,1), kernel*4), transposed.
    a = _upsample_1d(n)
    return np.kron(a, a).T.astype(np.float32)


def _roll_masks(n):
    # (9, 1, n*n) 0/1 masks zeroing out-of-image taps for the rolled same-conv.
    hw = n * n
    masks = np.zeros((9, 1, hw), np.float32)
    p = np.arange(hw)
    row, col = p // n, p % n
    k = 0
    for kh in range(3):
        for kw in range(3):
            ok = ((row + kh - 1 >= 0) & (row + kh - 1 < n) &
                  (col + kw - 1 >= 0) & (col + kw - 1 < n))
            masks[k, 0, :] = ok.astype(np.float32)
            k += 1
    return masks


# ------------------------------- the fused kernel ----------------------------
def _build_kernel(tb):
    c4, c8, c16 = CHANNELS[4], CHANNELS[8], CHANNELS[16]

    def kernel(code_ref, *refs):
        out_ref = refs[-1]
        it = iter(refs[:-1])

        rep32_ref = next(it)
        oh32_ref = next(it)
        rep16_ref = next(it)
        oh16_ref = next(it)
        wmod_ref = next(it)
        bmod_ref = next(it)
        const_ref = next(it)

        # All 8 EqualLinear style projections for the whole sample block at once.
        code = code_ref[...]                                        # (TB, S)
        styles = jnp.dot(code, wmod_ref[...],
                         preferred_element_type=jnp.float32) + bmod_ref[...]

        style_pos = [0]

        def next_style(c):
            off = style_pos[0]
            style_pos[0] = off + c
            return styles[:, off:off + c]                           # (TB, c)

        def expand(v):
            # (TB, C) -> (TB*C, 1) column, rows ordered sample-major then channel.
            c = v.shape[1]
            rep = rep32_ref[...] if c == c4 else rep16_ref[...]
            oh = oh32_ref[...] if c == c4 else oh16_ref[...]
            full = jnp.dot(rep, v, preferred_element_type=jnp.float32)
            return jnp.sum(full * oh, axis=1, keepdims=True)

        def contract(w_bf, taps, c_in):
            # shared (unmodulated) weight (c_out, 9*c_in) x per-sample patches.
            outs = []
            for b in range(tb):
                pb = jnp.concatenate(
                    [tp[b * c_in:(b + 1) * c_in, :] for tp in taps], axis=0)
                outs.append(jnp.dot(w_bf, pb, preferred_element_type=jnp.float32))
            return jnp.concatenate(outs, axis=0)

        def styled_conv(x, c_in, c_out, roll_n=None):
            # modulate activations -> spatial taps -> shared-weight contraction
            # -> demodulate outputs -> noise + bias + fused lrelu.
            w_ref = next(it)
            wsq_ref = next(it)
            bias_ref = next(it)
            noise_ref = next(it)
            op_ref = next(it)

            s = next_style(c_in)                                    # (TB, c_in)
            x_mod = x * expand(s)                                   # (TB*c_in, hw_in)

            if roll_n is None:
                xb = x_mod.astype(jnp.bfloat16)
                taps = [jnp.dot(xb, op_ref[k], preferred_element_type=jnp.float32
                                ).astype(jnp.bfloat16) for k in range(9)]
            else:
                hw = roll_n * roll_n
                taps = []
                k = 0
                for kh in range(3):
                    for kw in range(3):
                        delta = (kh - 1) * roll_n + (kw - 1)
                        rolled = x_mod if delta == 0 else pltpu.roll(
                            x_mod, shift=(-delta) % hw, axis=1)
                        taps.append((rolled * op_ref[k]).astype(jnp.bfloat16))
                        k += 1

            out = contract(w_ref[...], taps, c_in)                  # (TB*c_out, hw_out)
            d = jax.lax.rsqrt(jnp.dot(s * s, wsq_ref[...],
                                      preferred_element_type=jnp.float32) + 1e-8)
            out = out * expand(d)                                   # demodulate outputs
            out = out + noise_ref[...]                              # noise (scalar folded)
            out = out + bias_ref[...]                               # FusedLeakyReLU bias
            return jnp.where(out >= 0.0, out, LRELU_SLOPE * out) * FLR_SCALE

        def to_rgb(x, c_in):
            # 1x1 modulated conv, no demod, no activation.
            w_ref = next(it)
            bias_ref = next(it)
            s = next_style(c_in)
            xm = (x * expand(s)).astype(jnp.bfloat16)
            w_bf = w_ref[...]
            outs = []
            for b in range(tb):
                outs.append(jnp.dot(w_bf, xm[b * c_in:(b + 1) * c_in, :],
                                    preferred_element_type=jnp.float32))
            return jnp.concatenate(outs, axis=0) + bias_ref[...]

        def skip_upsample(skip):
            u_ref = next(it)
            return jnp.dot(skip.astype(jnp.bfloat16), u_ref[...],
                           preferred_element_type=jnp.float32)

        x = const_ref[...]                                          # (TB*32, 16)
        x = styled_conv(x, c4, c4)                                  # conv1 @ 4x4
        skip = to_rgb(x, c4)                                        # to_rgb1

        # 4x4 -> 8x8
        x = styled_conv(x, c4, c8)                                  # up conv (+folded blur)
        x = styled_conv(x, c8, c8)
        rgb = to_rgb(x, c8)
        skip = rgb + skip_upsample(skip)

        # 8x8 -> 16x16
        x = styled_conv(x, c8, c16)                                 # up conv (+folded blur)
        x = styled_conv(x, c16, c16, roll_n=SIZE)                   # rolls @ 16x16
        rgb = to_rgb(x, c16)
        skip = rgb + skip_upsample(skip)

        out_ref[...] = skip                                         # (TB*3, 256)

    return kernel


# ------------------------------- wrappers ------------------------------------
def decoder_forward(packed, code, input_is_w=True):
    # TODO(synk): mapping network / truncation (input_is_w=False path) is not
    # implemented (requires the checkpoint's mapping MLP).
    tensors = packed['tensors']
    tb = packed['tb']
    b, s_dim = code.shape
    b_pad = ((b + tb - 1) // tb) * tb
    nb = b_pad // tb
    assert nb == 1 or tb % 8 == 0, "multi-step grids need TB to be a multiple of 8"

    code_f = code.astype(jnp.float32)
    if b_pad != b:
        code_f = jnp.concatenate(
            [code_f, jnp.zeros((b_pad - b, s_dim), jnp.float32)], axis=0)

    in_specs = [pl.BlockSpec((tb, s_dim), lambda i: (i, 0))]        # per-block latents
    for t in tensors:                                               # resident constants
        in_specs.append(pl.BlockSpec(t.shape, lambda i, nd=t.ndim: (0,) * nd))

    hw = SIZE * SIZE
    out = pl.pallas_call(
        _build_kernel(tb),
        out_shape=jax.ShapeDtypeStruct((b_pad * 3, hw), jnp.float32),
        grid=(nb,),
        in_specs=in_specs,
        out_specs=pl.BlockSpec((tb * 3, hw), lambda i: (i, 0)),     # lane-dense store
        compiler_params=pltpu.CompilerParams(
            dimension_semantics=("parallel",),
            vmem_limit_bytes=32 * 1024 * 1024),
    )(code_f, *tensors)
    return out.reshape(b_pad, 3, SIZE, SIZE)[:b]


# ------------------------- parameter packing (one-time) ----------------------
def pack_params(params, tb):
    """Repack module parameters into kernel-ready constants for a sample block of
    `tb`: pre-scaled bf16 MXU operands, the fused style projection, pre-squared
    weights for output demodulation, tiled bias/const columns, noise buffers with
    the injection scalar folded in, and the folded spatial operators / roll masks."""
    c4, c8, c16 = CHANNELS[4], CHANNELS[8], CHANNELS[16]
    tensors = []

    def f32(a):
        return np.asarray(a, np.float32)

    def add(a, dt=jnp.float32):
        tensors.append(jnp.asarray(
            np.ascontiguousarray(np.asarray(a, np.float32)), dtype=dt))

    # row-expansion helpers: (TB, C) -> (TB*C, 1) via matmul + one-hot select
    def rep_oh(c):
        rep = np.zeros((tb * c, tb), np.float32)
        oh = np.zeros((tb * c, c), np.float32)
        for r in range(tb * c):
            rep[r, r // c] = 1.0
            oh[r, r % c] = 1.0
        return rep, oh

    rep32, oh32 = rep_oh(c4)
    rep16, oh16 = rep_oh(c8)
    add(rep32)
    add(oh32)
    add(rep16)
    add(oh16)

    # fused style projection (all 8 EqualLinear mod layers, consumer order)
    blk = params['blocks']
    mods = [params['conv1']['conv'], params['to_rgb1']['conv'],
            blk[0]['conv_up']['conv'], blk[0]['conv']['conv'],
            blk[0]['to_rgb']['conv'],
            blk[1]['conv_up']['conv'], blk[1]['conv']['conv'],
            blk[1]['to_rgb']['conv']]
    wmod_cat = np.concatenate(
        [(f32(m['mod_w']) / np.sqrt(STYLE_DIM)).T for m in mods], axis=1)  # (S, 176)
    bmod_cat = np.concatenate(
        [f32(m['mod_b']).reshape(1, -1) for m in mods], axis=1)            # (1, 176)
    add(wmod_cat)
    add(bmod_cat)

    # constant 4x4 input, tiled over the sample block
    add(np.tile(f32(params['const']).reshape(c4, 16), (tb, 1)))

    def pack_styled(p, c_in, c_out, n_in, upsample, noise_2d, use_roll=False):
        scale = 1.0 / np.sqrt(c_in * 9)
        w = f32(p['conv']['weight']) * scale                  # (c_out, c_in, 3, 3)
        wsq = np.sum(w * w, axis=(2, 3)).T                    # (c_in, c_out) for demod
        if upsample:
            w = w[:, :, ::-1, ::-1]                           # conv_transpose flip
        w_flat = np.transpose(w, (0, 2, 3, 1)).reshape(c_out, 9 * c_in)
        bias_col = np.tile(f32(p['act_bias']).reshape(c_out, 1), (tb, 1))
        nw = float(f32(p['noise_w']).reshape(-1)[0])
        noise = nw * f32(noise_2d).reshape(1, -1)             # noise scalar folded in
        add(w_flat, jnp.bfloat16)
        add(wsq)
        add(bias_col)
        add(noise)
        if use_roll:
            add(_roll_masks(n_in))
        elif upsample:
            add(_conv_taps_up(n_in), jnp.bfloat16)
        else:
            add(_conv_taps_same(n_in), jnp.bfloat16)

    def pack_torgb(p, c_in):
        scale = 1.0 / np.sqrt(c_in)
        w = f32(p['conv']['weight']).reshape(3, c_in) * scale
        add(w, jnp.bfloat16)
        add(np.tile(f32(p['bias']).reshape(3, 1), (tb, 1)))

    noises = params['noises']
    pack_styled(params['conv1'], c4, c4, 4, False, noises[0])
    pack_torgb(params['to_rgb1'], c4)

    pack_styled(blk[0]['conv_up'], c4, c8, 4, True, noises[1])
    pack_styled(blk[0]['conv'], c8, c8, 8, False, noises[2])
    pack_torgb(blk[0]['to_rgb'], c8)
    add(_upsample_op(4), jnp.bfloat16)                        # skip 4x4 -> 8x8

    pack_styled(blk[1]['conv_up'], c8, c16, 8, True, noises[3])
    pack_styled(blk[1]['conv'], c16, c16, 16, False, noises[4], use_roll=True)
    pack_torgb(blk[1]['to_rgb'], c16)
    add(_upsample_op(8), jnp.bfloat16)                        # skip 8x8 -> 16x16

    return dict(tensors=tuple(tensors), tb=tb)


# --------------------------- deterministic init -------------------------------
def _init_modconv(key, c_in, c_out, k):
    k1, k2 = jax.random.split(key)
    return dict(
        weight=jax.random.normal(k1, (c_out, c_in, k, k), jnp.float32),
        mod_w=jax.random.normal(k2, (c_in, STYLE_DIM), jnp.float32),
        mod_b=jnp.ones((c_in,), jnp.float32),          # EqualLinear bias_init=1
    )


def _init_styled(key, c_in, c_out):
    return dict(
        conv=_init_modconv(key, c_in, c_out, 3),
        noise_w=jnp.full((1, 1), 0.1, jnp.float32),    # NoiseInjection weight
        act_bias=jnp.zeros((c_out,), jnp.float32),     # FusedLeakyReLU bias
    )


def _init_torgb(key, c_in):
    return dict(
        conv=_init_modconv(key, c_in, 3, 1),
        bias=jnp.zeros((3,), jnp.float32),
    )


def init_params(key):
    keys = iter(jax.random.split(key, 32))
    params = dict(
        const=jax.random.normal(next(keys), (1, CHANNELS[4], 4, 4), jnp.float32),
        conv1=_init_styled(next(keys), CHANNELS[4], CHANNELS[4]),
        to_rgb1=_init_torgb(next(keys), CHANNELS[4]),
    )
    blocks = []
    in_ch = CHANNELS[4]
    for res in (8, 16):
        out_ch = CHANNELS[res]
        blocks.append(dict(
            conv_up=_init_styled(next(keys), in_ch, out_ch),
            conv=_init_styled(next(keys), out_ch, out_ch),
            to_rgb=_init_torgb(next(keys), out_ch),
        ))
        in_ch = out_ch
    params['blocks'] = blocks
    noises = [jax.random.normal(next(keys), (4, 4), jnp.float32)]
    for res in (8, 16):
        noises.append(jax.random.normal(next(keys), (res, res), jnp.float32))
        noises.append(jax.random.normal(next(keys), (res, res), jnp.float32))
    params['noises'] = noises
    return params


if __name__ == "__main__":
    key = jax.random.PRNGKey(0)
    pkey, ckey = jax.random.split(key)
    params = init_params(pkey)
    batch = 2
    packed = pack_params(params, tb=batch)     # whole batch in one grid step
    code = jax.random.normal(ckey, (batch, STYLE_DIM), jnp.float32)  # w-space latent
    img = decoder_forward(packed, code, input_is_w=True)
    img = jax.block_until_ready(img)
    assert img.shape == (batch, 3, SIZE, SIZE), img.shape
    assert bool(jnp.all(jnp.isfinite(img)))
    print("KERNEL_OK")
</pallas_src>

<mosaic_0001>
module attributes {stable_mosaic.version = 11 : i64} {
  func.func @kernel(%arg0: i32, %arg1: memref<2x32xf32, #tpu.memory_space<vmem>>, %arg2: memref<64x2xf32, #tpu.memory_space<vmem>>, %arg3: memref<64x32xf32, #tpu.memory_space<vmem>>, %arg4: memref<32x2xf32, #tpu.memory_space<vmem>>, %arg5: memref<32x16xf32, #tpu.memory_space<vmem>>, %arg6: memref<32x176xf32, #tpu.memory_space<vmem>>, %arg7: memref<1x176xf32, #tpu.memory_space<vmem>>, %arg8: memref<64x16xf32, #tpu.memory_space<vmem>>, %arg9: memref<32x288xbf16, #tpu.memory_space<vmem>>, %arg10: memref<32x32xf32, #tpu.memory_space<vmem>>, %arg11: memref<64x1xf32, #tpu.memory_space<vmem>>, %arg12: memref<1x16xf32, #tpu.memory_space<vmem>>, %arg13: memref<9x16x16xbf16, #tpu.memory_space<vmem>>, %arg14: memref<3x32xbf16, #tpu.memory_space<vmem>>, %arg15: memref<6x1xf32, #tpu.memory_space<vmem>>, %arg16: memref<16x288xbf16, #tpu.memory_space<vmem>>, %arg17: memref<32x16xf32, #tpu.memory_space<vmem>>, %arg18: memref<32x1xf32, #tpu.memory_space<vmem>>, %arg19: memref<1x64xf32, #tpu.memory_space<vmem>>, %arg20: memref<9x16x64xbf16, #tpu.memory_space<vmem>>, %arg21: memref<16x144xbf16, #tpu.memory_space<vmem>>, %arg22: memref<16x16xf32, #tpu.memory_space<vmem>>, %arg23: memref<32x1xf32, #tpu.memory_space<vmem>>, %arg24: memref<1x64xf32, #tpu.memory_space<vmem>>, %arg25: memref<9x64x64xbf16, #tpu.memory_space<vmem>>, %arg26: memref<3x16xbf16, #tpu.memory_space<vmem>>, %arg27: memref<6x1xf32, #tpu.memory_space<vmem>>, %arg28: memref<16x64xbf16, #tpu.memory_space<vmem>>, %arg29: memref<16x144xbf16, #tpu.memory_space<vmem>>, %arg30: memref<16x16xf32, #tpu.memory_space<vmem>>, %arg31: memref<32x1xf32, #tpu.memory_space<vmem>>, %arg32: memref<1x256xf32, #tpu.memory_space<vmem>>, %arg33: memref<9x64x256xbf16, #tpu.memory_space<vmem>>, %arg34: memref<16x144xbf16, #tpu.memory_space<vmem>>, %arg35: memref<16x16xf32, #tpu.memory_space<vmem>>, %arg36: memref<32x1xf32, #tpu.memory_space<vmem>>, %arg37: memref<1x256xf32, #tpu.memory_space<vmem>>, %arg38: memref<9x1x256xf32, #tpu.memory_space<vmem>>, %arg39: memref<3x16xbf16, #tpu.memory_space<vmem>>, %arg40: memref<6x1xf32, #tpu.memory_space<vmem>>, %arg41: memref<64x256xbf16, #tpu.memory_space<vmem>>, %arg42: memref<6x256xf32, #tpu.memory_space<vmem>>) attributes {dimension_semantics = [#tpu.dimension_semantics<parallel>], iteration_bounds = array<i64: 1>, scalar_prefetch = 0 : i64, scratch_operands = 0 : i64, tpu.core_type = #tpu.core_type<tc>, window_params = [{transform_indices = @transform_0, window_bounds = array<i64: 2, 32>}, {pipeline_mode = #tpu.pipeline_mode<synchronous>, transform_indices = @transform_1, window_bounds = array<i64: 64, 2>}, {pipeline_mode = #tpu.pipeline_mode<synchronous>, transform_indices = @transform_2, window_bounds = array<i64: 64, 32>}, {pipeline_mode = #tpu.pipeline_mode<synchronous>, transform_indices = @transform_3, window_bounds = array<i64: 32, 2>}, {pipeline_mode = #tpu.pipeline_mode<synchronous>, transform_indices = @transform_4, window_bounds = array<i64: 32, 16>}, {pipeline_mode = #tpu.pipeline_mode<synchronous>, transform_indices = @transform_5, window_bounds = array<i64: 32, 176>}, {pipeline_mode = #tpu.pipeline_mode<synchronous>, transform_indices = @transform_6, window_bounds = array<i64: 1, 176>}, {pipeline_mode = #tpu.pipeline_mode<synchronous>, transform_indices = @transform_7, window_bounds = array<i64: 64, 16>}, {pipeline_mode = #tpu.pipeline_mode<synchronous>, transform_indices = @transform_8, window_bounds = array<i64: 32, 288>}, {pipeline_mode = #tpu.pipeline_mode<synchronous>, transform_indices = @transform_9, window_bounds = array<i64: 32, 32>}, {pipeline_mode = #tpu.pipeline_mode<synchronous>, transform_indices = @transform_10, window_bounds = array<i64: 64, 1>}, {pipeline_mode = #tpu.pipeline_mode<synchronous>, transform_indices = @transform_11, window_bounds = array<i64: 1, 16>}, {pipeline_mode = #tpu.pipeline_mode<synchronous>, transform_indices = @transform_12, window_bounds = array<i64: 9, 16, 16>}, {pipeline_mode = #tpu.pipeline_mode<synchronous>, transform_indices = @transform_13, window_bounds = array<i64: 3, 32>}, {pipeline_mode = #tpu.pipeline_mode<synchronous>, transform_indices = @transform_14, window_bounds = array<i64: 6, 1>}, {pipeline_mode = #tpu.pipeline_mode<synchronous>, transform_indices = @transform_15, window_bounds = array<i64: 16, 288>}, {pipeline_mode = #tpu.pipeline_mode<synchronous>, transform_indices = @transform_16, window_bounds = array<i64: 32, 16>}, {pipeline_mode = #tpu.pipeline_mode<synchronous>, transform_indices = @transform_17, window_bounds = array<i64: 32, 1>}, {pipeline_mode = #tpu.pipeline_mode<synchronous>, transform_indices = @transform_18, window_bounds = array<i64: 1, 64>}, {pipeline_mode = #tpu.pipeline_mode<synchronous>, transform_indices = @transform_19, window_bounds = array<i64: 9, 16, 64>}, {pipeline_mode = #tpu.pipeline_mode<synchronous>, transform_indices = @transform_20, window_bounds = array<i64: 16, 144>}, {pipeline_mode = #tpu.pipeline_mode<synchronous>, transform_indices = @transform_21, window_bounds = array<i64: 16, 16>}, {pipeline_mode = #tpu.pipeline_mode<synchronous>, transform_indices = @transform_22, window_bounds = array<i64: 32, 1>}, {pipeline_mode = #tpu.pipeline_mode<synchronous>, transform_indices = @transform_23, window_bounds = array<i64: 1, 64>}, {pipeline_mode = #tpu.pipeline_mode<synchronous>, transform_indices = @transform_24, window_bounds = array<i64: 9, 64, 64>}, {pipeline_mode = #tpu.pipeline_mode<synchronous>, transform_indices = @transform_25, window_bounds = array<i64: 3, 16>}, {pipeline_mode = #tpu.pipeline_mode<synchronous>, transform_indices = @transform_26, window_bounds = array<i64: 6, 1>}, {pipeline_mode = #tpu.pipeline_mode<synchronous>, transform_indices = @transform_27, window_bounds = array<i64: 16, 64>}, {pipeline_mode = #tpu.pipeline_mode<synchronous>, transform_indices = @transform_28, window_bounds = array<i64: 16, 144>}, {pipeline_mode = #tpu.pipeline_mode<synchronous>, transform_indices = @transform_29, window_bounds = array<i64: 16, 16>}, {pipeline_mode = #tpu.pipeline_mode<synchronous>, transform_indices = @transform_30, window_bounds = array<i64: 32, 1>}, {pipeline_mode = #tpu.pipeline_mode<synchronous>, transform_indices = @transform_31, window_bounds = array<i64: 1, 256>}, {pipeline_mode = #tpu.pipeline_mode<synchronous>, transform_indices = @transform_32, window_bounds = array<i64: 9, 64, 256>}, {pipeline_mode = #tpu.pipeline_mode<synchronous>, transform_indices = @transform_33, window_bounds = array<i64: 16, 144>}, {pipeline_mode = #tpu.pipeline_mode<synchronous>, transform_indices = @transform_34, window_bounds = array<i64: 16, 16>}, {pipeline_mode = #tpu.pipeline_mode<synchronous>, transform_indices = @transform_35, window_bounds = array<i64: 32, 1>}, {pipeline_mode = #tpu.pipeline_mode<synchronous>, transform_indices = @transform_36, window_bounds = array<i64: 1, 256>}, {pipeline_mode = #tpu.pipeline_mode<synchronous>, transform_indices = @transform_37, window_bounds = array<i64: 9, 1, 256>}, {pipeline_mode = #tpu.pipeline_mode<synchronous>, transform_indices = @transform_38, window_bounds = array<i64: 3, 16>}, {pipeline_mode = #tpu.pipeline_mode<synchronous>, transform_indices = @transform_39, window_bounds = array<i64: 6, 1>}, {pipeline_mode = #tpu.pipeline_mode<synchronous>, transform_indices = @transform_40, window_bounds = array<i64: 64, 256>}, {transform_indices = @transform_41, window_bounds = array<i64: 6, 256>}]} {
    %c0 = arith.constant 0 : index
    %c0_0 = arith.constant 0 : index
    %0 = vector.load %arg1[%c0, %c0_0] : memref<2x32xf32, #tpu.memory_space<vmem>>, vector<2x32xf32>
    %c0_1 = arith.constant 0 : index
    %c0_2 = arith.constant 0 : index
    %1 = vector.load %arg6[%c0_1, %c0_2] : memref<32x176xf32, #tpu.memory_space<vmem>>, vector<32x176xf32>
    %cst = arith.constant dense<0.000000e+00> : vector<2x176xf32>
    %2 = tpu.matmul %0, %1, %cst {dimension_numbers = #tpu.dot_dimension_numbers<[1], [0], [0], [1], [0, 0, 1, 1], [], []>} : vector<2x32xf32>, vector<32x176xf32>, vector<2x176xf32> -> vector<2x176xf32>
    %c0_3 = arith.constant 0 : index
    %c0_4 = arith.constant 0 : index
    %3 = vector.load %arg7[%c0_3, %c0_4] : memref<1x176xf32, #tpu.memory_space<vmem>>, vector<1x176xf32>
    %4 = vector.broadcast %3 : vector<1x176xf32> to vector<2x176xf32>
    %5 = arith.addf %2, %4 : vector<2x176xf32>
    %c0_5 = arith.constant 0 : index
    %c0_6 = arith.constant 0 : index
    %6 = vector.load %arg8[%c0_5, %c0_6] : memref<64x16xf32, #tpu.memory_space<vmem>>, vector<64x16xf32>
    %7 = vector.extract_strided_slice %5 {offsets = [0, 0], sizes = [2, 32], strides = [1, 1]} : vector<2x176xf32> to vector<2x32xf32>
    %c0_7 = arith.constant 0 : index
    %c0_8 = arith.constant 0 : index
    %8 = vector.load %arg2[%c0_7, %c0_8] : memref<64x2xf32, #tpu.memory_space<vmem>>, vector<64x2xf32>
    %c0_9 = arith.constant 0 : index
    %c0_10 = arith.constant 0 : index
    %9 = vector.load %arg3[%c0_9, %c0_10] : memref<64x32xf32, #tpu.memory_space<vmem>>, vector<64x32xf32>
    %cst_11 = arith.constant dense<0.000000e+00> : vector<64x32xf32>
    %10 = tpu.matmul %8, %7, %cst_11 {dimension_numbers = #tpu.dot_dimension_numbers<[1], [0], [0], [1], [0, 0, 1, 1], [], []>} : vector<64x2xf32>, vector<2x32xf32>, vector<64x32xf32> -> vector<64x32xf32>
    %11 = arith.mulf %10, %9 : vector<64x32xf32>
    %cst_12 = arith.constant dense<0.000000e+00> : vector<64xf32>
    %12 = vector.multi_reduction <add>, %11, %cst_12 [1] : vector<64x32xf32> to vector<64xf32>
    %13 = vector.shape_cast %12 : vector<64xf32> to vector<64x1xf32>
    %14 = vector.broadcast %13 : vector<64x1xf32> to vector<64x16xf32>
    %15 = arith.mulf %6, %14 : vector<64x16xf32>
    %16 = arith.truncf %15 : vector<64x16xf32> to vector<64x16xbf16>
    %c0_13 = arith.constant 0 : index
    %c0_14 = arith.constant 0 : index
    %c0_15 = arith.constant 0 : index
    %17 = vector.load %arg13[%c0_13, %c0_14, %c0_15] : memref<9x16x16xbf16, #tpu.memory_space<vmem>>, vector<1x16x16xbf16>
    %18 = vector.shape_cast %17 : vector<1x16x16xbf16> to vector<16x16xbf16>
    %cst_16 = arith.constant dense<0.000000e+00> : vector<64x16xf32>
    %19 = tpu.matmul %16, %18, %cst_16 {dimension_numbers = #tpu.dot_dimension_numbers<[1], [0], [0], [1], [0, 0, 1, 1], [], []>} : vector<64x16xbf16>, vector<16x16xbf16>, vector<64x16xf32> -> vector<64x16xf32>
    %20 = arith.truncf %19 : vector<64x16xf32> to vector<64x16xbf16>
    %c1 = arith.constant 1 : index
    %c0_17 = arith.constant 0 : index
    %c0_18 = arith.constant 0 : index
    %21 = vector.load %arg13[%c1, %c0_17, %c0_18] : memref<9x16x16xbf16, #tpu.memory_space<vmem>>, vector<1x16x16xbf16>
    %22 = vector.shape_cast %21 : vector<1x16x16xbf16> to vector<16x16xbf16>
    %cst_19 = arith.constant dense<0.000000e+00> : vector<64x16xf32>
    %23 = tpu.matmul %16, %22, %cst_19 {dimension_numbers = #tpu.dot_dimension_numbers<[1], [0], [0], [1], [0, 0, 1, 1], [], []>} : vector<64x16xbf16>, vector<16x16xbf16>, vector<64x16xf32> -> vector<64x16xf32>
    %24 = arith.truncf %23 : vector<64x16xf32> to vector<64x16xbf16>
    %c2 = arith.constant 2 : index
    %c0_20 = arith.constant 0 : index
    %c0_21 = arith.constant 0 : index
    %25 = vector.load %arg13[%c2, %c0_20, %c0_21] : memref<9x16x16xbf16, #tpu.memory_space<vmem>>, vector<1x16x16xbf16>
    %26 = vector.shape_cast %25 : vector<1x16x16xbf16> to vector<16x16xbf16>
    %cst_22 = arith.constant dense<0.000000e+00> : vector<64x16xf32>
    %27 = tpu.matmul %16, %26, %cst_22 {dimension_numbers = #tpu.dot_dimension_numbers<[1], [0], [0], [1], [0, 0, 1, 1], [], []>} : vector<64x16xbf16>, vector<16x16xbf16>, vector<64x16xf32> -> vector<64x16xf32>
    %28 = arith.truncf %27 : vector<64x16xf32> to vector<64x16xbf16>
    %c3 = arith.constant 3 : index
    %c0_23 = arith.constant 0 : index
    %c0_24 = arith.constant 0 : index
    %29 = vector.load %arg13[%c3, %c0_23, %c0_24] : memref<9x16x16xbf16, #tpu.memory_space<vmem>>, vector<1x16x16xbf16>
    %30 = vector.shape_cast %29 : vector<1x16x16xbf16> to vector<16x16xbf16>
    %cst_25 = arith.constant dense<0.000000e+00> : vector<64x16xf32>
    %31 = tpu.matmul %16, %30, %cst_25 {dimension_numbers = #tpu.dot_dimension_numbers<[1], [0], [0], [1], [0, 0, 1, 1], [], []>} : vector<64x16xbf16>, vector<16x16xbf16>, vector<64x16xf32> -> vector<64x16xf32>
    %32 = arith.truncf %31 : vector<64x16xf32> to vector<64x16xbf16>
    %c4 = arith.constant 4 : index
    %c0_26 = arith.constant 0 : index
    %c0_27 = arith.constant 0 : index
    %33 = vector.load %arg13[%c4, %c0_26, %c0_27] : memref<9x16x16xbf16, #tpu.memory_space<vmem>>, vector<1x16x16xbf16>
    %34 = vector.shape_cast %33 : vector<1x16x16xbf16> to vector<16x16xbf16>
    %cst_28 = arith.constant dense<0.000000e+00> : vector<64x16xf32>
    %35 = tpu.matmul %16, %34, %cst_28 {dimension_numbers = #tpu.dot_dimension_numbers<[1], [0], [0], [1], [0, 0, 1, 1], [], []>} : vector<64x16xbf16>, vector<16x16xbf16>, vector<64x16xf32> -> vector<64x16xf32>
    %36 = arith.truncf %35 : vector<64x16xf32> to vector<64x16xbf16>
    %c5 = arith.constant 5 : index
    %c0_29 = arith.constant 0 : index
    %c0_30 = arith.constant 0 : index
    %37 = vector.load %arg13[%c5, %c0_29, %c0_30] : memref<9x16x16xbf16, #tpu.memory_space<vmem>>, vector<1x16x16xbf16>
    %38 = vector.shape_cast %37 : vector<1x16x16xbf16> to vector<16x16xbf16>
    %cst_31 = arith.constant dense<0.000000e+00> : vector<64x16xf32>
    %39 = tpu.matmul %16, %38, %cst_31 {dimension_numbers = #tpu.dot_dimension_numbers<[1], [0], [0], [1], [0, 0, 1, 1], [], []>} : vector<64x16xbf16>, vector<16x16xbf16>, vector<64x16xf32> -> vector<64x16xf32>
    %40 = arith.truncf %39 : vector<64x16xf32> to vector<64x16xbf16>
    %c6 = arith.constant 6 : index
    %c0_32 = arith.constant 0 : index
    %c0_33 = arith.constant 0 : index
    %41 = vector.load %arg13[%c6, %c0_32, %c0_33] : memref<9x16x16xbf16, #tpu.memory_space<vmem>>, vector<1x16x16xbf16>
    %42 = vector.shape_cast %41 : vector<1x16x16xbf16> to vector<16x16xbf16>
    %cst_34 = arith.constant dense<0.000000e+00> : vector<64x16xf32>
    %43 = tpu.matmul %16, %42, %cst_34 {dimension_numbers = #tpu.dot_dimension_numbers<[1], [0], [0], [1], [0, 0, 1, 1], [], []>} : vector<64x16xbf16>, vector<16x16xbf16>, vector<64x16xf32> -> vector<64x16xf32>
    %44 = arith.truncf %43 : vector<64x16xf32> to vector<64x16xbf16>
    %c7 = arith.constant 7 : index
    %c0_35 = arith.constant 0 : index
    %c0_36 = arith.constant 0 : index
    %45 = vector.load %arg13[%c7, %c0_35, %c0_36] : memref<9x16x16xbf16, #tpu.memory_space<vmem>>, vector<1x16x16xbf16>
    %46 = vector.shape_cast %45 : vector<1x16x16xbf16> to vector<16x16xbf16>
    %cst_37 = arith.constant dense<0.000000e+00> : vector<64x16xf32>
    %47 = tpu.matmul %16, %46, %cst_37 {dimension_numbers = #tpu.dot_dimension_numbers<[1], [0], [0], [1], [0, 0, 1, 1], [], []>} : vector<64x16xbf16>, vector<16x16xbf16>, vector<64x16xf32> -> vector<64x16xf32>
    %48 = arith.truncf %47 : vector<64x16xf32> to vector<64x16xbf16>
    %c8 = arith.constant 8 : index
    %c0_38 = arith.constant 0 : index
    %c0_39 = arith.constant 0 : index
    %49 = vector.load %arg13[%c8, %c0_38, %c0_39] : memref<9x16x16xbf16, #tpu.memory_space<vmem>>, vector<1x16x16xbf16>
    %50 = vector.shape_cast %49 : vector<1x16x16xbf16> to vector<16x16xbf16>
    %cst_40 = arith.constant dense<0.000000e+00> : vector<64x16xf32>
    %51 = tpu.matmul %16, %50, %cst_40 {dimension_numbers = #tpu.dot_dimension_numbers<[1], [0], [0], [1], [0, 0, 1, 1], [], []>} : vector<64x16xbf16>, vector<16x16xbf16>, vector<64x16xf32> -> vector<64x16xf32>
    %52 = arith.truncf %51 : vector<64x16xf32> to vector<64x16xbf16>
    %c0_41 = arith.constant 0 : index
    %c0_42 = arith.constant 0 : index
    %53 = vector.load %arg9[%c0_41, %c0_42] : memref<32x288xbf16, #tpu.memory_space<vmem>>, vector<32x288xbf16>
    %54 = vector.extract_strided_slice %20 {offsets = [0, 0], sizes = [32, 16], strides = [1, 1]} : vector<64x16xbf16> to vector<32x16xbf16>
    %55 = vector.extract_strided_slice %24 {offsets = [0, 0], sizes = [32, 16], strides = [1, 1]} : vector<64x16xbf16> to vector<32x16xbf16>
    %56 = vector.extract_strided_slice %28 {offsets = [0, 0], sizes = [32, 16], strides = [1, 1]} : vector<64x16xbf16> to vector<32x16xbf16>
    %57 = vector.extract_strided_slice %32 {offsets = [0, 0], sizes = [32, 16], strides = [1, 1]} : vector<64x16xbf16> to vector<32x16xbf16>
    %58 = vector.extract_strided_slice %36 {offsets = [0, 0], sizes = [32, 16], strides = [1, 1]} : vector<64x16xbf16> to vector<32x16xbf16>
    %59 = vector.extract_strided_slice %40 {offsets = [0, 0], sizes = [32, 16], strides = [1, 1]} : vector<64x16xbf16> to vector<32x16xbf16>
    %60 = vector.extract_strided_slice %44 {offsets = [0, 0], sizes = [32, 16], strides = [1, 1]} : vector<64x16xbf16> to vector<32x16xbf16>
    %61 = vector.extract_strided_slice %48 {offsets = [0, 0], sizes = [32, 16], strides = [1, 1]} : vector<64x16xbf16> to vector<32x16xbf16>
    %62 = vector.extract_strided_slice %52 {offsets = [0, 0], sizes = [32, 16], strides = [1, 1]} : vector<64x16xbf16> to vector<32x16xbf16>
    %63 = tpu.concatenate %54, %55, %56, %57, %58, %59, %60, %61, %62 in 0 : vector<32x16xbf16>, vector<32x16xbf16>, vector<32x16xbf16>, vector<32x16xbf16>, vector<32x16xbf16>, vector<32x16xbf16>, vector<32x16xbf16>, vector<32x16xbf16>, vector<32x16xbf16> -> vector<288x16xbf16>
    %cst_43 = arith.constant dense<0.000000e+00> : vector<32x16xf32>
    %64 = tpu.matmul %53, %63, %cst_43 {dimension_numbers = #tpu.dot_dimension_numbers<[1], [0], [0], [1], [0, 0, 1, 1], [], []>} : vector<32x288xbf16>, vector<288x16xbf16>, vector<32x16xf32> -> vector<32x16xf32>
    %65 = vector.extract_strided_slice %20 {offsets = [32, 0], sizes = [32, 16], strides = [1, 1]} : vector<64x16xbf16> to vector<32x16xbf16>
    %66 = vector.extract_strided_slice %24 {offsets = [32, 0], sizes = [32, 16], strides = [1, 1]} : vector<64x16xbf16> to vector<32x16xbf16>
    %67 = vector.extract_strided_slice %28 {offsets = [32, 0], sizes = [32, 16], strides = [1, 1]} : vector<64x16xbf16> to vector<32x16xbf16>
    %68 = vector.extract_strided_slice %32 {offsets = [32, 0], sizes = [32, 16], strides = [1, 1]} : vector<64x16xbf16> to vector<32x16xbf16>
    %69 = vector.extract_strided_slice %36 {offsets = [32, 0], sizes = [32, 16], strides = [1, 1]} : vector<64x16xbf16> to vector<32x16xbf16>
    %70 = vector.extract_strided_slice %40 {offsets = [32, 0], sizes = [32, 16], strides = [1, 1]} : vector<64x16xbf16> to vector<32x16xbf16>
    %71 = vector.extract_strided_slice %44 {offsets = [32, 0], sizes = [32, 16], strides = [1, 1]} : vector<64x16xbf16> to vector<32x16xbf16>
    %72 = vector.extract_strided_slice %48 {offsets = [32, 0], sizes = [32, 16], strides = [1, 1]} : vector<64x16xbf16> to vector<32x16xbf16>
    %73 = vector.extract_strided_slice %52 {offsets = [32, 0], sizes = [32, 16], strides = [1, 1]} : vector<64x16xbf16> to vector<32x16xbf16>
    %74 = tpu.concatenate %65, %66, %67, %68, %69, %70, %71, %72, %73 in 0 : vector<32x16xbf16>, vector<32x16xbf16>, vector<32x16xbf16>, vector<32x16xbf16>, vector<32x16xbf16>, vector<32x16xbf16>, vector<32x16xbf16>, vector<32x16xbf16>, vector<32x16xbf16> -> vector<288x16xbf16>
    %cst_44 = arith.constant dense<0.000000e+00> : vector<32x16xf32>
    %75 = tpu.matmul %53, %74, %cst_44 {dimension_numbers = #tpu.dot_dimension_numbers<[1], [0], [0], [1], [0, 0, 1, 1], [], []>} : vector<32x288xbf16>, vector<288x16xbf16>, vector<32x16xf32> -> vector<32x16xf32>
    %76 = tpu.concatenate %64, %75 in 0 : vector<32x16xf32>, vector<32x16xf32> -> vector<64x16xf32>
    %77 = arith.mulf %7, %7 : vector<2x32xf32>
    %c0_45 = arith.constant 0 : index
    %c0_46 = arith.constant 0 : index
    %78 = vector.load %arg10[%c0_45, %c0_46] : memref<32x32xf32, #tpu.memory_space<vmem>>, vector<32x32xf32>
    %cst_47 = arith.constant dense<0.000000e+00> : vector<2x32xf32>
    %79 = tpu.matmul %77, %78, %cst_47 {dimension_numbers = #tpu.dot_dimension_numbers<[1], [0], [0], [1], [0, 0, 1, 1], [], []>} : vector<2x32xf32>, vector<32x32xf32>, vector<2x32xf32> -> vector<2x32xf32>
    %cst_48 = arith.constant 9.99999993E-9 : f32
    %80 = vector.broadcast %cst_48 : f32 to vector<2x32xf32>
    %81 = arith.addf %79, %80 : vector<2x32xf32>
    %82 = math.rsqrt %81 : vector<2x32xf32>
    %c0_49 = arith.constant 0 : index
    %c0_50 = arith.constant 0 : index
    %83 = vector.load %arg2[%c0_49, %c0_50] : memref<64x2xf32, #tpu.memory_space<vmem>>, vector<64x2xf32>
    %c0_51 = arith.constant 0 : index
    %c0_52 = arith.constant 0 : index
    %84 = vector.load %arg3[%c0_51, %c0_52] : memref<64x32xf32, #tpu.memory_space<vmem>>, vector<64x32xf32>
    %cst_53 = arith.constant dense<0.000000e+00> : vector<64x32xf32>
    %85 = tpu.matmul %83, %82, %cst_53 {dimension_numbers = #tpu.dot_dimension_numbers<[1], [0], [0], [1], [0, 0, 1, 1], [], []>} : vector<64x2xf32>, vector<2x32xf32>, vector<64x32xf32> -> vector<64x32xf32>
    %86 = arith.mulf %85, %84 : vector<64x32xf32>
    %cst_54 = arith.constant dense<0.000000e+00> : vector<64xf32>
    %87 = vector.multi_reduction <add>, %86, %cst_54 [1] : vector<64x32xf32> to vector<64xf32>
    %88 = vector.shape_cast %87 : vector<64xf32> to vector<64x1xf32>
    %89 = vector.broadcast %88 : vector<64x1xf32> to vector<64x16xf32>
    %90 = arith.mulf %76, %89 : vector<64x16xf32>
    %c0_55 = arith.constant 0 : index
    %c0_56 = arith.constant 0 : index
    %91 = vector.load %arg12[%c0_55, %c0_56] : memref<1x16xf32, #tpu.memory_space<vmem>>, vector<1x16xf32>
    %92 = vector.broadcast %91 : vector<1x16xf32> to vector<64x16xf32>
    %93 = arith.addf %90, %92 : vector<64x16xf32>
    %c0_57 = arith.constant 0 : index
    %c0_58 = arith.constant 0 : index
    %94 = vector.load %arg11[%c0_57, %c0_58] : memref<64x1xf32, #tpu.memory_space<vmem>>, vector<64x1xf32>
    %95 = vector.broadcast %94 : vector<64x1xf32> to vector<64x16xf32>
    %96 = arith.addf %93, %95 : vector<64x16xf32>
    %cst_59 = arith.constant 0.000000e+00 : f32
    %97 = vector.broadcast %cst_59 : f32 to vector<64x16xf32>
    %98 = arith.cmpf oge, %96, %97 : vector<64x16xf32>
    %cst_60 = arith.constant 2.000000e-01 : f32
    %99 = vector.broadcast %cst_60 : f32 to vector<64x16xf32>
    %100 = arith.mulf %99, %96 : vector<64x16xf32>
    %101 = arith.select %98, %96, %100 : vector<64x16xi1>, vector<64x16xf32>
    %cst_61 = arith.constant 1.41421354 : f32
    %102 = vector.broadcast %cst_61 : f32 to vector<64x16xf32>
    %103 = arith.mulf %101, %102 : vector<64x16xf32>
    %104 = vector.extract_strided_slice %5 {offsets = [0, 32], sizes = [2, 32], strides = [1, 1]} : vector<2x176xf32> to vector<2x32xf32>
    %c0_62 = arith.constant 0 : index
    %c0_63 = arith.constant 0 : index
    %105 = vector.load %arg2[%c0_62, %c0_63] : memref<64x2xf32, #tpu.memory_space<vmem>>, vector<64x2xf32>
    %c0_64 = arith.constant 0 : index
    %c0_65 = arith.constant 0 : index
    %106 = vector.load %arg3[%c0_64, %c0_65] : memref<64x32xf32, #tpu.memory_space<vmem>>, vector<64x32xf32>
    %cst_66 = arith.constant dense<0.000000e+00> : vector<64x32xf32>
    %107 = tpu.matmul %105, %104, %cst_66 {dimension_numbers = #tpu.dot_dimension_numbers<[1], [0], [0], [1], [0, 0, 1, 1], [], []>} : vector<64x2xf32>, vector<2x32xf32>, vector<64x32xf32> -> vector<64x32xf32>
    %108 = arith.mulf %107, %106 : vector<64x32xf32>
    %cst_67 = arith.constant dense<0.000000e+00> : vector<64xf32>
    %109 = vector.multi_reduction <add>, %108, %cst_67 [1] : vector<64x32xf32> to vector<64xf32>
    %110 = vector.shape_cast %109 : vector<64xf32> to vector<64x1xf32>
    %111 = vector.broadcast %110 : vector<64x1xf32> to vector<64x16xf32>
    %112 = arith.mulf %103, %111 : vector<64x16xf32>
    %113 = arith.truncf %112 : vector<64x16xf32> to vector<64x16xbf16>
    %c0_68 = arith.constant 0 : index
    %c0_69 = arith.constant 0 : index
    %114 = vector.load %arg14[%c0_68, %c0_69] : memref<3x32xbf16, #tpu.memory_space<vmem>>, vector<3x32xbf16>
    %115 = vector.extract_strided_slice %113 {offsets = [0, 0], sizes = [32, 16], strides = [1, 1]} : vector<64x16xbf16> to vector<32x16xbf16>
    %cst_70 = arith.constant dense<0.000000e+00> : vector<3x16xf32>
    %116 = tpu.matmul %114, %115, %cst_70 {dimension_numbers = #tpu.dot_dimension_numbers<[1], [0], [0], [1], [0, 0, 1, 1], [], []>} : vector<3x32xbf16>, vector<32x16xbf16>, vector<3x16xf32> -> vector<3x16xf32>
    %117 = vector.extract_strided_slice %113 {offsets = [32, 0], sizes = [32, 16], strides = [1, 1]} : vector<64x16xbf16> to vector<32x16xbf16>
    %cst_71 = arith.constant dense<0.000000e+00> : vector<3x16xf32>
    %118 = tpu.matmul %114, %117, %cst_71 {dimension_numbers = #tpu.dot_dimension_numbers<[1], [0], [0], [1], [0, 0, 1, 1], [], []>} : vector<3x32xbf16>, vector<32x16xbf16>, vector<3x16xf32> -> vector<3x16xf32>
    %119 = tpu.concatenate %116, %118 in 0 : vector<3x16xf32>, vector<3x16xf32> -> vector<6x16xf32>
    %c0_72 = arith.constant 0 : index
    %c0_73 = arith.constant 0 : index
    %120 = vector.load %arg15[%c0_72, %c0_73] : memref<6x1xf32, #tpu.memory_space<vmem>>, vector<6x1xf32>
    %121 = vector.broadcast %120 : vector<6x1xf32> to vector<6x16xf32>
    %122 = arith.addf %119, %121 : vector<6x16xf32>
    %123 = vector.extract_strided_slice %5 {offsets = [0, 64], sizes = [2, 32], strides = [1, 1]} : vector<2x176xf32> to vector<2x32xf32>
    %c0_74 = arith.constant 0 : index
    %c0_75 = arith.constant 0 : index
    %124 = vector.load %arg2[%c0_74, %c0_75] : memref<64x2xf32, #tpu.memory_space<vmem>>, vector<64x2xf32>
    %c0_76 = arith.constant 0 : index
    %c0_77 = arith.constant 0 : index
    %125 = vector.load %arg3[%c0_76, %c0_77] : memref<64x32xf32, #tpu.memory_space<vmem>>, vector<64x32xf32>
    %cst_78 = arith.constant dense<0.000000e+00> : vector<64x32xf32>
    %126 = tpu.matmul %124, %123, %cst_78 {dimension_numbers = #tpu.dot_dimension_numbers<[1], [0], [0], [1], [0, 0, 1, 1], [], []>} : vector<64x2xf32>, vector<2x32xf32>, vector<64x32xf32> -> vector<64x32xf32>
    %127 = arith.mulf %126, %125 : vector<64x32xf32>
    %cst_79 = arith.constant dense<0.000000e+00> : vector<64xf32>
    %128 = vector.multi_reduction <add>, %127, %cst_79 [1] : vector<64x32xf32> to vector<64xf32>
    %129 = vector.shape_cast %128 : vector<64xf32> to vector<64x1xf32>
    %130 = vector.broadcast %129 : vector<64x1xf32> to vector<64x16xf32>
    %131 = arith.mulf %103, %130 : vector<64x16xf32>
    %132 = arith.truncf %131 : vector<64x16xf32> to vector<64x16xbf16>
    %c0_80 = arith.constant 0 : index
    %c0_81 = arith.constant 0 : index
    %c0_82 = arith.constant 0 : index
    %133 = vector.load %arg20[%c0_80, %c0_81, %c0_82] : memref<9x16x64xbf16, #tpu.memory_space<vmem>>, vector<1x16x64xbf16>
    %134 = vector.shape_cast %133 : vector<1x16x64xbf16> to vector<16x64xbf16>
    %cst_83 = arith.constant dense<0.000000e+00> : vector<64x64xf32>
    %135 = tpu.matmul %132, %134, %cst_83 {dimension_numbers = #tpu.dot_dimension_numbers<[1], [0], [0], [1], [0, 0, 1, 1], [], []>} : vector<64x16xbf16>, vector<16x64xbf16>, vector<64x64xf32> -> vector<64x64xf32>
    %136 = arith.truncf %135 : vector<64x64xf32> to vector<64x64xbf16>
    %c1_84 = arith.constant 1 : index
    %c0_85 = arith.constant 0 : index
    %c0_86 = arith.constant 0 : index
    %137 = vector.load %arg20[%c1_84, %c0_85, %c0_86] : memref<9x16x64xbf16, #tpu.memory_space<vmem>>, vector<1x16x64xbf16>
    %138 = vector.shape_cast %137 : vector<1x16x64xbf16> to vector<16x64xbf16>
    %cst_87 = arith.constant dense<0.000000e+00> : vector<64x64xf32>
    %139 = tpu.matmul %132, %138, %cst_87 {dimension_numbers = #tpu.dot_dimension_numbers<[1], [0], [0], [1], [0, 0, 1, 1], [], []>} : vector<64x16xbf16>, vector<16x64xbf16>, vector<64x64xf32> -> vector<64x64xf32>
    %140 = arith.truncf %139 : vector<64x64xf32> to vector<64x64xbf16>
    %c2_88 = arith.constant 2 : index
    %c0_89 = arith.constant 0 : index
    %c0_90 = arith.constant 0 : index
    %141 = vector.load %arg20[%c2_88, %c0_89, %c0_90] : memref<9x16x64xbf16, #tpu.memory_space<vmem>>, vector<1x16x64xbf16>
    %142 = vector.shape_cast %141 : vector<1x16x64xbf16> to vector<16x64xbf16>
    %cst_91 = arith.constant dense<0.000000e+00> : vector<64x64xf32>
    %143 = tpu.matmul %132, %142, %cst_91 {dimension_numbers = #tpu.dot_dimension_numbers<[1], [0], [0], [1], [0, 0, 1, 1], [], []>} : vector<64x16xbf16>, vector<16x64xbf16>, vector<64x64xf32> -> vector<64x64xf32>
    %144 = arith.truncf %143 : vector<64x64xf32> to vector<64x64xbf16>
    %c3_92 = arith.constant 3 : index
    %c0_93 = arith.constant 0 : index
    %c0_94 = arith.constant 0 : index
    %145 = vector.load %arg20[%c3_92, %c0_93, %c0_94] : memref<9x16x64xbf16, #tpu.memory_space<vmem>>, vector<1x16x64xbf16>
    %146 = vector.shape_cast %145 : vector<1x16x64xbf16> to vector<16x64xbf16>
    %cst_95 = arith.constant dense<0.000000e+00> : vector<64x64xf32>
    %147 = tpu.matmul %132, %146, %cst_95 {dimension_numbers = #tpu.dot_dimension_numbers<[1], [0], [0], [1], [0, 0, 1, 1], [], []>} : vector<64x16xbf16>, vector<16x64xbf16>, vector<64x64xf32> -> vector<64x64xf32>
    %148 = arith.truncf %147 : vector<64x64xf32> to vector<64x64xbf16>
    %c4_96 = arith.constant 4 : index
    %c0_97 = arith.constant 0 : index
    %c0_98 = arith.constant 0 : index
    %149 = vector.load %arg20[%c4_96, %c0_97, %c0_98] : memref<9x16x64xbf16, #tpu.memory_space<vmem>>, vector<1x16x64xbf16>
    %150 = vector.shape_cast %149 : vector<1x16x64xbf16> to vector<16x64xbf16>
    %cst_99 = arith.constant dense<0.000000e+00> : vector<64x64xf32>
    %151 = tpu.matmul %132, %150, %cst_99 {dimension_numbers = #tpu.dot_dimension_numbers<[1], [0], [0], [1], [0, 0, 1, 1], [], []>} : vector<64x16xbf16>, vector<16x64xbf16>, vector<64x64xf32> -> vector<64x64xf32>
    %152 = arith.truncf %151 : vector<64x64xf32> to vector<64x64xbf16>
    %c5_100 = arith.constant 5 : index
    %c0_101 = arith.constant 0 : index
    %c0_102 = arith.constant 0 : index
    %153 = vector.load %arg20[%c5_100, %c0_101, %c0_102] : memref<9x16x64xbf16, #tpu.memory_space<vmem>>, vector<1x16x64xbf16>
    %154 = vector.shape_cast %153 : vector<1x16x64xbf16> to vector<16x64xbf16>
    %cst_103 = arith.constant dense<0.000000e+00> : vector<64x64xf32>
    %155 = tpu.matmul %132, %154, %cst_103 {dimension_numbers = #tpu.dot_dimension_numbers<[1], [0], [0], [1], [0, 0, 1, 1], [], []>} : vector<64x16xbf16>, vector<16x64xbf16>, vector<64x64xf32> -> vector<64x64xf32>
    %156 = arith.truncf %155 : vector<64x64xf32> to vector<64x64xbf16>
    %c6_104 = arith.constant 6 : index
    %c0_105 = arith.constant 0 : index
    %c0_106 = arith.constant 0 : index
    %157 = vector.load %arg20[%c6_104, %c0_105, %c0_106] : memref<9x16x64xbf16, #tpu.memory_space<vmem>>, vector<1x16x64xbf16>
    %158 = vector.shape_cast %157 : vector<1x16x64xbf16> to vector<16x64xbf16>
    %cst_107 = arith.constant dense<0.000000e+00> : vector<64x64xf32>
    %159 = tpu.matmul %132, %158, %cst_107 {dimension_numbers = #tpu.dot_dimension_numbers<[1], [0], [0], [1], [0, 0, 1, 1], [], []>} : vector<64x16xbf16>, vector<16x64xbf16>, vector<64x64xf32> -> vector<64x64xf32>
    %160 = arith.truncf %159 : vector<64x64xf32> to vector<64x64xbf16>
    %c7_108 = arith.constant 7 : index
    %c0_109 = arith.constant 0 : index
    %c0_110 = arith.constant 0 : index
    %161 = vector.load %arg20[%c7_108, %c0_109, %c0_110] : memref<9x16x64xbf16, #tpu.memory_space<vmem>>, vector<1x16x64xbf16>
    %162 = vector.shape_cast %161 : vector<1x16x64xbf16> to vector<16x64xbf16>
    %cst_111 = arith.constant dense<0.000000e+00> : vector<64x64xf32>
    %163 = tpu.matmul %132, %162, %cst_111 {dimension_numbers = #tpu.dot_dimension_numbers<[1], [0], [0], [1], [0, 0, 1, 1], [], []>} : vector<64x16xbf16>, vector<16x64xbf16>, vector<64x64xf32> -> vector<64x64xf32>
    %164 = arith.truncf %163 : vector<64x64xf32> to vector<64x64xbf16>
    %c8_112 = arith.constant 8 : index
    %c0_113 = arith.constant 0 : index
    %c0_114 = arith.constant 0 : index
    %165 = vector.load %arg20[%c8_112, %c0_113, %c0_114] : memref<9x16x64xbf16, #tpu.memory_space<vmem>>, vector<1x16x64xbf16>
    %166 = vector.shape_cast %165 : vector<1x16x64xbf16> to vector<16x64xbf16>
    %cst_115 = arith.constant dense<0.000000e+00> : vector<64x64xf32>
    %167 = tpu.matmul %132, %166, %cst_115 {dimension_numbers = #tpu.dot_dimension_numbers<[1], [0], [0], [1], [0, 0, 1, 1], [], []>} : vector<64x16xbf16>, vector<16x64xbf16>, vector<64x64xf32> -> vector<64x64xf32>
    %168 = arith.truncf %167 : vector<64x64xf32> to vector<64x64xbf16>
    %c0_116 = arith.constant 0 : index
    %c0_117 = arith.constant 0 : index
    %169 = vector.load %arg16[%c0_116, %c0_117] : memref<16x288xbf16, #tpu.memory_space<vmem>>, vector<16x288xbf16>
    %170 = vector.extract_strided_slice %136 {offsets = [0, 0], sizes = [32, 64], strides = [1, 1]} : vector<64x64xbf16> to vector<32x64xbf16>
    %171 = vector.extract_strided_slice %140 {offsets = [0, 0], sizes = [32, 64], strides = [1, 1]} : vector<64x64xbf16> to vector<32x64xbf16>
    %172 = vector.extract_strided_slice %144 {offsets = [0, 0], sizes = [32, 64], strides = [1, 1]} : vector<64x64xbf16> to vector<32x64xbf16>
    %173 = vector.extract_strided_slice %148 {offsets = [0, 0], sizes = [32, 64], strides = [1, 1]} : vector<64x64xbf16> to vector<32x64xbf16>
    %174 = vector.extract_strided_slice %152 {offsets = [0, 0], sizes = [32, 64], strides = [1, 1]} : vector<64x64xbf16> to vector<32x64xbf16>
    %175 = vector.extract_strided_slice %156 {offsets = [0, 0], sizes = [32, 64], strides = [1, 1]} : vector<64x64xbf16> to vector<32x64xbf16>
    %176 = vector.extract_strided_slice %160 {offsets = [0, 0], sizes = [32, 64], strides = [1, 1]} : vector<64x64xbf16> to vector<32x64xbf16>
    %177 = vector.extract_strided_slice %164 {offsets = [0, 0], sizes = [32, 64], strides = [1, 1]} : vector<64x64xbf16> to vector<32x64xbf16>
    %178 = vector.extract_strided_slice %168 {offsets = [0, 0], sizes = [32, 64], strides = [1, 1]} : vector<64x64xbf16> to vector<32x64xbf16>
    %179 = tpu.concatenate %170, %171, %172, %173, %174, %175, %176, %177, %178 in 0 : vector<32x64xbf16>, vector<32x64xbf16>, vector<32x64xbf16>, vector<32x64xbf16>, vector<32x64xbf16>, vector<32x64xbf16>, vector<32x64xbf16>, vector<32x64xbf16>, vector<32x64xbf16> -> vector<288x64xbf16>
    %cst_118 = arith.constant dense<0.000000e+00> : vector<16x64xf32>
    %180 = tpu.matmul %169, %179, %cst_118 {dimension_numbers = #tpu.dot_dimension_numbers<[1], [0], [0], [1], [0, 0, 1, 1], [], []>} : vector<16x288xbf16>, vector<288x64xbf16>, vector<16x64xf32> -> vector<16x64xf32>
    %181 = vector.extract_strided_slice %136 {offsets = [32, 0], sizes = [32, 64], strides = [1, 1]} : vector<64x64xbf16> to vector<32x64xbf16>
    %182 = vector.extract_strided_slice %140 {offsets = [32, 0], sizes = [32, 64], strides = [1, 1]} : vector<64x64xbf16> to vector<32x64xbf16>
    %183 = vector.extract_strided_slice %144 {offsets = [32, 0], sizes = [32, 64], strides = [1, 1]} : vector<64x64xbf16> to vector<32x64xbf16>
    %184 = vector.extract_strided_slice %148 {offsets = [32, 0], sizes = [32, 64], strides = [1, 1]} : vector<64x64xbf16> to vector<32x64xbf16>
    %185 = vector.extract_strided_slice %152 {offsets = [32, 0], sizes = [32, 64], strides = [1, 1]} : vector<64x64xbf16> to vector<32x64xbf16>
    %186 = vector.extract_strided_slice %156 {offsets = [32, 0], sizes = [32, 64], strides = [1, 1]} : vector<64x64xbf16> to vector<32x64xbf16>
    %187 = vector.extract_strided_slice %160 {offsets = [32, 0], sizes = [32, 64], strides = [1, 1]} : vector<64x64xbf16> to vector<32x64xbf16>
    %188 = vector.extract_strided_slice %164 {offsets = [32, 0], sizes = [32, 64], strides = [1, 1]} : vector<64x64xbf16> to vector<32x64xbf16>
    %189 = vector.extract_strided_slice %168 {offsets = [32, 0], sizes = [32, 64], strides = [1, 1]} : vector<64x64xbf16> to vector<32x64xbf16>
    %190 = tpu.concatenate %181, %182, %183, %184, %185, %186, %187, %188, %189 in 0 : vector<32x64xbf16>, vector<32x64xbf16>, vector<32x64xbf16>, vector<32x64xbf16>, vector<32x64xbf16>, vector<32x64xbf16>, vector<32x64xbf16>, vector<32x64xbf16>, vector<32x64xbf16> -> vector<288x64xbf16>
    %cst_119 = arith.constant dense<0.000000e+00> : vector<16x64xf32>
    %191 = tpu.matmul %169, %190, %cst_119 {dimension_numbers = #tpu.dot_dimension_numbers<[1], [0], [0], [1], [0, 0, 1, 1], [], []>} : vector<16x288xbf16>, vector<288x64xbf16>, vector<16x64xf32> -> vector<16x64xf32>
    %192 = tpu.concatenate %180, %191 in 0 : vector<16x64xf32>, vector<16x64xf32> -> vector<32x64xf32>
    %193 = arith.mulf %123, %123 : vector<2x32xf32>
    %c0_120 = arith.constant 0 : index
    %c0_121 = arith.constant 0 : index
    %194 = vector.load %arg17[%c0_120, %c0_121] : memref<32x16xf32, #tpu.memory_space<vmem>>, vector<32x16xf32>
    %cst_122 = arith.constant dense<0.000000e+00> : vector<2x16xf32>
    %195 = tpu.matmul %193, %194, %cst_122 {dimension_numbers = #tpu.dot_dimension_numbers<[1], [0], [0], [1], [0, 0, 1, 1], [], []>} : vector<2x32xf32>, vector<32x16xf32>, vector<2x16xf32> -> vector<2x16xf32>
    %cst_123 = arith.constant 9.99999993E-9 : f32
    %196 = vector.broadcast %cst_123 : f32 to vector<2x16xf32>
    %197 = arith.addf %195, %196 : vector<2x16xf32>
    %198 = math.rsqrt %197 : vector<2x16xf32>
    %c0_124 = arith.constant 0 : index
    %c0_125 = arith.constant 0 : index
    %199 = vector.load %arg4[%c0_124, %c0_125] : memref<32x2xf32, #tpu.memory_space<vmem>>, vector<32x2xf32>
    %c0_126 = arith.constant 0 : index
    %c0_127 = arith.constant 0 : index
    %200 = vector.load %arg5[%c0_126, %c0_127] : memref<32x16xf32, #tpu.memory_space<vmem>>, vector<32x16xf32>
    %cst_128 = arith.constant dense<0.000000e+00> : vector<32x16xf32>
    %201 = tpu.matmul %199, %198, %cst_128 {dimension_numbers = #tpu.dot_dimension_numbers<[1], [0], [0], [1], [0, 0, 1, 1], [], []>} : vector<32x2xf32>, vector<2x16xf32>, vector<32x16xf32> -> vector<32x16xf32>
    %202 = arith.mulf %201, %200 : vector<32x16xf32>
    %cst_129 = arith.constant dense<0.000000e+00> : vector<32xf32>
    %203 = vector.multi_reduction <add>, %202, %cst_129 [1] : vector<32x16xf32> to vector<32xf32>
    %204 = vector.shape_cast %203 : vector<32xf32> to vector<32x1xf32>
    %205 = vector.broadcast %204 : vector<32x1xf32> to vector<32x64xf32>
    %206 = arith.mulf %192, %205 : vector<32x64xf32>
    %c0_130 = arith.constant 0 : index
    %c0_131 = arith.constant 0 : index
    %207 = vector.load %arg19[%c0_130, %c0_131] : memref<1x64xf32, #tpu.memory_space<vmem>>, vector<1x64xf32>
    %208 = vector.broadcast %207 : vector<1x64xf32> to vector<32x64xf32>
    %209 = arith.addf %206, %208 : vector<32x64xf32>
    %c0_132 = arith.constant 0 : index
    %c0_133 = arith.constant 0 : index
    %210 = vector.load %arg18[%c0_132, %c0_133] : memref<32x1xf32, #tpu.memory_space<vmem>>, vector<32x1xf32>
    %211 = vector.broadcast %210 : vector<32x1xf32> to vector<32x64xf32>
    %212 = arith.addf %209, %211 : vector<32x64xf32>
    %cst_134 = arith.constant 0.000000e+00 : f32
    %213 = vector.broadcast %cst_134 : f32 to vector<32x64xf32>
    %214 = arith.cmpf oge, %212, %213 : vector<32x64xf32>
    %cst_135 = arith.constant 2.000000e-01 : f32
    %215 = vector.broadcast %cst_135 : f32 to vector<32x64xf32>
    %216 = arith.mulf %215, %212 : vector<32x64xf32>
    %217 = arith.select %214, %212, %216 : vector<32x64xi1>, vector<32x64xf32>
    %cst_136 = arith.constant 1.41421354 : f32
    %218 = vector.broadcast %cst_136 : f32 to vector<32x64xf32>
    %219 = arith.mulf %217, %218 : vector<32x64xf32>
    %220 = vector.extract_strided_slice %5 {offsets = [0, 96], sizes = [2, 16], strides = [1, 1]} : vector<2x176xf32> to vector<2x16xf32>
    %c0_137 = arith.constant 0 : index
    %c0_138 = arith.constant 0 : index
    %221 = vector.load %arg4[%c0_137, %c0_138] : memref<32x2xf32, #tpu.memory_space<vmem>>, vector<32x2xf32>
    %c0_139 = arith.constant 0 : index
    %c0_140 = arith.constant 0 : index
    %222 = vector.load %arg5[%c0_139, %c0_140] : memref<32x16xf32, #tpu.memory_space<vmem>>, vector<32x16xf32>
    %cst_141 = arith.constant dense<0.000000e+00> : vector<32x16xf32>
    %223 = tpu.matmul %221, %220, %cst_141 {dimension_numbers = #tpu.dot_dimension_numbers<[1], [0], [0], [1], [0, 0, 1, 1], [], []>} : vector<32x2xf32>, vector<2x16xf32>, vector<32x16xf32> -> vector<32x16xf32>
    %224 = arith.mulf %223, %222 : vector<32x16xf32>
    %cst_142 = arith.constant dense<0.000000e+00> : vector<32xf32>
    %225 = vector.multi_reduction <add>, %224, %cst_142 [1] : vector<32x16xf32> to vector<32xf32>
    %226 = vector.shape_cast %225 : vector<32xf32> to vector<32x1xf32>
    %227 = vector.broadcast %226 : vector<32x1xf32> to vector<32x64xf32>
    %228 = arith.mulf %219, %227 : vector<32x64xf32>
    %229 = arith.truncf %228 : vector<32x64xf32> to vector<32x64xbf16>
    %c0_143 = arith.constant 0 : index
    %c0_144 = arith.constant 0 : index
    %c0_145 = arith.constant 0 : index
    %230 = vector.load %arg25[%c0_143, %c0_144, %c0_145] : memref<9x64x64xbf16, #tpu.memory_space<vmem>>, vector<1x64x64xbf16>
    %231 = vector.shape_cast %230 : vector<1x64x64xbf16> to vector<64x64xbf16>
    %cst_146 = arith.constant dense<0.000000e+00> : vector<32x64xf32>
    %232 = tpu.matmul %229, %231, %cst_146 {dimension_numbers = #tpu.dot_dimension_numbers<[1], [0], [0], [1], [0, 0, 1, 1], [], []>} : vector<32x64xbf16>, vector<64x64xbf16>, vector<32x64xf32> -> vector<32x64xf32>
    %233 = arith.truncf %232 : vector<32x64xf32> to vector<32x64xbf16>
    %c1_147 = arith.constant 1 : index
    %c0_148 = arith.constant 0 : index
    %c0_149 = arith.constant 0 : index
    %234 = vector.load %arg25[%c1_147, %c0_148, %c0_149] : memref<9x64x64xbf16, #tpu.memory_space<vmem>>, vector<1x64x64xbf16>
    %235 = vector.shape_cast %234 : vector<1x64x64xbf16> to vector<64x64xbf16>
    %cst_150 = arith.constant dense<0.000000e+00> : vector<32x64xf32>
    %236 = tpu.matmul %229, %235, %cst_150 {dimension_numbers = #tpu.dot_dimension_numbers<[1], [0], [0], [1], [0, 0, 1, 1], [], []>} : vector<32x64xbf16>, vector<64x64xbf16>, vector<32x64xf32> -> vector<32x64xf32>
    %237 = arith.truncf %236 : vector<32x64xf32> to vector<32x64xbf16>
    %c2_151 = arith.constant 2 : index
    %c0_152 = arith.constant 0 : index
    %c0_153 = arith.constant 0 : index
    %238 = vector.load %arg25[%c2_151, %c0_152, %c0_153] : memref<9x64x64xbf16, #tpu.memory_space<vmem>>, vector<1x64x64xbf16>
    %239 = vector.shape_cast %238 : vector<1x64x64xbf16> to vector<64x64xbf16>
    %cst_154 = arith.constant dense<0.000000e+00> : vector<32x64xf32>
    %240 = tpu.matmul %229, %239, %cst_154 {dimension_numbers = #tpu.dot_dimension_numbers<[1], [0], [0], [1], [0, 0, 1, 1], [], []>} : vector<32x64xbf16>, vector<64x64xbf16>, vector<32x64xf32> -> vector<32x64xf32>
    %241 = arith.truncf %240 : vector<32x64xf32> to vector<32x64xbf16>
    %c3_155 = arith.constant 3 : index
    %c0_156 = arith.constant 0 : index
    %c0_157 = arith.constant 0 : index
    %242 = vector.load %arg25[%c3_155, %c0_156, %c0_157] : memref<9x64x64xbf16, #tpu.memory_space<vmem>>, vector<1x64x64xbf16>
    %243 = vector.shape_cast %242 : vector<1x64x64xbf16> to vector<64x64xbf16>
    %cst_158 = arith.constant dense<0.000000e+00> : vector<32x64xf32>
    %244 = tpu.matmul %229, %243, %cst_158 {dimension_numbers = #tpu.dot_dimension_numbers<[1], [0], [0], [1], [0, 0, 1, 1], [], []>} : vector<32x64xbf16>, vector<64x64xbf16>, vector<32x64xf32> -> vector<32x64xf32>
    %245 = arith.truncf %244 : vector<32x64xf32> to vector<32x64xbf16>
    %c4_159 = arith.constant 4 : index
    %c0_160 = arith.constant 0 : index
    %c0_161 = arith.constant 0 : index
    %246 = vector.load %arg25[%c4_159, %c0_160, %c0_161] : memref<9x64x64xbf16, #tpu.memory_space<vmem>>, vector<1x64x64xbf16>
    %247 = vector.shape_cast %246 : vector<1x64x64xbf16> to vector<64x64xbf16>
    %cst_162 = arith.constant dense<0.000000e+00> : vector<32x64xf32>
    %248 = tpu.matmul %229, %247, %cst_162 {dimension_numbers = #tpu.dot_dimension_numbers<[1], [0], [0], [1], [0, 0, 1, 1], [], []>} : vector<32x64xbf16>, vector<64x64xbf16>, vector<32x64xf32> -> vector<32x64xf32>
    %249 = arith.truncf %248 : vector<32x64xf32> to vector<32x64xbf16>
    %c5_163 = arith.constant 5 : index
    %c0_164 = arith.constant 0 : index
    %c0_165 = arith.constant 0 : index
    %250 = vector.load %arg25[%c5_163, %c0_164, %c0_165] : memref<9x64x64xbf16, #tpu.memory_space<vmem>>, vector<1x64x64xbf16>
    %251 = vector.shape_cast %250 : vector<1x64x64xbf16> to vector<64x64xbf16>
    %cst_166 = arith.constant dense<0.000000e+00> : vector<32x64xf32>
    %252 = tpu.matmul %229, %251, %cst_166 {dimension_numbers = #tpu.dot_dimension_numbers<[1], [0], [0], [1], [0, 0, 1, 1], [], []>} : vector<32x64xbf16>, vector<64x64xbf16>, vector<32x64xf32> -> vector<32x64xf32>
    %253 = arith.truncf %252 : vector<32x64xf32> to vector<32x64xbf16>
    %c6_167 = arith.constant 6 : index
    %c0_168 = arith.constant 0 : index
    %c0_169 = arith.constant 0 : index
    %254 = vector.load %arg25[%c6_167, %c0_168, %c0_169] : memref<9x64x64xbf16, #tpu.memory_space<vmem>>, vector<1x64x64xbf16>
    %255 = vector.shape_cast %254 : vector<1x64x64xbf16> to vector<64x64xbf16>
    %cst_170 = arith.constant dense<0.000000e+00> : vector<32x64xf32>
    %256 = tpu.matmul %229, %255, %cst_170 {dimension_numbers = #tpu.dot_dimension_numbers<[1], [0], [0], [1], [0, 0, 1, 1], [], []>} : vector<32x64xbf16>, vector<64x64xbf16>, vector<32x64xf32> -> vector<32x64xf32>
    %257 = arith.truncf %256 : vector<32x64xf32> to vector<32x64xbf16>
    %c7_171 = arith.constant 7 : index
    %c0_172 = arith.constant 0 : index
    %c0_173 = arith.constant 0 : index
    %258 = vector.load %arg25[%c7_171, %c0_172, %c0_173] : memref<9x64x64xbf16, #tpu.memory_space<vmem>>, vector<1x64x64xbf16>
    %259 = vector.shape_cast %258 : vector<1x64x64xbf16> to vector<64x64xbf16>
    %cst_174 = arith.constant dense<0.000000e+00> : vector<32x64xf32>
    %260 = tpu.matmul %229, %259, %cst_174 {dimension_numbers = #tpu.dot_dimension_numbers<[1], [0], [0], [1], [0, 0, 1, 1], [], []>} : vector<32x64xbf16>, vector<64x64xbf16>, vector<32x64xf32> -> vector<32x64xf32>
    %261 = arith.truncf %260 : vector<32x64xf32> to vector<32x64xbf16>
    %c8_175 = arith.constant 8 : index
    %c0_176 = arith.constant 0 : index
    %c0_177 = arith.constant 0 : index
    %262 = vector.load %arg25[%c8_175, %c0_176, %c0_177] : memref<9x64x64xbf16, #tpu.memory_space<vmem>>, vector<1x64x64xbf16>
    %263 = vector.shape_cast %262 : vector<1x64x64xbf16> to vector<64x64xbf16>
    %cst_178 = arith.constant dense<0.000000e+00> : vector<32x64xf32>
    %264 = tpu.matmul %229, %263, %cst_178 {dimension_numbers = #tpu.dot_dimension_numbers<[1], [0], [0], [1], [0, 0, 1, 1], [], []>} : vector<32x64xbf16>, vector<64x64xbf16>, vector<32x64xf32> -> vector<32x64xf32>
    %265 = arith.truncf %264 : vector<32x64xf32> to vector<32x64xbf16>
    %c0_179 = arith.constant 0 : index
    %c0_180 = arith.constant 0 : index
    %266 = vector.load %arg21[%c0_179, %c0_180] : memref<16x144xbf16, #tpu.memory_space<vmem>>, vector<16x144xbf16>
    %267 = vector.extract_strided_slice %233 {offsets = [0, 0], sizes = [16, 64], strides = [1, 1]} : vector<32x64xbf16> to vector<16x64xbf16>
    %268 = vector.extract_strided_slice %237 {offsets = [0, 0], sizes = [16, 64], strides = [1, 1]} : vector<32x64xbf16> to vector<16x64xbf16>
    %269 = vector.extract_strided_slice %241 {offsets = [0, 0], sizes = [16, 64], strides = [1, 1]} : vector<32x64xbf16> to vector<16x64xbf16>
    %270 = vector.extract_strided_slice %245 {offsets = [0, 0], sizes = [16, 64], strides = [1, 1]} : vector<32x64xbf16> to vector<16x64xbf16>
    %271 = vector.extract_strided_slice %249 {offsets = [0, 0], sizes = [16, 64], strides = [1, 1]} : vector<32x64xbf16> to vector<16x64xbf16>
    %272 = vector.extract_strided_slice %253 {offsets = [0, 0], sizes = [16, 64], strides = [1, 1]} : vector<32x64xbf16> to vector<16x64xbf16>
    %273 = vector.extract_strided_slice %257 {offsets = [0, 0], sizes = [16, 64], strides = [1, 1]} : vector<32x64xbf16> to vector<16x64xbf16>
    %274 = vector.extract_strided_slice %261 {offsets = [0, 0], sizes = [16, 64], strides = [1, 1]} : vector<32x64xbf16> to vector<16x64xbf16>
    %275 = vector.extract_strided_slice %265 {offsets = [0, 0], sizes = [16, 64], strides = [1, 1]} : vector<32x64xbf16> to vector<16x64xbf16>
    %276 = tpu.concatenate %267, %268, %269, %270, %271, %272, %273, %274, %275 in 0 : vector<16x64xbf16>, vector<16x64xbf16>, vector<16x64xbf16>, vector<16x64xbf16>, vector<16x64xbf16>, vector<16x64xbf16>, vector<16x64xbf16>, vector<16x64xbf16>, vector<16x64xbf16> -> vector<144x64xbf16>
    %cst_181 = arith.constant dense<0.000000e+00> : vector<16x64xf32>
    %277 = tpu.matmul %266, %276, %cst_181 {dimension_numbers = #tpu.dot_dimension_numbers<[1], [0], [0], [1], [0, 0, 1, 1], [], []>} : vector<16x144xbf16>, vector<144x64xbf16>, vector<16x64xf32> -> vector<16x64xf32>
    %278 = vector.extract_strided_slice %233 {offsets = [16, 0], sizes = [16, 64], strides = [1, 1]} : vector<32x64xbf16> to vector<16x64xbf16>
    %279 = vector.extract_strided_slice %237 {offsets = [16, 0], sizes = [16, 64], strides = [1, 1]} : vector<32x64xbf16> to vector<16x64xbf16>
    %280 = vector.extract_strided_slice %241 {offsets = [16, 0], sizes = [16, 64], strides = [1, 1]} : vector<32x64xbf16> to vector<16x64xbf16>
    %281 = vector.extract_strided_slice %245 {offsets = [16, 0], sizes = [16, 64], strides = [1, 1]} : vector<32x64xbf16> to vector<16x64xbf16>
    %282 = vector.extract_strided_slice %249 {offsets = [16, 0], sizes = [16, 64], strides = [1, 1]} : vector<32x64xbf16> to vector<16x64xbf16>
    %283 = vector.extract_strided_slice %253 {offsets = [16, 0], sizes = [16, 64], strides = [1, 1]} : vector<32x64xbf16> to vector<16x64xbf16>
    %284 = vector.extract_strided_slice %257 {offsets = [16, 0], sizes = [16, 64], strides = [1, 1]} : vector<32x64xbf16> to vector<16x64xbf16>
    %285 = vector.extract_strided_slice %261 {offsets = [16, 0], sizes = [16, 64], strides = [1, 1]} : vector<32x64xbf16> to vector<16x64xbf16>
    %286 = vector.extract_strided_slice %265 {offsets = [16, 0], sizes = [16, 64], strides = [1, 1]} : vector<32x64xbf16> to vector<16x64xbf16>
    %287 = tpu.concatenate %278, %279, %280, %281, %282, %283, %284, %285, %286 in 0 : vector<16x64xbf16>, vector<16x64xbf16>, vector<16x64xbf16>, vector<16x64xbf16>, vector<16x64xbf16>, vector<16x64xbf16>, vector<16x64xbf16>, vector<16x64xbf16>, vector<16x64xbf16> -> vector<144x64xbf16>
    %cst_182 = arith.constant dense<0.000000e+00> : vector<16x64xf32>
    %288 = tpu.matmul %266, %287, %cst_182 {dimension_numbers = #tpu.dot_dimension_numbers<[1], [0], [0], [1], [0, 0, 1, 1], [], []>} : vector<16x144xbf16>, vector<144x64xbf16>, vector<16x64xf32> -> vector<16x64xf32>
    %289 = tpu.concatenate %277, %288 in 0 : vector<16x64xf32>, vector<16x64xf32> -> vector<32x64xf32>
    %290 = arith.mulf %220, %220 : vector<2x16xf32>
    %c0_183 = arith.constant 0 : index
    %c0_184 = arith.constant 0 : index
    %291 = vector.load %arg22[%c0_183, %c0_184] : memref<16x16xf32, #tpu.memory_space<vmem>>, vector<16x16xf32>
    %cst_185 = arith.constant dense<0.000000e+00> : vector<2x16xf32>
    %292 = tpu.matmul %290, %291, %cst_185 {dimension_numbers = #tpu.dot_dimension_numbers<[1], [0], [0], [1], [0, 0, 1, 1], [], []>} : vector<2x16xf32>, vector<16x16xf32>, vector<2x16xf32> -> vector<2x16xf32>
    %cst_186 = arith.constant 9.99999993E-9 : f32
    %293 = vector.broadcast %cst_186 : f32 to vector<2x16xf32>
    %294 = arith.addf %292, %293 : vector<2x16xf32>
    %295 = math.rsqrt %294 : vector<2x16xf32>
    %c0_187 = arith.constant 0 : index
    %c0_188 = arith.constant 0 : index
    %296 = vector.load %arg4[%c0_187, %c0_188] : memref<32x2xf32, #tpu.memory_space<vmem>>, vector<32x2xf32>
    %c0_189 = arith.constant 0 : index
    %c0_190 = arith.constant 0 : index
    %297 = vector.load %arg5[%c0_189, %c0_190] : memref<32x16xf32, #tpu.memory_space<vmem>>, vector<32x16xf32>
    %cst_191 = arith.constant dense<0.000000e+00> : vector<32x16xf32>
    %298 = tpu.matmul %296, %295, %cst_191 {dimension_numbers = #tpu.dot_dimension_numbers<[1], [0], [0], [1], [0, 0, 1, 1], [], []>} : vector<32x2xf32>, vector<2x16xf32>, vector<32x16xf32> -> vector<32x16xf32>
    %299 = arith.mulf %298, %297 : vector<32x16xf32>
    %cst_192 = arith.constant dense<0.000000e+00> : vector<32xf32>
    %300 = vector.multi_reduction <add>, %299, %cst_192 [1] : vector<32x16xf32> to vector<32xf32>
    %301 = vector.shape_cast %300 : vector<32xf32> to vector<32x1xf32>
    %302 = vector.broadcast %301 : vector<32x1xf32> to vector<32x64xf32>
    %303 = arith.mulf %289, %302 : vector<32x64xf32>
    %c0_193 = arith.constant 0 : index
    %c0_194 = arith.constant 0 : index
    %304 = vector.load %arg24[%c0_193, %c0_194] : memref<1x64xf32, #tpu.memory_space<vmem>>, vector<1x64xf32>
    %305 = vector.broadcast %304 : vector<1x64xf32> to vector<32x64xf32>
    %306 = arith.addf %303, %305 : vector<32x64xf32>
    %c0_195 = arith.constant 0 : index
    %c0_196 = arith.constant 0 : index
    %307 = vector.load %arg23[%c0_195, %c0_196] : memref<32x1xf32, #tpu.memory_space<vmem>>, vector<32x1xf32>
    %308 = vector.broadcast %307 : vector<32x1xf32> to vector<32x64xf32>
    %309 = arith.addf %306, %308 : vector<32x64xf32>
    %cst_197 = arith.constant 0.000000e+00 : f32
    %310 = vector.broadcast %cst_197 : f32 to vector<32x64xf32>
    %311 = arith.cmpf oge, %309, %310 : vector<32x64xf32>
    %cst_198 = arith.constant 2.000000e-01 : f32
    %312 = vector.broadcast %cst_198 : f32 to vector<32x64xf32>
    %313 = arith.mulf %312, %309 : vector<32x64xf32>
    %314 = arith.select %311, %309, %313 : vector<32x64xi1>, vector<32x64xf32>
    %cst_199 = arith.constant 1.41421354 : f32
    %315 = vector.broadcast %cst_199 : f32 to vector<32x64xf32>
    %316 = arith.mulf %314, %315 : vector<32x64xf32>
    %317 = vector.extract_strided_slice %5 {offsets = [0, 112], sizes = [2, 16], strides = [1, 1]} : vector<2x176xf32> to vector<2x16xf32>
    %c0_200 = arith.constant 0 : index
    %c0_201 = arith.constant 0 : index
    %318 = vector.load %arg4[%c0_200, %c0_201] : memref<32x2xf32, #tpu.memory_space<vmem>>, vector<32x2xf32>
    %c0_202 = arith.constant 0 : index
    %c0_203 = arith.constant 0 : index
    %319 = vector.load %arg5[%c0_202, %c0_203] : memref<32x16xf32, #tpu.memory_space<vmem>>, vector<32x16xf32>
    %cst_204 = arith.constant dense<0.000000e+00> : vector<32x16xf32>
    %320 = tpu.matmul %318, %317, %cst_204 {dimension_numbers = #tpu.dot_dimension_numbers<[1], [0], [0], [1], [0, 0, 1, 1], [], []>} : vector<32x2xf32>, vector<2x16xf32>, vector<32x16xf32> -> vector<32x16xf32>
    %321 = arith.mulf %320, %319 : vector<32x16xf32>
    %cst_205 = arith.constant dense<0.000000e+00> : vector<32xf32>
    %322 = vector.multi_reduction <add>, %321, %cst_205 [1] : vector<32x16xf32> to vector<32xf32>
    %323 = vector.shape_cast %322 : vector<32xf32> to vector<32x1xf32>
    %324 = vector.broadcast %323 : vector<32x1xf32> to vector<32x64xf32>
    %325 = arith.mulf %316, %324 : vector<32x64xf32>
    %326 = arith.truncf %325 : vector<32x64xf32> to vector<32x64xbf16>
    %c0_206 = arith.constant 0 : index
    %c0_207 = arith.constant 0 : index
    %327 = vector.load %arg26[%c0_206, %c0_207] : memref<3x16xbf16, #tpu.memory_space<vmem>>, vector<3x16xbf16>
    %328 = vector.extract_strided_slice %326 {offsets = [0, 0], sizes = [16, 64], strides = [1, 1]} : vector<32x64xbf16> to vector<16x64xbf16>
    %cst_208 = arith.constant dense<0.000000e+00> : vector<3x64xf32>
    %329 = tpu.matmul %327, %328, %cst_208 {dimension_numbers = #tpu.dot_dimension_numbers<[1], [0], [0], [1], [0, 0, 1, 1], [], []>} : vector<3x16xbf16>, vector<16x64xbf16>, vector<3x64xf32> -> vector<3x64xf32>
    %330 = vector.extract_strided_slice %326 {offsets = [16, 0], sizes = [16, 64], strides = [1, 1]} : vector<32x64xbf16> to vector<16x64xbf16>
    %cst_209 = arith.constant dense<0.000000e+00> : vector<3x64xf32>
    %331 = tpu.matmul %327, %330, %cst_209 {dimension_numbers = #tpu.dot_dimension_numbers<[1], [0], [0], [1], [0, 0, 1, 1], [], []>} : vector<3x16xbf16>, vector<16x64xbf16>, vector<3x64xf32> -> vector<3x64xf32>
    %332 = tpu.concatenate %329, %331 in 0 : vector<3x64xf32>, vector<3x64xf32> -> vector<6x64xf32>
    %c0_210 = arith.constant 0 : index
    %c0_211 = arith.constant 0 : index
    %333 = vector.load %arg27[%c0_210, %c0_211] : memref<6x1xf32, #tpu.memory_space<vmem>>, vector<6x1xf32>
    %334 = vector.broadcast %333 : vector<6x1xf32> to vector<6x64xf32>
    %335 = arith.addf %332, %334 : vector<6x64xf32>
    %336 = arith.truncf %122 : vector<6x16xf32> to vector<6x16xbf16>
    %c0_212 = arith.constant 0 : index
    %c0_213 = arith.constant 0 : index
    %337 = vector.load %arg28[%c0_212, %c0_213] : memref<16x64xbf16, #tpu.memory_space<vmem>>, vector<16x64xbf16>
    %cst_214 = arith.constant dense<0.000000e+00> : vector<6x64xf32>
    %338 = tpu.matmul %336, %337, %cst_214 {dimension_numbers = #tpu.dot_dimension_numbers<[1], [0], [0], [1], [0, 0, 1, 1], [], []>} : vector<6x16xbf16>, vector<16x64xbf16>, vector<6x64xf32> -> vector<6x64xf32>
    %339 = arith.addf %335, %338 : vector<6x64xf32>
    %340 = vector.extract_strided_slice %5 {offsets = [0, 128], sizes = [2, 16], strides = [1, 1]} : vector<2x176xf32> to vector<2x16xf32>
    %c0_215 = arith.constant 0 : index
    %c0_216 = arith.constant 0 : index
    %341 = vector.load %arg4[%c0_215, %c0_216] : memref<32x2xf32, #tpu.memory_space<vmem>>, vector<32x2xf32>
    %c0_217 = arith.constant 0 : index
    %c0_218 = arith.constant 0 : index
    %342 = vector.load %arg5[%c0_217, %c0_218] : memref<32x16xf32, #tpu.memory_space<vmem>>, vector<32x16xf32>
    %cst_219 = arith.constant dense<0.000000e+00> : vector<32x16xf32>
    %343 = tpu.matmul %341, %340, %cst_219 {dimension_numbers = #tpu.dot_dimension_numbers<[1], [0], [0], [1], [0, 0, 1, 1], [], []>} : vector<32x2xf32>, vector<2x16xf32>, vector<32x16xf32> -> vector<32x16xf32>
    %344 = arith.mulf %343, %342 : vector<32x16xf32>
    %cst_220 = arith.constant dense<0.000000e+00> : vector<32xf32>
    %345 = vector.multi_reduction <add>, %344, %cst_220 [1] : vector<32x16xf32> to vector<32xf32>
    %346 = vector.shape_cast %345 : vector<32xf32> to vector<32x1xf32>
    %347 = vector.broadcast %346 : vector<32x1xf32> to vector<32x64xf32>
    %348 = arith.mulf %316, %347 : vector<32x64xf32>
    %349 = arith.truncf %348 : vector<32x64xf32> to vector<32x64xbf16>
    %c0_221 = arith.constant 0 : index
    %c0_222 = arith.constant 0 : index
    %c0_223 = arith.constant 0 : index
    %350 = vector.load %arg33[%c0_221, %c0_222, %c0_223] : memref<9x64x256xbf16, #tpu.memory_space<vmem>>, vector<1x64x256xbf16>
    %351 = vector.shape_cast %350 : vector<1x64x256xbf16> to vector<64x256xbf16>
    %cst_224 = arith.constant dense<0.000000e+00> : vector<32x256xf32>
    %352 = tpu.matmul %349, %351, %cst_224 {dimension_numbers = #tpu.dot_dimension_numbers<[1], [0], [0], [1], [0, 0, 1, 1], [], []>} : vector<32x64xbf16>, vector<64x256xbf16>, vector<32x256xf32> -> vector<32x256xf32>
    %353 = arith.truncf %352 : vector<32x256xf32> to vector<32x256xbf16>
    %c1_225 = arith.constant 1 : index
    %c0_226 = arith.constant 0 : index
    %c0_227 = arith.constant 0 : index
    %354 = vector.load %arg33[%c1_225, %c0_226, %c0_227] : memref<9x64x256xbf16, #tpu.memory_space<vmem>>, vector<1x64x256xbf16>
    %355 = vector.shape_cast %354 : vector<1x64x256xbf16> to vector<64x256xbf16>
    %cst_228 = arith.constant dense<0.000000e+00> : vector<32x256xf32>
    %356 = tpu.matmul %349, %355, %cst_228 {dimension_numbers = #tpu.dot_dimension_numbers<[1], [0], [0], [1], [0, 0, 1, 1], [], []>} : vector<32x64xbf16>, vector<64x256xbf16>, vector<32x256xf32> -> vector<32x256xf32>
    %357 = arith.truncf %356 : vector<32x256xf32> to vector<32x256xbf16>
    %c2_229 = arith.constant 2 : index
    %c0_230 = arith.constant 0 : index
    %c0_231 = arith.constant 0 : index
    %358 = vector.load %arg33[%c2_229, %c0_230, %c0_231] : memref<9x64x256xbf16, #tpu.memory_space<vmem>>, vector<1x64x256xbf16>
    %359 = vector.shape_cast %358 : vector<1x64x256xbf16> to vector<64x256xbf16>
    %cst_232 = arith.constant dense<0.000000e+00> : vector<32x256xf32>
    %360 = tpu.matmul %349, %359, %cst_232 {dimension_numbers = #tpu.dot_dimension_numbers<[1], [0], [0], [1], [0, 0, 1, 1], [], []>} : vector<32x64xbf16>, vector<64x256xbf16>, vector<32x256xf32> -> vector<32x256xf32>
    %361 = arith.truncf %360 : vector<32x256xf32> to vector<32x256xbf16>
    %c3_233 = arith.constant 3 : index
    %c0_234 = arith.constant 0 : index
    %c0_235 = arith.constant 0 : index
    %362 = vector.load %arg33[%c3_233, %c0_234, %c0_235] : memref<9x64x256xbf16, #tpu.memory_space<vmem>>, vector<1x64x256xbf16>
    %363 = vector.shape_cast %362 : vector<1x64x256xbf16> to vector<64x256xbf16>
    %cst_236 = arith.constant dense<0.000000e+00> : vector<32x256xf32>
    %364 = tpu.matmul %349, %363, %cst_236 {dimension_numbers = #tpu.dot_dimension_numbers<[1], [0], [0], [1], [0, 0, 1, 1], [], []>} : vector<32x64xbf16>, vector<64x256xbf16>, vector<32x256xf32> -> vector<32x256xf32>
    %365 = arith.truncf %364 : vector<32x256xf32> to vector<32x256xbf16>
    %c4_237 = arith.constant 4 : index
    %c0_238 = arith.constant 0 : index
    %c0_239 = arith.constant 0 : index
    %366 = vector.load %arg33[%c4_237, %c0_238, %c0_239] : memref<9x64x256xbf16, #tpu.memory_space<vmem>>, vector<1x64x256xbf16>
    %367 = vector.shape_cast %366 : vector<1x64x256xbf16> to vector<64x256xbf16>
    %cst_240 = arith.constant dense<0.000000e+00> : vector<32x256xf32>
    %368 = tpu.matmul %349, %367, %cst_240 {dimension_numbers = #tpu.dot_dimension_numbers<[1], [0], [0], [1], [0, 0, 1, 1], [], []>} : vector<32x64xbf16>, vector<64x256xbf16>, vector<32x256xf32> -> vector<32x256xf32>
    %369 = arith.truncf %368 : vector<32x256xf32> to vector<32x256xbf16>
    %c5_241 = arith.constant 5 : index
    %c0_242 = arith.constant 0 : index
    %c0_243 = arith.constant 0 : index
    %370 = vector.load %arg33[%c5_241, %c0_242, %c0_243] : memref<9x64x256xbf16, #tpu.memory_space<vmem>>, vector<1x64x256xbf16>
    %371 = vector.shape_cast %370 : vector<1x64x256xbf16> to vector<64x256xbf16>
    %cst_244 = arith.constant dense<0.000000e+00> : vector<32x256xf32>
    %372 = tpu.matmul %349, %371, %cst_244 {dimension_numbers = #tpu.dot_dimension_numbers<[1], [0], [0], [1], [0, 0, 1, 1], [], []>} : vector<32x64xbf16>, vector<64x256xbf16>, vector<32x256xf32> -> vector<32x256xf32>
    %373 = arith.truncf %372 : vector<32x256xf32> to vector<32x256xbf16>
    %c6_245 = arith.constant 6 : index
    %c0_246 = arith.constant 0 : index
    %c0_247 = arith.constant 0 : index
    %374 = vector.load %arg33[%c6_245, %c0_246, %c0_247] : memref<9x64x256xbf16, #tpu.memory_space<vmem>>, vector<1x64x256xbf16>
    %375 = vector.shape_cast %374 : vector<1x64x256xbf16> to vector<64x256xbf16>
    %cst_248 = arith.constant dense<0.000000e+00> : vector<32x256xf32>
    %376 = tpu.matmul %349, %375, %cst_248 {dimension_numbers = #tpu.dot_dimension_numbers<[1], [0], [0], [1], [0, 0, 1, 1], [], []>} : vector<32x64xbf16>, vector<64x256xbf16>, vector<32x256xf32> -> vector<32x256xf32>
    %377 = arith.truncf %376 : vector<32x256xf32> to vector<32x256xbf16>
    %c7_249 = arith.constant 7 : index
    %c0_250 = arith.constant 0 : index
    %c0_251 = arith.constant 0 : index
    %378 = vector.load %arg33[%c7_249, %c0_250, %c0_251] : memref<9x64x256xbf16, #tpu.memory_space<vmem>>, vector<1x64x256xbf16>
    %379 = vector.shape_cast %378 : vector<1x64x256xbf16> to vector<64x256xbf16>
    %cst_252 = arith.constant dense<0.000000e+00> : vector<32x256xf32>
    %380 = tpu.matmul %349, %379, %cst_252 {dimension_numbers = #tpu.dot_dimension_numbers<[1], [0], [0], [1], [0, 0, 1, 1], [], []>} : vector<32x64xbf16>, vector<64x256xbf16>, vector<32x256xf32> -> vector<32x256xf32>
    %381 = arith.truncf %380 : vector<32x256xf32> to vector<32x256xbf16>
    %c8_253 = arith.constant 8 : index
    %c0_254 = arith.constant 0 : index
    %c0_255 = arith.constant 0 : index
    %382 = vector.load %arg33[%c8_253, %c0_254, %c0_255] : memref<9x64x256xbf16, #tpu.memory_space<vmem>>, vector<1x64x256xbf16>
    %383 = vector.shape_cast %382 : vector<1x64x256xbf16> to vector<64x256xbf16>
    %cst_256 = arith.constant dense<0.000000e+00> : vector<32x256xf32>
    %384 = tpu.matmul %349, %383, %cst_256 {dimension_numbers = #tpu.dot_dimension_numbers<[1], [0], [0], [1], [0, 0, 1, 1], [], []>} : vector<32x64xbf16>, vector<64x256xbf16>, vector<32x256xf32> -> vector<32x256xf32>
    %385 = arith.truncf %384 : vector<32x256xf32> to vector<32x256xbf16>
    %c0_257 = arith.constant 0 : index
    %c0_258 = arith.constant 0 : index
    %386 = vector.load %arg29[%c0_257, %c0_258] : memref<16x144xbf16, #tpu.memory_space<vmem>>, vector<16x144xbf16>
    %387 = vector.extract_strided_slice %353 {offsets = [0, 0], sizes = [16, 256], strides = [1, 1]} : vector<32x256xbf16> to vector<16x256xbf16>
    %388 = vector.extract_strided_slice %357 {offsets = [0, 0], sizes = [16, 256], strides = [1, 1]} : vector<32x256xbf16> to vector<16x256xbf16>
    %389 = vector.extract_strided_slice %361 {offsets = [0, 0], sizes = [16, 256], strides = [1, 1]} : vector<32x256xbf16> to vector<16x256xbf16>
    %390 = vector.extract_strided_slice %365 {offsets = [0, 0], sizes = [16, 256], strides = [1, 1]} : vector<32x256xbf16> to vector<16x256xbf16>
    %391 = vector.extract_strided_slice %369 {offsets = [0, 0], sizes = [16, 256], strides = [1, 1]} : vector<32x256xbf16> to vector<16x256xbf16>
    %392 = vector.extract_strided_slice %373 {offsets = [0, 0], sizes = [16, 256], strides = [1, 1]} : vector<32x256xbf16> to vector<16x256xbf16>
    %393 = vector.extract_strided_slice %377 {offsets = [0, 0], sizes = [16, 256], strides = [1, 1]} : vector<32x256xbf16> to vector<16x256xbf16>
    %394 = vector.extract_strided_slice %381 {offsets = [0, 0], sizes = [16, 256], strides = [1, 1]} : vector<32x256xbf16> to vector<16x256xbf16>
    %395 = vector.extract_strided_slice %385 {offsets = [0, 0], sizes = [16, 256], strides = [1, 1]} : vector<32x256xbf16> to vector<16x256xbf16>
    %396 = tpu.concatenate %387, %388, %389, %390, %391, %392, %393, %394, %395 in 0 : vector<16x256xbf16>, vector<16x256xbf16>, vector<16x256xbf16>, vector<16x256xbf16>, vector<16x256xbf16>, vector<16x256xbf16>, vector<16x256xbf16>, vector<16x256xbf16>, vector<16x256xbf16> -> vector<144x256xbf16>
    %cst_259 = arith.constant dense<0.000000e+00> : vector<16x256xf32>
    %397 = tpu.matmul %386, %396, %cst_259 {dimension_numbers = #tpu.dot_dimension_numbers<[1], [0], [0], [1], [0, 0, 1, 1], [], []>} : vector<16x144xbf16>, vector<144x256xbf16>, vector<16x256xf32> -> vector<16x256xf32>
    %398 = vector.extract_strided_slice %353 {offsets = [16, 0], sizes = [16, 256], strides = [1, 1]} : vector<32x256xbf16> to vector<16x256xbf16>
    %399 = vector.extract_strided_slice %357 {offsets = [16, 0], sizes = [16, 256], strides = [1, 1]} : vector<32x256xbf16> to vector<16x256xbf16>
    %400 = vector.extract_strided_slice %361 {offsets = [16, 0], sizes = [16, 256], strides = [1, 1]} : vector<32x256xbf16> to vector<16x256xbf16>
    %401 = vector.extract_strided_slice %365 {offsets = [16, 0], sizes = [16, 256], strides = [1, 1]} : vector<32x256xbf16> to vector<16x256xbf16>
    %402 = vector.extract_strided_slice %369 {offsets = [16, 0], sizes = [16, 256], strides = [1, 1]} : vector<32x256xbf16> to vector<16x256xbf16>
    %403 = vector.extract_strided_slice %373 {offsets = [16, 0], sizes = [16, 256], strides = [1, 1]} : vector<32x256xbf16> to vector<16x256xbf16>
    %404 = vector.extract_strided_slice %377 {offsets = [16, 0], sizes = [16, 256], strides = [1, 1]} : vector<32x256xbf16> to vector<16x256xbf16>
    %405 = vector.extract_strided_slice %381 {offsets = [16, 0], sizes = [16, 256], strides = [1, 1]} : vector<32x256xbf16> to vector<16x256xbf16>
    %406 = vector.extract_strided_slice %385 {offsets = [16, 0], sizes = [16, 256], strides = [1, 1]} : vector<32x256xbf16> to vector<16x256xbf16>
    %407 = tpu.concatenate %398, %399, %400, %401, %402, %403, %404, %405, %406 in 0 : vector<16x256xbf16>, vector<16x256xbf16>, vector<16x256xbf16>, vector<16x256xbf16>, vector<16x256xbf16>, vector<16x256xbf16>, vector<16x256xbf16>, vector<16x256xbf16>, vector<16x256xbf16> -> vector<144x256xbf16>
    %cst_260 = arith.constant dense<0.000000e+00> : vector<16x256xf32>
    %408 = tpu.matmul %386, %407, %cst_260 {dimension_numbers = #tpu.dot_dimension_numbers<[1], [0], [0], [1], [0, 0, 1, 1], [], []>} : vector<16x144xbf16>, vector<144x256xbf16>, vector<16x256xf32> -> vector<16x256xf32>
    %409 = tpu.concatenate %397, %408 in 0 : vector<16x256xf32>, vector<16x256xf32> -> vector<32x256xf32>
    %410 = arith.mulf %340, %340 : vector<2x16xf32>
    %c0_261 = arith.constant 0 : index
    %c0_262 = arith.constant 0 : index
    %411 = vector.load %arg30[%c0_261, %c0_262] : memref<16x16xf32, #tpu.memory_space<vmem>>, vector<16x16xf32>
    %cst_263 = arith.constant dense<0.000000e+00> : vector<2x16xf32>
    %412 = tpu.matmul %410, %411, %cst_263 {dimension_numbers = #tpu.dot_dimension_numbers<[1], [0], [0], [1], [0, 0, 1, 1], [], []>} : vector<2x16xf32>, vector<16x16xf32>, vector<2x16xf32> -> vector<2x16xf32>
    %cst_264 = arith.constant 9.99999993E-9 : f32
    %413 = vector.broadcast %cst_264 : f32 to vector<2x16xf32>
    %414 = arith.addf %412, %413 : vector<2x16xf32>
    %415 = math.rsqrt %414 : vector<2x16xf32>
    %c0_265 = arith.constant 0 : index
    %c0_266 = arith.constant 0 : index
    %416 = vector.load %arg4[%c0_265, %c0_266] : memref<32x2xf32, #tpu.memory_space<vmem>>, vector<32x2xf32>
    %c0_267 = arith.constant 0 : index
    %c0_268 = arith.constant 0 : index
    %417 = vector.load %arg5[%c0_267, %c0_268] : memref<32x16xf32, #tpu.memory_space<vmem>>, vector<32x16xf32>
    %cst_269 = arith.constant dense<0.000000e+00> : vector<32x16xf32>
    %418 = tpu.matmul %416, %415, %cst_269 {dimension_numbers = #tpu.dot_dimension_numbers<[1], [0], [0], [1], [0, 0, 1, 1], [], []>} : vector<32x2xf32>, vector<2x16xf32>, vector<32x16xf32> -> vector<32x16xf32>
    %419 = arith.mulf %418, %417 : vector<32x16xf32>
    %cst_270 = arith.constant dense<0.000000e+00> : vector<32xf32>
    %420 = vector.multi_reduction <add>, %419, %cst_270 [1] : vector<32x16xf32> to vector<32xf32>
    %421 = vector.shape_cast %420 : vector<32xf32> to vector<32x1xf32>
    %422 = vector.broadcast %421 : vector<32x1xf32> to vector<32x256xf32>
    %423 = arith.mulf %409, %422 : vector<32x256xf32>
    %c0_271 = arith.constant 0 : index
    %c0_272 = arith.constant 0 : index
    %424 = vector.load %arg32[%c0_271, %c0_272] : memref<1x256xf32, #tpu.memory_space<vmem>>, vector<1x256xf32>
    %425 = vector.broadcast %424 : vector<1x256xf32> to vector<32x256xf32>
    %426 = arith.addf %423, %425 : vector<32x256xf32>
    %c0_273 = arith.constant 0 : index
    %c0_274 = arith.constant 0 : index
    %427 = vector.load %arg31[%c0_273, %c0_274] : memref<32x1xf32, #tpu.memory_space<vmem>>, vector<32x1xf32>
    %428 = vector.broadcast %427 : vector<32x1xf32> to vector<32x256xf32>
    %429 = arith.addf %426, %428 : vector<32x256xf32>
    %cst_275 = arith.constant 0.000000e+00 : f32
    %430 = vector.broadcast %cst_275 : f32 to vector<32x256xf32>
    %431 = arith.cmpf oge, %429, %430 : vector<32x256xf32>
    %cst_276 = arith.constant 2.000000e-01 : f32
    %432 = vector.broadcast %cst_276 : f32 to vector<32x256xf32>
    %433 = arith.mulf %432, %429 : vector<32x256xf32>
    %434 = arith.select %431, %429, %433 : vector<32x256xi1>, vector<32x256xf32>
    %cst_277 = arith.constant 1.41421354 : f32
    %435 = vector.broadcast %cst_277 : f32 to vector<32x256xf32>
    %436 = arith.mulf %434, %435 : vector<32x256xf32>
    %437 = vector.extract_strided_slice %5 {offsets = [0, 144], sizes = [2, 16], strides = [1, 1]} : vector<2x176xf32> to vector<2x16xf32>
    %c0_278 = arith.constant 0 : index
    %c0_279 = arith.constant 0 : index
    %438 = vector.load %arg4[%c0_278, %c0_279] : memref<32x2xf32, #tpu.memory_space<vmem>>, vector<32x2xf32>
    %c0_280 = arith.constant 0 : index
    %c0_281 = arith.constant 0 : index
    %439 = vector.load %arg5[%c0_280, %c0_281] : memref<32x16xf32, #tpu.memory_space<vmem>>, vector<32x16xf32>
    %cst_282 = arith.constant dense<0.000000e+00> : vector<32x16xf32>
    %440 = tpu.matmul %438, %437, %cst_282 {dimension_numbers = #tpu.dot_dimension_numbers<[1], [0], [0], [1], [0, 0, 1, 1], [], []>} : vector<32x2xf32>, vector<2x16xf32>, vector<32x16xf32> -> vector<32x16xf32>
    %441 = arith.mulf %440, %439 : vector<32x16xf32>
    %cst_283 = arith.constant dense<0.000000e+00> : vector<32xf32>
    %442 = vector.multi_reduction <add>, %441, %cst_283 [1] : vector<32x16xf32> to vector<32xf32>
    %443 = vector.shape_cast %442 : vector<32xf32> to vector<32x1xf32>
    %444 = vector.broadcast %443 : vector<32x1xf32> to vector<32x256xf32>
    %445 = arith.mulf %436, %444 : vector<32x256xf32>
    %c17_i32 = arith.constant 17 : i32
    %446 = tpu.dynamic_rotate %445 by %c17_i32 dim 1 : vector<32x256xf32>, i32 -> vector<32x256xf32>
    %c0_284 = arith.constant 0 : index
    %c0_285 = arith.constant 0 : index
    %c0_286 = arith.constant 0 : index
    %447 = vector.load %arg38[%c0_284, %c0_285, %c0_286] : memref<9x1x256xf32, #tpu.memory_space<vmem>>, vector<1x1x256xf32>
    %448 = vector.shape_cast %447 : vector<1x1x256xf32> to vector<1x256xf32>
    %449 = vector.broadcast %448 : vector<1x256xf32> to vector<32x256xf32>
    %450 = arith.mulf %446, %449 : vector<32x256xf32>
    %451 = arith.truncf %450 : vector<32x256xf32> to vector<32x256xbf16>
    %c16_i32 = arith.constant 16 : i32
    %452 = tpu.dynamic_rotate %445 by %c16_i32 dim 1 : vector<32x256xf32>, i32 -> vector<32x256xf32>
    %c1_287 = arith.constant 1 : index
    %c0_288 = arith.constant 0 : index
    %c0_289 = arith.constant 0 : index
    %453 = vector.load %arg38[%c1_287, %c0_288, %c0_289] : memref<9x1x256xf32, #tpu.memory_space<vmem>>, vector<1x1x256xf32>
    %454 = vector.shape_cast %453 : vector<1x1x256xf32> to vector<1x256xf32>
    %455 = vector.broadcast %454 : vector<1x256xf32> to vector<32x256xf32>
    %456 = arith.mulf %452, %455 : vector<32x256xf32>
    %457 = arith.truncf %456 : vector<32x256xf32> to vector<32x256xbf16>
    %c15_i32 = arith.constant 15 : i32
    %458 = tpu.dynamic_rotate %445 by %c15_i32 dim 1 : vector<32x256xf32>, i32 -> vector<32x256xf32>
    %c2_290 = arith.constant 2 : index
    %c0_291 = arith.constant 0 : index
    %c0_292 = arith.constant 0 : index
    %459 = vector.load %arg38[%c2_290, %c0_291, %c0_292] : memref<9x1x256xf32, #tpu.memory_space<vmem>>, vector<1x1x256xf32>
    %460 = vector.shape_cast %459 : vector<1x1x256xf32> to vector<1x256xf32>
    %461 = vector.broadcast %460 : vector<1x256xf32> to vector<32x256xf32>
    %462 = arith.mulf %458, %461 : vector<32x256xf32>
    %463 = arith.truncf %462 : vector<32x256xf32> to vector<32x256xbf16>
    %c1_i32 = arith.constant 1 : i32
    %464 = tpu.dynamic_rotate %445 by %c1_i32 dim 1 : vector<32x256xf32>, i32 -> vector<32x256xf32>
    %c3_293 = arith.constant 3 : index
    %c0_294 = arith.constant 0 : index
    %c0_295 = arith.constant 0 : index
    %465 = vector.load %arg38[%c3_293, %c0_294, %c0_295] : memref<9x1x256xf32, #tpu.memory_space<vmem>>, vector<1x1x256xf32>
    %466 = vector.shape_cast %465 : vector<1x1x256xf32> to vector<1x256xf32>
    %467 = vector.broadcast %466 : vector<1x256xf32> to vector<32x256xf32>
    %468 = arith.mulf %464, %467 : vector<32x256xf32>
    %469 = arith.truncf %468 : vector<32x256xf32> to vector<32x256xbf16>
    %c4_296 = arith.constant 4 : index
    %c0_297 = arith.constant 0 : index
    %c0_298 = arith.constant 0 : index
    %470 = vector.load %arg38[%c4_296, %c0_297, %c0_298] : memref<9x1x256xf32, #tpu.memory_space<vmem>>, vector<1x1x256xf32>
    %471 = vector.shape_cast %470 : vector<1x1x256xf32> to vector<1x256xf32>
    %472 = vector.broadcast %471 : vector<1x256xf32> to vector<32x256xf32>
    %473 = arith.mulf %445, %472 : vector<32x256xf32>
    %474 = arith.truncf %473 : vector<32x256xf32> to vector<32x256xbf16>
    %c255_i32 = arith.constant 255 : i32
    %475 = tpu.dynamic_rotate %445 by %c255_i32 dim 1 : vector<32x256xf32>, i32 -> vector<32x256xf32>
    %c5_299 = arith.constant 5 : index
    %c0_300 = arith.constant 0 : index
    %c0_301 = arith.constant 0 : index
    %476 = vector.load %arg38[%c5_299, %c0_300, %c0_301] : memref<9x1x256xf32, #tpu.memory_space<vmem>>, vector<1x1x256xf32>
    %477 = vector.shape_cast %476 : vector<1x1x256xf32> to vector<1x256xf32>
    %478 = vector.broadcast %477 : vector<1x256xf32> to vector<32x256xf32>
    %479 = arith.mulf %475, %478 : vector<32x256xf32>
    %480 = arith.truncf %479 : vector<32x256xf32> to vector<32x256xbf16>
    %c241_i32 = arith.constant 241 : i32
    %481 = tpu.dynamic_rotate %445 by %c241_i32 dim 1 : vector<32x256xf32>, i32 -> vector<32x256xf32>
    %c6_302 = arith.constant 6 : index
    %c0_303 = arith.constant 0 : index
    %c0_304 = arith.constant 0 : index
    %482 = vector.load %arg38[%c6_302, %c0_303, %c0_304] : memref<9x1x256xf32, #tpu.memory_space<vmem>>, vector<1x1x256xf32>
    %483 = vector.shape_cast %482 : vector<1x1x256xf32> to vector<1x256xf32>
    %484 = vector.broadcast %483 : vector<1x256xf32> to vector<32x256xf32>
    %485 = arith.mulf %481, %484 : vector<32x256xf32>
    %486 = arith.truncf %485 : vector<32x256xf32> to vector<32x256xbf16>
    %c240_i32 = arith.constant 240 : i32
    %487 = tpu.dynamic_rotate %445 by %c240_i32 dim 1 : vector<32x256xf32>, i32 -> vector<32x256xf32>
    %c7_305 = arith.constant 7 : index
    %c0_306 = arith.constant 0 : index
    %c0_307 = arith.constant 0 : index
    %488 = vector.load %arg38[%c7_305, %c0_306, %c0_307] : memref<9x1x256xf32, #tpu.memory_space<vmem>>, vector<1x1x256xf32>
    %489 = vector.shape_cast %488 : vector<1x1x256xf32> to vector<1x256xf32>
    %490 = vector.broadcast %489 : vector<1x256xf32> to vector<32x256xf32>
    %491 = arith.mulf %487, %490 : vector<32x256xf32>
    %492 = arith.truncf %491 : vector<32x256xf32> to vector<32x256xbf16>
    %c239_i32 = arith.constant 239 : i32
    %493 = tpu.dynamic_rotate %445 by %c239_i32 dim 1 : vector<32x256xf32>, i32 -> vector<32x256xf32>
    %c8_308 = arith.constant 8 : index
    %c0_309 = arith.constant 0 : index
    %c0_310 = arith.constant 0 : index
    %494 = vector.load %arg38[%c8_308, %c0_309, %c0_310] : memref<9x1x256xf32, #tpu.memory_space<vmem>>, vector<1x1x256xf32>
    %495 = vector.shape_cast %494 : vector<1x1x256xf32> to vector<1x256xf32>
    %496 = vector.broadcast %495 : vector<1x256xf32> to vector<32x256xf32>
    %497 = arith.mulf %493, %496 : vector<32x256xf32>
    %498 = arith.truncf %497 : vector<32x256xf32> to vector<32x256xbf16>
    %c0_311 = arith.constant 0 : index
    %c0_312 = arith.constant 0 : index
    %499 = vector.load %arg34[%c0_311, %c0_312] : memref<16x144xbf16, #tpu.memory_space<vmem>>, vector<16x144xbf16>
    %500 = vector.extract_strided_slice %451 {offsets = [0, 0], sizes = [16, 256], strides = [1, 1]} : vector<32x256xbf16> to vector<16x256xbf16>
    %501 = vector.extract_strided_slice %457 {offsets = [0, 0], sizes = [16, 256], strides = [1, 1]} : vector<32x256xbf16> to vector<16x256xbf16>
    %502 = vector.extract_strided_slice %463 {offsets = [0, 0], sizes = [16, 256], strides = [1, 1]} : vector<32x256xbf16> to vector<16x256xbf16>
    %503 = vector.extract_strided_slice %469 {offsets = [0, 0], sizes = [16, 256], strides = [1, 1]} : vector<32x256xbf16> to vector<16x256xbf16>
    %504 = vector.extract_strided_slice %474 {offsets = [0, 0], sizes = [16, 256], strides = [1, 1]} : vector<32x256xbf16> to vector<16x256xbf16>
    %505 = vector.extract_strided_slice %480 {offsets = [0, 0], sizes = [16, 256], strides = [1, 1]} : vector<32x256xbf16> to vector<16x256xbf16>
    %506 = vector.extract_strided_slice %486 {offsets = [0, 0], sizes = [16, 256], strides = [1, 1]} : vector<32x256xbf16> to vector<16x256xbf16>
    %507 = vector.extract_strided_slice %492 {offsets = [0, 0], sizes = [16, 256], strides = [1, 1]} : vector<32x256xbf16> to vector<16x256xbf16>
    %508 = vector.extract_strided_slice %498 {offsets = [0, 0], sizes = [16, 256], strides = [1, 1]} : vector<32x256xbf16> to vector<16x256xbf16>
    %509 = tpu.concatenate %500, %501, %502, %503, %504, %505, %506, %507, %508 in 0 : vector<16x256xbf16>, vector<16x256xbf16>, vector<16x256xbf16>, vector<16x256xbf16>, vector<16x256xbf16>, vector<16x256xbf16>, vector<16x256xbf16>, vector<16x256xbf16>, vector<16x256xbf16> -> vector<144x256xbf16>
    %cst_313 = arith.constant dense<0.000000e+00> : vector<16x256xf32>
    %510 = tpu.matmul %499, %509, %cst_313 {dimension_numbers = #tpu.dot_dimension_numbers<[1], [0], [0], [1], [0, 0, 1, 1], [], []>} : vector<16x144xbf16>, vector<144x256xbf16>, vector<16x256xf32> -> vector<16x256xf32>
    %511 = vector.extract_strided_slice %451 {offsets = [16, 0], sizes = [16, 256], strides = [1, 1]} : vector<32x256xbf16> to vector<16x256xbf16>
    %512 = vector.extract_strided_slice %457 {offsets = [16, 0], sizes = [16, 256], strides = [1, 1]} : vector<32x256xbf16> to vector<16x256xbf16>
    %513 = vector.extract_strided_slice %463 {offsets = [16, 0], sizes = [16, 256], strides = [1, 1]} : vector<32x256xbf16> to vector<16x256xbf16>
    %514 = vector.extract_strided_slice %469 {offsets = [16, 0], sizes = [16, 256], strides = [1, 1]} : vector<32x256xbf16> to vector<16x256xbf16>
    %515 = vector.extract_strided_slice %474 {offsets = [16, 0], sizes = [16, 256], strides = [1, 1]} : vector<32x256xbf16> to vector<16x256xbf16>
    %516 = vector.extract_strided_slice %480 {offsets = [16, 0], sizes = [16, 256], strides = [1, 1]} : vector<32x256xbf16> to vector<16x256xbf16>
    %517 = vector.extract_strided_slice %486 {offsets = [16, 0], sizes = [16, 256], strides = [1, 1]} : vector<32x256xbf16> to vector<16x256xbf16>
    %518 = vector.extract_strided_slice %492 {offsets = [16, 0], sizes = [16, 256], strides = [1, 1]} : vector<32x256xbf16> to vector<16x256xbf16>
    %519 = vector.extract_strided_slice %498 {offsets = [16, 0], sizes = [16, 256], strides = [1, 1]} : vector<32x256xbf16> to vector<16x256xbf16>
    %520 = tpu.concatenate %511, %512, %513, %514, %515, %516, %517, %518, %519 in 0 : vector<16x256xbf16>, vector<16x256xbf16>, vector<16x256xbf16>, vector<16x256xbf16>, vector<16x256xbf16>, vector<16x256xbf16>, vector<16x256xbf16>, vector<16x256xbf16>, vector<16x256xbf16> -> vector<144x256xbf16>
    %cst_314 = arith.constant dense<0.000000e+00> : vector<16x256xf32>
    %521 = tpu.matmul %499, %520, %cst_314 {dimension_numbers = #tpu.dot_dimension_numbers<[1], [0], [0], [1], [0, 0, 1, 1], [], []>} : vector<16x144xbf16>, vector<144x256xbf16>, vector<16x256xf32> -> vector<16x256xf32>
    %522 = tpu.concatenate %510, %521 in 0 : vector<16x256xf32>, vector<16x256xf32> -> vector<32x256xf32>
    %523 = arith.mulf %437, %437 : vector<2x16xf32>
    %c0_315 = arith.constant 0 : index
    %c0_316 = arith.constant 0 : index
    %524 = vector.load %arg35[%c0_315, %c0_316] : memref<16x16xf32, #tpu.memory_space<vmem>>, vector<16x16xf32>
    %cst_317 = arith.constant dense<0.000000e+00> : vector<2x16xf32>
    %525 = tpu.matmul %523, %524, %cst_317 {dimension_numbers = #tpu.dot_dimension_numbers<[1], [0], [0], [1], [0, 0, 1, 1], [], []>} : vector<2x16xf32>, vector<16x16xf32>, vector<2x16xf32> -> vector<2x16xf32>
    %cst_318 = arith.constant 9.99999993E-9 : f32
    %526 = vector.broadcast %cst_318 : f32 to vector<2x16xf32>
    %527 = arith.addf %525, %526 : vector<2x16xf32>
    %528 = math.rsqrt %527 : vector<2x16xf32>
    %c0_319 = arith.constant 0 : index
    %c0_320 = arith.constant 0 : index
    %529 = vector.load %arg4[%c0_319, %c0_320] : memref<32x2xf32, #tpu.memory_space<vmem>>, vector<32x2xf32>
    %c0_321 = arith.constant 0 : index
    %c0_322 = arith.constant 0 : index
    %530 = vector.load %arg5[%c0_321, %c0_322] : memref<32x16xf32, #tpu.memory_space<vmem>>, vector<32x16xf32>
    %cst_323 = arith.constant dense<0.000000e+00> : vector<32x16xf32>
    %531 = tpu.matmul %529, %528, %cst_323 {dimension_numbers = #tpu.dot_dimension_numbers<[1], [0], [0], [1], [0, 0, 1, 1], [], []>} : vector<32x2xf32>, vector<2x16xf32>, vector<32x16xf32> -> vector<32x16xf32>
    %532 = arith.mulf %531, %530 : vector<32x16xf32>
    %cst_324 = arith.constant dense<0.000000e+00> : vector<32xf32>
    %533 = vector.multi_reduction <add>, %532, %cst_324 [1] : vector<32x16xf32> to vector<32xf32>
    %534 = vector.shape_cast %533 : vector<32xf32> to vector<32x1xf32>
    %535 = vector.broadcast %534 : vector<32x1xf32> to vector<32x256xf32>
    %536 = arith.mulf %522, %535 : vector<32x256xf32>
    %c0_325 = arith.constant 0 : index
    %c0_326 = arith.constant 0 : index
    %537 = vector.load %arg37[%c0_325, %c0_326] : memref<1x256xf32, #tpu.memory_space<vmem>>, vector<1x256xf32>
    %538 = vector.broadcast %537 : vector<1x256xf32> to vector<32x256xf32>
    %539 = arith.addf %536, %538 : vector<32x256xf32>
    %c0_327 = arith.constant 0 : index
    %c0_328 = arith.constant 0 : index
    %540 = vector.load %arg36[%c0_327, %c0_328] : memref<32x1xf32, #tpu.memory_space<vmem>>, vector<32x1xf32>
    %541 = vector.broadcast %540 : vector<32x1xf32> to vector<32x256xf32>
    %542 = arith.addf %539, %541 : vector<32x256xf32>
    %cst_329 = arith.constant 0.000000e+00 : f32
    %543 = vector.broadcast %cst_329 : f32 to vector<32x256xf32>
    %544 = arith.cmpf oge, %542, %543 : vector<32x256xf32>
    %cst_330 = arith.constant 2.000000e-01 : f32
    %545 = vector.broadcast %cst_330 : f32 to vector<32x256xf32>
    %546 = arith.mulf %545, %542 : vector<32x256xf32>
    %547 = arith.select %544, %542, %546 : vector<32x256xi1>, vector<32x256xf32>
    %cst_331 = arith.constant 1.41421354 : f32
    %548 = vector.broadcast %cst_331 : f32 to vector<32x256xf32>
    %549 = arith.mulf %547, %548 : vector<32x256xf32>
    %550 = vector.extract_strided_slice %5 {offsets = [0, 160], sizes = [2, 16], strides = [1, 1]} : vector<2x176xf32> to vector<2x16xf32>
    %c0_332 = arith.constant 0 : index
    %c0_333 = arith.constant 0 : index
    %551 = vector.load %arg4[%c0_332, %c0_333] : memref<32x2xf32, #tpu.memory_space<vmem>>, vector<32x2xf32>
    %c0_334 = arith.constant 0 : index
    %c0_335 = arith.constant 0 : index
    %552 = vector.load %arg5[%c0_334, %c0_335] : memref<32x16xf32, #tpu.memory_space<vmem>>, vector<32x16xf32>
    %cst_336 = arith.constant dense<0.000000e+00> : vector<32x16xf32>
    %553 = tpu.matmul %551, %550, %cst_336 {dimension_numbers = #tpu.dot_dimension_numbers<[1], [0], [0], [1], [0, 0, 1, 1], [], []>} : vector<32x2xf32>, vector<2x16xf32>, vector<32x16xf32> -> vector<32x16xf32>
    %554 = arith.mulf %553, %552 : vector<32x16xf32>
    %cst_337 = arith.constant dense<0.000000e+00> : vector<32xf32>
    %555 = vector.multi_reduction <add>, %554, %cst_337 [1] : vector<32x16xf32> to vector<32xf32>
    %556 = vector.shape_cast %555 : vector<32xf32> to vector<32x1xf32>
    %557 = vector.broadcast %556 : vector<32x1xf32> to vector<32x256xf32>
    %558 = arith.mulf %549, %557 : vector<32x256xf32>
    %559 = arith.truncf %558 : vector<32x256xf32> to vector<32x256xbf16>
    %c0_338 = arith.constant 0 : index
    %c0_339 = arith.constant 0 : index
    %560 = vector.load %arg39[%c0_338, %c0_339] : memref<3x16xbf16, #tpu.memory_space<vmem>>, vector<3x16xbf16>
    %561 = vector.extract_strided_slice %559 {offsets = [0, 0], sizes = [16, 256], strides = [1, 1]} : vector<32x256xbf16> to vector<16x256xbf16>
    %cst_340 = arith.constant dense<0.000000e+00> : vector<3x256xf32>
    %562 = tpu.matmul %560, %561, %cst_340 {dimension_numbers = #tpu.dot_dimension_numbers<[1], [0], [0], [1], [0, 0, 1, 1], [], []>} : vector<3x16xbf16>, vector<16x256xbf16>, vector<3x256xf32> -> vector<3x256xf32>
    %563 = vector.extract_strided_slice %559 {offsets = [16, 0], sizes = [16, 256], strides = [1, 1]} : vector<32x256xbf16> to vector<16x256xbf16>
    %cst_341 = arith.constant dense<0.000000e+00> : vector<3x256xf32>
    %564 = tpu.matmul %560, %563, %cst_341 {dimension_numbers = #tpu.dot_dimension_numbers<[1], [0], [0], [1], [0, 0, 1, 1], [], []>} : vector<3x16xbf16>, vector<16x256xbf16>, vector<3x256xf32> -> vector<3x256xf32>
    %565 = tpu.concatenate %562, %564 in 0 : vector<3x256xf32>, vector<3x256xf32> -> vector<6x256xf32>
    %c0_342 = arith.constant 0 : index
    %c0_343 = arith.constant 0 : index
    %566 = vector.load %arg40[%c0_342, %c0_343] : memref<6x1xf32, #tpu.memory_space<vmem>>, vector<6x1xf32>
    %567 = vector.broadcast %566 : vector<6x1xf32> to vector<6x256xf32>
    %568 = arith.addf %565, %567 : vector<6x256xf32>
    %569 = arith.truncf %339 : vector<6x64xf32> to vector<6x64xbf16>
    %c0_344 = arith.constant 0 : index
    %c0_345 = arith.constant 0 : index
    %570 = vector.load %arg41[%c0_344, %c0_345] : memref<64x256xbf16, #tpu.memory_space<vmem>>, vector<64x256xbf16>
    %cst_346 = arith.constant dense<0.000000e+00> : vector<6x256xf32>
    %571 = tpu.matmul %569, %570, %cst_346 {dimension_numbers = #tpu.dot_dimension_numbers<[1], [0], [0], [1], [0, 0, 1, 1], [], []>} : vector<6x64xbf16>, vector<64x256xbf16>, vector<6x256xf32> -> vector<6x256xf32>
    %572 = arith.addf %568, %571 : vector<6x256xf32>
    %c0_347 = arith.constant 0 : index
    %c0_348 = arith.constant 0 : index
    %573 = vector.load %arg42[%c0_347, %c0_348] : memref<6x256xf32, #tpu.memory_space<vmem>>, vector<6x256xf32>
    tpu.vector_store %arg42[%c0_347, %c0_348], %572 {strides = array<i32>} : memref<6x256xf32, #tpu.memory_space<vmem>>, vector<6x256xf32>,
    return
  }
  func.func @transform_0(%arg0: i32) -> (i32, i32) {
    %c0_i32 = arith.constant 0 : i32
    %c0_i32_0 = arith.constant 0 : i32
    return %arg0, %c0_i32 : i32, i32
  }
  func.func @transform_1(%arg0: i32) -> (i32, i32) {
    %c0_i32 = arith.constant 0 : i32
    %c0_i32_0 = arith.constant 0 : i32
    %c0_i32_1 = arith.constant 0 : i32
    return %c0_i32, %c0_i32_0 : i32, i32
  }
  func.func @transform_2(%arg0: i32) -> (i32, i32) {
    %c0_i32 = arith.constant 0 : i32
    %c0_i32_0 = arith.constant 0 : i32
    %c0_i32_1 = arith.constant 0 : i32
    return %c0_i32, %c0_i32_0 : i32, i32
  }
  func.func @transform_3(%arg0: i32) -> (i32, i32) {
    %c0_i32 = arith.constant 0 : i32
    %c0_i32_0 = arith.constant 0 : i32
    %c0_i32_1 = arith.constant 0 : i32
    return %c0_i32, %c0_i32_0 : i32, i32
  }
  func.func @transform_4(%arg0: i32) -> (i32, i32) {
    %c0_i32 = arith.constant 0 : i32
    %c0_i32_0 = arith.constant 0 : i32
    %c0_i32_1 = arith.constant 0 : i32
    return %c0_i32, %c0_i32_0 : i32, i32
  }
  func.func @transform_5(%arg0: i32) -> (i32, i32) {
    %c0_i32 = arith.constant 0 : i32
    %c0_i32_0 = arith.constant 0 : i32
    %c0_i32_1 = arith.constant 0 : i32
    return %c0_i32, %c0_i32_0 : i32, i32
  }
  func.func @transform_6(%arg0: i32) -> (i32, i32) {
    %c0_i32 = arith.constant 0 : i32
    %c0_i32_0 = arith.constant 0 : i32
    %c0_i32_1 = arith.constant 0 : i32
    return %c0_i32, %c0_i32_0 : i32, i32
  }
  func.func @transform_7(%arg0: i32) -> (i32, i32) {
    %c0_i32 = arith.constant 0 : i32
    %c0_i32_0 = arith.constant 0 : i32
    %c0_i32_1 = arith.constant 0 : i32
    return %c0_i32, %c0_i32_0 : i32, i32
  }
  func.func @transform_8(%arg0: i32) -> (i32, i32) {
    %c0_i32 = arith.constant 0 : i32
    %c0_i32_0 = arith.constant 0 : i32
    %c0_i32_1 = arith.constant 0 : i32
    return %c0_i32, %c0_i32_0 : i32, i32
  }
  func.func @transform_9(%arg0: i32) -> (i32, i32) {
    %c0_i32 = arith.constant 0 : i32
    %c0_i32_0 = arith.constant 0 : i32
    %c0_i32_1 = arith.constant 0 : i32
    return %c0_i32, %c0_i32_0 : i32, i32
  }
  func.func @transform_10(%arg0: i32) -> (i32, i32) {
    %c0_i32 = arith.constant 0 : i32
    %c0_i32_0 = arith.constant 0 : i32
    %c0_i32_1 = arith.constant 0 : i32
    return %c0_i32, %c0_i32_0 : i32, i32
  }
  func.func @transform_11(%arg0: i32) -> (i32, i32) {
    %c0_i32 = arith.constant 0 : i32
    %c0_i32_0 = arith.constant 0 : i32
    %c0_i32_1 = arith.constant 0 : i32
    return %c0_i32, %c0_i32_0 : i32, i32
  }
  func.func @transform_12(%arg0: i32) -> (i32, i32, i32) {
    %c0_i32 = arith.constant 0 : i32
    %c0_i32_0 = arith.constant 0 : i32
    %c0_i32_1 = arith.constant 0 : i32
    %c0_i32_2 = arith.constant 0 : i32
    return %c0_i32, %c0_i32_0, %c0_i32_1 : i32, i32, i32
  }
  func.func @transform_13(%arg0: i32) -> (i32, i32) {
    %c0_i32 = arith.constant 0 : i32
    %c0_i32_0 = arith.constant 0 : i32
    %c0_i32_1 = arith.constant 0 : i32
    return %c0_i32, %c0_i32_0 : i32, i32
  }
  func.func @transform_14(%arg0: i32) -> (i32, i32) {
    %c0_i32 = arith.constant 0 : i32
    %c0_i32_0 = arith.constant 0 : i32
    %c0_i32_1 = arith.constant 0 : i32
    return %c0_i32, %c0_i32_0 : i32, i32
  }
  func.func @transform_15(%arg0: i32) -> (i32, i32) {
    %c0_i32 = arith.constant 0 : i32
    %c0_i32_0 = arith.constant 0 : i32
    %c0_i32_1 = arith.constant 0 : i32
    return %c0_i32, %c0_i32_0 : i32, i32
  }
  func.func @transform_16(%arg0: i32) -> (i32, i32) {
    %c0_i32 = arith.constant 0 : i32
    %c0_i32_0 = arith.constant 0 : i32
    %c0_i32_1 = arith.constant 0 : i32
    return %c0_i32, %c0_i32_0 : i32, i32
  }
  func.func @transform_17(%arg0: i32) -> (i32, i32) {
    %c0_i32 = arith.constant 0 : i32
    %c0_i32_0 = arith.constant 0 : i32
    %c0_i32_1 = arith.constant 0 : i32
    return %c0_i32, %c0_i32_0 : i32, i32
  }
  func.func @transform_18(%arg0: i32) -> (i32, i32) {
    %c0_i32 = arith.constant 0 : i32
    %c0_i32_0 = arith.constant 0 : i32
    %c0_i32_1 = arith.constant 0 : i32
    return %c0_i32, %c0_i32_0 : i32, i32
  }
  func.func @transform_19(%arg0: i32) -> (i32, i32, i32) {
    %c0_i32 = arith.constant 0 : i32
    %c0_i32_0 = arith.constant 0 : i32
    %c0_i32_1 = arith.constant 0 : i32
    %c0_i32_2 = arith.constant 0 : i32
    return %c0_i32, %c0_i32_0, %c0_i32_1 : i32, i32, i32
  }
  func.func @transform_20(%arg0: i32) -> (i32, i32) {
    %c0_i32 = arith.constant 0 : i32
    %c0_i32_0 = arith.constant 0 : i32
    %c0_i32_1 = arith.constant 0 : i32
    return %c0_i32, %c0_i32_0 : i32, i32
  }
  func.func @transform_21(%arg0: i32) -> (i32, i32) {
    %c0_i32 = arith.constant 0 : i32
    %c0_i32_0 = arith.constant 0 : i32
    %c0_i32_1 = arith.constant 0 : i32
    return %c0_i32, %c0_i32_0 : i32, i32
  }
  func.func @transform_22(%arg0: i32) -> (i32, i32) {
    %c0_i32 = arith.constant 0 : i32
    %c0_i32_0 = arith.constant 0 : i32
    %c0_i32_1 = arith.constant 0 : i32
    return %c0_i32, %c0_i32_0 : i32, i32
  }
  func.func @transform_23(%arg0: i32) -> (i32, i32) {
    %c0_i32 = arith.constant 0 : i32
    %c0_i32_0 = arith.constant 0 : i32
    %c0_i32_1 = arith.constant 0 : i32
    return %c0_i32, %c0_i32_0 : i32, i32
  }
  func.func @transform_24(%arg0: i32) -> (i32, i32, i32) {
    %c0_i32 = arith.constant 0 : i32
    %c0_i32_0 = arith.constant 0 : i32
    %c0_i32_1 = arith.constant 0 : i32
    %c0_i32_2 = arith.constant 0 : i32
    return %c0_i32, %c0_i32_0, %c0_i32_1 : i32, i32, i32
  }
  func.func @transform_25(%arg0: i32) -> (i32, i32) {
    %c0_i32 = arith.constant 0 : i32
    %c0_i32_0 = arith.constant 0 : i32
    %c0_i32_1 = arith.constant 0 : i32
    return %c0_i32, %c0_i32_0 : i32, i32
  }
  func.func @transform_26(%arg0: i32) -> (i32, i32) {
    %c0_i32 = arith.constant 0 : i32
    %c0_i32_0 = arith.constant 0 : i32
    %c0_i32_1 = arith.constant 0 : i32
    return %c0_i32, %c0_i32_0 : i32, i32
  }
  func.func @transform_27(%arg0: i32) -> (i32, i32) {
    %c0_i32 = arith.constant 0 : i32
    %c0_i32_0 = arith.constant 0 : i32
    %c0_i32_1 = arith.constant 0 : i32
    return %c0_i32, %c0_i32_0 : i32, i32
  }
  func.func @transform_28(%arg0: i32) -> (i32, i32) {
    %c0_i32 = arith.constant 0 : i32
    %c0_i32_0 = arith.constant 0 : i32
    %c0_i32_1 = arith.constant 0 : i32
    return %c0_i32, %c0_i32_0 : i32, i32
  }
  func.func @transform_29(%arg0: i32) -> (i32, i32) {
    %c0_i32 = arith.constant 0 : i32
    %c0_i32_0 = arith.constant 0 : i32
    %c0_i32_1 = arith.constant 0 : i32
    return %c0_i32, %c0_i32_0 : i32, i32
  }
  func.func @transform_30(%arg0: i32) -> (i32, i32) {
    %c0_i32 = arith.constant 0 : i32
    %c0_i32_0 = arith.constant 0 : i32
    %c0_i32_1 = arith.constant 0 : i32
    return %c0_i32, %c0_i32_0 : i32, i32
  }
  func.func @transform_31(%arg0: i32) -> (i32, i32) {
    %c0_i32 = arith.constant 0 : i32
    %c0_i32_0 = arith.constant 0 : i32
    %c0_i32_1 = arith.constant 0 : i32
    return %c0_i32, %c0_i32_0 : i32, i32
  }
  func.func @transform_32(%arg0: i32) -> (i32, i32, i32) {
    %c0_i32 = arith.constant 0 : i32
    %c0_i32_0 = arith.constant 0 : i32
    %c0_i32_1 = arith.constant 0 : i32
    %c0_i32_2 = arith.constant 0 : i32
    return %c0_i32, %c0_i32_0, %c0_i32_1 : i32, i32, i32
  }
  func.func @transform_33(%arg0: i32) -> (i32, i32) {
    %c0_i32 = arith.constant 0 : i32
    %c0_i32_0 = arith.constant 0 : i32
    %c0_i32_1 = arith.constant 0 : i32
    return %c0_i32, %c0_i32_0 : i32, i32
  }
  func.func @transform_34(%arg0: i32) -> (i32, i32) {
    %c0_i32 = arith.constant 0 : i32
    %c0_i32_0 = arith.constant 0 : i32
    %c0_i32_1 = arith.constant 0 : i32
    return %c0_i32, %c0_i32_0 : i32, i32
  }
  func.func @transform_35(%arg0: i32) -> (i32, i32) {
    %c0_i32 = arith.constant 0 : i32
    %c0_i32_0 = arith.constant 0 : i32
    %c0_i32_1 = arith.constant 0 : i32
    return %c0_i32, %c0_i32_0 : i32, i32
  }
  func.func @transform_36(%arg0: i32) -> (i32, i32) {
    %c0_i32 = arith.constant 0 : i32
    %c0_i32_0 = arith.constant 0 : i32
    %c0_i32_1 = arith.constant 0 : i32
    return %c0_i32, %c0_i32_0 : i32, i32
  }
  func.func @transform_37(%arg0: i32) -> (i32, i32, i32) {
    %c0_i32 = arith.constant 0 : i32
    %c0_i32_0 = arith.constant 0 : i32
    %c0_i32_1 = arith.constant 0 : i32
    %c0_i32_2 = arith.constant 0 : i32
    return %c0_i32, %c0_i32_0, %c0_i32_1 : i32, i32, i32
  }
  func.func @transform_38(%arg0: i32) -> (i32, i32) {
    %c0_i32 = arith.constant 0 : i32
    %c0_i32_0 = arith.constant 0 : i32
    %c0_i32_1 = arith.constant 0 : i32
    return %c0_i32, %c0_i32_0 : i32, i32
  }
  func.func @transform_39(%arg0: i32) -> (i32, i32) {
    %c0_i32 = arith.constant 0 : i32
    %c0_i32_0 = arith.constant 0 : i32
    %c0_i32_1 = arith.constant 0 : i32
    return %c0_i32, %c0_i32_0 : i32, i32
  }
  func.func @transform_40(%arg0: i32) -> (i32, i32) {
    %c0_i32 = arith.constant 0 : i32
    %c0_i32_0 = arith.constant 0 : i32
    %c0_i32_1 = arith.constant 0 : i32
    return %c0_i32, %c0_i32_0 : i32, i32
  }
  func.func @transform_41(%arg0: i32) -> (i32, i32) {
    %c0_i32 = arith.constant 0 : i32
    %c0_i32_0 = arith.constant 0 : i32
    return %arg0, %c0_i32 : i32, i32
  }
}

</mosaic_0001>

<bundles_post_ra>
// kernel: tpu_custom_call.1
= control target key start
LH: loop header
LB: loop body
LE: loop exit
PB: predicated region body
PF: predicated region fallthrough
CT: control target
= control target key end

     0   :  { %s9985_s6 = smov 1   ;;  %s9986_s10 = smov 2   ;;  %s12290_s0 = inlined_call_operand.smem [shape: u32[42], index: -1, kind: input, shape index: {}] }
   0x1   :  { %s10076_s5 = sld [smem:[%s12290_s0]]   ;;  %s9987_s14 = smov 3  }
   0x2   :  { %s10081_s9 = sld [smem:[%s12290_s0 + %s9985_s6]]   ;;  %s9988_s18 = smov 4  }
   0x3   :  { %s10086_s13 = sld [smem:[%s12290_s0 + %s9986_s10]]   ;;  %s9989_s22 = smov 5  }
   0x4   :  { %s10091_s17 = sld [smem:[%s12290_s0 + %s9987_s14]]   ;;  %s9990_s26 = smov 6  }
   0x5   :  { %s10096_s21 = sld [smem:[%s12290_s0 + %s9988_s18]]   ;;  %s9991_s30 = smov 7  }
   0x6   :  { %s10101_s25 = sld [smem:[%s12290_s0 + %s9989_s22]]   ;;  %s9992_s4 = smov 8  }
   0x7   :  { %12325 = sst [smem:[#allocation48_spill]] %s10076_s5  ;;  %s9993_s10 = smov 9  }
   0x8   :  { %12326 = sst [smem:[#allocation49_spill]] %s10081_s9  ;;  %s9994_s15 = smov 10  }
   0x9   :  { %12327 = sst [smem:[#allocation50_spill]] %s10086_s13  ;;  %s9995_s20 = smov 11  }
   0xa   :  { %12328 = sst [smem:[#allocation51_spill]] %s10091_s17  ;;  %s9997_s1 = smov 13  }
   0xb   :  { %12329 = sst [smem:[#allocation52_spill]] %s10096_s21  ;;  %s9998_s7 = smov 14  }
   0xc   :  { %12330 = sst [smem:[#allocation53_spill]] %s10101_s25  ;;  %s10000_s22 = smov 16  }
   0xd   :  { %s10106_s29 = sld [smem:[%s12290_s0 + %s9990_s26]]   ;;  %s9996_s26 = smov 12  }
   0xe   :  { %s10111_s3 = sld [smem:[%s12290_s0 + %s9991_s30]]   ;;  %s10001_s28 = smov 17  }
   0xf   :  { %s10116_s8 = sld [smem:[%s12290_s0 + %s9992_s4]]  }
  0x10   :  { %s10121_s14 = sld [smem:[%s12290_s0 + %s9993_s10]]  }
  0x11   :  { %s10126_s19 = sld [smem:[%s12290_s0 + %s9994_s15]]   ;;  %s9999_s15 = smov 15  }
  0x12   :  { %s10131_s24 = sld [smem:[%s12290_s0 + %s9995_s20]]  }
  0x13   :  { %s10136_s30 = sld [smem:[%s12290_s0 + %s9996_s26]]  }
  0x14   :  { %12331 = sst [smem:[#allocation54_spill]] %s10111_s3 }
  0x15   :  { %s10141_s6 = sld [smem:[%s12290_s0 + %s9997_s1]]  }
  0x16   :  { %s10146_s12 = sld [smem:[%s12290_s0 + %s9998_s7]]   ;;  %s10002_s7 = smov 18  }
  0x17   :  { %12332 = sst [smem:[#allocation55_spill]] %s10126_s19 }
  0x18   :  { %s10151_s20 = sld [smem:[%s12290_s0 + %s9999_s15]]   ;;  %s10003_s15 = smov 19  }
  0x19   :  { %12333 = sst [smem:[#allocation56_spill]] %s10136_s30 }
  0x1a   :  { %s10156_s27 = sld [smem:[%s12290_s0 + %s10000_s22]]   ;;  %s10004_s22 = smov 20  }
  0x1b   :  { %s10161_s4 = sld [smem:[%s12290_s0 + %s10001_s28]]   ;;  %s10005_s28 = smov 21  }
  0x1c   :  { %12334 = sst [smem:[#allocation57_spill]] %s10146_s12 }
  0x1d   :  { %s10166_s12 = sld [smem:[%s12290_s0 + %s10002_s7]]   ;;  %s10006_s7 = smov 22  }
  0x1e   :  { %s10171_s21 = sld [smem:[%s12290_s0 + %s10003_s15]]   ;;  %s10007_s15 = smov 23  }
  0x1f   :  { %s10176_s17 = sld [smem:[%s12290_s0 + %s10004_s22]]   ;;  %s10008_s22 = smov 24  }
  0x20   :  { %12335 = sst [smem:[#allocation58_spill]] %s10156_s27 }
  0x21   :  { %12336 = sst [smem:[#allocation59_spill]] %s10161_s4 }
  0x22   :  { %s10181_s27 = sld [smem:[%s12290_s0 + %s10005_s28]]   ;;  %s10009_s28 = smov 25  }
  0x23   :  { %s10186_s4 = sld [smem:[%s12290_s0 + %s10006_s7]]   ;;  %s10010_s7 = smov 26  }
  0x24   :  { %s10191_s19 = sld [smem:[%s12290_s0 + %s10007_s15]]   ;;  %s10011_s15 = smov 27  }
  0x25   :  { %12337 = sst [smem:[#allocation60_spill]] %s10176_s17 }
  0x26   :  { %s10196_s3 = sld [smem:[%s12290_s0 + %s10008_s22]]   ;;  %s10012_s22 = smov 28  }
  0x27   :  { %s10201_s30 = sld [smem:[%s12290_s0 + %s10009_s28]]   ;;  %s10013_s28 = smov 29  }
  0x28   :  { %s10211_s13 = sld [smem:[%s12290_s0 + %s10011_s15]]   ;;  %s10015_s15 = smov 31  }
  0x29   :  { %12338 = sst [smem:[#allocation61_spill]] %s10186_s4 }
  0x2a   :  { %12339 = sst [smem:[#allocation62_spill]] %s10191_s19 }
  0x2b   :  { %s10206_s4 = sld [smem:[%s12290_s0 + %s10010_s7]]   ;;  %s10014_s7 = smov 30  }
  0x2c   :  { %s10216_s9 = sld [smem:[%s12290_s0 + %s10012_s22]]   ;;  %s10016_s22 = smov 32  }
  0x2d   :  { %12340 = sst [smem:[#allocation63_spill]] %s10201_s30 }
  0x2e   :  { %s10221_s5 = sld [smem:[%s12290_s0 + %s10013_s28]]   ;;  %s10017_s28 = smov 33  }
  0x2f   :  { %s10231_s25 = sld [smem:[%s12290_s0 + %s10015_s15]]   ;;  %s10019_s15 = smov 35  }
  0x30   :  { %s10241_s30 = sld [smem:[%s12290_s0 + %s10017_s28]]   ;;  %s10021_s28 = smov 37  }
  0x31   :  { %12341 = sst [smem:[#allocation64_spill]] %s10206_s4 }
  0x32   :  { %12342 = sst [smem:[#allocation65_spill]] %s10216_s9 }
  0x33   :  { %s10226_s4 = sld [smem:[%s12290_s0 + %s10014_s7]]   ;;  %s10018_s7 = smov 34  }
  0x34   :  { %s10236_s9 = sld [smem:[%s12290_s0 + %s10016_s22]]   ;;  %s10020_s22 = smov 36  }
  0x35   :  { %12344 = sst [smem:[#allocation67_spill]] %s10231_s25 }
  0x36   :  { %s10251_s25 = sld [smem:[%s12290_s0 + %s10019_s15]]   ;;  %s10023_s15 = smov 39  }
  0x37   :  { %s10261_s19 = sld [smem:[%s12290_s0 + %s10021_s28]]   ;;  %s10025_s28 = smov 41  }
  0x39   :  { %12343 = sst [smem:[#allocation66_spill]] %s10226_s4 }
  0x3a   :  { %12345 = sst [smem:[#allocation68_spill]] %s10236_s9 }
  0x3b   :  { %s10246_s4 = sld [smem:[%s12290_s0 + %s10018_s7]]   ;;  %s10022_s7 = smov 38  }
  0x3c   :  { %12347 = sst [smem:[#allocation70_spill]] %s10251_s25 }
  0x3d   :  { %s10256_s9 = sld [smem:[%s12290_s0 + %s10020_s22]]   ;;  %s10024_s22 = smov 40  }
  0x3e   :  { %12348 = sst [smem:[#allocation71_spill]] %s10261_s19 }
  0x3f   :  { %s10271_s25 = sld [smem:[%s12290_s0 + %s10023_s15]]  }
  0x40   :  { %s10276_s17 = sld [smem:[%s12290_s0 + %s10024_s22]]  }
  0x41   :  { %12346 = sst [smem:[#allocation69_spill]] %s10246_s4 }
  0x42   :  { %s10266_s4 = sld [smem:[%s12290_s0 + %s10022_s7]]  }
  0x43   :  { %s10281_s19 = sld [smem:[%s12290_s0 + %s10025_s28]]  }
  0x44   :  { %88 = vsyncpa [#allocation3], 0 }
  0x45   :  { %89 = vsyncpa [#allocation6], 0 }
  0x46   :  { %90 = vsyncpa [#allocation9], 0 }
  0x47   :  { %91 = vsyncpa [#allocation12], 0 }
  0x48   :  { %92 = vsyncpa [#allocation15], 0 }
  0x49   :  { %93 = vsyncpa [#allocation18], 0 }
  0x4a   :  { %94 = vsyncpa [#allocation21], 0 }
  0x4b   :  { %95 = vsyncpa [#allocation24], 0 }
  0x4c   :  { %96 = vsyncpa [#allocation27], 0 }
  0x4d   :  { %97 = vsyncpa [#allocation30], 0 }
  0x4e   :  { %98 = vsyncpa [#allocation33], 0 }
  0x4f   :  { %99 = vsyncpa [#allocation4], 0  ;;  %s10026_s7 = smov [#allocation5]   ;;  %s9477_s0 = scalar_lea.hbm %s10116_s8, 768 }
  0x50   :  { %s129_s10 = sshll.u32 %s10026_s7, 4  ;;  %p9478_p0 = scmp.ne.s32.totalorder %s10116_s8, %s9477_s0  ;;  %s130_s10 = int_to_ptr.vmem [resolvable:$true] %s129_s10 }
  0x51   :  { %p9481_p1 = scmp.lt.u32.totalorder %s9477_s0, %s10116_s8 }
  0x53   :  { %p9483_p2 = pnand %p9481_p1, %p9478_p0 }
  0x55   :  { %9486 = shalt.err (!%p9483_p2)
}
  0x56   :  { %s9487_s11 = scalar_lea.vmem %s130_s10, 768  ;;  %p9492_p4 = scmp.lt.s32.totalorder %s130_s10, %s130_s10 }
  0x57   :  { %p9488_p3 = scmp.ne.s32.totalorder %s130_s10, %s9487_s11  ;;  %p9493_p5 = scmp.lt.s32.totalorder %s9487_s11, %s9487_s11 }
  0x59   :  { %p9494_p6 = por %p9493_p5, %p9492_p4 }
  0x5b   :  { %p9495_p7 = pnand %p9494_p6, %p9488_p3 }
  0x5d   :  { %9498 = shalt.err (!%p9495_p7)
}
  0x5e   :  { %s10027_s15 = smov 192   ;;  %s10028_s16 = smov 12  }
  0x5f   :  { %135 = dma.hbm_to_vmem [thread:$0]  %s10116_s8, 768, %s130_s10, [#allocation6], %s10027_s15, %s10027_s15, %s10028_s16  }
  0x60   :  { %s10029_s18 = smov [#allocation8]   ;;  %s10030_s23 = smov [#allocation11]  }
  0x61   :  { %s156_s22 = sshll.u32 %s10029_s18, 4  ;;  %s179_s26 = sshll.u32 %s10030_s23, 4  ;;  %s157_s22 = int_to_ptr.vmem [resolvable:$true] %s156_s22  ;;  %s180_s26 = int_to_ptr.vmem [resolvable:$true] %s179_s26 }
  0x62   :  { %s9499_s28 = scalar_lea.hbm %s10131_s24, 16 }
  0x63   :  { %p9500_p8 = scmp.ne.s32.totalorder %s10131_s24, %s9499_s28  ;;  %p9503_p9 = scmp.lt.u32.totalorder %s9499_s28, %s10131_s24 }
  0x65   :  { %p9505_p10 = pnand %p9503_p9, %p9500_p8 }
  0x67   :  { %9508 = shalt.err (!%p9505_p10)
}
  0x68   :  { %s9509_s1 = scalar_lea.vmem %s157_s22, 16  ;;  %s9513_s2 = scalar_lea.vmem %s157_s22, 32 }
  0x69   :  { %p9510_p11 = scmp.ne.s32.totalorder %s157_s22, %s9509_s1  ;;  %p9514_p12 = scmp.lt.s32.totalorder %s157_s22, %s157_s22 }
  0x6a   :  { %p9515_p13 = scmp.lt.s32.totalorder %s9513_s2, %s9509_s1 }
  0x6c   :  { %p9516_p0 = por %p9515_p13, %p9514_p12 }
  0x6e   :  { %p9517_p1 = pnand %p9516_p0, %p9510_p11 }
  0x70   :  { %9520 = shalt.err (!%p9517_p1)
}
  0x71   :  { %159 = dma.hbm_to_vmem [thread:$0]  %s10131_s24, 16, %s157_s22, [#allocation9]  }
  0x72   :  { %s9521_s8 = scalar_lea.hbm %s10151_s20, 384 }
  0x73   :  { %p9522_p2 = scmp.ne.s32.totalorder %s10151_s20, %s9521_s8  ;;  %p9525_p3 = scmp.lt.u32.totalorder %s9521_s8, %s10151_s20 }
  0x75   :  { %p9527_p4 = pnand %p9525_p3, %p9522_p2 }
  0x77   :  { %9530 = shalt.err (!%p9527_p4)
}
  0x78   :  { %s9531_s7 = scalar_lea.vmem %s180_s26, 384  ;;  %p9536_p6 = scmp.lt.s32.totalorder %s180_s26, %s180_s26 }
  0x79   :  { %p9532_p5 = scmp.ne.s32.totalorder %s180_s26, %s9531_s7  ;;  %p9537_p7 = scmp.lt.s32.totalorder %s9531_s7, %s9531_s7 }
  0x7b   :  { %p9538_p8 = por %p9537_p7, %p9536_p6 }
  0x7d   :  { %p9539_p9 = pnand %p9538_p8, %p9532_p5 }
  0x7f   :  { %9542 = shalt.err (!%p9539_p9)
}
  0x80   :  { %185 = dma.hbm_to_vmem [thread:$0]  %s10151_s20, 384, %s180_s26, [#allocation12], %s10027_s15, %s10027_s15, %s10028_s16  }
  0x81   :  { %s10031_s24 = smov [#allocation14]   ;;  %s9543_s0 = scalar_lea.hbm %s10171_s21, 1152 }
  0x82   :  { %s205_s10 = sshll.u32 %s10031_s24, 4  ;;  %p9544_p10 = scmp.ne.s32.totalorder %s10171_s21, %s9543_s0  ;;  %s206_s10 = int_to_ptr.vmem [resolvable:$true] %s205_s10 }
  0x83   :  { %p9547_p11 = scmp.lt.u32.totalorder %s9543_s0, %s10171_s21 }
  0x85   :  { %p9549_p12 = pnand %p9547_p11, %p9544_p10 }
  0x87   :  { %9552 = shalt.err (!%p9549_p12)
}
  0x88   :  { %s9553_s11 = scalar_lea.vmem %s206_s10, 1152  ;;  %p9558_p0 = scmp.lt.s32.totalorder %s206_s10, %s206_s10 }
  0x89   :  { %p9554_p13 = scmp.ne.s32.totalorder %s206_s10, %s9553_s11  ;;  %p9559_p1 = scmp.lt.s32.totalorder %s9553_s11, %s9553_s11 }
  0x8b   :  { %p9560_p2 = por %p9559_p1, %p9558_p0 }
  0x8d   :  { %p9561_p3 = pnand %p9560_p2, %p9554_p13 }
  0x8f   :  { %9564 = shalt.err (!%p9561_p3)
}
  0x90   :  { %s10032_s18 = smov 64   ;;  %s10033_s20 = smov 4  }
  0x91   :  { %211 = dma.hbm_to_vmem [thread:$0]  %s10171_s21, 1152, %s206_s10, [#allocation15], %s10032_s18, %s10032_s18, %s10033_s20  }
  0x92   :  { %s10034_s15 = smov [#allocation17]   ;;  %s10035_s22 = smov [#allocation20]  }
  0x93   :  { %s229_s16 = sshll.u32 %s10034_s15, 4  ;;  %s253_s23 = sshll.u32 %s10035_s22, 4  ;;  %s230_s16 = int_to_ptr.vmem [resolvable:$true] %s229_s16  ;;  %s10308_s23 = int_to_ptr.vmem [resolvable:$true] %s253_s23 }
  0x94   :  { %s9565_s26 = scalar_lea.hbm %s10181_s27, 256 }
  0x95   :  { %p9566_p4 = scmp.ne.s32.totalorder %s10181_s27, %s9565_s26  ;;  %p9569_p5 = scmp.lt.u32.totalorder %s9565_s26, %s10181_s27 }
  0x97   :  { %p9571_p6 = pnand %p9569_p5, %p9566_p4 }
  0x99   :  { %9574 = shalt.err (!%p9571_p6)
}
  0x9a   :  { %s9575_s28 = scalar_lea.vmem %s230_s16, 256  ;;  %p9580_p8 = scmp.lt.s32.totalorder %s230_s16, %s230_s16 }
  0x9b   :  { %p9576_p7 = scmp.ne.s32.totalorder %s230_s16, %s9575_s28  ;;  %p9581_p9 = scmp.lt.s32.totalorder %s9575_s28, %s9575_s28 }
  0x9d   :  { %p9582_p10 = por %p9581_p9, %p9580_p8 }
  0x9f   :  { %p9583_p11 = pnand %p9582_p10, %p9576_p7 }
  0xa1   :  { %9586 = shalt.err (!%p9583_p11)
}
  0xa2   :  { %s10036_s21 = smov 128   ;;  %s10037_s1 = smov 8  }
  0xa3   :  { %235 = dma.hbm_to_vmem [thread:$0]  %s10181_s27, 256, %s230_s16, [#allocation18], %s10036_s21, %s10036_s21, %s10037_s1  }
  0xa4   :  { %s9587_s2 = scalar_lea.hbm %s10196_s3, 4608 }
  0xa5   :  { %p9588_p12 = scmp.ne.s32.totalorder %s10196_s3, %s9587_s2  ;;  %p9591_p13 = scmp.lt.u32.totalorder %s9587_s2, %s10196_s3 }
  0xa7   :  { %p9593_p0 = pnand %p9591_p13, %p9588_p12 }
  0xa9   :  { %9596 = shalt.err (!%p9593_p0)
}
  0xaa   :  { %s9597_s8 = scalar_lea.vmem %s10308_s23, 4608  ;;  %p9602_p2 = scmp.lt.s32.totalorder %s10308_s23, %s10308_s23 }
  0xab   :  { %p9598_p1 = scmp.ne.s32.totalorder %s10308_s23, %s9597_s8  ;;  %p9603_p3 = scmp.lt.s32.totalorder %s9597_s8, %s9597_s8 }
  0xad   :  { %p9604_p4 = por %p9603_p3, %p9602_p2 }
  0xaf   :  { %p9605_p5 = pnand %p9604_p4, %p9598_p1 }
  0xb1   :  { %9608 = shalt.err (!%p9605_p5)
}
  0xb2   :  { %259 = dma.hbm_to_vmem [thread:$0]  %s10196_s3, 4608, %s10308_s23, [#allocation21], %s10032_s18, %s10032_s18, %s10033_s20  }
  0xb3   :  { %s10038_s27 = smov [#allocation23]   ;;  %s10039_s24 = smov [#allocation26]  }
  0xb4   :  { %s277_s7 = sshll.u32 %s10038_s27, 4  ;;  %s301_s10 = sshll.u32 %s10039_s24, 4  ;;  %s278_s7 = int_to_ptr.vmem [resolvable:$true] %s277_s7  ;;  %s10329_s10 = int_to_ptr.vmem [resolvable:$true] %s301_s10 }
  0xb5   :  { %s9609_s0 = scalar_lea.hbm %s10211_s13, 128 }
  0xb6   :  { %p9610_p6 = scmp.ne.s32.totalorder %s10211_s13, %s9609_s0  ;;  %p9613_p7 = scmp.lt.u32.totalorder %s9609_s0, %s10211_s13 }
  0xb8   :  { %p9615_p8 = pnand %p9613_p7, %p9610_p6 }
  0xba   :  { %9618 = shalt.err (!%p9615_p8)
}
  0xbb   :  { %s9619_s11 = scalar_lea.vmem %s278_s7, 128  ;;  %p9624_p10 = scmp.lt.s32.totalorder %s278_s7, %s278_s7 }
  0xbc   :  { %p9620_p9 = scmp.ne.s32.totalorder %s278_s7, %s9619_s11  ;;  %p9625_p11 = scmp.lt.s32.totalorder %s9619_s11, %s9619_s11 }
  0xbe   :  { %p9626_p12 = por %p9625_p11, %p9624_p10 }
  0xc0   :  { %p9627_p13 = pnand %p9626_p12, %p9620_p9 }
  0xc2   :  { %9630 = shalt.err (!%p9627_p13)
}
  0xc3   :  { %283 = dma.hbm_to_vmem [thread:$0]  %s10211_s13, 128, %s278_s7, [#allocation24], %s10032_s18, %s10032_s18, %s10033_s20  }
  0xc4   :  { %s9631_s3 = scalar_lea.hbm %s10221_s5, 256 }
  0xc5   :  { %p9632_p0 = scmp.ne.s32.totalorder %s10221_s5, %s9631_s3  ;;  %p9635_p1 = scmp.lt.u32.totalorder %s9631_s3, %s10221_s5 }
  0xc7   :  { %p9637_p2 = pnand %p9635_p1, %p9632_p0 }
  0xc9   :  { %9640 = shalt.err (!%p9637_p2)
}
  0xca   :  { %s9641_s15 = scalar_lea.vmem %s10329_s10, 256  ;;  %p9646_p4 = scmp.lt.s32.totalorder %s10329_s10, %s10329_s10 }
  0xcb   :  { %p9642_p3 = scmp.ne.s32.totalorder %s10329_s10, %s9641_s15  ;;  %p9647_p5 = scmp.lt.s32.totalorder %s9641_s15, %s9641_s15 }
  0xcd   :  { %p9648_p6 = por %p9647_p5, %p9646_p4 }
  0xcf   :  { %p9649_p7 = pnand %p9648_p6, %p9642_p3 }
  0xd1   :  { %9652 = shalt.err (!%p9649_p7)
}
  0xd2   :  { %307 = dma.hbm_to_vmem [thread:$0]  %s10221_s5, 256, %s10329_s10, [#allocation27], %s10036_s21, %s10036_s21, %s10037_s1  }
  0xd3   :  { %s10040_s13 = smov [#allocation29]   ;;  %s10041_s16 = smov [#allocation32]  }
  0xd4   :  { %s327_s20 = sshll.u32 %s10040_s13, 4  ;;  %s354_s22 = sshll.u32 %s10041_s16, 4  ;;  %s328_s20 = int_to_ptr.vmem [resolvable:$true] %s327_s20  ;;  %s355_s22 = int_to_ptr.vmem [resolvable:$true] %s354_s22 }
  0xd5   :  { %s9653_s23 = scalar_lea.hbm %s10241_s30, 256 }
  0xd6   :  { %p9654_p8 = scmp.ne.s32.totalorder %s10241_s30, %s9653_s23  ;;  %p9657_p9 = scmp.lt.u32.totalorder %s9653_s23, %s10241_s30 }
  0xd8   :  { %p9659_p10 = pnand %p9657_p9, %p9654_p8 }
  0xda   :  { %9662 = shalt.err (!%p9659_p10)
}
  0xdb   :  { %s9663_s26 = scalar_lea.vmem %s328_s20, 256  ;;  %p9668_p12 = scmp.lt.s32.totalorder %s328_s20, %s328_s20 }
  0xdc   :  { %p9664_p11 = scmp.ne.s32.totalorder %s328_s20, %s9663_s26  ;;  %p9669_p13 = scmp.lt.s32.totalorder %s9663_s26, %s9663_s26 }
  0xde   :  { %p9670_p0 = por %p9669_p13, %p9668_p12 }
  0xe0   :  { %p9671_p1 = pnand %p9670_p0, %p9664_p11 }
  0xe2   :  { %9674 = shalt.err (!%p9671_p1)
}
  0xe3   :  { %333 = dma.hbm_to_vmem [thread:$0]  %s10241_s30, 256, %s328_s20, [#allocation30], %s10036_s21, %s10036_s21, %s10037_s1  }
  0xe4   :  { %s9675_s5 = scalar_lea.hbm %s10256_s9, 32 }
  0xe5   :  { %p9676_p2 = scmp.ne.s32.totalorder %s10256_s9, %s9675_s5  ;;  %p9679_p3 = scmp.lt.u32.totalorder %s9675_s5, %s10256_s9 }
  0xe7   :  { %p9681_p4 = pnand %p9679_p3, %p9676_p2 }
  0xe9   :  { %9684 = shalt.err (!%p9681_p4)
}
  0xea   :  { %s9685_s28 = scalar_lea.vmem %s355_s22, 32  ;;  %p9690_p6 = scmp.lt.s32.totalorder %s355_s22, %s355_s22 }
  0xeb   :  { %p9686_p5 = scmp.ne.s32.totalorder %s355_s22, %s9685_s28  ;;  %p9691_p7 = scmp.lt.s32.totalorder %s9685_s28, %s9685_s28 }
  0xed   :  { %p9692_p8 = por %p9691_p7, %p9690_p6 }
  0xef   :  { %p9693_p9 = pnand %p9692_p8, %p9686_p5 }
  0xf1   :  { %9696 = shalt.err (!%p9693_p9)
}
  0xf2   :  { %357 = dma.hbm_to_vmem [thread:$0]  %s10256_s9, 32, %s355_s22, [#allocation33]  }
  0xf3   :  { %s10042_s2 = smov [#allocation2]   ;;  %s10043_s30 = smov [#allocation7]  }
  0xf4   :  { %s118_s8 = sshll.u32 %s10042_s2, 4  ;;  %s141_s27 = sshll.u32 %s10043_s30, 4  ;;  %s119_s8 = int_to_ptr.vmem [resolvable:$true] %s118_s8  ;;  %s10361_s27 = int_to_ptr.vmem [resolvable:$true] %s141_s27 }
  0xf5   :  { %s9697_s7 = scalar_lea.hbm %s10106_s29, 32 }
  0xf6   :  { %p9698_p10 = scmp.ne.s32.totalorder %s10106_s29, %s9697_s7  ;;  %p9701_p11 = scmp.lt.u32.totalorder %s9697_s7, %s10106_s29 }
  0xf8   :  { %p9703_p12 = pnand %p9701_p11, %p9698_p10 }
  0xfa   :  { %9706 = shalt.err (!%p9703_p12)
}
  0xfb   :  { %s9707_s24 = scalar_lea.vmem %s119_s8, 32  ;;  %p9712_p0 = scmp.lt.s32.totalorder %s119_s8, %s119_s8 }
  0xfc   :  { %p9708_p13 = scmp.ne.s32.totalorder %s119_s8, %s9707_s24  ;;  %p9713_p1 = scmp.lt.s32.totalorder %s9707_s24, %s9707_s24 }
  0xfe   :  { %p9714_p2 = por %p9713_p1, %p9712_p0 }
 0x100   :  { %p9715_p3 = pnand %p9714_p2, %p9708_p13 }
 0x102   :  { %9718 = shalt.err (!%p9715_p3)
}
 0x103   :  { %121 = dma.hbm_to_vmem [thread:$0]  %s10106_s29, 32, %s119_s8, [#allocation3]  }
 0x104   :  { %s9719_s9 = scalar_lea.hbm %s10121_s14, 512 }
 0x105   :  { %p9720_p4 = scmp.ne.s32.totalorder %s10121_s14, %s9719_s9  ;;  %p9723_p5 = scmp.lt.u32.totalorder %s9719_s9, %s10121_s14 }
 0x107   :  { %p9725_p6 = pnand %p9723_p5, %p9720_p4 }
 0x109   :  { %9728 = shalt.err (!%p9725_p6)
}
 0x10a   :  { %s9729_s10 = scalar_lea.vmem %s10361_s27, 512  ;;  %p9734_p8 = scmp.lt.s32.totalorder %s10361_s27, %s10361_s27 }
 0x10b   :  { %p9730_p7 = scmp.ne.s32.totalorder %s10361_s27, %s9729_s10  ;;  %p9735_p9 = scmp.lt.s32.totalorder %s9729_s10, %s9729_s10 }
 0x10d   :  { %p9736_p10 = por %p9735_p9, %p9734_p8 }
 0x10f   :  { %p9737_p11 = pnand %p9736_p10, %p9730_p7 }
 0x111   :  { %9740 = shalt.err (!%p9737_p11)
}
 0x112   :  { %147 = dma.hbm_to_vmem [thread:$0]  %s10121_s14, 512, %s10361_s27, [#allocation6], %s10036_s21, %s10036_s21, %s10037_s1  }
 0x113   :  { %s10044_s29 = smov [#allocation10]   ;;  %s10045_s11 = smov [#allocation13]  }
 0x114   :  { %s168_s0 = sshll.u32 %s10044_s29, 4  ;;  %s196_s3 = sshll.u32 %s10045_s11, 4  ;;  %s169_s0 = int_to_ptr.vmem [resolvable:$true] %s168_s0  ;;  %s197_s3 = int_to_ptr.vmem [resolvable:$true] %s196_s3 }
 0x115   :  { %s9741_s15 = scalar_lea.hbm %s10141_s6, 32 }
 0x116   :  { %p9742_p12 = scmp.ne.s32.totalorder %s10141_s6, %s9741_s15  ;;  %p9745_p13 = scmp.lt.u32.totalorder %s9741_s15, %s10141_s6 }
 0x118   :  { %p9747_p0 = pnand %p9745_p13, %p9742_p12 }
 0x11a   :  { %9750 = shalt.err (!%p9747_p0)
}
 0x11b   :  { %s9751_s13 = scalar_lea.vmem %s169_s0, 32  ;;  %p9756_p2 = scmp.lt.s32.totalorder %s169_s0, %s169_s0 }
 0x11c   :  { %p9752_p1 = scmp.ne.s32.totalorder %s169_s0, %s9751_s13  ;;  %p9757_p3 = scmp.lt.s32.totalorder %s9751_s13, %s9751_s13 }
 0x11e   :  { %p9758_p4 = por %p9757_p3, %p9756_p2 }
 0x120   :  { %p9759_p5 = pnand %p9758_p4, %p9752_p1 }
 0x122   :  { %9762 = shalt.err (!%p9759_p5)
}
 0x123   :  { %171 = dma.hbm_to_vmem [thread:$0]  %s10141_s6, 32, %s169_s0, [#allocation9]  }
 0x124   :  { %s9763_s14 = scalar_lea.hbm %s10166_s12, 16 }
 0x125   :  { %p9764_p6 = scmp.ne.s32.totalorder %s10166_s12, %s9763_s14  ;;  %p9767_p7 = scmp.lt.u32.totalorder %s9763_s14, %s10166_s12 }
 0x127   :  { %p9769_p8 = pnand %p9767_p7, %p9764_p6 }
 0x129   :  { %9772 = shalt.err (!%p9769_p8)
}
 0x12a   :  { %s9773_s20 = scalar_lea.vmem %s197_s3, 16  ;;  %s9777_s16 = scalar_lea.vmem %s197_s3, 32 }
 0x12b   :  { %p9774_p9 = scmp.ne.s32.totalorder %s197_s3, %s9773_s20  ;;  %p9778_p10 = scmp.lt.s32.totalorder %s197_s3, %s197_s3 }
 0x12c   :  { %p9779_p11 = scmp.lt.s32.totalorder %s9777_s16, %s9773_s20 }
 0x12e   :  { %p9780_p12 = por %p9779_p11, %p9778_p10 }
 0x130   :  { %p9781_p13 = pnand %p9780_p12, %p9774_p9 }
 0x132   :  { %9784 = shalt.err (!%p9781_p13)
}
 0x133   :  { %s12349_s22 = sld [smem:[#allocation60_spill]]  ;;  %s10046_s23 = smov [#allocation16]  }
 0x134   :  { %199 = dma.hbm_to_vmem [thread:$0]  %s10166_s12, 16, %s197_s3, [#allocation12]  }
 0x135   :  { %s217_s6 = sshll.u32 %s10046_s23, 4  ;;  %s10047_s26 = smov [#allocation19]   ;;  %s218_s6 = int_to_ptr.vmem [resolvable:$true] %s217_s6 }
 0x136   :  { %s244_s5 = sshll.u32 %s10047_s26, 4  ;;  %s245_s5 = int_to_ptr.vmem [resolvable:$true] %s244_s5 }
 0x139   :  { %s9785_s28 = scalar_lea.hbm %s12349_s22, 256 }
 0x13a   :  { %p9786_p0 = scmp.ne.s32.totalorder %s12349_s22, %s9785_s28  ;;  %p9789_p1 = scmp.lt.u32.totalorder %s9785_s28, %s12349_s22 }
 0x13c   :  { %p9791_p2 = pnand %p9789_p1, %p9786_p0 }
 0x13e   :  { %9794 = shalt.err (!%p9791_p2)
}
 0x13f   :  { %s9795_s2 = scalar_lea.vmem %s218_s6, 256  ;;  %p9800_p4 = scmp.lt.s32.totalorder %s218_s6, %s218_s6 }
 0x140   :  { %p9796_p3 = scmp.ne.s32.totalorder %s218_s6, %s9795_s2  ;;  %p9801_p5 = scmp.lt.s32.totalorder %s9795_s2, %s9795_s2 }
 0x142   :  { %p9802_p6 = por %p9801_p5, %p9800_p4 }
 0x144   :  { %p9803_p7 = pnand %p9802_p6, %p9796_p3 }
 0x146   :  { %9806 = shalt.err (!%p9803_p7)
}
 0x147   :  { %s12350_s12 = sld [smem:[#allocation62_spill]] }
 0x148   :  { %223 = dma.hbm_to_vmem [thread:$0]  %s12349_s22, 256, %s218_s6, [#allocation15], %s10036_s21, %s10036_s21, %s10037_s1  }
 0x14d   :  { %s9807_s8 = scalar_lea.hbm %s12350_s12, 16 }
 0x14e   :  { %p9808_p8 = scmp.ne.s32.totalorder %s12350_s12, %s9807_s8  ;;  %p9811_p9 = scmp.lt.u32.totalorder %s9807_s8, %s12350_s12 }
 0x150   :  { %p9813_p10 = pnand %p9811_p9, %p9808_p8 }
 0x152   :  { %9816 = shalt.err (!%p9813_p10)
}
 0x153   :  { %s9817_s30 = scalar_lea.vmem %s245_s5, 16  ;;  %s9821_s27 = scalar_lea.vmem %s245_s5, 32 }
 0x154   :  { %p9818_p11 = scmp.ne.s32.totalorder %s245_s5, %s9817_s30  ;;  %p9822_p12 = scmp.lt.s32.totalorder %s245_s5, %s245_s5 }
 0x155   :  { %p9823_p13 = scmp.lt.s32.totalorder %s9821_s27, %s9817_s30 }
 0x157   :  { %p9824_p0 = por %p9823_p13, %p9822_p12 }
 0x159   :  { %p9825_p1 = pnand %p9824_p0, %p9818_p11 }
 0x15b   :  { %9828 = shalt.err (!%p9825_p1)
}
 0x15c   :  { %s12351_s7 = sld [smem:[#allocation63_spill]]  ;;  %s10048_s24 = smov [#allocation22]  }
 0x15d   :  { %247 = dma.hbm_to_vmem [thread:$0]  %s12350_s12, 16, %s245_s5, [#allocation18]  }
 0x15e   :  { %s266_s9 = sshll.u32 %s10048_s24, 4  ;;  %s10049_s10 = smov [#allocation25]   ;;  %s267_s9 = int_to_ptr.vmem [resolvable:$true] %s266_s9 }
 0x15f   :  { %s289_s29 = sshll.u32 %s10049_s10, 4  ;;  %s10398_s29 = int_to_ptr.vmem [resolvable:$true] %s289_s29 }
 0x162   :  { %s9829_s0 = scalar_lea.hbm %s12351_s7, 32 }
 0x163   :  { %p9830_p2 = scmp.ne.s32.totalorder %s12351_s7, %s9829_s0  ;;  %p9833_p3 = scmp.lt.u32.totalorder %s9829_s0, %s12351_s7 }
 0x165   :  { %p9835_p4 = pnand %p9833_p3, %p9830_p2 }
 0x167   :  { %9838 = shalt.err (!%p9835_p4)
}
 0x168   :  { %s9839_s11 = scalar_lea.vmem %s267_s9, 32  ;;  %p9844_p6 = scmp.lt.s32.totalorder %s267_s9, %s267_s9 }
 0x169   :  { %p9840_p5 = scmp.ne.s32.totalorder %s267_s9, %s9839_s11  ;;  %p9845_p7 = scmp.lt.s32.totalorder %s9839_s11, %s9839_s11 }
 0x16b   :  { %p9846_p8 = por %p9845_p7, %p9844_p6 }
 0x16d   :  { %p9847_p9 = pnand %p9846_p8, %p9840_p5 }
 0x16f   :  { %9850 = shalt.err (!%p9847_p9)
}
 0x170   :  { %s12352_s3 = sld [smem:[#allocation65_spill]] }
 0x171   :  { %269 = dma.hbm_to_vmem [thread:$0]  %s12351_s7, 32, %s267_s9, [#allocation21]  }
 0x176   :  { %s9851_s15 = scalar_lea.hbm %s12352_s3, 256 }
 0x177   :  { %p9852_p10 = scmp.ne.s32.totalorder %s12352_s3, %s9851_s15  ;;  %p9855_p11 = scmp.lt.u32.totalorder %s9851_s15, %s12352_s3 }
 0x179   :  { %p9857_p12 = pnand %p9855_p11, %p9852_p10 }
 0x17b   :  { %9860 = shalt.err (!%p9857_p12)
}
 0x17c   :  { %s9861_s13 = scalar_lea.vmem %s10398_s29, 256  ;;  %p9866_p0 = scmp.lt.s32.totalorder %s10398_s29, %s10398_s29 }
 0x17d   :  { %p9862_p13 = scmp.ne.s32.totalorder %s10398_s29, %s9861_s13  ;;  %p9867_p1 = scmp.lt.s32.totalorder %s9861_s13, %s9861_s13 }
 0x17f   :  { %p9868_p2 = por %p9867_p1, %p9866_p0 }
 0x181   :  { %p9869_p3 = pnand %p9868_p2, %p9862_p13 }
 0x183   :  { %9872 = shalt.err (!%p9869_p3)
}
 0x184   :  { %s12353_s14 = sld [smem:[#allocation67_spill]]  ;;  %s10050_s20 = smov [#allocation28]  }
 0x185   :  { %295 = dma.hbm_to_vmem [thread:$0]  %s12352_s3, 256, %s10398_s29, [#allocation24], %s10036_s21, %s10036_s21, %s10037_s1  }
 0x186   :  { %s316_s16 = sshll.u32 %s10050_s20, 4  ;;  %s10051_s22 = smov [#allocation31]   ;;  %s317_s16 = int_to_ptr.vmem [resolvable:$true] %s316_s16 }
 0x187   :  { %s339_s23 = sshll.u32 %s10051_s22, 4  ;;  %s10416_s23 = int_to_ptr.vmem [resolvable:$true] %s339_s23 }
 0x18a   :  { %s9873_s6 = scalar_lea.hbm %s12353_s14, 32 }
 0x18b   :  { %p9874_p4 = scmp.ne.s32.totalorder %s12353_s14, %s9873_s6  ;;  %p9877_p5 = scmp.lt.u32.totalorder %s9873_s6, %s12353_s14 }
 0x18d   :  { %p9879_p6 = pnand %p9877_p5, %p9874_p4 }
 0x18f   :  { %9882 = shalt.err (!%p9879_p6)
}
 0x190   :  { %s9883_s26 = scalar_lea.vmem %s317_s16, 32  ;;  %p9888_p8 = scmp.lt.s32.totalorder %s317_s16, %s317_s16 }
 0x191   :  { %p9884_p7 = scmp.ne.s32.totalorder %s317_s16, %s9883_s26  ;;  %p9889_p9 = scmp.lt.s32.totalorder %s9883_s26, %s9883_s26 }
 0x193   :  { %p9890_p10 = por %p9889_p9, %p9888_p8 }
 0x195   :  { %p9891_p11 = pnand %p9890_p10, %p9884_p7 }
 0x197   :  { %9894 = shalt.err (!%p9891_p11)
}
 0x198   :  { %s12354_s5 = sld [smem:[#allocation69_spill]] }
 0x199   :  { %319 = dma.hbm_to_vmem [thread:$0]  %s12353_s14, 32, %s317_s16, [#allocation27]  }
 0x19e   :  { %s9895_s28 = scalar_lea.hbm %s12354_s5, 256 }
 0x19f   :  { %p9896_p12 = scmp.ne.s32.totalorder %s12354_s5, %s9895_s28  ;;  %p9899_p13 = scmp.lt.u32.totalorder %s9895_s28, %s12354_s5 }
 0x1a1   :  { %p9901_p0 = pnand %p9899_p13, %p9896_p12 }
 0x1a3   :  { %9904 = shalt.err (!%p9901_p0)
}
 0x1a4   :  { %s9905_s2 = scalar_lea.vmem %s10416_s23, 256  ;;  %p9910_p2 = scmp.lt.s32.totalorder %s10416_s23, %s10416_s23 }
 0x1a5   :  { %p9906_p1 = scmp.ne.s32.totalorder %s10416_s23, %s9905_s2  ;;  %p9911_p3 = scmp.lt.s32.totalorder %s9905_s2, %s9905_s2 }
 0x1a7   :  { %p9912_p4 = por %p9911_p3, %p9910_p2 }
 0x1a9   :  { %p9913_p5 = pnand %p9912_p4, %p9906_p1 }
 0x1ab   :  { %9916 = shalt.err (!%p9913_p5)
}
 0x1ac   :  { %345 = dma.hbm_to_vmem [thread:$0]  %s12354_s5, 256, %s10416_s23, [#allocation30], %s10036_s21, %s10036_s21, %s10037_s1  }
 0x1ad   :  { %s10052_s12 = smov [#allocation34]   ;;  %s9917_s30 = scalar_lea.hbm %s10276_s17, 1024 }
 0x1ae   :  { %s369_s8 = sshll.u32 %s10052_s12, 4  ;;  %p9918_p6 = scmp.ne.s32.totalorder %s10276_s17, %s9917_s30  ;;  %s370_s8 = int_to_ptr.vmem [resolvable:$true] %s369_s8 }
 0x1af   :  { %p9921_p7 = scmp.lt.u32.totalorder %s9917_s30, %s10276_s17 }
 0x1b1   :  { %p9923_p8 = pnand %p9921_p7, %p9918_p6 }
 0x1b3   :  { %9926 = shalt.err (!%p9923_p8)
}
 0x1b4   :  { %s9927_s27 = scalar_lea.vmem %s370_s8, 1024  ;;  %p9932_p10 = scmp.lt.s32.totalorder %s370_s8, %s370_s8 }
 0x1b5   :  { %p9928_p9 = scmp.ne.s32.totalorder %s370_s8, %s9927_s27  ;;  %p9933_p11 = scmp.lt.s32.totalorder %s9927_s27, %s9927_s27 }
 0x1b7   :  { %p9934_p12 = por %p9933_p11, %p9932_p10 }
 0x1b9   :  { %p9935_p13 = pnand %p9934_p12, %p9928_p9 }
 0x1bb   :  { %9938 = shalt.err (!%p9935_p13)
}
 0x1bc   :  { %375 = dma.hbm_to_vmem [thread:$0]  %s10276_s17, 1024, %s370_s8, [#allocation33], %s10036_s21, %s10036_s21, %s10037_s1  }
 0x1bd   :  { %9961 = dma.done.wait [#allocation3], 32  }
 0x1be   :  { %9962 = vsyncadd [#allocation3], 4294967264 }
 0x1bf   :  { %9963 = dma.done.wait [#allocation6], 1280  }
 0x1c0   :  { %9964 = vsyncadd [#allocation6], 4294966016 }
 0x1c1   :  { %9965 = dma.done.wait [#allocation9], 48  }
 0x1c2   :  { %9966 = vsyncadd [#allocation9], 4294967248 }
 0x1c3   :  { %9967 = dma.done.wait [#allocation12], 400  }
 0x1c4   :  { %9968 = vsyncadd [#allocation12], 4294966896 }
 0x1c5   :  { %9969 = dma.done.wait [#allocation15], 1408  }
 0x1c6   :  { %9970 = vsyncadd [#allocation15], 4294965888 }
 0x1c7   :  { %9971 = dma.done.wait [#allocation18], 272  }
 0x1c8   :  { %9972 = vsyncadd [#allocation18], 4294967024 }
 0x1c9   :  { %9973 = dma.done.wait [#allocation21], 4640  }
 0x1ca   :  { %9974 = vsyncadd [#allocation21], 4294962656 }
 0x1cb   :  { %9975 = dma.done.wait [#allocation24], 384  }
 0x1cc   :  { %9976 = vsyncadd [#allocation24], 4294966912 }
 0x1cd   :  { %9977 = dma.done.wait [#allocation27], 288  }
 0x1ce   :  { %9978 = vsyncadd [#allocation27], 4294967008 }
 0x1cf   :  { %9979 = dma.done.wait [#allocation30], 512  }
 0x1d0   :  { %9980 = vsyncadd [#allocation30], 4294966784 }
 0x1d1   :  { %9981 = dma.done.wait [#allocation33], 1056  }
 0x1d2   :  { %9982 = vsyncadd [#allocation33], 4294966240  ;;  %s12355_s17 = sld [smem:[#allocation53_spill]]  ;;  %v12313_v0 = vmov 0.0   ;;  %s12356_s21 = sld [smem:[#allocation48_spill]]  ;;  %vm461_vm0 = vcmask 261120   ;;  %v12312_v15 = vlaneseq }
 0x1d3   :  { %529 = vmatprep.mubr.f32.mxu0 %v12313_v0  ;;  %s12357_s1 = sld [smem:[#allocation49_spill]]  ;;  %vm560_vm1 = vcmask 15360   ;;  %v449_v18 = vld [vmem:[#allocation2] sm:$0x3]  ;;  %vm585_vm2 = vcmask 1041408   ;;  %s12361_s7 = sld [smem:[#allocation50_spill]] }
 0x1d4   :  { %v10458_v16 = vshrl.u32 %v12312_v15, 7  ;;  %s12364_s24 = sld [smem:[#allocation56_spill]]  ;;  %s12365_s9 = sld [smem:[#allocation54_spill]]  ;;  %vm746_vm3 = vcmask 130048   ;;  %vm10056_vm4 = vmmov 0   ;;  %vm12324_vm13 = vcmask 1042432  }
 0x1d5   :  { %s10054_s10 = smov 96   ;;  %s12384_s29 = sld [smem:[#allocation55_spill]] }
 0x1d6   :  { %12358 = vst [vmem:[#allocation72_spill] sm:$0xff] %v10458_v16  ;;  %v10461_v17 = vsub.s32 0, %v10458_v16  ;;  %s12387_s0 = sld [smem:[#allocation59_spill]]  ;;  %s10058_s11 = smov 32  }
 0x1d7   :  { %s12391_s3 = sld [smem:[#allocation51_spill]]  ;;  %s12396_s15 = sld [smem:[#allocation52_spill]] }
 0x1d8   :  { %v442_v1 = vld [vmem:[%s12355_s17 + $0x8] sm:$0xff]  ;;  %v444_v2 = vld [vmem:[%s12355_s17 + $0x18] sm:$0xff]  ;;  %v441_v3 = vld [vmem:[%s12355_s17] sm:$0xff]  ;;  %12359 = vst [vmem:[#allocation73_spill] sm:$0xff] %v10461_v17  ;;  %v454_v19 = vrot.slane %v449_v18, %v10461_v17  ;;  %s10059_s13 = smov 16   ;;  %s12398_s14 = sld [smem:[#allocation61_spill]] }
 0x1d9   :  { %v9140_v4 = vpack.c.bf16 %v444_v2, %v442_v1  ;;  %v443_v5 = vld [vmem:[%s12355_s17 + $0x10] sm:$0xff]  ;;  %v446_v6 = vld [vmem:[%s12355_s17 + $0x28] sm:$0xff]  ;;  %v448_v7 = vld [vmem:[%s12355_s17 + $0x38] sm:$0xff]  ;;  %s12399_s20 = sld [smem:[#allocation57_spill]]  ;;  %s12402_s16 = sld [smem:[#allocation68_spill]] }
 0x1da   :  { %v9142_v8 = vpack.c.bf16 %v443_v5, %v441_v3  ;;  %v9144_v9 = vpack.c.bf16 %v448_v7, %v446_v6  ;;  %v445_v10 = vld [vmem:[%s12355_s17 + $0x20] sm:$0xff]  ;;  %v447_v11 = vld [vmem:[%s12355_s17 + $0x30] sm:$0xff]  ;;  %v10469_v23 = vld [vmem:[%s12357_s1 + $0x8] sm:$0xff]  ;;  %s10060_s22 = smov 112   ;;  %s12403_s23 = sld [smem:[#allocation66_spill]] }
 0x1db   :  { %9141 = vmatprep.subr.bf16.mxu0 %v9140_v4  ;;  %v9146_v12 = vpack.c.bf16 %v447_v11, %v445_v10  ;;  %v440_v13 = vld [vmem:[%s12356_s21] sm:$0x3]  ;;  %v10474_v24 = vld [vmem:[%s12357_s1 + $0x10] sm:$0xff]  ;;  %v10483_v25 = vld [vmem:[%s12357_s1 + $0x18] sm:$0xff]  ;;  %s12405_s6 = sld [smem:[#allocation71_spill]]  ;;  %s10061_s26 = smov 17  }
 0x1dc   :  { %9143 = vmatpush1.bf16.msra.mxu0 %v9142_v8  ;;  %v10453_v14 = vld [vmem:[%s12357_s1] sm:$0xff]  ;;  %v10493_v27 = vld [vmem:[%s12357_s1 + $0x28] sm:$0xff]  ;;  %v10496_v28 = vld [vmem:[%s12357_s1 + $0x30] sm:$0xff]  ;;  %s10062_s5 = smov 15   ;;  %s10063_s28 = smov 1  }
 0x1dd   :  { %9145 = vmatprep.subr.bf16.mxu0 %v9144_v9  ;;  %8617 = vmatprep.mubr.msk.f32.mxu1 %vm560_vm1, %v10453_v14  ;;  %v10486_v26 = vld [vmem:[%s12357_s1 + $0x20] sm:$0xff]  ;;  %v10503_v29 = vld [vmem:[%s12357_s1 + $0x38] sm:$0xff]  ;;  %v10511_v36 = vld [vmem:[%s12361_s7 + $0x28] sm:$0xff]  ;;  %s10064_s2 = smov 127   ;;  %s10065_s12 = smov 113  }
 0x1de   :  { %v10508_v34 = vld [vmem:[%s12361_s7 + $0x20] sm:$0xff]  ;;  %v10515_v39 = vld [vmem:[%s12361_s7 + $0x38] sm:$0xff]  ;;  %v10520_v43 = vld [vmem:[%s12361_s7 + $0x30] sm:$0xff]  ;;  %s10066_s8 = smov 111   ;;  %s12407_s30 = sld [smem:[#allocation70_spill]] }
 0x1df   :  { %12362 = vst [vmem:[#allocation75_spill] sm:$0xff] %v10515_v39  ;;  %12363 = vst [vmem:[#allocation76_spill] sm:$0xff] %v10520_v43  ;;  %v10523_v44 = vld [vmem:[%s12361_s7] sm:$0xff]  ;;  %v10529_v49 = vld [vmem:[%s12361_s7 + $0x8] sm:$0xff]  ;;  %s12408_s27 = sld [smem:[#allocation64_spill]] }
 0x1e0   :  { %9147 = vmatpush1.bf16.msra.mxu0 %v9146_v12  ;;  %v10534_v52 = vld [vmem:[%s12361_s7 + $0x10] sm:$0xff]  ;;  %v10539_v55 = vld [vmem:[%s12361_s7 + $0x18] sm:$0xff]  ;;  %v9256_v62 = vld [vmem:[%s12364_s24] sm:$0xff]  }
 0x1e1   :  { %8629 = vmatprep.subr.bf16.mxu0 %v9256_v62  ;;  %v9257_v63 = vld [vmem:[%s12364_s24 + $0x8] sm:$0xff]   ;;  %v9258_v1 = vld [vmem:[%s12364_s24 + $0x10] sm:$0xff]   ;;  %v540_v3 = vld [vmem:[%s12365_s9 + $0x20] sm:$0xff] }
 0x1e2   :  { %v541_v4 = vld [vmem:[%s12365_s9 + $0x28] sm:$0xff]  ;;  %v543_v8 = vld [vmem:[%s12365_s9 + $0x38] sm:$0xff]  ;;  %v542_v10 = vld [vmem:[%s12365_s9 + $0x30] sm:$0xff] }
 0x1e3   :  { %7789 = vmatmul.mubr.msk.f32.vlgmr.msra.gmra.mrb[0].mxu0 %vm461_vm0, %v440_v13 }
 0x1e4   :  { %8630 = vmatpush3.bf16.msra.mxu0 %v9256_v62 }
 0x1e5   :  { %8649 = vmatprep.subr.bf16.mxu0 %v9258_v1 }
 0x2b6   :  { %v531_v20 = vpop.f32.mrb[0].mxu0 }
 0x2b7   :  { %v10464_v21 = vadd.f32 %v531_v20, %v454_v19  ;;  %v10466_v22 = vpop.f32.mrb[1].mxu0  ;;  %v536_v20 = vld [vmem:[%s12365_s9] sm:$0xff] }
 0x2b8   :  { %12360 = vst [vmem:[#allocation74_spill] sm:$0xff] %v10466_v22 }
 0x2b9   :  { %8615 = vmatprep.subr.msk.mxu1 %vm585_vm2, %v10464_v21 }
 0x2ba   :  { %8616 = vmatpush3.msk.msra.mxu1 %vm585_vm2, %v10464_v21 }
 0x2bb   :  { %8618 = vmatmul.mubr.msk.f32.vlgmr.msra.gmra.mrb[0].mxu1 %vm560_vm1, %v10469_v23  ;;  %9169 = vmatprep.subr.bf16.mxu1 %v9256_v62 }
 0x2bc   :  { %8620 = vmatprep.mubr.msk.f32.mxu1 %vm560_vm1, %v10474_v24  ;;  %9170 = vmatpush3.bf16.msra.mxu1 %v9256_v62 }
 0x2bd   :  { %8639 = vmatprep.subr.bf16.mxu1 %v9257_v63 }
 0x2bf   :  { %8621 = vmatmul.mubr.msk.f32.gmra.mrb[2].mxu1 %vm560_vm1, %v10483_v25 }
 0x2c0   :  { %8623 = vmatprep.mubr.msk.f32.mxu1 %vm560_vm1, %v10486_v26 }
 0x2c3   :  { %8624 = vmatmul.mubr.msk.f32.gmra.mrb[4].mxu1 %vm560_vm1, %v10493_v27 }
 0x2c4   :  { %8626 = vmatprep.mubr.msk.f32.mxu1 %vm560_vm1, %v10496_v28 }
 0x2c7   :  { %8627 = vmatmul.mubr.msk.f32.gmra.mrb[6].mxu1 %vm560_vm1, %v10503_v29 }
 0x38e   :  { %v8619_v30 = vpop.f32.mrb[0].mxu1 }
 0x38f   :  { %v655_v31 = vpop.f32.mrb[1].mxu1  ;;  %v695_v53 = vmul.f32 %v8619_v30, %v10529_v49  ;;  %v537_v30 = vld [vmem:[%s12365_s9 + $0x8] sm:$0xff] }
 0x390   :  { %v694_v50 = vmul.f32 %v655_v31, %v10523_v44 }
 0x391   :  { %v705_v59 = vsel %vm461_vm0, %v695_v53, 0.0  ;;  %v9262_v53 = vld [vmem:[%s12364_s24 + $0x30] sm:$0xff]  }
 0x392   :  { %v8622_v32 = vpop.f32.mrb[2].mxu1  ;;  %v702_v57 = vsel %vm461_vm0, %v694_v50, 0.0  ;;  %v9260_v50 = vld [vmem:[%s12364_s24 + $0x20] sm:$0xff]  }
 0x393   :  { %v665_v33 = vpop.f32.mrb[3].mxu1  ;;  %v697_v58 = vmul.f32 %v8622_v32, %v10539_v55  ;;  %v9259_v32 = vld [vmem:[%s12364_s24 + $0x18] sm:$0xff]  }
 0x394   :  { %v696_v56 = vmul.f32 %v665_v33, %v10534_v52 }
 0x395   :  { %v711_v61 = vsel %vm461_vm0, %v697_v58, 0.0  ;;  %v10629_v58 = vld [vmem:[#allocation5 + $0x8] ss:$12 sps:$4 sm:$0xff]  }
 0x396   :  { %v8625_v35 = vpop.f32.mrb[4].mxu1  ;;  %v708_v60 = vsel %vm461_vm0, %v696_v56, 0.0  ;;  %v9264_v56 = vld [vmem:[%s12364_s24 + $0x40] sm:$0xff]  }
 0x397   :  { %v675_v37 = vpop.f32.mrb[5].mxu1  ;;  %v699_v40 = vmul.f32 %v8625_v35, %v10511_v36 }
 0x398   :  { %v698_v38 = vmul.f32 %v675_v37, %v10508_v34 }
 0x399   :  { %v717_v51 = vsel %vm461_vm0, %v699_v40, 0.0 }
 0x39a   :  { %v8628_v41 = vpop.f32.mrb[6].mxu1  ;;  %v714_v42 = vsel %vm461_vm0, %v698_v38, 0.0  ;;  %v538_v38 = vld [vmem:[%s12365_s9 + $0x10] sm:$0xff] }
 0x39b   :  { %v701_v45 = vmul.f32 %v8628_v41, %v10515_v39  ;;  %715 = vadd.xlane.f32.xlu0 %v714_v42  ;;  %v685_v46 = vpop.f32.mrb[7].mxu1  ;;  %v539_v41 = vld [vmem:[%s12365_s9 + $0x18] sm:$0xff] }
 0x39c   :  { %v700_v47 = vmul.f32 %v685_v46, %v10520_v43  ;;  %v10756_v43 = vld [vmem:[#allocation5] ss:$12 sps:$4 sm:$0xff]  }
 0x39d   :  { %v723_v48 = vsel %vm461_vm0, %v701_v45, 0.0 }
 0x39e   :  { %724 = vadd.xlane.f32.xlu1 %v723_v48  ;;  %v720_v54 = vsel %vm461_vm0, %v700_v47, 0.0 }
 0x39f   :  { %718 = vadd.xlane.f32.xlu0 %v717_v51  ;;  %v9261_v51 = vld [vmem:[%s12364_s24 + $0x28] sm:$0xff]  }
 0x3a2   :  { %721 = vadd.xlane.f32.xlu1 %v720_v54  ;;  %v9263_v54 = vld [vmem:[%s12364_s24 + $0x38] sm:$0xff]  }
 0x3a3   :  { %703 = vadd.xlane.f32.xlu0 %v702_v57  ;;  %v10626_v57 = vld [vmem:[#allocation5 + $0x4] ss:$12 sps:$4 sm:$0xff]  }
 0x3a6   :  { %706 = vadd.xlane.f32.xlu1 %v705_v59 }
 0x3a7   :  { %709 = vadd.xlane.f32.xlu0 %v708_v60 }
 0x3aa   :  { %712 = vadd.xlane.f32.xlu1 %v711_v61 }
 0x3bb   :  { %2271 = vrot.lane.b32.xlu1 %v10464_v21, %s10032_s18 }
 0x3bd   :  { %2022 = vrot.lane.b32.xlu0 %v10464_v21, %s10054_s10 }
 0x428   :  { %v716_v2 = vpop.xlane.xlu0 %715 }
 0x429   :  { %v730_v7 = vmul.f32 %v716_v2, %v540_v3 }
 0x42b   :  { %v725_v5 = vpop.xlane.xlu1 %724 }
 0x42c   :  { %v719_v6 = vpop.xlane.xlu0 %718  ;;  %v733_v13 = vmul.f32 %v725_v5, %v543_v8 }
 0x42d   :  { %v731_v9 = vmul.f32 %v719_v6, %v541_v4 }
 0x42f   :  { %v10558_v11 = vpack.c.bf16 %v731_v9, %v730_v7  ;;  %v722_v12 = vpop.xlane.xlu1 %721 }
 0x430   :  { %v732_v18 = vmul.f32 %v722_v12, %v542_v10  ;;  %v704_v19 = vpop.xlane.xlu0 %703 }
 0x431   :  { %8635 = vmatprep.mubr.msk.bf16.mxu1 %vm746_vm3, %v10558_v11  ;;  %v726_v35 = vmul.f32 %v704_v19, %v536_v20 }
 0x432   :  { %v10564_v31 = vpack.c.bf16 %v733_v13, %v732_v18 }
 0x433   :  { %v707_v33 = vpop.xlane.xlu1 %706 }
 0x434   :  { %v727_v37 = vmul.f32 %v707_v33, %v537_v30  ;;  %8636 = vmatmul.mubr.msk.bf16.vlgmr.msra.gmra.mrb[8].mxu1 %vm746_vm3, %v10564_v31  ;;  %v710_v40 = vpop.xlane.xlu0 %709 }
 0x435   :  { %8640 = vmatpush3.bf16.msra.mxu1 %v9257_v63  ;;  %v728_v46 = vmul.f32 %v710_v40, %v538_v38 }
 0x436   :  { %v734_v42 = vpack.c.bf16 %v727_v37, %v726_v35  ;;  %8659 = vmatprep.subr.bf16.mxu1 %v9259_v32 }
 0x437   :  { %v713_v45 = vpop.xlane.xlu1 %712 }
 0x438   :  { %v729_v47 = vmul.f32 %v713_v45, %v539_v41  ;;  %8631 = vmatprep.mubr.msk.bf16.mxu0 %vm746_vm3, %v734_v42  ;;  %8641 = vmatprep.mubr.msk.bf16.mxu1 %vm746_vm3, %v734_v42 }
 0x43a   :  { %v735_v48 = vpack.c.bf16 %v729_v47, %v728_v46 }
 0x43c   :  { %8632 = vmatmul.mubr.msk.bf16.vlgmr.msra.gmra.mrb[4].mxu0 %vm746_vm3, %v735_v48  ;;  %8642 = vmatmul.mubr.msk.bf16.vlgmr.msra.gmra.mrb[12].mxu1 %vm746_vm3, %v735_v48 }
 0x43d   :  { %8645 = vmatprep.mubr.msk.bf16.mxu1 %vm746_vm3, %v10558_v11  ;;  %8651 = vmatprep.mubr.msk.bf16.mxu0 %vm746_vm3, %v734_v42 }
 0x43e   :  { %8650 = vmatpush3.bf16.msra.mxu0 %v9258_v1  ;;  %8660 = vmatpush3.bf16.msra.mxu1 %v9259_v32 }
 0x43f   :  { %8669 = vmatprep.subr.bf16.mxu0 %v9260_v50  ;;  %8679 = vmatprep.subr.bf16.mxu1 %v9261_v51 }
 0x444   :  { %8646 = vmatmul.mubr.msk.bf16.gmra.mrb[16].mxu1 %vm746_vm3, %v10564_v31  ;;  %8652 = vmatmul.mubr.msk.bf16.vlgmr.msra.gmra.mrb[8].mxu0 %vm746_vm3, %v735_v48 }
 0x445   :  { %8655 = vmatprep.mubr.msk.bf16.mxu0 %vm746_vm3, %v10558_v11  ;;  %8661 = vmatprep.mubr.msk.bf16.mxu1 %vm746_vm3, %v734_v42 }
 0x446   :  { %8670 = vmatpush3.bf16.msra.mxu0 %v9260_v50 }
 0x447   :  { %8689 = vmatprep.subr.bf16.mxu0 %v9262_v53 }
 0x44c   :  { %8656 = vmatmul.mubr.msk.bf16.gmra.mrb[12].mxu0 %vm746_vm3, %v10564_v31  ;;  %8662 = vmatmul.mubr.msk.bf16.vlgmr.msra.gmra.mrb[20].mxu1 %vm746_vm3, %v735_v48 }
 0x44d   :  { %8665 = vmatprep.mubr.msk.bf16.mxu1 %vm746_vm3, %v10558_v11  ;;  %8671 = vmatprep.mubr.msk.bf16.mxu0 %vm746_vm3, %v734_v42 }
 0x44e   :  { %8680 = vmatpush3.bf16.msra.mxu1 %v9261_v51 }
 0x44f   :  { %8699 = vmatprep.subr.bf16.mxu1 %v9263_v54 }
 0x454   :  { %8666 = vmatmul.mubr.msk.bf16.gmra.mrb[24].mxu1 %vm746_vm3, %v10564_v31  ;;  %8672 = vmatmul.mubr.msk.bf16.vlgmr.msra.gmra.mrb[16].mxu0 %vm746_vm3, %v735_v48 }
 0x455   :  { %8675 = vmatprep.mubr.msk.bf16.mxu0 %vm746_vm3, %v10558_v11  ;;  %8681 = vmatprep.mubr.msk.bf16.mxu1 %vm746_vm3, %v734_v42 }
 0x456   :  { %8690 = vmatpush3.bf16.msra.mxu0 %v9262_v53 }
 0x457   :  { %8709 = vmatprep.subr.bf16.mxu0 %v9264_v56 }
 0x45c   :  { %8676 = vmatmul.mubr.msk.bf16.gmra.mrb[20].mxu0 %vm746_vm3, %v10564_v31  ;;  %8682 = vmatmul.mubr.msk.bf16.vlgmr.msra.gmra.mrb[28].mxu1 %vm746_vm3, %v735_v48 }
 0x45d   :  { %8685 = vmatprep.mubr.msk.bf16.mxu1 %vm746_vm3, %v10558_v11  ;;  %8691 = vmatprep.mubr.msk.bf16.mxu0 %vm746_vm3, %v734_v42 }
 0x45e   :  { %8700 = vmatpush3.bf16.msra.mxu1 %v9263_v54 }
 0x464   :  { %8686 = vmatmul.mubr.msk.bf16.gmra.mrb[32].mxu1 %vm746_vm3, %v10564_v31  ;;  %8692 = vmatmul.mubr.msk.bf16.vlgmr.msra.gmra.mrb[24].mxu0 %vm746_vm3, %v735_v48 }
 0x465   :  { %8695 = vmatprep.mubr.msk.bf16.mxu0 %vm746_vm3, %v10558_v11  ;;  %8701 = vmatprep.mubr.msk.bf16.mxu1 %vm746_vm3, %v734_v42 }
 0x466   :  { %8710 = vmatpush3.bf16.msra.mxu0 %v9264_v56 }
 0x46c   :  { %8696 = vmatmul.mubr.msk.bf16.gmra.mrb[28].mxu0 %vm746_vm3, %v10564_v31  ;;  %8702 = vmatmul.mubr.msk.bf16.vlgmr.msra.gmra.mrb[36].mxu1 %vm746_vm3, %v735_v48 }
 0x46d   :  { %8705 = vmatprep.mubr.msk.bf16.mxu1 %vm746_vm3, %v10558_v11  ;;  %8711 = vmatprep.mubr.msk.bf16.mxu0 %vm746_vm3, %v734_v42 }
 0x474   :  { %8706 = vmatmul.mubr.msk.bf16.gmra.mrb[40].mxu1 %vm746_vm3, %v10564_v31  ;;  %8712 = vmatmul.mubr.msk.bf16.vlgmr.msra.gmra.mrb[32].mxu0 %vm746_vm3, %v735_v48 }
 0x475   :  { %8715 = vmatprep.mubr.msk.bf16.mxu0 %vm746_vm3, %v10558_v11  ;;  %1528 = vmatprep.mubr.bf16.mxu1 %v10626_v57 }
 0x47c   :  { %8716 = vmatmul.mubr.msk.bf16.gmra.mrb[36].mxu0 %vm746_vm3, %v10564_v31 }
 0x47d   :  { %8723 = vmatprep.mubr.msk.bf16.mxu0 %vm461_vm0, %v10629_v58 }
 0x507   :  { %v10633_v59 = vpop.f32.mrb[8].mxu1 }
 0x508   :  { %v10635_v60 = vpop.f32.mrb[9].mxu1 }
 0x509   :  { %v10637_v61 = vpop.f32.mrb[10].mxu1 }
 0x50a   :  { %v10641_v63 = vpop.f32.mrb[11].mxu1 }
 0x50f   :  { %v8633_v2 = vpop.f32.mrb[4].mxu0  ;;  %v10645_v3 = vpop.f32.mrb[12].mxu1 }
 0x510   :  { %v793_v4 = vpop.f32.mrb[5].mxu0  ;;  %v871_v5 = vpop.f32.mrb[13].mxu1 }
 0x511   :  { %v8634_v6 = vpop.f32.mrb[6].mxu0  ;;  %v10647_v7 = vpop.f32.mrb[14].mxu1 }
 0x512   :  { %v825_v8 = vpack.c.bf16 %v8634_v6, %v8633_v2  ;;  %v796_v10 = vpop.f32.mrb[7].mxu0  ;;  %v874_v11 = vpop.f32.mrb[15].mxu1 }
 0x513   :  { %v824_v12 = vpack.c.bf16 %v796_v10, %v793_v4  ;;  %v902_v13 = vpack.c.bf16 %v874_v11, %v871_v5 }
 0x517   :  { %v10651_v18 = vpop.f32.mrb[16].mxu1  ;;  %v10653_v19 = vpop.f32.mrb[8].mxu0 }
 0x518   :  { %v10655_v20 = vpop.f32.mrb[17].mxu1  ;;  %v10657_v30 = vpop.f32.mrb[9].mxu0 }
 0x519   :  { %v10659_v31 = vpop.f32.mrb[18].mxu1  ;;  %v10661_v32 = vpop.f32.mrb[10].mxu0 }
 0x51a   :  { %v10667_v37 = vpop.f32.mrb[19].mxu1  ;;  %v952_v38 = vpop.f32.mrb[11].mxu0 }
 0x51b   :  { %v980_v41 = vpack.c.bf16 %v952_v38, %v10657_v30 }
 0x51f   :  { %v10672_v42 = vpop.f32.mrb[12].mxu0  ;;  %v10674_v45 = vpop.f32.mrb[20].mxu1 }
 0x520   :  { %v10676_v46 = vpop.f32.mrb[13].mxu0  ;;  %v10678_v47 = vpop.f32.mrb[21].mxu1 }
 0x521   :  { %v10680_v48 = vpop.f32.mrb[14].mxu0  ;;  %v10682_v50 = vpop.f32.mrb[22].mxu1 }
 0x522   :  { %v10688_v54 = vpop.f32.mrb[15].mxu0  ;;  %v10690_v56 = vpop.f32.mrb[23].mxu1 }
 0x523   :  { %v1058_v4 = vpack.c.bf16 %v10690_v56, %v10678_v47 }
 0x527   :  { %v10696_v5 = vpop.f32.mrb[24].mxu1  ;;  %v8673_v6 = vpop.f32.mrb[16].mxu0 }
 0x528   :  { %v10698_v10 = vpop.f32.mrb[25].mxu1  ;;  %v1105_v11 = vpop.f32.mrb[17].mxu0 }
 0x529   :  { %v10700_v30 = vpop.f32.mrb[26].mxu1  ;;  %v8674_v38 = vpop.f32.mrb[18].mxu0 }
 0x52a   :  { %v1137_v51 = vpack.c.bf16 %v8674_v38, %v8673_v6  ;;  %v10704_v33 = vpop.f32.mrb[27].mxu1  ;;  %v1108_v0 = vpop.f32.mrb[19].mxu0 }
 0x52b   :  { %v1136_v47 = vpack.c.bf16 %v1108_v0, %v1105_v11 }
 0x52d   :  { %8299 = vmatprep.subr.bf16.mxu1 %v1136_v47 }
 0x52e   :  { %8300 = vmatpush3.bf16.msra.mxu1 %v824_v12 }
 0x52f   :  { %v10708_v56 = vpop.f32.mrb[20].mxu0  ;;  %v8683_v40 = vpop.f32.mrb[28].mxu1  ;;  %8301 = vmatprep.subr.bf16.mxu1 %v1137_v51 }
 0x530   :  { %v10710_v62 = vpop.f32.mrb[21].mxu0  ;;  %v1183_v1 = vpop.f32.mrb[29].mxu1 }
 0x531   :  { %v10712_v53 = vpop.f32.mrb[22].mxu0  ;;  %v8684_v15 = vpop.f32.mrb[30].mxu1 }
 0x532   :  { %v1215_v38 = vpack.c.bf16 %v8684_v15, %v8683_v40  ;;  %v10716_v35 = vpop.f32.mrb[23].mxu0  ;;  %v1186_v2 = vpop.f32.mrb[31].mxu1  ;;  %8302 = vmatpush3.bf16.msra.mxu1 %v825_v8 }
 0x533   :  { %v1214_v12 = vpack.c.bf16 %v1186_v2, %v1183_v1  ;;  %v12366_v1 = vpack.c.bf16 %v10647_v7, %v10645_v3 }
 0x535   :  { %8303 = vmatprep.subr.bf16.mxu1 %v1214_v12 }
 0x536   :  { %8304 = vmatpush3.bf16.msra.mxu1 %v902_v13 }
 0x537   :  { %v10720_v51 = vpop.f32.mrb[32].mxu1  ;;  %v8693_v11 = vpop.f32.mrb[24].mxu0  ;;  %8305 = vmatprep.subr.bf16.mxu1 %v1215_v38 }
 0x538   :  { %v10722_v47 = vpop.f32.mrb[33].mxu1  ;;  %v1261_v9 = vpop.f32.mrb[25].mxu0 }
 0x539   :  { %v10724_v17 = vpop.f32.mrb[34].mxu1  ;;  %v8694_v15 = vpop.f32.mrb[26].mxu0 }
 0x53a   :  { %v1293_v8 = vpack.c.bf16 %v8694_v15, %v8693_v11  ;;  %v10728_v6 = vpop.f32.mrb[35].mxu1  ;;  %v1264_v0 = vpop.f32.mrb[27].mxu0  ;;  %8306 = vmatpush3.bf16.msra.mxu1 %v12366_v1 }
 0x53b   :  { %v1292_v2 = vpack.c.bf16 %v1264_v0, %v1261_v9  ;;  %v12367_v9 = vpack.c.bf16 %v10661_v32, %v10653_v19 }
 0x53d   :  { %8307 = vmatprep.subr.bf16.mxu1 %v1292_v2 }
 0x53e   :  { %8308 = vmatpush3.bf16.msra.mxu1 %v980_v41 }
 0x53f   :  { %v10735_v38 = vpop.f32.mrb[28].mxu0  ;;  %v8703_v12 = vpop.f32.mrb[36].mxu1  ;;  %8309 = vmatprep.subr.bf16.mxu1 %v1293_v8 }
 0x540   :  { %v10737_v22 = vpop.f32.mrb[29].mxu0  ;;  %v1339_v11 = vpop.f32.mrb[37].mxu1 }
 0x541   :  { %v10739_v15 = vpop.f32.mrb[30].mxu0  ;;  %v8704_v40 = vpop.f32.mrb[38].mxu1 }
 0x542   :  { %v1371_v7 = vpack.c.bf16 %v8704_v40, %v8703_v12  ;;  %v10743_v1 = vpop.f32.mrb[31].mxu0  ;;  %v1342_v13 = vpop.f32.mrb[39].mxu1  ;;  %8310 = vmatpush3.bf16.msra.mxu1 %v12367_v9 }
 0x543   :  { %v1370_v0 = vpack.c.bf16 %v1342_v13, %v1339_v11  ;;  %v10763_v11 = vld [vmem:[#allocation5 + $0x1c] ss:$12 sps:$4 sm:$0xff]  }
 0x545   :  { %8311 = vmatprep.subr.bf16.mxu1 %v1370_v0 }
 0x546   :  { %8312 = vmatpush3.bf16.msra.mxu1 %v1058_v4  ;;  %v12368_v4 = vpack.c.bf16 %v10682_v50, %v10674_v45 }
 0x547   :  { %v10750_v8 = vpop.f32.mrb[40].mxu1  ;;  %v8713_v2 = vpop.f32.mrb[32].mxu0  ;;  %8313 = vmatprep.subr.bf16.mxu1 %v1371_v7 }
 0x548   :  { %v10752_v16 = vpop.f32.mrb[41].mxu1  ;;  %v1417_v40 = vpop.f32.mrb[33].mxu0 }
 0x549   :  { %v10754_v12 = vpop.f32.mrb[42].mxu1  ;;  %v8714_v3 = vpop.f32.mrb[34].mxu0 }
 0x54a   :  { %v1373_v19 = vpack.c.bf16 %v10754_v12, %v10750_v8  ;;  %v1449_v32 = vpack.c.bf16 %v8714_v3, %v8713_v2  ;;  %v1358_v9 = vpop.f32.mrb[43].mxu1  ;;  %v1420_v13 = vpop.f32.mrb[35].mxu0  ;;  %8314 = vmatpush3.bf16.msra.mxu1 %v12368_v4  ;;  %v9271_v2 = vld [vmem:[#allocation5 + $0x18] ss:$12 sps:$4 sm:$0xff]   ;;  %v9272_v12 = vld [vmem:[#allocation5 + $0x20] ss:$12 sps:$4 sm:$0xff]  }
 0x54b   :  { %v1372_v7 = vpack.c.bf16 %v1358_v9, %v10752_v16  ;;  %v1448_v0 = vpack.c.bf16 %v1420_v13, %v1417_v40  ;;  %v12369_v16 = vpack.c.bf16 %v10716_v35, %v10710_v62  ;;  %v12370_v40 = vpack.c.bf16 %v10641_v63, %v10635_v60  ;;  %v1694_v62 = vld [vmem:[#allocation7 + $0x8] sm:$0xff] }
 0x54c   :  { %v12371_v9 = vpack.c.bf16 %v10712_v53, %v10708_v56  ;;  %v12372_v35 = vpack.c.bf16 %v10637_v61, %v10633_v59  ;;  %v12373_v60 = vpack.c.bf16 %v10728_v6, %v10722_v47  ;;  %v10055_v53 = vmov 0.0|0.0   ;;  %v1695_v56 = vld [vmem:[#allocation7 + $0x10] sm:$0xff]  ;;  %v2023_v6 = vpop.permute.xlu0 %2022 }
 0x54d   :  { %1529 = vmatmul.mubr.bf16.vlgmr.msra.gmra.mrb[44].mxu1 %v10756_v43  ;;  %8719 = vmatprep.subr.bf16.mxu0 %v1448_v0  ;;  %v12376_v59 = vmov 0.0   ;;  %v12377_v61 = vpack.c.bf16 %v10659_v31, %v10651_v18  ;;  %v12380_v18 = vpack.c.bf16 %v10739_v15, %v10735_v38  ;;  %v12382_v31 = vpack.c.bf16 %v10704_v33, %v10698_v10  ;;  %v1939_v10 = vld [vmem:[%s12384_s29 + $0x28] sm:$0xff] }
 0x54e   :  { %8720 = vmatpush3.bf16.msra.mxu0 %v1448_v0  ;;  %1536 = vmatprep.mubr.bf16.mxu1 %v10763_v11  ;;  %v12322_v33 = vmov 0  }
 0x54f   :  { %v8717_v41 = vpop.f32.mrb[36].mxu0  ;;  %8721 = vmatprep.subr.bf16.mxu0 %v1449_v32  ;;  %9255 = vset.pattern.permute.xlu1 %v12322_v33 }
 0x550   :  { %v1433_v3 = vpop.f32.mrb[37].mxu0  ;;  %9254 = vset.pattern.permute.xlu0 %v12322_v33 }
 0x551   :  { %v8718_v8 = vpop.f32.mrb[38].mxu0 }
 0x552   :  { %v1451_v39 = vpack.c.bf16 %v8718_v8, %v8717_v41  ;;  %v1436_v45 = vpop.f32.mrb[39].mxu0  ;;  %8722 = vmatpush3.bf16.msra.mxu0 %v1449_v32  ;;  %v1693_v41 = vld [vmem:[#allocation7] sm:$0xff]  ;;  %v1696_v32 = vld [vmem:[#allocation7 + $0x18] sm:$0xff] }
 0x553   :  { %v1450_v50 = vpack.c.bf16 %v1436_v45, %v1433_v3  ;;  %8331 = vmatprep.subr.bf16.mxu0 %v12369_v16  ;;  %v9149_v63 = vpack.c.bf16 %v1694_v62, %v1693_v41 }
 0x555   :  { %1537 = vmatmul.mubr.bf16.gmra.mrb[48].mxu1 %v9271_v2  ;;  %8724 = vmatmul.mubr.msk.bf16.vlgmr.msra.gmra.mrb[40].mxu0 %vm461_vm0, %v9272_v12 }
 0x556   :  { %8727 = vmatprep.subr.bf16.mxu1 %v1450_v50  ;;  %8332 = vmatpush3.bf16.msra.mxu0 %v12370_v40 }
 0x557   :  { %8728 = vmatpush3.bf16.msra.mxu1 %v1450_v50  ;;  %8333 = vmatprep.subr.bf16.mxu0 %v12371_v9 }
 0x558   :  { %8729 = vmatprep.subr.bf16.mxu1 %v1451_v39  ;;  %8731 = vmatprep.mubr.msk.bf16.mxu1 %vm461_vm0, %v10629_v58  ;;  %v9152_v58 = vpack.c.bf16 %v1696_v32, %v1695_v56 }
 0x559   :  { %1626 = vmatprep.mubr.bf16.mxu0 %v10626_v57  ;;  %v12374_v57 = vpack.c.bf16 %v10667_v37, %v10655_v20  ;;  %v12378_v20 = vpack.c.bf16 %v10743_v1, %v10737_v22  ;;  %v12379_v37 = vpack.c.bf16 %v10688_v54, %v10676_v46  ;;  %v12381_v22 = vpack.c.bf16 %v10680_v48, %v10672_v42  ;;  %v2272_v54 = vpop.permute.xlu1 %2271  ;;  %v1936_v42 = vld [vmem:[%s12384_s29 + $0x10] sm:$0xff]  ;;  %v1937_v48 = vld [vmem:[%s12384_s29 + $0x18] sm:$0xff] }
 0x55a   :  { %8334 = vmatpush3.bf16.msra.mxu0 %v12372_v35  ;;  %v12383_v46 = vpack.c.bf16 %v10700_v30, %v10696_v5  ;;  %v1938_v5 = vld [vmem:[%s12384_s29 + $0x20] sm:$0xff] }
 0x55b   :  { %8730 = vmatpush3.bf16.msra.mxu1 %v1451_v39  ;;  %8335 = vmatprep.subr.bf16.mxu0 %v12373_v60  ;;  %v12375_v39 = vpack.c.bf16 %v10724_v17, %v10720_v51  ;;  %v10806_v17 = vmul.f32 %v10464_v21, %v10464_v21 }
 0x55c   :  { %9148 = vmatprep.subr.bf16.mxu1 %v10055_v53 }
 0x55e   :  { %8732 = vmatmul.mubr.msk.bf16.vlgmr.msra.gmra.mrb[52].mxu1 %vm461_vm0, %v9272_v12  ;;  %8336 = vmatpush3.bf16.msra.mxu0 %v12374_v57 }
 0x55f   :  { %9150 = vmatpush3.bf16.msra.mxu1 %v9149_v63  ;;  %8337 = vmatprep.subr.bf16.mxu0 %v12375_v39 }
 0x560   :  { %9151 = vmatprep.subr.bf16.mxu1 %v10055_v53  ;;  %8743 = vmatprep.mubr.msk.f32.mxu1 %vm10056_vm4, %v12376_v59 }
 0x562   :  { %8338 = vmatpush3.bf16.msra.mxu0 %v12377_v61 }
 0x563   :  { %9153 = vmatpush3.bf16.msra.mxu1 %v9152_v58  ;;  %8339 = vmatprep.subr.bf16.mxu0 %v12378_v20 }
 0x566   :  { %8744 = vmatmul.mubr.msk.f32.vlgmr.msra.gmra.mrb[56].mxu1 %vm461_vm0, %v10806_v17  ;;  %8340 = vmatpush3.bf16.msra.mxu0 %v12379_v37 }
 0x567   :  { %8341 = vmatprep.subr.bf16.mxu0 %v12380_v18  ;;  %8748 = vmatprep.mubr.msk.f32.mxu1 %vm560_vm1, %v10453_v14 }
 0x56a   :  { %8342 = vmatpush3.bf16.msra.mxu0 %v12381_v22 }
 0x56b   :  { %8343 = vmatprep.subr.bf16.mxu0 %v1372_v7 }
 0x56e   :  { %8344 = vmatpush3.bf16.msra.mxu0 %v12382_v31 }
 0x56f   :  { %8345 = vmatprep.subr.bf16.mxu0 %v1373_v19 }
 0x572   :  { %8346 = vmatpush3.bf16.msra.mxu0 %v12383_v46 }
 0x573   :  { %8760 = vmatprep.subr.msk.mxu0 %vm585_vm2, %v2023_v6 }
 0x575   :  { %1627 = vmatmul.mubr.bf16.vlgmr.msra.gmra.mrb[44].mxu0 %v10756_v43  ;;  %v1934_v43 = vld [vmem:[%s12384_s29] sm:$0xff] }
 0x576   :  { %8761 = vmatpush3.msk.msra.mxu0 %vm585_vm2, %v2023_v6  ;;  %1634 = vmatprep.mubr.bf16.mxu0 %v10763_v11 }
 0x577   :  { %8790 = vmatprep.subr.msk.mxu0 %vm585_vm2, %v2272_v54  ;;  %1944 = vperm.xlu0 %9254, %v1934_v43  }
 0x57b   :  { %1959 = vperm.xlu0 %9254, %v1937_v48  }
 0x57d   :  { %1635 = vmatmul.mubr.bf16.gmra.mrb[48].mxu0 %v9271_v2 }
 0x57e   :  { %8762 = vmatprep.mubr.msk.f32.mxu0 %vm560_vm1, %v10453_v14 }
 0x57f   :  { %1969 = vperm.xlu0 %9254, %v1939_v10  }
 0x585   :  { %8763 = vmatmul.mubr.msk.f32.vlgmr.msra.gmra.mrb[2].mxu0 %vm560_vm1, %v10469_v23 }
 0x586   :  { %8791 = vmatpush3.msk.msra.mxu0 %vm585_vm2, %v2272_v54  ;;  %8765 = vmatprep.mubr.msk.f32.mxu0 %vm560_vm1, %v10474_v24 }
 0x589   :  { %8766 = vmatmul.mubr.msk.f32.gmra.mrb[52].mxu0 %vm560_vm1, %v10483_v25 }
 0x58a   :  { %8768 = vmatprep.mubr.msk.f32.mxu0 %vm560_vm1, %v10486_v26 }
 0x58d   :  { %8769 = vmatmul.mubr.msk.f32.gmra.mrb[54].mxu0 %vm560_vm1, %v10493_v27 }
 0x58e   :  { %8771 = vmatprep.mubr.msk.f32.mxu0 %vm560_vm1, %v10496_v28 }
 0x591   :  { %8772 = vmatmul.mubr.msk.f32.gmra.mrb[56].mxu0 %vm560_vm1, %v10503_v29 }
 0x592   :  { %8792 = vmatprep.mubr.msk.f32.mxu0 %vm560_vm1, %v10453_v14  ;;  %v1935_v14 = vld [vmem:[%s12384_s29 + $0x8] sm:$0xff] }
 0x593   :  { %1949 = vperm.xlu1 %9255, %v1935_v14  }
 0x595   :  { %8793 = vmatmul.mubr.msk.f32.vlgmr.msra.gmra.mrb[58].mxu0 %vm560_vm1, %v10469_v23 }
 0x596   :  { %8795 = vmatprep.mubr.msk.f32.mxu0 %vm560_vm1, %v10474_v24 }
 0x597   :  { %1954 = vperm.xlu1 %9255, %v1936_v42  }
 0x599   :  { %8796 = vmatmul.mubr.msk.f32.gmra.mrb[60].mxu0 %vm560_vm1, %v10483_v25 }
 0x59a   :  { %8798 = vmatprep.mubr.msk.f32.mxu0 %vm560_vm1, %v10486_v26 }
 0x59b   :  { %1964 = vperm.xlu1 %9255, %v1938_v5  }
 0x59d   :  { %8799 = vmatmul.mubr.msk.f32.gmra.mrb[62].mxu0 %vm560_vm1, %v10493_v27 }
 0x59e   :  { %8801 = vmatprep.mubr.msk.f32.mxu0 %vm560_vm1, %v10496_v28 }
 0x5a1   :  { %8802 = vmatmul.mubr.msk.f32.gmra.mrb[64].mxu0 %vm560_vm1, %v10503_v29 }
 0x620   :  { %v8315_v30 = vpop.f32.mrb[44].mxu1 }
 0x621   :  { %v8316_v51 = vpop.f32.mrb[45].mxu1 }
 0x622   :  { %v8317_v47 = vadd.f32 %v8316_v51, %v8315_v30  ;;  %v8318_v38 = vpop.f32.mrb[46].mxu1 }
 0x623   :  { %v8319_v15 = vpop.f32.mrb[47].mxu1 }
 0x624   :  { %v8320_v1 = vadd.f32 %v8319_v15, %v8318_v38 }
 0x628   :  { %v8725_v19 = vpop.f32.mrb[40].mxu0  ;;  %v8321_v13 = vpop.f32.mrb[48].mxu1 }
 0x629   :  { %v1579_v4 = vpop.f32.mrb[41].mxu0  ;;  %v8322_v11 = vpop.f32.mrb[49].mxu1 }
 0x62a   :  { %v10873_v7 = vadd.f32 %v8317_v47, %v1579_v4  ;;  %v8323_v0 = vadd.f32 %v8322_v11, %v8321_v13  ;;  %v8726_v3 = vpop.f32.mrb[42].mxu0  ;;  %v8324_v8 = vpop.f32.mrb[50].mxu1 }
 0x62b   :  { %v1582_v2 = vpop.f32.mrb[43].mxu0  ;;  %v8325_v12 = vpop.f32.mrb[51].mxu1 }
 0x62c   :  { %v10875_v45 = vadd.f32 %v8725_v19, %v8323_v0  ;;  %v10877_v50 = vadd.f32 %v8320_v1, %v1582_v2  ;;  %v8326_v16 = vadd.f32 %v8325_v12, %v8324_v8 }
 0x62e   :  { %v10879_v40 = vadd.f32 %v8726_v3, %v8326_v16 }
 0x631   :  { %v8733_v9 = vpop.f32.mrb[52].mxu1 }
 0x632   :  { %v1677_v41 = vpop.f32.mrb[53].mxu1 }
 0x633   :  { %v8734_v62 = vpop.f32.mrb[54].mxu1 }
 0x634   :  { %v1680_v35 = vpop.f32.mrb[55].mxu1 }
 0x639   :  { %v1766_v60 = vpop.f32.mrb[56].mxu1 }
 0x63a   :  { %v1767_v63 = vadd.f32 1e-08, %v1766_v60  ;;  %v8745_v56 = vpop.f32.mrb[57].mxu1 }
 0x63c   :  { %9452 = vrsqrt.f32 %v1767_v63 }
 0x646   :  { %v9453_v32 = vpop.eup %9452 }
 0x647   :  { %8746 = vmatprep.subr.msk.mxu1 %vm585_vm2, %v9453_v32 }
 0x648   :  { %8747 = vmatpush3.msk.msra.mxu1 %vm585_vm2, %v9453_v32  ;;  %v8347_v57 = vpop.f32.mrb[44].mxu0 }
 0x649   :  { %8749 = vmatmul.mubr.msk.f32.vlgmr.msra.gmra.mrb[58].mxu1 %vm560_vm1, %v10469_v23  ;;  %v8348_v39 = vpop.f32.mrb[45].mxu0  ;;  %8774 = vmatprep.subr.bf16.mxu1 %v12376_v59 }
 0x64a   :  { %v8349_v58 = vadd.f32 %v8348_v39, %v8347_v57  ;;  %v8350_v61 = vpop.f32.mrb[46].mxu0  ;;  %8751 = vmatprep.mubr.msk.f32.mxu1 %vm560_vm1, %v10474_v24 }
 0x64b   :  { %v8351_v20 = vpop.f32.mrb[47].mxu0 }
 0x64c   :  { %v10888_v37 = vadd.f32 %v8349_v58, %v1677_v41  ;;  %v8352_v18 = vadd.f32 %v8351_v20, %v8350_v61 }
 0x64d   :  { %8752 = vmatmul.mubr.msk.f32.gmra.mrb[60].mxu1 %vm560_vm1, %v10483_v25 }
 0x64e   :  { %v10892_v22 = vadd.f32 %v8352_v18, %v1680_v35  ;;  %8754 = vmatprep.mubr.msk.f32.mxu1 %vm560_vm1, %v10486_v26 }
 0x650   :  { %v8353_v23 = vpop.f32.mrb[48].mxu0 }
 0x651   :  { %8755 = vmatmul.mubr.msk.f32.gmra.mrb[62].mxu1 %vm560_vm1, %v10493_v27  ;;  %v8354_v31 = vpop.f32.mrb[49].mxu0 }
 0x652   :  { %v8355_v6 = vadd.f32 %v8354_v31, %v8353_v23  ;;  %v8356_v46 = vpop.f32.mrb[50].mxu0  ;;  %8757 = vmatprep.mubr.msk.f32.mxu1 %vm560_vm1, %v10496_v28 }
 0x653   :  { %v8357_v24 = vpop.f32.mrb[51].mxu0 }
 0x654   :  { %v10900_v54 = vadd.f32 %v8733_v9, %v8355_v6  ;;  %v8358_v14 = vadd.f32 %v8357_v24, %v8356_v46 }
 0x655   :  { %8758 = vmatmul.mubr.msk.f32.gmra.mrb[64].mxu1 %vm560_vm1, %v10503_v29 }
 0x656   :  { %v10904_v25 = vadd.f32 %v8734_v62, %v8358_v14  ;;  %8778 = vmatprep.mubr.msk.bf16.mxu1 %vm10056_vm4, %v12376_v59 }
 0x658   :  { %v8764_v26 = vpop.f32.mrb[2].mxu0 }
 0x659   :  { %v2132_v27 = vmul.f32 %v8764_v26, %v10529_v49  ;;  %v2092_v43 = vpop.f32.mrb[3].mxu0 }
 0x65a   :  { %v2131_v42 = vmul.f32 %v2092_v43, %v10523_v44  ;;  %v12385_v43 = vld [vmem:[#allocation75_spill] sm:$0xff] }
 0x65b   :  { %v2142_v28 = vsel %vm461_vm0, %v2132_v27, 0.0 }
 0x65c   :  { %2143 = vadd.xlane.f32.xlu0 %v2142_v28  ;;  %v8767_v48 = vpop.f32.mrb[52].mxu0  ;;  %v2139_v5 = vsel %vm461_vm0, %v2131_v42, 0.0 }
 0x65d   :  { %v2134_v10 = vmul.f32 %v8767_v48, %v10539_v55  ;;  %2140 = vadd.xlane.f32.xlu1 %v2139_v5  ;;  %v2102_v29 = vpop.f32.mrb[53].mxu0  ;;  %v12386_v5 = vld [vmem:[#allocation76_spill] sm:$0xff] }
 0x65e   :  { %v2133_v30 = vmul.f32 %v2102_v29, %v10534_v52 }
 0x65f   :  { %v2148_v51 = vsel %vm461_vm0, %v2134_v10, 0.0 }
 0x660   :  { %2149 = vadd.xlane.f32.xlu0 %v2148_v51  ;;  %v8770_v47 = vpop.f32.mrb[54].mxu0  ;;  %v2145_v38 = vsel %vm461_vm0, %v2133_v30, 0.0  ;;  %v1941_v30 = vld [vmem:[%s12384_s29 + $0x38] sm:$0xff]  ;;  %v1940_v51 = vld [vmem:[%s12384_s29 + $0x30] sm:$0xff] }
 0x661   :  { %v2136_v15 = vmul.f32 %v8770_v47, %v10511_v36  ;;  %2146 = vadd.xlane.f32.xlu1 %v2145_v38  ;;  %v2112_v1 = vpop.f32.mrb[55].mxu0 }
 0x662   :  { %v2135_v13 = vmul.f32 %v2112_v1, %v10508_v34 }
 0x663   :  { %v2154_v19 = vsel %vm461_vm0, %v2136_v15, 0.0 }
 0x664   :  { %2155 = vadd.xlane.f32.xlu0 %v2154_v19  ;;  %v2151_v4 = vsel %vm461_vm0, %v2135_v13, 0.0  ;;  %v8773_v11 = vpop.f32.mrb[56].mxu0 }
 0x665   :  { %2152 = vadd.xlane.f32.xlu1 %v2151_v4  ;;  %v2122_v0 = vpop.f32.mrb[57].mxu0  ;;  %v2138_v47 = vmul.f32 %v8773_v11, %v12385_v43 }
 0x666   :  { %v2137_v1 = vmul.f32 %v2122_v0, %v12386_v5 }
 0x667   :  { %v2160_v38 = vsel %vm461_vm0, %v2138_v47, 0.0 }
 0x668   :  { %v8794_v3 = vpop.f32.mrb[58].mxu0 }
 0x669   :  { %v2341_v8 = vpop.f32.mrb[59].mxu0 }
 0x66a   :  { %v2380_v4 = vmul.f32 %v2341_v8, %v10523_v44 }
 0x66c   :  { %v8797_v2 = vpop.f32.mrb[60].mxu0  ;;  %v2388_v11 = vsel %vm461_vm0, %v2380_v4, 0.0 }
 0x66d   :  { %v2351_v12 = vpop.f32.mrb[61].mxu0 }
 0x66e   :  { %v2382_v0 = vmul.f32 %v2351_v12, %v10534_v52  ;;  %v3541_v12 = vld [vmem:[%s12387_s0] sm:$0xff] }
 0x670   :  { %v8800_v16 = vpop.f32.mrb[62].mxu0 }
 0x671   :  { %v2361_v9 = vpop.f32.mrb[63].mxu0  ;;  %v2385_v8 = vmul.f32 %v8800_v16, %v10511_v36  ;;  %v3542_v16 = vld [vmem:[%s12387_s0 + $0x8] sm:$0xff] }
 0x672   :  { %v2384_v15 = vmul.f32 %v2361_v9, %v10508_v34 }
 0x674   :  { %v10920_v41 = vpop.f32.mrb[64].mxu0  ;;  %v2400_v19 = vsel %vm461_vm0, %v2384_v15, 0.0 }
 0x675   :  { %v2371_v62 = vpop.f32.mrb[65].mxu0 }
 0x676   :  { %v2386_v13 = vmul.f32 %v2371_v62, %v12386_v5  ;;  %v2394_v62 = vsel %vm461_vm0, %v2382_v0, 0.0 }
 0x71c   :  { %v8750_v35 = vpop.f32.mrb[58].mxu1 }
 0x71d   :  { %v1880_v60 = vmul.f32 %v8750_v35, %v10529_v49  ;;  %v1840_v63 = vpop.f32.mrb[59].mxu1  ;;  %v2157_v35 = vsel %vm461_vm0, %v2137_v1, 0.0 }
 0x71e   :  { %v1879_v56 = vmul.f32 %v1840_v63, %v10523_v44  ;;  %v2383_v44 = vmul.f32 %v8797_v2, %v10539_v55  ;;  %v1950_v2 = vpop.permute.xlu1 %1949 }
 0x71f   :  { %v1890_v32 = vsel %vm461_vm0, %v1880_v60, 0.0  ;;  %v2406_v60 = vsel %vm461_vm0, %v2386_v13, 0.0 }
 0x720   :  { %1891 = vadd.xlane.f32.xlu0 %v1890_v32  ;;  %v8753_v57 = vpop.f32.mrb[60].mxu1  ;;  %v1887_v39 = vsel %vm461_vm0, %v1879_v56, 0.0  ;;  %v2397_v63 = vsel %vm461_vm0, %v2383_v44, 0.0  ;;  %v10967_v32 = vld [vmem:[#allocation14 + $0x18] sm:$0xff]  }
 0x721   :  { %v1882_v58 = vmul.f32 %v8753_v57, %v10539_v55  ;;  %1888 = vadd.xlane.f32.xlu1 %v1887_v39  ;;  %v1850_v61 = vpop.f32.mrb[61].mxu1  ;;  %v9274_v55 = vld [vmem:[#allocation14 + $0x8] sm:$0xff]  }
 0x722   :  { %v1881_v20 = vmul.f32 %v1850_v61, %v10534_v52  ;;  %8814 = vmatprep.subr.bf16.mxu0 %v9274_v55  ;;  %v1955_v56 = vpop.permute.xlu1 %1954 }
 0x723   :  { %v1896_v18 = vsel %vm461_vm0, %v1882_v58, 0.0  ;;  %8815 = vmatpush3.bf16.msra.mxu0 %v9274_v55 }
 0x724   :  { %v8756_v23 = vpop.f32.mrb[62].mxu1  ;;  %v1893_v31 = vsel %vm461_vm0, %v1881_v20, 0.0  ;;  %8834 = vmatprep.subr.bf16.mxu0 %v10967_v32 }
 0x725   :  { %v1884_v6 = vmul.f32 %v8756_v23, %v10511_v36  ;;  %1897 = vadd.xlane.f32.xlu1 %v1896_v18  ;;  %1894 = vadd.xlane.f32.xlu0 %v1893_v31  ;;  %v1860_v46 = vpop.f32.mrb[63].mxu1  ;;  %v1945_v36 = vpop.permute.xlu0 %1944 }
 0x726   :  { %v1883_v24 = vmul.f32 %v1860_v46, %v10508_v34  ;;  %v2381_v34 = vmul.f32 %v8794_v3, %v10529_v49  ;;  %v2387_v49 = vmul.f32 %v10920_v41, %v12385_v43  ;;  %v2403_v3 = vsel %vm461_vm0, %v2385_v8, 0.0  ;;  %v1965_v39 = vpop.permute.xlu1 %1964 }
 0x727   :  { %v1902_v14 = vsel %vm461_vm0, %v1884_v6, 0.0  ;;  %v10970_v6 = vld [vmem:[#allocation8] ss:$0 sm:$0xff] }
 0x728   :  { %v1899_v26 = vsel %vm461_vm0, %v1883_v24, 0.0  ;;  %v8759_v27 = vpop.f32.mrb[64].mxu1  ;;  %v2391_v9 = vsel %vm461_vm0, %v2381_v34, 0.0  ;;  %v2409_v52 = vsel %vm461_vm0, %v2387_v49, 0.0 }
 0x729   :  { %1903 = vadd.xlane.f32.xlu1 %v1902_v14  ;;  %1900 = vadd.xlane.f32.xlu0 %v1899_v26  ;;  %v1886_v42 = vmul.f32 %v8759_v27, %v12385_v43  ;;  %v1870_v28 = vpop.f32.mrb[65].mxu1  ;;  %v1960_v41 = vpop.permute.xlu0 %1959 }
 0x72a   :  { %v1885_v10 = vmul.f32 %v1870_v28, %v12386_v5  ;;  %v2141_v61 = vpop.xlane.xlu1 %2140 }
 0x72b   :  { %v1908_v48 = vsel %vm461_vm0, %v1886_v42, 0.0 }
 0x72c   :  { %v1905_v29 = vsel %vm461_vm0, %v1885_v10, 0.0 }
 0x72d   :  { %1909 = vadd.xlane.f32.xlu1 %v1908_v48  ;;  %v1970_v57 = vpop.permute.xlu0 %1969 }
 0x72e   :  { %v2147_v18 = vpop.xlane.xlu1 %2146 }
 0x731   :  { %1906 = vadd.xlane.f32.xlu1 %v1905_v29  ;;  %v2144_v58 = vpop.xlane.xlu0 %2143 }
 0x732   :  { %v2153_v31 = vpop.xlane.xlu1 %2152 }
 0x735   :  { %v2150_v20 = vpop.xlane.xlu0 %2149 }
 0x739   :  { %v2156_v23 = vpop.xlane.xlu0 %2155 }
 0x73f   :  { %1979 = vperm.xlu0 %9254, %v1941_v30  }
 0x742   :  { %1974 = vperm.xlu1 %9255, %v1940_v51  }
 0x75e   :  { %2161 = vadd.xlane.f32.xlu0 %v2160_v38 }
 0x762   :  { %2401 = vadd.xlane.f32.xlu0 %v2400_v19 }
 0x766   :  { %2158 = vadd.xlane.f32.xlu1 %v2157_v35  ;;  %2407 = vadd.xlane.f32.xlu0 %v2406_v60 }
 0x76a   :  { %2389 = vadd.xlane.f32.xlu1 %v2388_v11 }
 0x76e   :  { %2392 = vadd.xlane.f32.xlu1 %v2391_v9 }
 0x772   :  { %2395 = vadd.xlane.f32.xlu1 %v2394_v62 }
 0x776   :  { %2398 = vadd.xlane.f32.xlu1 %v2397_v63 }
 0x77a   :  { %2404 = vadd.xlane.f32.xlu1 %v2403_v3 }
 0x77c   :  { %3327 = vrot.lane.b32.xlu0 %v10806_v17, %s10032_s18  ;;  %s12388_s18 = sld [smem:[#allocation58_spill]] }
 0x77e   :  { %2410 = vadd.xlane.f32.xlu1 %v2409_v52 }
 0x780   :  { %3547 = vperm.xlu0 %9254, %v3541_v12  }
 0x78f   :  { %3585 = vrot.lane.b32.xlu1 %v10464_v21, %s10058_s11 }
 0x793   :  { %3552 = vperm.xlu1 %9255, %v3542_v16  }
 0x7ad   :  { %v1892_v46 = vpop.xlane.xlu0 %1891 }
 0x7ae   :  { %v1912_v24 = vmul.f32 %v1892_v46, %v10877_v50  ;;  %v1889_v14 = vpop.xlane.xlu1 %1888 }
 0x7af   :  { %v1911_v26 = vmul.f32 %v1889_v14, %v10873_v7 }
 0x7b0   :  { %v1927_v27 = vadd.f32 %v10970_v6, %v1912_v24 }
 0x7b1   :  { %v1926_v43 = vadd.f32 %v10970_v6, %v1911_v26 }
 0x7b2   :  { %v1983_v42 = vadd.f32 %v1950_v2, %v1927_v27  ;;  %v1895_v28 = vpop.xlane.xlu0 %1894  ;;  %v1898_v48 = vpop.xlane.xlu1 %1897 }
 0x7b3   :  { %v1982_v5 = vadd.f32 %v1945_v36, %v1926_v43  ;;  %v1913_v10 = vmul.f32 %v1895_v28, %v10875_v45  ;;  %v1914_v29 = vmul.f32 %v1898_v48, %v10879_v40 }
 0x7b4   :  { %vm1991_vm5 = vcmp.ge.f32.partialorder %v1983_v42, 0.0  ;;  %v1999_v30 = vmul.f32 0.2, %v1983_v42 }
 0x7b5   :  { %vm1990_vm6 = vcmp.ge.f32.partialorder %v1982_v5, 0.0  ;;  %v1998_v51 = vmul.f32 0.2, %v1982_v5  ;;  %v1928_v50 = vadd.f32 %v10970_v6, %v1913_v10  ;;  %v1929_v7 = vadd.f32 %v10970_v6, %v1914_v29 }
 0x7b6   :  { %v2007_v47 = vsel %vm1991_vm5, %v1983_v42, %v1999_v30  ;;  %v1901_v38 = vpop.xlane.xlu0 %1900  ;;  %v1904_v15 = vpop.xlane.xlu1 %1903 }
 0x7b7   :  { %v10980_v1 = vmul.f32 1.4142135, %v2007_v47  ;;  %v2006_v19 = vsel %vm1990_vm6, %v1982_v5, %v1998_v51  ;;  %v1984_v13 = vadd.f32 %v1955_v56, %v1928_v50  ;;  %v1985_v4 = vadd.f32 %v1960_v41, %v1929_v7  ;;  %v9273_v7 = vld [vmem:[#allocation14] sm:$0xff]  }
 0x7b8   :  { %v10982_v35 = vmul.f32 1.4142135, %v2006_v19  ;;  %v1915_v45 = vmul.f32 %v1901_v38, %v10888_v37  ;;  %v1916_v40 = vmul.f32 %v1904_v15, %v10892_v22 }
 0x7b9   :  { %vm1992_vm7 = vcmp.ge.f32.partialorder %v1984_v13, 0.0  ;;  %v2000_v60 = vmul.f32 0.2, %v1984_v13  ;;  %vm1993_vm8 = vcmp.ge.f32.partialorder %v1985_v4, 0.0  ;;  %v2001_v11 = vmul.f32 0.2, %v1985_v4 }
 0x7ba   :  { %v1930_v34 = vadd.f32 %v10970_v6, %v1915_v45  ;;  %v1931_v0 = vadd.f32 %v10970_v6, %v1916_v40  ;;  %v2163_v9 = vmul.f32 %v2141_v61, %v10982_v35  ;;  %v2164_v62 = vmul.f32 %v2144_v58, %v10980_v1 }
 0x7bb   :  { %v2008_v44 = vsel %vm1992_vm7, %v1984_v13, %v2000_v60  ;;  %v2009_v8 = vsel %vm1993_vm8, %v1985_v4, %v2001_v11 }
 0x7bc   :  { %v10990_v63 = vmul.f32 1.4142135, %v2008_v44  ;;  %v10992_v49 = vmul.f32 1.4142135, %v2009_v8  ;;  %v1986_v37 = vadd.f32 %v1965_v39, %v1930_v34  ;;  %v1987_v22 = vadd.f32 %v1970_v57, %v1931_v0  ;;  %v2175_v39 = vld [vmem:[#allocation10] sm:$0x3] }
 0x7bd   :  { %v2171_v3 = vpack.c.bf16 %v2164_v62, %v2163_v9  ;;  %v9277_v0 = vld [vmem:[#allocation14 + $0x20] sm:$0xff]  }
 0x7be   :  { %vm1994_vm9 = vcmp.ge.f32.partialorder %v1986_v37, 0.0  ;;  %v2002_v52 = vmul.f32 0.2, %v1986_v37  ;;  %vm1995_vm10 = vcmp.ge.f32.partialorder %v1987_v22, 0.0  ;;  %v2003_v12 = vmul.f32 0.2, %v1987_v22  ;;  %v1980_v26 = vpop.permute.xlu0 %1979 }
 0x7bf   :  { %8775 = vmatpush3.bf16.msra.mxu1 %v2171_v3  ;;  %v2165_v55 = vmul.f32 %v2147_v18, %v10990_v63  ;;  %v2166_v36 = vmul.f32 %v2150_v20, %v10992_v49  ;;  %v1910_v20 = vpop.xlane.xlu1 %1909 }
 0x7c0   :  { %v2010_v2 = vsel %vm1994_vm9, %v1986_v37, %v2002_v52  ;;  %v2011_v16 = vsel %vm1995_vm10, %v1987_v22, %v2003_v12  ;;  %8776 = vmatprep.subr.bf16.mxu1 %v12376_v59  ;;  %v1918_v24 = vmul.f32 %v1910_v20, %v10904_v25  ;;  %v9280_v52 = vld [vmem:[#allocation14 + $0x38] sm:$0xff]   ;;  %v9281_v12 = vld [vmem:[#allocation14 + $0x40] sm:$0xff]  }
 0x7c1   :  { %v2018_v41 = vmul.f32 1.4142135, %v2010_v2  ;;  %v2019_v56 = vmul.f32 1.4142135, %v2011_v16  ;;  %v2172_v58 = vpack.c.bf16 %v2166_v36, %v2165_v55 }
 0x7c3   :  { %8777 = vmatpush3.bf16.msra.mxu1 %v2172_v58  ;;  %v2167_v57 = vmul.f32 %v2153_v31, %v2018_v41  ;;  %v2168_v61 = vmul.f32 %v2156_v23, %v2019_v56  ;;  %v1907_v18 = vpop.xlane.xlu1 %1906  ;;  %v1933_v31 = vadd.f32 %v10970_v6, %v1918_v24 }
 0x7c4   :  { %8782 = vmatprep.subr.bf16.mxu1 %v12376_v59  ;;  %v1917_v14 = vmul.f32 %v1907_v18, %v10900_v54 }
 0x7c5   :  { %v2173_v46 = vpack.c.bf16 %v2168_v61, %v2167_v57  ;;  %v1989_v43 = vadd.f32 %v1980_v26, %v1933_v31 }
 0x7c6   :  { %8779 = vmatmul.mubr.msk.bf16.vlgmr.msra.gmra.mrb[68].mxu1 %vm461_vm0, %v2175_v39  ;;  %v1932_v23 = vadd.f32 %v10970_v6, %v1917_v14  ;;  %v9275_v6 = vld [vmem:[#allocation14 + $0x10] sm:$0xff]  }
 0x7c7   :  { %8783 = vmatpush3.bf16.msra.mxu1 %v2173_v46  ;;  %8786 = vmatprep.mubr.msk.bf16.mxu1 %vm10056_vm4, %v12376_v59  ;;  %v1975_v27 = vpop.permute.xlu1 %1974  ;;  %v2005_v28 = vmul.f32 0.2, %v1989_v43  ;;  %vm1997_vm11 = vcmp.ge.f32.partialorder %v1989_v43, 0.0 }
 0x7c8   :  { %8784 = vmatprep.subr.bf16.mxu1 %v12376_v59  ;;  %v1988_v42 = vadd.f32 %v1975_v27, %v1932_v23 }
 0x7c9   :  { %v2013_v5 = vsel %vm1997_vm11, %v1989_v43, %v2005_v28 }
 0x7ca   :  { %v2004_v48 = vmul.f32 0.2, %v1988_v42  ;;  %vm1996_vm12 = vcmp.ge.f32.partialorder %v1988_v42, 0.0  ;;  %v2021_v30 = vmul.f32 1.4142135, %v2013_v5 }
 0x7cc   :  { %v2012_v10 = vsel %vm1996_vm12, %v1988_v42, %v2004_v48 }
 0x7cd   :  { %v2020_v51 = vmul.f32 1.4142135, %v2012_v10 }
 0x7eb   :  { %v2162_v29 = vpop.xlane.xlu0 %2161 }
 0x7ec   :  { %v2170_v50 = vmul.f32 %v2162_v29, %v2021_v30 }
 0x7ef   :  { %v2402_v40 = vpop.xlane.xlu0 %2401 }
 0x7f0   :  { %v2416_v62 = vmul.f32 %v2402_v40, %v2018_v41  ;;  %v11062_v41 = vld [vmem:[#allocation11 + $0x4] ss:$12 sps:$4 sm:$0xff]  }
 0x7f3   :  { %v2159_v25 = vpop.xlane.xlu1 %2158  ;;  %v2408_v8 = vpop.xlane.xlu0 %2407 }
 0x7f4   :  { %v2169_v54 = vmul.f32 %v2159_v25, %v2020_v51  ;;  %v2418_v22 = vmul.f32 %v2408_v8, %v2020_v51 }
 0x7f6   :  { %v2174_v47 = vpack.c.bf16 %v2170_v50, %v2169_v54 }
 0x7f7   :  { %v2390_v38 = vpop.xlane.xlu1 %2389 }
 0x7f8   :  { %8785 = vmatpush3.bf16.msra.mxu1 %v2174_v47  ;;  %v2412_v19 = vmul.f32 %v2390_v38, %v10982_v35 }
 0x7f9   :  { %8804 = vmatprep.subr.bf16.mxu1 %v9273_v7 }
 0x7fb   :  { %8787 = vmatmul.mubr.msk.bf16.vlgmr.msra.gmra.mrb[72].mxu1 %vm461_vm0, %v2175_v39  ;;  %v2393_v15 = vpop.xlane.xlu1 %2392 }
 0x7fc   :  { %v2413_v13 = vmul.f32 %v2393_v15, %v10980_v1  ;;  %8805 = vmatpush3.bf16.msra.mxu1 %v9273_v7  ;;  %v9278_v1 = vld [vmem:[#allocation14 + $0x28] sm:$0xff]  }
 0x7fd   :  { %8824 = vmatprep.subr.bf16.mxu1 %v9275_v6 }
 0x7fe   :  { %v11009_v4 = vpack.c.bf16 %v2413_v13, %v2412_v19 }
 0x7ff   :  { %v2396_v45 = vpop.xlane.xlu1 %2395 }
 0x800   :  { %8806 = vmatprep.mubr.msk.bf16.mxu1 %vm746_vm3, %v11009_v4  ;;  %8816 = vmatprep.mubr.msk.bf16.mxu0 %vm746_vm3, %v11009_v4  ;;  %v2414_v11 = vmul.f32 %v2396_v45, %v10990_v63 }
 0x803   :  { %v2399_v60 = vpop.xlane.xlu1 %2398 }
 0x804   :  { %v2415_v34 = vmul.f32 %v2399_v60, %v10992_v49 }
 0x806   :  { %v2421_v35 = vpack.c.bf16 %v2415_v34, %v2414_v11 }
 0x807   :  { %v2405_v9 = vpop.xlane.xlu1 %2404 }
 0x808   :  { %v2417_v44 = vmul.f32 %v2405_v9, %v2019_v56  ;;  %8807 = vmatmul.mubr.msk.bf16.vlgmr.msra.gmra.mrb[76].mxu1 %vm746_vm3, %v2421_v35  ;;  %8817 = vmatmul.mubr.msk.bf16.vlgmr.msra.gmra.mrb[68].mxu0 %vm746_vm3, %v2421_v35 }
 0x809   :  { %8825 = vmatpush3.bf16.msra.mxu1 %v9275_v6  ;;  %8835 = vmatpush3.bf16.msra.mxu0 %v10967_v32  ;;  %v9279_v32 = vld [vmem:[#allocation14 + $0x30] sm:$0xff]  }
 0x80a   :  { %v2422_v37 = vpack.c.bf16 %v2417_v44, %v2416_v62  ;;  %8844 = vmatprep.subr.bf16.mxu1 %v9277_v0  ;;  %8854 = vmatprep.subr.bf16.mxu0 %v9278_v1 }
 0x80b   :  { %v2411_v63 = vpop.xlane.xlu1 %2410 }
 0x80c   :  { %v2419_v49 = vmul.f32 %v2411_v63, %v2021_v30  ;;  %8810 = vmatprep.mubr.msk.bf16.mxu1 %vm746_vm3, %v2422_v37  ;;  %8820 = vmatprep.mubr.msk.bf16.mxu0 %vm746_vm3, %v2422_v37 }
 0x80e   :  { %v2423_v3 = vpack.c.bf16 %v2419_v49, %v2418_v22 }
 0x810   :  { %8811 = vmatmul.mubr.msk.bf16.gmra.mrb[80].mxu1 %vm746_vm3, %v2423_v3  ;;  %8821 = vmatmul.mubr.msk.bf16.gmra.mrb[72].mxu0 %vm746_vm3, %v2423_v3 }
 0x811   :  { %8826 = vmatprep.mubr.msk.bf16.mxu1 %vm746_vm3, %v11009_v4  ;;  %8836 = vmatprep.mubr.msk.bf16.mxu0 %vm746_vm3, %v11009_v4 }
 0x818   :  { %8827 = vmatmul.mubr.msk.bf16.vlgmr.msra.gmra.mrb[84].mxu1 %vm746_vm3, %v2421_v35  ;;  %8837 = vmatmul.mubr.msk.bf16.vlgmr.msra.gmra.mrb[76].mxu0 %vm746_vm3, %v2421_v35 }
 0x819   :  { %8830 = vmatprep.mubr.msk.bf16.mxu1 %vm746_vm3, %v2422_v37  ;;  %8840 = vmatprep.mubr.msk.bf16.mxu0 %vm746_vm3, %v2422_v37 }
 0x81a   :  { %8845 = vmatpush3.bf16.msra.mxu1 %v9277_v0  ;;  %8855 = vmatpush3.bf16.msra.mxu0 %v9278_v1 }
 0x81b   :  { %8864 = vmatprep.subr.bf16.mxu1 %v9279_v32  ;;  %8874 = vmatprep.subr.bf16.mxu0 %v9280_v52 }
 0x820   :  { %8831 = vmatmul.mubr.msk.bf16.gmra.mrb[88].mxu1 %vm746_vm3, %v2423_v3  ;;  %8841 = vmatmul.mubr.msk.bf16.gmra.mrb[80].mxu0 %vm746_vm3, %v2423_v3 }
 0x821   :  { %8846 = vmatprep.mubr.msk.bf16.mxu1 %vm746_vm3, %v11009_v4  ;;  %8856 = vmatprep.mubr.msk.bf16.mxu0 %vm746_vm3, %v11009_v4 }
 0x828   :  { %8847 = vmatmul.mubr.msk.bf16.vlgmr.msra.gmra.mrb[92].mxu1 %vm746_vm3, %v2421_v35  ;;  %8857 = vmatmul.mubr.msk.bf16.vlgmr.msra.gmra.mrb[84].mxu0 %vm746_vm3, %v2421_v35 }
 0x829   :  { %8850 = vmatprep.mubr.msk.bf16.mxu1 %vm746_vm3, %v2422_v37  ;;  %8860 = vmatprep.mubr.msk.bf16.mxu0 %vm746_vm3, %v2422_v37 }
 0x82a   :  { %8865 = vmatpush3.bf16.msra.mxu1 %v9279_v32  ;;  %8875 = vmatpush3.bf16.msra.mxu0 %v9280_v52 }
 0x82b   :  { %8884 = vmatprep.subr.bf16.mxu1 %v9281_v12 }
 0x830   :  { %8851 = vmatmul.mubr.msk.bf16.gmra.mrb[96].mxu1 %vm746_vm3, %v2423_v3  ;;  %8861 = vmatmul.mubr.msk.bf16.gmra.mrb[88].mxu0 %vm746_vm3, %v2423_v3 }
 0x831   :  { %8866 = vmatprep.mubr.msk.bf16.mxu1 %vm746_vm3, %v11009_v4  ;;  %8876 = vmatprep.mubr.msk.bf16.mxu0 %vm746_vm3, %v11009_v4 }
 0x838   :  { %8867 = vmatmul.mubr.msk.bf16.vlgmr.msra.gmra.mrb[100].mxu1 %vm746_vm3, %v2421_v35  ;;  %8877 = vmatmul.mubr.msk.bf16.vlgmr.msra.gmra.mrb[92].mxu0 %vm746_vm3, %v2421_v35 }
 0x839   :  { %8870 = vmatprep.mubr.msk.bf16.mxu1 %vm746_vm3, %v2422_v37  ;;  %8880 = vmatprep.mubr.msk.bf16.mxu0 %vm746_vm3, %v2422_v37 }
 0x83a   :  { %8885 = vmatpush3.bf16.msra.mxu1 %v9281_v12 }
 0x83b   :  { %8894 = vmatprep.subr.bf16.mxu1 %v12376_v59 }
 0x840   :  { %8871 = vmatmul.mubr.msk.bf16.gmra.mrb[104].mxu1 %vm746_vm3, %v2423_v3  ;;  %8881 = vmatmul.mubr.msk.bf16.gmra.mrb[96].mxu0 %vm746_vm3, %v2423_v3 }
 0x841   :  { %8886 = vmatprep.mubr.msk.bf16.mxu1 %vm746_vm3, %v11009_v4  ;;  %3191 = vmatprep.mubr.bf16.mxu0 %v11062_v41 }
 0x848   :  { %8887 = vmatmul.mubr.msk.bf16.vlgmr.msra.gmra.mrb[108].mxu1 %vm746_vm3, %v2421_v35 }
 0x849   :  { %8890 = vmatprep.mubr.msk.bf16.mxu1 %vm746_vm3, %v2422_v37 }
 0x850   :  { %8891 = vmatmul.mubr.msk.bf16.gmra.mrb[112].mxu1 %vm746_vm3, %v2423_v3 }
 0x851   :  { %8898 = vmatprep.mubr.msk.bf16.mxu1 %vm10056_vm4, %v12376_v59 }
 0x899   :  { %v2213_v55 = vpop.f32.mrb[68].mxu1 }
 0x89a   :  { %v8780_v36 = vpop.f32.mrb[69].mxu1 }
 0x89b   :  { %v2216_v2 = vpop.f32.mrb[70].mxu1 }
 0x89c   :  { %v8781_v16 = vpop.f32.mrb[71].mxu1 }
 0x8ce   :  { %v2253_v56 = vpop.f32.mrb[72].mxu1 }
 0x8cf   :  { %v2260_v58 = vrot.slane %v2253_v56, 5  ;;  %v8788_v39 = vpop.f32.mrb[73].mxu1 }
 0x8d0   :  { %v2256_v57 = vpop.f32.mrb[74].mxu1 }
 0x8d1   :  { %v8789_v61 = vpop.f32.mrb[75].mxu1  ;;  %v11066_v46 = vsel %vm12324_vm13, %v2213_v55, %v2260_v58 }
 0x8db   :  { %v11068_v20 = vpop.f32.mrb[76].mxu1  ;;  %v11070_v18 = vpop.f32.mrb[68].mxu0 }
 0x8dc   :  { %v2478_v24 = vpop.f32.mrb[77].mxu1  ;;  %v11072_v14 = vpop.f32.mrb[69].mxu0 }
 0x8dd   :  { %v11074_v31 = vpop.f32.mrb[78].mxu1  ;;  %v11076_v23 = vpop.f32.mrb[70].mxu0 }
 0x8de   :  { %v2510_v26 = vpack.c.bf16 %v11074_v31, %v11068_v20  ;;  %v2588_v27 = vpack.c.bf16 %v11076_v23, %v11070_v18  ;;  %v2481_v43 = vpop.f32.mrb[79].mxu1  ;;  %v11082_v42 = vpop.f32.mrb[71].mxu0 }
 0x8df   :  { %v2509_v28 = vpack.c.bf16 %v2481_v43, %v2478_v24  ;;  %v2587_v48 = vpack.c.bf16 %v11082_v42, %v11072_v14 }
 0x8e3   :  { %v11086_v5 = vpop.f32.mrb[80].mxu1  ;;  %v11088_v10 = vpop.f32.mrb[72].mxu0 }
 0x8e4   :  { %v11090_v29 = vpop.f32.mrb[81].mxu1  ;;  %v11092_v30 = vpop.f32.mrb[73].mxu0 }
 0x8e5   :  { %v11094_v51 = vpop.f32.mrb[82].mxu1  ;;  %v11096_v25 = vpop.f32.mrb[74].mxu0 }
 0x8e6   :  { %v2512_v50 = vpack.c.bf16 %v11094_v51, %v11086_v5  ;;  %v11102_v7 = vpop.f32.mrb[83].mxu1  ;;  %v11104_v47 = vpop.f32.mrb[75].mxu0  ;;  %v12390_v51 = vpack.c.bf16 %v11096_v25, %v11088_v10 }
 0x8e7   :  { %v2511_v38 = vpack.c.bf16 %v11102_v7, %v11090_v29  ;;  %v2589_v6 = vpack.c.bf16 %v11104_v47, %v11092_v30  ;;  %v3325_v29 = vld [vmem:[%s12388_s18 + $0x10] sm:$0xff]  ;;  %v3326_v7 = vld [vmem:[%s12388_s18 + $0x18] sm:$0xff]  ;;  %v3328_v30 = vpop.permute.xlu0 %3327  ;;  %v3586_v25 = vpop.permute.xlu1 %3585 }
 0x8eb   :  { %v11110_v15 = vpop.f32.mrb[84].mxu1  ;;  %v11112_v19 = vpop.f32.mrb[76].mxu0 }
 0x8ec   :  { %v11114_v13 = vpop.f32.mrb[85].mxu1  ;;  %v11116_v4 = vpop.f32.mrb[77].mxu0 }
 0x8ed   :  { %v11118_v45 = vpop.f32.mrb[86].mxu1  ;;  %v11120_v40 = vpop.f32.mrb[78].mxu0 }
 0x8ee   :  { %v2666_v60 = vpack.c.bf16 %v11118_v45, %v11110_v15  ;;  %v2744_v11 = vpack.c.bf16 %v11120_v40, %v11112_v19  ;;  %v2637_v34 = vpop.f32.mrb[87].mxu1  ;;  %v11126_v35 = vpop.f32.mrb[79].mxu0 }
 0x8ef   :  { %v2665_v0 = vpack.c.bf16 %v2637_v34, %v11114_v13  ;;  %v2743_v1 = vpack.c.bf16 %v11126_v35, %v11116_v4 }
 0x8f3   :  { %v11131_v9 = vpop.f32.mrb[88].mxu1  ;;  %v11133_v62 = vpop.f32.mrb[80].mxu0 }
 0x8f4   :  { %v11135_v44 = vpop.f32.mrb[89].mxu1  ;;  %v11137_v8 = vpop.f32.mrb[81].mxu0 }
 0x8f5   :  { %v11139_v37 = vpop.f32.mrb[90].mxu1  ;;  %v11141_v63 = vpop.f32.mrb[82].mxu0 }
 0x8f6   :  { %v11147_v3 = vpop.f32.mrb[91].mxu1  ;;  %v11149_v32 = vpop.f32.mrb[83].mxu0  ;;  %v12395_v47 = vpack.c.bf16 %v11141_v63, %v11133_v62  ;;  %v11274_v62 = vld [vmem:[%s12391_s3 + $0x18] sm:$0xff] }
 0x8f7   :  { %v12394_v10 = vpack.c.bf16 %v11149_v32, %v11137_v8 }
 0x8fb   :  { %v8848_v55 = vpop.f32.mrb[92].mxu1  ;;  %v8858_v36 = vpop.f32.mrb[84].mxu0 }
 0x8fc   :  { %v2790_v2 = vpop.f32.mrb[93].mxu1  ;;  %v2868_v16 = vpop.f32.mrb[85].mxu0 }
 0x8fd   :  { %v8849_v56 = vpop.f32.mrb[94].mxu1  ;;  %v8859_v58 = vpop.f32.mrb[86].mxu0 }
 0x8fe   :  { %v2822_v39 = vpack.c.bf16 %v8849_v56, %v8848_v55  ;;  %v2900_v57 = vpack.c.bf16 %v8859_v58, %v8858_v36  ;;  %v2793_v61 = vpop.f32.mrb[95].mxu1  ;;  %v2871_v24 = vpop.f32.mrb[87].mxu0 }
 0x8ff   :  { %v2821_v43 = vpack.c.bf16 %v2793_v61, %v2790_v2  ;;  %v2899_v13 = vpack.c.bf16 %v2871_v24, %v2868_v16 }
 0x901   :  { %8446 = vmatprep.subr.bf16.mxu0 %v2821_v43 }
 0x902   :  { %8447 = vmatpush3.bf16.msra.mxu0 %v2509_v28 }
 0x903   :  { %v11155_v34 = vpop.f32.mrb[96].mxu1  ;;  %v11157_v33 = vpop.f32.mrb[88].mxu0  ;;  %8448 = vmatprep.subr.bf16.mxu0 %v2822_v39 }
 0x904   :  { %v11159_v49 = vpop.f32.mrb[97].mxu1  ;;  %v11161_v12 = vpop.f32.mrb[89].mxu0 }
 0x905   :  { %v11163_v22 = vpop.f32.mrb[98].mxu1  ;;  %v11165_v52 = vpop.f32.mrb[90].mxu0 }
 0x906   :  { %v2824_v55 = vpack.c.bf16 %v11163_v22, %v11155_v34  ;;  %v2809_v28 = vpop.f32.mrb[99].mxu1  ;;  %v11171_v2 = vpop.f32.mrb[91].mxu0  ;;  %8449 = vmatpush3.bf16.msra.mxu0 %v2510_v26  ;;  %v12389_v5 = vpack.c.bf16 %v11165_v52, %v11157_v33  ;;  %v12392_v33 = vpack.c.bf16 %v11147_v3, %v11135_v44 }
 0x907   :  { %v2823_v16 = vpack.c.bf16 %v2809_v28, %v11159_v49  ;;  %v2901_v56 = vpack.c.bf16 %v11171_v2, %v11161_v12  ;;  %8450 = vmatprep.subr.bf16.mxu0 %v2899_v13 }
 0x90a   :  { %8451 = vmatpush3.bf16.msra.mxu0 %v2587_v48 }
 0x90b   :  { %v8868_v58 = vpop.f32.mrb[100].mxu1  ;;  %v8878_v39 = vpop.f32.mrb[92].mxu0  ;;  %8452 = vmatprep.subr.bf16.mxu0 %v2900_v57 }
 0x90c   :  { %v2946_v61 = vpop.f32.mrb[101].mxu1  ;;  %v3024_v24 = vpop.f32.mrb[93].mxu0 }
 0x90d   :  { %v8869_v43 = vpop.f32.mrb[102].mxu1  ;;  %v8879_v54 = vpop.f32.mrb[94].mxu0 }
 0x90e   :  { %v2978_v36 = vpack.c.bf16 %v8869_v43, %v8868_v58  ;;  %v3056_v20 = vpack.c.bf16 %v8879_v54, %v8878_v39  ;;  %v2949_v31 = vpop.f32.mrb[103].mxu1  ;;  %v3027_v26 = vpop.f32.mrb[95].mxu0  ;;  %8453 = vmatpush3.bf16.msra.mxu0 %v2588_v27  ;;  %v9282_v43 = vld [vmem:[#allocation11] ss:$12 sps:$4 sm:$0xff]  }
 0x90f   :  { %v2977_v49 = vpack.c.bf16 %v2949_v31, %v2946_v61  ;;  %v3055_v13 = vpack.c.bf16 %v3027_v26, %v3024_v24 }
 0x911   :  { %8454 = vmatprep.subr.bf16.mxu0 %v2977_v49 }
 0x912   :  { %8455 = vmatpush3.bf16.msra.mxu0 %v2665_v0 }
 0x913   :  { %v11185_v14 = vpop.f32.mrb[104].mxu1  ;;  %v11187_v42 = vpop.f32.mrb[96].mxu0  ;;  %8456 = vmatprep.subr.bf16.mxu0 %v2978_v36 }
 0x914   :  { %v2962_v48 = vpop.f32.mrb[105].mxu1  ;;  %v11189_v57 = vpop.f32.mrb[97].mxu0 }
 0x915   :  { %v8873_v28 = vpop.f32.mrb[106].mxu1  ;;  %v11191_v54 = vpop.f32.mrb[98].mxu0 }
 0x916   :  { %v2980_v58 = vpack.c.bf16 %v8873_v28, %v11185_v14  ;;  %v3058_v18 = vpack.c.bf16 %v11191_v54, %v11187_v42  ;;  %v2965_v23 = vpop.f32.mrb[107].mxu1  ;;  %v3043_v27 = vpop.f32.mrb[99].mxu0  ;;  %8457 = vmatpush3.bf16.msra.mxu0 %v2666_v60  ;;  %v9285_v60 = vld [vmem:[#allocation11 + $0x8] ss:$12 sps:$4 sm:$0xff]  }
 0x917   :  { %v2979_v0 = vpack.c.bf16 %v2965_v23, %v2962_v48  ;;  %v3057_v36 = vpack.c.bf16 %v3043_v27, %v11189_v57  ;;  %8458 = vmatprep.subr.bf16.mxu0 %v3055_v13 }
 0x91a   :  { %8459 = vmatpush3.bf16.msra.mxu0 %v2743_v1 }
 0x91b   :  { %v8888_v39 = vpop.f32.mrb[108].mxu1  ;;  %8460 = vmatprep.subr.bf16.mxu0 %v3056_v20  ;;  %v3324_v20 = vld [vmem:[%s12388_s18 + $0x8] sm:$0xff] }
 0x91c   :  { %v3102_v61 = vpop.f32.mrb[109].mxu1 }
 0x91d   :  { %v8889_v24 = vpop.f32.mrb[110].mxu1 }
 0x91e   :  { %v3134_v31 = vpack.c.bf16 %v8889_v24, %v8888_v39  ;;  %v3105_v26 = vpop.f32.mrb[111].mxu1  ;;  %8461 = vmatpush3.bf16.msra.mxu0 %v2744_v11  ;;  %v3323_v11 = vld [vmem:[%s12388_s18] sm:$0xff] }
 0x91f   :  { %v3133_v15 = vpack.c.bf16 %v3105_v26, %v3102_v61  ;;  %8902 = vmatprep.subr.bf16.mxu0 %v12376_v59 }
 0x921   :  { %8895 = vmatpush3.bf16.msra.mxu1 %v3133_v15  ;;  %3192 = vmatmul.mubr.bf16.vlgmr.msra.gmra.mrb[100].mxu0 %v9282_v43 }
 0x922   :  { %8896 = vmatprep.subr.bf16.mxu1 %v12376_v59  ;;  %8906 = vmatprep.mubr.msk.bf16.mxu0 %vm10056_vm4, %v12376_v59 }
 0x923   :  { %v8892_v4 = vpop.f32.mrb[112].mxu1 }
 0x924   :  { %v3118_v45 = vpop.f32.mrb[113].mxu1 }
 0x925   :  { %v8893_v35 = vpop.f32.mrb[114].mxu1  ;;  %8897 = vmatpush3.bf16.msra.mxu1 %v3134_v31  ;;  %v11300_v31 = vld [vmem:[%s12396_s15] sm:$0xff] }
 0x926   :  { %v3136_v1 = vpack.c.bf16 %v8893_v35, %v8892_v4  ;;  %v3121_v19 = vpop.f32.mrb[115].mxu1  ;;  %8471 = vmatprep.subr.bf16.mxu1 %v2823_v16  ;;  %v9155_v16 = vpack.c.bf16 %v3324_v20, %v3323_v11  ;;  %v11309_v20 = vld [vmem:[%s12396_s15 + $0x18] sm:$0xff] }
 0x927   :  { %v3135_v40 = vpack.c.bf16 %v3121_v19, %v3118_v45 }
 0x928   :  { %8899 = vmatmul.mubr.msk.bf16.vlgmr.msra.gmra.mrb[116].mxu1 %vm461_vm0, %v9285_v60 }
 0x929   :  { %8472 = vmatpush3.bf16.msra.mxu1 %v2511_v38  ;;  %8903 = vmatpush3.bf16.msra.mxu0 %v3135_v40  ;;  %v11259_v38 = vld [vmem:[%s12391_s3] sm:$0xff] }
 0x92a   :  { %8473 = vmatprep.subr.bf16.mxu1 %v2824_v55  ;;  %8904 = vmatprep.subr.bf16.mxu0 %v12376_v59 }
 0x92b   :  { %3273 = vmatprep.mubr.bf16.mxu1 %v11062_v41  ;;  %v9158_v41 = vpack.c.bf16 %v3326_v7, %v3325_v29  ;;  %v11313_v29 = vld [vmem:[%s12396_s15 + $0x10] sm:$0xff] }
 0x92d   :  { %8474 = vmatpush3.bf16.msra.mxu1 %v2512_v50  ;;  %8905 = vmatpush3.bf16.msra.mxu0 %v3136_v1  ;;  %v12393_v50 = vpack.c.bf16 %v11139_v37, %v11131_v9  ;;  %v11271_v9 = vld [vmem:[%s12391_s3 + $0x10] sm:$0xff] }
 0x92e   :  { %8475 = vmatprep.subr.bf16.mxu1 %v2901_v56  ;;  %9154 = vmatprep.subr.bf16.mxu0 %v10055_v53 }
 0x930   :  { %8907 = vmatmul.mubr.msk.bf16.vlgmr.msra.gmra.mrb[104].mxu0 %vm461_vm0, %v9285_v60 }
 0x931   :  { %8476 = vmatpush3.bf16.msra.mxu1 %v2589_v6  ;;  %9156 = vmatpush3.bf16.msra.mxu0 %v9155_v16  ;;  %v11262_v6 = vld [vmem:[%s12391_s3 + $0x8] sm:$0xff] }
 0x932   :  { %8477 = vmatprep.subr.bf16.mxu1 %v12389_v5  ;;  %9157 = vmatprep.subr.bf16.mxu0 %v10055_v53 }
 0x933   :  { %8918 = vmatprep.mubr.msk.f32.mxu0 %vm10056_vm4, %v12376_v59 }
 0x935   :  { %8478 = vmatpush3.bf16.msra.mxu1 %v12390_v51  ;;  %9159 = vmatpush3.bf16.msra.mxu0 %v9158_v41 }
 0x936   :  { %8479 = vmatprep.subr.bf16.mxu1 %v2979_v0 }
 0x938   :  { %8919 = vmatmul.mubr.msk.f32.vlgmr.msra.gmra.mrb[66].mxu0 %vm461_vm0, %v3328_v30  ;;  %vm3728_vm0 = vcmask 523264  }
 0x939   :  { %8480 = vmatpush3.bf16.msra.mxu1 %v12392_v33  ;;  %8923 = vmatprep.mubr.msk.f32.mxu0 %vm560_vm1, %v11259_v38 }
 0x93a   :  { %8481 = vmatprep.subr.bf16.mxu1 %v2980_v58 }
 0x93d   :  { %8482 = vmatpush3.bf16.msra.mxu1 %v12393_v50 }
 0x93e   :  { %8483 = vmatprep.subr.bf16.mxu1 %v3057_v36 }
 0x941   :  { %8484 = vmatpush3.bf16.msra.mxu1 %v12394_v10  ;;  %v3544_v10 = vld [vmem:[%s12387_s0 + $0x18] sm:$0xff] }
 0x942   :  { %8485 = vmatprep.subr.bf16.mxu1 %v3058_v18 }
 0x945   :  { %8486 = vmatpush3.bf16.msra.mxu1 %v12395_v47  ;;  %v9286_v47 = vld [vmem:[#allocation20] sm:$0xff]  }
 0x946   :  { %8929 = vmatprep.subr.msk.mxu1 %vm585_vm2, %v3586_v25 }
 0x948   :  { %3274 = vmatmul.mubr.bf16.vlgmr.msra.gmra.mrb[120].mxu1 %v9282_v43  ;;  %v11297_v43 = vld [vmem:[%s12396_s15 + $0x8] sm:$0xff] }
 0x949   :  { %8930 = vmatpush3.msk.msra.mxu1 %vm585_vm2, %v3586_v25  ;;  %8931 = vmatprep.mubr.msk.f32.mxu1 %vm560_vm1, %v11259_v38  ;;  %v3543_v25 = vld [vmem:[%s12387_s0 + $0x10] sm:$0xff] }
 0x950   :  { %8932 = vmatmul.mubr.msk.f32.vlgmr.msra.gmra.mrb[66].mxu1 %vm560_vm1, %v11262_v6 }
 0x951   :  { %8934 = vmatprep.mubr.msk.f32.mxu1 %vm560_vm1, %v11271_v9 }
 0x954   :  { %8935 = vmatmul.mubr.msk.f32.gmra.mrb[124].mxu1 %vm560_vm1, %v11274_v62 }
 0x9f4   :  { %v8462_v44 = vpop.f32.mrb[100].mxu0 }
 0x9f5   :  { %v8463_v8 = vpop.f32.mrb[101].mxu0 }
 0x9f6   :  { %v8464_v37 = vadd.f32 %v8463_v8, %v8462_v44  ;;  %v8465_v63 = vpop.f32.mrb[102].mxu0  ;;  %v9287_v44 = vld [vmem:[#allocation20 + $0x20] sm:$0xff]   ;;  %v9288_v8 = vld [vmem:[#allocation20 + $0x8] sm:$0xff]  }
 0x9f7   :  { %v8466_v22 = vpop.f32.mrb[103].mxu0  ;;  %8949 = vmatprep.subr.bf16.mxu1 %v9287_v44 }
 0x9f8   :  { %v8467_v3 = vadd.f32 %v8466_v22, %v8465_v63  ;;  %8950 = vmatpush3.bf16.msra.mxu1 %v9287_v44  ;;  %v9290_v63 = vld [vmem:[#allocation20 + $0x10] sm:$0xff]  }
 0x9f9   :  { %v9291_v22 = vld [vmem:[#allocation20 + $0x30] sm:$0xff]  }
 0x9fb   :  { %v3234_v32 = vpop.f32.mrb[116].mxu1 }
 0x9fc   :  { %v11280_v52 = vadd.f32 %v8464_v37, %v3234_v32  ;;  %v8900_v12 = vpop.f32.mrb[117].mxu1  ;;  %v9289_v37 = vld [vmem:[#allocation20 + $0x28] sm:$0xff]   ;;  %v9293_v32 = vld [vmem:[#allocation20 + $0x38] sm:$0xff]  }
 0x9fd   :  { %v3237_v34 = vpop.f32.mrb[118].mxu1  ;;  %8951 = vmatprep.subr.bf16.mxu1 %v9289_v37 }
 0x9fe   :  { %v11282_v55 = vadd.f32 %v8467_v3, %v3237_v34  ;;  %v8901_v2 = vpop.f32.mrb[119].mxu1  ;;  %8952 = vmatpush3.bf16.msra.mxu1 %v9289_v37  ;;  %v9292_v3 = vld [vmem:[#allocation20 + $0x18] sm:$0xff]  }
 0x9ff   :  { %8953 = vmatprep.subr.bf16.mxu1 %v9291_v22 }
 0xa02   :  { %8954 = vmatpush3.bf16.msra.mxu1 %v9291_v22  ;;  %v9297_v22 = vld [vmem:[#allocation20 + $0x68] sm:$0xff]  }
 0xa03   :  { %v3316_v56 = vpop.f32.mrb[104].mxu0  ;;  %8955 = vmatprep.subr.bf16.mxu1 %v9293_v32 }
 0xa04   :  { %v8908_v49 = vpop.f32.mrb[105].mxu0 }
 0xa05   :  { %v3319_v13 = vpop.f32.mrb[106].mxu0  ;;  %v9294_v49 = vld [vmem:[#allocation20 + $0x40] sm:$0xff]  }
 0xa06   :  { %v8909_v14 = vpop.f32.mrb[107].mxu0  ;;  %8956 = vmatpush3.bf16.msra.mxu1 %v9293_v32  ;;  %v9299_v32 = vld [vmem:[#allocation20 + $0x70] sm:$0xff]  }
 0xa07   :  { %v3548_v14 = vpop.permute.xlu0 %3547 }
 0xa0b   :  { %v3397_v42 = vpop.f32.mrb[66].mxu0 }
 0xa0c   :  { %v3398_v48 = vadd.f32 1e-08, %v3397_v42  ;;  %v8920_v57 = vpop.f32.mrb[67].mxu0  ;;  %v3553_v42 = vpop.permute.xlu1 %3552 }
 0xa0e   :  { %9454 = vrsqrt.f32 %v3398_v48 }
 0xa18   :  { %v9455_v28 = vpop.eup %9454 }
 0xa19   :  { %8921 = vmatprep.subr.msk.mxu0 %vm585_vm2, %v9455_v28 }
 0xa1a   :  { %8922 = vmatpush3.msk.msra.mxu0 %vm585_vm2, %v9455_v28  ;;  %v7957_v28 = vld [vmem:[#allocation13] ss:$0 sm:$0xff] }
 0xa1b   :  { %v8487_v54 = vpop.f32.mrb[120].mxu1  ;;  %8924 = vmatmul.mubr.msk.f32.vlgmr.msra.gmra.mrb[108].mxu0 %vm560_vm1, %v11262_v6  ;;  %8937 = vmatprep.subr.bf16.mxu0 %v9286_v47 }
 0xa1c   :  { %v8488_v58 = vpop.f32.mrb[121].mxu1  ;;  %8926 = vmatprep.mubr.msk.f32.mxu0 %vm560_vm1, %v11271_v9  ;;  %8938 = vmatpush3.bf16.msra.mxu0 %v9286_v47 }
 0xa1d   :  { %v8489_v18 = vadd.f32 %v8488_v58, %v8487_v54  ;;  %v8490_v23 = vpop.f32.mrb[122].mxu1  ;;  %8939 = vmatprep.subr.bf16.mxu0 %v9288_v8 }
 0xa1e   :  { %v8491_v27 = vpop.f32.mrb[123].mxu1 }
 0xa1f   :  { %v11290_v0 = vadd.f32 %v8489_v18, %v3316_v56  ;;  %v8492_v36 = vadd.f32 %v8491_v27, %v8490_v23  ;;  %8927 = vmatmul.mubr.msk.f32.gmra.mrb[110].mxu0 %vm560_vm1, %v11274_v62 }
 0xa20   :  { %8940 = vmatpush3.bf16.msra.mxu0 %v9288_v8 }
 0xa21   :  { %v11294_v39 = vadd.f32 %v8492_v36, %v3319_v13  ;;  %8941 = vmatprep.subr.bf16.mxu0 %v9290_v63  ;;  %v9295_v13 = vld [vmem:[#allocation20 + $0x60] sm:$0xff]  }
 0xa22   :  { %8973 = vmatprep.subr.bf16.mxu1 %v9295_v13 }
 0xa23   :  { %v8933_v61 = vpop.f32.mrb[66].mxu1 }
 0xa24   :  { %v3655_v24 = vpop.f32.mrb[67].mxu1  ;;  %v3675_v26 = vmul.f32 %v8933_v61, %v11297_v43  ;;  %8942 = vmatpush3.bf16.msra.mxu0 %v9290_v63 }
 0xa25   :  { %v3674_v15 = vmul.f32 %v3655_v24, %v11300_v31  ;;  %8943 = vmatprep.subr.bf16.mxu0 %v9292_v3 }
 0xa26   :  { %v3681_v4 = vsel %vm746_vm3, %v3675_v26, 0.0 }
 0xa27   :  { %v3678_v45 = vsel %vm746_vm3, %v3674_v15, 0.0  ;;  %3682 = vadd.xlane.f32.xlu0 %v3681_v4  ;;  %v8936_v60 = vpop.f32.mrb[124].mxu1 }
 0xa28   :  { %3679 = vadd.xlane.f32.xlu1 %v3678_v45  ;;  %v3665_v35 = vpop.f32.mrb[125].mxu1  ;;  %8944 = vmatpush3.bf16.msra.mxu0 %v9292_v3  ;;  %v3677_v12 = vmul.f32 %v8936_v60, %v11309_v20  ;;  %v9298_v3 = vld [vmem:[#allocation20 + $0x50] sm:$0xff]  }
 0xa29   :  { %v3676_v34 = vmul.f32 %v3665_v35, %v11313_v29  ;;  %8961 = vmatprep.subr.bf16.mxu0 %v9294_v49 }
 0xa2a   :  { %v3687_v2 = vsel %vm746_vm3, %v3677_v12, 0.0  ;;  %v9300_v12 = vld [vmem:[#allocation20 + $0x58] sm:$0xff]  }
 0xa2b   :  { %v3684_v56 = vsel %vm746_vm3, %v3676_v34, 0.0  ;;  %v9301_v34 = vld [vmem:[#allocation20 + $0x78] sm:$0xff]  }
 0xab4   :  { %v3683_v48 = vpop.xlane.xlu0 %3682 }
 0xab5   :  { %v3680_v57 = vpop.xlane.xlu1 %3679 }
 0xaee   :  { %v8925_v1 = vpop.f32.mrb[108].mxu0 }
 0xaef   :  { %v3511_v19 = vmul.f32 %v8925_v1, %v11297_v43  ;;  %v3491_v40 = vpop.f32.mrb[109].mxu0 }
 0xaf0   :  { %v3510_v11 = vmul.f32 %v3491_v40, %v11300_v31 }
 0xaf1   :  { %v3517_v16 = vsel %vm746_vm3, %v3511_v19, 0.0 }
 0xaf2   :  { %v8928_v7 = vpop.f32.mrb[110].mxu0  ;;  %3518 = vadd.xlane.f32.xlu0 %v3517_v16  ;;  %v3514_v41 = vsel %vm746_vm3, %v3510_v11, 0.0 }
 0xaf3   :  { %v3513_v5 = vmul.f32 %v8928_v7, %v11309_v20  ;;  %v3501_v51 = vpop.f32.mrb[111].mxu0  ;;  %3515 = vadd.xlane.f32.xlu1 %v3514_v41 }
 0xaf4   :  { %v3512_v30 = vmul.f32 %v3501_v51, %v11313_v29 }
 0xaf5   :  { %v3523_v33 = vsel %vm746_vm3, %v3513_v5, 0.0 }
 0xaf6   :  { %v3520_v50 = vsel %vm746_vm3, %v3512_v30, 0.0 }
 0xaf7   :  { %3521 = vadd.xlane.f32.xlu0 %v3520_v50  ;;  %3524 = vadd.xlane.f32.xlu1 %v3523_v33 }
 0xb08   :  { %3562 = vperm.xlu1 %9255, %v3544_v10  }
 0xb0d   :  { %3557 = vperm.xlu0 %9254, %v3543_v25  }
 0xb2c   :  { %3688 = vadd.xlane.f32.xlu0 %v3687_v2  ;;  %3685 = vadd.xlane.f32.xlu1 %v3684_v56  ;;  %v9302_v2 = vld [vmem:[#allocation20 + $0x80] sm:$0xff]  }
 0xb2d   :  { %v9303_v56 = vld [vmem:[#allocation20 + $0xa0] sm:$0xff]  }
 0xb3d   :  { %4794 = vrot.lane.b32.xlu1 %v10464_v21, %s10059_s13 }
 0xb42   :  { %4556 = vrot.lane.b32.xlu0 %v10806_v17, %s10058_s11 }
 0xb7f   :  { %v3519_v54 = vpop.xlane.xlu0 %3518 }
 0xb80   :  { %v3527_v58 = vmul.f32 %v3519_v54, %v11282_v55  ;;  %v3516_v18 = vpop.xlane.xlu1 %3515  ;;  %v9311_v54 = vld [vmem:[#allocation20 + $0xe0] sm:$0xff]  }
 0xb81   :  { %v3526_v23 = vmul.f32 %v3516_v18, %v11280_v52  ;;  %v9313_v18 = vld [vmem:[#allocation20 + $0xe8] sm:$0xff]  }
 0xb82   :  { %v3538_v27 = vadd.f32 %v7957_v28, %v3527_v58  ;;  %v9312_v58 = vld [vmem:[#allocation20 + $0xc8] sm:$0xff]  }
 0xb83   :  { %v3537_v36 = vadd.f32 %v7957_v28, %v3526_v23  ;;  %v9314_v23 = vld [vmem:[#allocation20 + $0xd0] sm:$0xff]  }
 0xb84   :  { %v3566_v61 = vadd.f32 %v3553_v42, %v3538_v27  ;;  %v3525_v52 = vpop.xlane.xlu1 %3524  ;;  %v3522_v55 = vpop.xlane.xlu0 %3521  ;;  %v9307_v42 = vld [vmem:[#allocation20 + $0xb0] sm:$0xff]  }
 0xb85   :  { %v3565_v21 = vadd.f32 %v3548_v14, %v3537_v36  ;;  %v3529_v19 = vmul.f32 %v3525_v52, %v11294_v39  ;;  %v3528_v40 = vmul.f32 %v3522_v55, %v11290_v0  ;;  %v9296_v0 = vld [vmem:[#allocation20 + $0x48] sm:$0xff]   ;;  %v9306_v14 = vld [vmem:[#allocation20 + $0x90] sm:$0xff]   ;;  %v9316_v36 = vld [vmem:[#allocation20 + $0xd8] sm:$0xff]  }
 0xb86   :  { %vm3570_vm14 = vcmp.ge.f32.partialorder %v3566_v61, 0.0  ;;  %v3574_v24 = vmul.f32 0.2, %v3566_v61  ;;  %v9315_v27 = vld [vmem:[#allocation20 + $0xf0] sm:$0xff]  }
 0xb87   :  { %vm3569_vm15 = vcmp.ge.f32.partialorder %v3565_v21, 0.0  ;;  %v3573_v26 = vmul.f32 0.2, %v3565_v21  ;;  %v3540_v11 = vadd.f32 %v7957_v28, %v3529_v19  ;;  %v3539_v41 = vadd.f32 %v7957_v28, %v3528_v40  ;;  %v9310_v28 = vld [vmem:[#allocation20 + $0xc0] sm:$0xff]  }
 0xb88   :  { %v3578_v17 = vsel %vm3570_vm14, %v3566_v61, %v3574_v24  ;;  %v3563_v16 = vpop.permute.xlu1 %3562  ;;  %v9317_v61 = vld [vmem:[#allocation20 + $0xf8] sm:$0xff]   ;;  %v9319_v24 = vld [vmem:[#allocation20 + $0x108] sm:$0xff]  }
 0xb89   :  { %v3582_v15 = vmul.f32 1.4142135, %v3578_v17  ;;  %v3577_v4 = vsel %vm3569_vm15, %v3565_v21, %v3573_v26  ;;  %v3568_v5 = vadd.f32 %v3563_v16, %v3540_v11  ;;  %v9318_v21 = vld [vmem:[#allocation20 + $0x100] sm:$0xff]   ;;  %v12397_v26 = vmov 0   ;;  %v9320_v17 = vld [vmem:[#allocation20 + $0x110] sm:$0xff]  }
 0xb8a   :  { %v3581_v45 = vmul.f32 1.4142135, %v3577_v4  ;;  %v9322_v4 = vld [vmem:[#allocation16 + $0x4] ss:$8 sps:$4 sm:$0xff]  }
 0xb8b   :  { %v3691_v60 = vmul.f32 %v3683_v48, %v3582_v15  ;;  %v3576_v30 = vmul.f32 0.2, %v3568_v5  ;;  %vm3572_vm5 = vcmp.ge.f32.partialorder %v3568_v5, 0.0  ;;  %v9308_v48 = vld [vmem:[#allocation20 + $0x98] sm:$0xff]  }
 0xb8c   :  { %v3690_v35 = vmul.f32 %v3680_v57, %v3581_v45  ;;  %v3558_v7 = vpop.permute.xlu0 %3557  ;;  %v9309_v57 = vld [vmem:[#allocation20 + $0xb8] sm:$0xff]  }
 0xb8d   :  { %v3567_v51 = vadd.f32 %v3558_v7, %v3539_v41  ;;  %v3580_v50 = vsel %vm3572_vm5, %v3568_v5, %v3576_v30  ;;  %v9321_v15 = vld [vmem:[#allocation20 + $0x118] sm:$0xff]  }
 0xb8e   :  { %v11332_v1 = vpack.c.bf16 %v3691_v60, %v3690_v35  ;;  %v3584_v25 = vmul.f32 1.4142135, %v3580_v50 }
 0xb8f   :  { %v3575_v33 = vmul.f32 0.2, %v3567_v51  ;;  %vm3571_vm6 = vcmp.ge.f32.partialorder %v3567_v51, 0.0 }
 0xb90   :  { %8945 = vmatprep.mubr.msk.bf16.mxu0 %vm3728_vm0, %v11332_v1  ;;  %8957 = vmatprep.mubr.msk.bf16.mxu1 %vm3728_vm0, %v11332_v1 }
 0xb91   :  { %v3579_v10 = vsel %vm3571_vm6, %v3567_v51, %v3575_v33 }
 0xb92   :  { %v3583_v47 = vmul.f32 1.4142135, %v3579_v10 }
 0xbb9   :  { %v3689_v44 = vpop.xlane.xlu0 %3688  ;;  %v3686_v8 = vpop.xlane.xlu1 %3685 }
 0xbba   :  { %v3693_v37 = vmul.f32 %v3689_v44, %v3584_v25  ;;  %v3692_v39 = vmul.f32 %v3686_v8, %v3583_v47 }
 0xbbc   :  { %v11340_v63 = vpack.c.bf16 %v3693_v37, %v3692_v39 }
 0xbbe   :  { %8946 = vmatmul.mubr.msk.bf16.vlgmr.msra.gmra.mrb[112].mxu0 %vm3728_vm0, %v11340_v63  ;;  %8958 = vmatmul.mubr.msk.bf16.vlgmr.msra.gmra.mrb[128].mxu1 %vm3728_vm0, %v11340_v63 }
 0xbbf   :  { %8962 = vmatpush3.bf16.msra.mxu0 %v9294_v49  ;;  %8974 = vmatpush3.bf16.msra.mxu1 %v9295_v13  ;;  %v9304_v49 = vld [vmem:[#allocation20 + $0x88] sm:$0xff]  }
 0xbc0   :  { %8969 = vmatprep.mubr.msk.bf16.mxu0 %vm3728_vm0, %v11332_v1  ;;  %8981 = vmatprep.mubr.msk.bf16.mxu1 %vm3728_vm0, %v11332_v1  ;;  %v9305_v13 = vld [vmem:[#allocation20 + $0xa8] sm:$0xff]  }
 0xbc1   :  { %8963 = vmatprep.subr.bf16.mxu0 %v9296_v0  ;;  %8975 = vmatprep.subr.bf16.mxu1 %v9297_v22 }
 0xbc3   :  { %8964 = vmatpush3.bf16.msra.mxu0 %v9296_v0  ;;  %8976 = vmatpush3.bf16.msra.mxu1 %v9297_v22 }
 0xbc4   :  { %8965 = vmatprep.subr.bf16.mxu0 %v9298_v3  ;;  %8977 = vmatprep.subr.bf16.mxu1 %v9299_v32 }
 0xbc7   :  { %8966 = vmatpush3.bf16.msra.mxu0 %v9298_v3  ;;  %8978 = vmatpush3.bf16.msra.mxu1 %v9299_v32 }
 0xbc8   :  { %8967 = vmatprep.subr.bf16.mxu0 %v9300_v12  ;;  %8979 = vmatprep.subr.bf16.mxu1 %v9301_v34 }
 0xbcb   :  { %8968 = vmatpush3.bf16.msra.mxu0 %v9300_v12  ;;  %8980 = vmatpush3.bf16.msra.mxu1 %v9301_v34 }
 0xbcc   :  { %8985 = vmatprep.subr.bf16.mxu0 %v9302_v2  ;;  %8997 = vmatprep.subr.bf16.mxu1 %v9303_v56 }
 0xbce   :  { %8970 = vmatmul.mubr.msk.bf16.vlgmr.msra.gmra.mrb[116].mxu0 %vm3728_vm0, %v11340_v63  ;;  %8982 = vmatmul.mubr.msk.bf16.vlgmr.msra.gmra.mrb[132].mxu1 %vm3728_vm0, %v11340_v63 }
 0xbcf   :  { %8986 = vmatpush3.bf16.msra.mxu0 %v9302_v2  ;;  %8993 = vmatprep.mubr.msk.bf16.mxu0 %vm3728_vm0, %v11332_v1 }
 0xbd0   :  { %8998 = vmatpush3.bf16.msra.mxu1 %v9303_v56  ;;  %9005 = vmatprep.mubr.msk.bf16.mxu1 %vm3728_vm0, %v11332_v1 }
 0xbd1   :  { %8987 = vmatprep.subr.bf16.mxu0 %v9304_v49  ;;  %8999 = vmatprep.subr.bf16.mxu1 %v9305_v13 }
 0xbd3   :  { %8988 = vmatpush3.bf16.msra.mxu0 %v9304_v49 }
 0xbd4   :  { %9000 = vmatpush3.bf16.msra.mxu1 %v9305_v13  ;;  %8989 = vmatprep.subr.bf16.mxu0 %v9306_v14 }
 0xbd5   :  { %9001 = vmatprep.subr.bf16.mxu1 %v9307_v42 }
 0xbd7   :  { %8990 = vmatpush3.bf16.msra.mxu0 %v9306_v14 }
 0xbd8   :  { %9002 = vmatpush3.bf16.msra.mxu1 %v9307_v42  ;;  %8991 = vmatprep.subr.bf16.mxu0 %v9308_v48 }
 0xbd9   :  { %9003 = vmatprep.subr.bf16.mxu1 %v9309_v57 }
 0xbdb   :  { %8992 = vmatpush3.bf16.msra.mxu0 %v9308_v48 }
 0xbdc   :  { %9004 = vmatpush3.bf16.msra.mxu1 %v9309_v57  ;;  %9009 = vmatprep.subr.bf16.mxu0 %v9310_v28 }
 0xbdd   :  { %9021 = vmatprep.subr.bf16.mxu1 %v9311_v54 }
 0xbde   :  { %8994 = vmatmul.mubr.msk.bf16.vlgmr.msra.gmra.mrb[120].mxu0 %vm3728_vm0, %v11340_v63 }
 0xbdf   :  { %9006 = vmatmul.mubr.msk.bf16.vlgmr.msra.gmra.mrb[136].mxu1 %vm3728_vm0, %v11340_v63  ;;  %9010 = vmatpush3.bf16.msra.mxu0 %v9310_v28 }
 0xbe0   :  { %9017 = vmatprep.mubr.msk.bf16.mxu0 %vm3728_vm0, %v11332_v1  ;;  %9022 = vmatpush3.bf16.msra.mxu1 %v9311_v54 }
 0xbe1   :  { %9029 = vmatprep.mubr.msk.bf16.mxu1 %vm3728_vm0, %v11332_v1  ;;  %9011 = vmatprep.subr.bf16.mxu0 %v9312_v58 }
 0xbe2   :  { %9023 = vmatprep.subr.bf16.mxu1 %v9313_v18 }
 0xbe3   :  { %9012 = vmatpush3.bf16.msra.mxu0 %v9312_v58 }
 0xbe4   :  { %9024 = vmatpush3.bf16.msra.mxu1 %v9313_v18  ;;  %9013 = vmatprep.subr.bf16.mxu0 %v9314_v23 }
 0xbe5   :  { %9025 = vmatprep.subr.bf16.mxu1 %v9315_v27 }
 0xbe7   :  { %9014 = vmatpush3.bf16.msra.mxu0 %v9314_v23 }
 0xbe8   :  { %9026 = vmatpush3.bf16.msra.mxu1 %v9315_v27  ;;  %9015 = vmatprep.subr.bf16.mxu0 %v9316_v36 }
 0xbe9   :  { %9027 = vmatprep.subr.bf16.mxu1 %v9317_v61 }
 0xbeb   :  { %9016 = vmatpush3.bf16.msra.mxu0 %v9316_v36 }
 0xbec   :  { %9028 = vmatpush3.bf16.msra.mxu1 %v9317_v61  ;;  %9033 = vmatprep.subr.bf16.mxu0 %v9318_v21 }
 0xbed   :  { %4472 = vmatprep.subr.bf16.mxu1 %v12397_v26 }
 0xbee   :  { %9018 = vmatmul.mubr.msk.bf16.vlgmr.msra.gmra.mrb[124].mxu0 %vm3728_vm0, %v11340_v63 }
 0xbef   :  { %9030 = vmatmul.mubr.msk.bf16.vlgmr.msra.gmra.mrb[140].mxu1 %vm3728_vm0, %v11340_v63  ;;  %9034 = vmatpush3.bf16.msra.mxu0 %v9318_v21 }
 0xbf0   :  { %9041 = vmatprep.mubr.msk.bf16.mxu0 %vm3728_vm0, %v11332_v1  ;;  %9035 = vmatprep.subr.bf16.mxu0 %v9319_v24 }
 0xbf1   :  { %8019 = vmatprep.mubr.msk.bf16.mxu1 %vm746_vm3, %v9322_v4 }
 0xbf3   :  { %9036 = vmatpush3.bf16.msra.mxu0 %v9319_v24 }
 0xbf4   :  { %9037 = vmatprep.subr.bf16.mxu0 %v9320_v17 }
 0xbf7   :  { %9038 = vmatpush3.bf16.msra.mxu0 %v9320_v17 }
 0xbf8   :  { %9039 = vmatprep.subr.bf16.mxu0 %v9321_v15 }
 0xbfb   :  { %9040 = vmatpush3.bf16.msra.mxu0 %v9321_v15 }
 0xbfc   :  { %4513 = vmatprep.subr.bf16.mxu0 %v12397_v26 }
 0xbfe   :  { %9042 = vmatmul.mubr.msk.bf16.vlgmr.msra.gmra.mrb[128].mxu0 %vm3728_vm0, %v11340_v63 }
 0xbff   :  { %8020 = vmatprep.mubr.msk.bf16.mxu0 %vm746_vm3, %v9322_v4 }
 0xc91   :  { %v8947_v45 = vpop.f32.mrb[112].mxu0  ;;  %v8959_v60 = vpop.f32.mrb[128].mxu1 }
 0xc92   :  { %v3769_v35 = vpop.f32.mrb[113].mxu0  ;;  %v3853_v1 = vpop.f32.mrb[129].mxu1 }
 0xc93   :  { %v8948_v52 = vpop.f32.mrb[114].mxu0  ;;  %v8960_v55 = vpop.f32.mrb[130].mxu1 }
 0xc94   :  { %v3785_v19 = vpack.c.bf16 %v8948_v52, %v8947_v45  ;;  %v3869_v40 = vpack.c.bf16 %v8960_v55, %v8959_v60  ;;  %v3772_v11 = vpop.f32.mrb[115].mxu0  ;;  %v3856_v16 = vpop.f32.mrb[131].mxu1  ;;  %v4554_v60 = vld [vmem:[#allocation17] sm:$0xff]  ;;  %v9324_v52 = vld [vmem:[#allocation16] ss:$8 sps:$4 sm:$0xff]  }
 0xc95   :  { %v3784_v7 = vpack.c.bf16 %v3772_v11, %v3769_v35  ;;  %v3868_v41 = vpack.c.bf16 %v3856_v16, %v3853_v1  ;;  %v4555_v35 = vld [vmem:[#allocation17 + $0x8] sm:$0xff]  ;;  %v4795_v55 = vpop.permute.xlu1 %4794 }
 0xc96   :  { %4514 = vmatpush1.bf16.msra.mxu0 %v3785_v19  ;;  %v9161_v19 = vpack.c.bf16 %v4555_v35, %v4554_v60 }
 0xc97   :  { %4473 = vmatpush1.bf16.msra.mxu1 %v3784_v7  ;;  %4515 = vmatprep.subr.bf16.mxu0 %v12397_v26 }
 0xc98   :  { %4474 = vmatprep.subr.bf16.mxu1 %v12397_v26 }
 0xc9a   :  { %4516 = vmatpush1.bf16.msra.mxu0 %v3869_v40  ;;  %v4557_v40 = vpop.permute.xlu0 %4556 }
 0xc9b   :  { %4475 = vmatpush1.bf16.msra.mxu1 %v3868_v41  ;;  %4517 = vmatprep.subr.bf16.mxu0 %v12397_v26 }
 0xc9c   :  { %4476 = vmatprep.subr.bf16.mxu1 %v12397_v26 }
 0xca1   :  { %v8971_v5 = vpop.f32.mrb[116].mxu0  ;;  %v8983_v51 = vpop.f32.mrb[132].mxu1 }
 0xca2   :  { %v3937_v30 = vpop.f32.mrb[117].mxu0  ;;  %v4021_v33 = vpop.f32.mrb[133].mxu1 }
 0xca3   :  { %v8972_v50 = vpop.f32.mrb[118].mxu0  ;;  %v8984_v10 = vpop.f32.mrb[134].mxu1 }
 0xca4   :  { %v3953_v25 = vpack.c.bf16 %v8972_v50, %v8971_v5  ;;  %v4037_v47 = vpack.c.bf16 %v8984_v10, %v8983_v51  ;;  %v3940_v44 = vpop.f32.mrb[119].mxu0  ;;  %v4024_v8 = vpop.f32.mrb[135].mxu1 }
 0xca5   :  { %v3952_v37 = vpack.c.bf16 %v3940_v44, %v3937_v30  ;;  %v4036_v39 = vpack.c.bf16 %v4024_v8, %v4021_v33 }
 0xca6   :  { %4518 = vmatpush1.bf16.msra.mxu0 %v3953_v25 }
 0xca7   :  { %4477 = vmatpush1.bf16.msra.mxu1 %v3952_v37  ;;  %4519 = vmatprep.subr.bf16.mxu0 %v12397_v26 }
 0xca8   :  { %4478 = vmatprep.subr.bf16.mxu1 %v12397_v26 }
 0xcaa   :  { %4520 = vmatpush1.bf16.msra.mxu0 %v4037_v47 }
 0xcab   :  { %4479 = vmatpush1.bf16.msra.mxu1 %v4036_v39  ;;  %4521 = vmatprep.subr.bf16.mxu0 %v12397_v26 }
 0xcac   :  { %4480 = vmatprep.subr.bf16.mxu1 %v12397_v26 }
 0xcb1   :  { %v8995_v63 = vpop.f32.mrb[120].mxu0 }
 0xcb2   :  { %v9007_v0 = vpop.f32.mrb[136].mxu1  ;;  %v4105_v22 = vpop.f32.mrb[121].mxu0 }
 0xcb3   :  { %v4189_v3 = vpop.f32.mrb[137].mxu1  ;;  %v8996_v32 = vpop.f32.mrb[122].mxu0 }
 0xcb4   :  { %v4121_v12 = vpack.c.bf16 %v8996_v32, %v8995_v63  ;;  %v9008_v34 = vpop.f32.mrb[138].mxu1  ;;  %v4108_v2 = vpop.f32.mrb[123].mxu0 }
 0xcb5   :  { %v4205_v56 = vpack.c.bf16 %v9008_v34, %v9007_v0  ;;  %v4120_v49 = vpack.c.bf16 %v4108_v2, %v4105_v22  ;;  %v4192_v13 = vpop.f32.mrb[139].mxu1 }
 0xcb6   :  { %v4204_v14 = vpack.c.bf16 %v4192_v13, %v4189_v3  ;;  %4522 = vmatpush1.bf16.msra.mxu0 %v4121_v12 }
 0xcb7   :  { %4481 = vmatpush1.bf16.msra.mxu1 %v4120_v49  ;;  %4523 = vmatprep.subr.bf16.mxu0 %v12397_v26  ;;  %v4752_v49 = vld [vmem:[%s12398_s14 + $0x10] sm:$0xff] }
 0xcb8   :  { %4482 = vmatprep.subr.bf16.mxu1 %v12397_v26 }
 0xcba   :  { %4524 = vmatpush1.bf16.msra.mxu0 %v4205_v56  ;;  %v4753_v56 = vld [vmem:[%s12398_s14 + $0x18] sm:$0xff] }
 0xcbb   :  { %4483 = vmatpush1.bf16.msra.mxu1 %v4204_v14  ;;  %4525 = vmatprep.subr.bf16.mxu0 %v12397_v26 }
 0xcbc   :  { %4484 = vmatprep.subr.bf16.mxu1 %v12397_v26 }
 0xcc1   :  { %v9019_v42 = vpop.f32.mrb[124].mxu0 }
 0xcc2   :  { %v9031_v48 = vpop.f32.mrb[140].mxu1  ;;  %v4273_v57 = vpop.f32.mrb[125].mxu0 }
 0xcc3   :  { %v4357_v28 = vpop.f32.mrb[141].mxu1  ;;  %v9020_v54 = vpop.f32.mrb[126].mxu0 }
 0xcc4   :  { %v4289_v58 = vpack.c.bf16 %v9020_v54, %v9019_v42  ;;  %v9032_v18 = vpop.f32.mrb[142].mxu1  ;;  %v4276_v23 = vpop.f32.mrb[127].mxu0 }
 0xcc5   :  { %v4373_v27 = vpack.c.bf16 %v9032_v18, %v9031_v48  ;;  %v4288_v36 = vpack.c.bf16 %v4276_v23, %v4273_v57  ;;  %v4360_v61 = vpop.f32.mrb[143].mxu1  ;;  %v4751_v18 = vld [vmem:[%s12398_s14 + $0x8] sm:$0xff]  ;;  %v4750_v23 = vld [vmem:[%s12398_s14] sm:$0xff] }
 0xcc6   :  { %v4372_v21 = vpack.c.bf16 %v4360_v61, %v4357_v28  ;;  %4526 = vmatpush1.bf16.msra.mxu0 %v4289_v58 }
 0xcc7   :  { %4485 = vmatpush1.bf16.msra.mxu1 %v4288_v36  ;;  %4527 = vmatprep.subr.bf16.mxu0 %v12397_v26 }
 0xcc8   :  { %4486 = vmatprep.subr.bf16.mxu1 %v12397_v26 }
 0xcca   :  { %4528 = vmatpush1.bf16.msra.mxu0 %v4373_v27 }
 0xccb   :  { %4487 = vmatpush1.bf16.msra.mxu1 %v4372_v21  ;;  %4529 = vmatprep.subr.bf16.mxu0 %v12397_v26 }
 0xccc   :  { %4488 = vmatprep.subr.bf16.mxu1 %v12397_v26 }
 0xcd1   :  { %v9043_v24 = vpop.f32.mrb[128].mxu0 }
 0xcd2   :  { %v4441_v17 = vpop.f32.mrb[129].mxu0 }
 0xcd3   :  { %v9044_v15 = vpop.f32.mrb[130].mxu0 }
 0xcd4   :  { %v4457_v4 = vpack.c.bf16 %v9044_v15, %v9043_v24  ;;  %v4444_v45 = vpop.f32.mrb[131].mxu0  ;;  %v2264_v24 = vld [vmem:[%s12399_s20] sm:$0x3f] }
 0xcd5   :  { %v4456_v1 = vpack.c.bf16 %v4444_v45, %v4441_v17  ;;  %v8027_v45 = vld [vmem:[#allocation19] ss:$0 sm:$0xff] }
 0xcd6   :  { %4530 = vmatpush1.bf16.msra.mxu0 %v4457_v4 }
 0xcd7   :  { %4489 = vmatpush1.bf16.msra.mxu1 %v4456_v1  ;;  %9060 = vmatprep.subr.msk.mxu0 %vm585_vm2, %v4795_v55 }
 0xcd8   :  { %9160 = vmatprep.subr.bf16.mxu1 %v10055_v53 }
 0xcd9   :  { %4546 = vmatmul.mubr.bf16.vlgmr.msra.gmra.mrb[132].mxu0 %v9324_v52 }
 0xcda   :  { %4505 = vmatmul.mubr.bf16.vlgmr.msra.gmra.mrb[144].mxu1 %v9324_v52  ;;  %9061 = vmatpush3.msk.msra.mxu0 %vm585_vm2, %v4795_v55 }
 0xcdb   :  { %9162 = vmatpush3.bf16.msra.mxu1 %v9161_v19  ;;  %9049 = vmatprep.mubr.msk.f32.mxu1 %vm10056_vm4, %v12376_v59 }
 0xcdc   :  { %9062 = vmatprep.mubr.msk.f32.mxu0 %vm560_vm1, %v11259_v38  ;;  %9074 = vmatprep.subr.bf16.mxu0 %v12376_v59 }
 0xce1   :  { %9063 = vmatmul.mubr.msk.f32.vlgmr.msra.gmra.mrb[136].mxu0 %vm560_vm1, %v11262_v6 }
 0xce2   :  { %9050 = vmatmul.mubr.msk.f32.vlgmr.msra.gmra.mrb[126].mxu1 %vm746_vm3, %v4557_v40  ;;  %9065 = vmatprep.mubr.msk.f32.mxu0 %vm560_vm1, %v11271_v9 }
 0xce3   :  { %9054 = vmatprep.mubr.msk.f32.mxu1 %vm560_vm1, %v11259_v38 }
 0xce5   :  { %9066 = vmatmul.mubr.msk.f32.gmra.mrb[138].mxu0 %vm560_vm1, %v11274_v62 }
 0xce6   :  { %9076 = vmatprep.mubr.msk.bf16.mxu0 %vm10056_vm4, %v12376_v59 }
 0xdac   :  { %v4547_v50 = vpop.f32.mrb[132].mxu0 }
 0xdad   :  { %v11413_v11 = vpop.f32.mrb[144].mxu1  ;;  %v4549_v10 = vpop.f32.mrb[133].mxu0 }
 0xdae   :  { %v4508_v16 = vpop.f32.mrb[145].mxu1  ;;  %v4550_v25 = vpop.f32.mrb[134].mxu0 }
 0xdaf   :  { %v11415_v7 = vpop.f32.mrb[146].mxu1  ;;  %v4552_v47 = vpop.f32.mrb[135].mxu0 }
 0xdb0   :  { %v4511_v41 = vpop.f32.mrb[147].mxu1 }
 0xdb4   :  { %v9064_v44 = vpop.f32.mrb[136].mxu0 }
 0xdb5   :  { %v4626_v5 = vpop.f32.mrb[126].mxu1  ;;  %v4864_v8 = vpop.f32.mrb[137].mxu0  ;;  %v4884_v27 = vmul.f32 %v9064_v44, %v11297_v43 }
 0xdb6   :  { %v4627_v51 = vadd.f32 1e-08, %v4626_v5  ;;  %v9051_v30 = vpop.f32.mrb[127].mxu1  ;;  %v4883_v36 = vmul.f32 %v4864_v8, %v11300_v31 }
 0xdb7   :  { %v4890_v61 = vsel %vm746_vm3, %v4884_v27, 0.0 }
 0xdb8   :  { %9456 = vrsqrt.f32 %v4627_v51  ;;  %v9067_v37 = vpop.f32.mrb[138].mxu0  ;;  %v4887_v21 = vsel %vm746_vm3, %v4883_v36, 0.0  ;;  %v12400_v51 = vld [vmem:[#allocation72_spill] sm:$0xff] }
 0xdb9   :  { %v4874_v39 = vpop.f32.mrb[139].mxu0  ;;  %v4886_v13 = vmul.f32 %v9067_v37, %v11309_v20  ;;  %v11450_v30 = vsub.s32 1, %v12400_v51 }
 0xdba   :  { %v4885_v14 = vmul.f32 %v4874_v39, %v11313_v29 }
 0xdbb   :  { %v4896_v42 = vsel %vm746_vm3, %v4886_v13, 0.0 }
 0xdbc   :  { %v4893_v48 = vsel %vm746_vm3, %v4885_v14, 0.0 }
 0xdc2   :  { %v9457_v33 = vpop.eup %9456 }
 0xdc3   :  { %9052 = vmatprep.subr.msk.mxu1 %vm585_vm2, %v9457_v33 }
 0xdc4   :  { %9053 = vmatpush3.msk.msra.mxu1 %vm585_vm2, %v9457_v33 }
 0xdc5   :  { %9055 = vmatmul.mubr.msk.f32.vlgmr.msra.gmra.mrb[148].mxu1 %vm560_vm1, %v11262_v6  ;;  %9068 = vmatprep.subr.bf16.mxu1 %v12376_v59 }
 0xdc6   :  { %9057 = vmatprep.mubr.msk.f32.mxu1 %vm560_vm1, %v11271_v9 }
 0xdc9   :  { %9058 = vmatmul.mubr.msk.f32.gmra.mrb[150].mxu1 %vm560_vm1, %v11274_v62 }
 0xdca   :  { %9070 = vmatprep.mubr.msk.bf16.mxu1 %vm10056_vm4, %v12376_v59 }
 0xe98   :  { %v9056_v63 = vpop.f32.mrb[148].mxu1 }
 0xe99   :  { %v4700_v0 = vpop.f32.mrb[149].mxu1  ;;  %v4720_v28 = vmul.f32 %v9056_v63, %v11297_v43 }
 0xe9a   :  { %v4719_v57 = vmul.f32 %v4700_v0, %v11300_v31  ;;  %v12401_v0 = vld [vmem:[#allocation74_spill] sm:$0xff] }
 0xe9b   :  { %v4726_v58 = vsel %vm746_vm3, %v4720_v28, 0.0 }
 0xe9c   :  { %v9059_v22 = vpop.f32.mrb[150].mxu1  ;;  %v4723_v54 = vsel %vm746_vm3, %v4719_v57, 0.0 }
 0xe9d   :  { %v4722_v3 = vmul.f32 %v9059_v22, %v11309_v20  ;;  %v4710_v32 = vpop.f32.mrb[151].mxu1 }
 0xe9e   :  { %v4721_v12 = vmul.f32 %v4710_v32, %v11313_v29 }
 0xe9f   :  { %v4732_v34 = vsel %vm746_vm3, %v4722_v3, 0.0  ;;  %v4905_v3 = vld [vmem:[#allocation22] sm:$0x3] }
 0xea0   :  { %4733 = vadd.xlane.f32.xlu0 %v4732_v34  ;;  %v4729_v2 = vsel %vm746_vm3, %v4721_v12, 0.0 }
 0xea1   :  { %4730 = vadd.xlane.f32.xlu1 %v4729_v2 }
 0xeb2   :  { %4771 = vperm.xlu1 %9255, %v4753_v56  }
 0xeb6   :  { %4766 = vperm.xlu0 %9254, %v4752_v49  }
 0xed5   :  { %4897 = vadd.xlane.f32.xlu0 %v4896_v42 }
 0xed6   :  { %4894 = vadd.xlane.f32.xlu1 %v4893_v48 }
 0xed9   :  { %4724 = vadd.xlane.f32.xlu0 %v4723_v54 }
 0xeda   :  { %4727 = vadd.xlane.f32.xlu1 %v4726_v58 }
 0xeeb   :  { %4761 = vperm.xlu1 %9255, %v4751_v18  }
 0xeef   :  { %4756 = vperm.xlu0 %9254, %v4750_v23   ;;  %v9325_v23 = vld [vmem:[#allocation23] sm:$0xff]  }
 0xf0e   :  { %4891 = vadd.xlane.f32.xlu0 %v4890_v61 }
 0xf0f   :  { %4888 = vadd.xlane.f32.xlu1 %v4887_v21  ;;  %v9326_v21 = vld [vmem:[%s12402_s16] ss:$8 sps:$4 sm:$0xff]  }
 0xf24   :  { %2267 = vperm.xlu0 %9254, %v2264_v24   ;;  %v9328_v24 = vld [vmem:[%s12402_s16 + $0x4] ss:$8 sps:$4 sm:$0xff]  }
 0xf2d   :  { %v4734_v17 = vpop.xlane.xlu0 %4733 }
 0xf2e   :  { %v4731_v15 = vpop.xlane.xlu1 %4730  ;;  %v4738_v4 = vmul.f32 %v4734_v17, %v4550_v25  ;;  %v9329_v17 = vld [vmem:[%s12402_s16 + $0x40] ss:$8 sps:$4 sm:$0xff]  }
 0xf2f   :  { %v4737_v60 = vmul.f32 %v4731_v15, %v4547_v50  ;;  %v9462_v50 = vld [vmem:[#allocation2] sm:$0x3]  ;;  %v9331_v15 = vld [vmem:[%s12402_s16 + $0x44] ss:$8 sps:$4 sm:$0xff]  }
 0xf30   :  { %v4749_v35 = vadd.f32 %v8027_v45, %v4738_v4  ;;  %v458_v44 = vrot.slane %v9462_v50, %v11450_v30  ;;  %v9334_v4 = vld [vmem:[%s12402_s16 + $0x14] ss:$8 sps:$4 sm:$0xff]  }
 0xf31   :  { %v4748_v55 = vadd.f32 %v8027_v45, %v4737_v60  ;;  %v9332_v60 = vld [vmem:[%s12402_s16 + $0x10] ss:$8 sps:$4 sm:$0xff]  }
 0xf32   :  { %v4772_v1 = vpop.permute.xlu1 %4771  ;;  %v11460_v22 = vadd.f32 %v12401_v0, %v458_v44  ;;  %v9349_v0 = vld [vmem:[%s12402_s16 + $0x74] ss:$8 sps:$4 sm:$0xff]  }
 0xf33   :  { %v4777_v19 = vadd.f32 %v4772_v1, %v4749_v35  ;;  %v9335_v35 = vld [vmem:[%s12402_s16 + $0x50] ss:$8 sps:$4 sm:$0xff]  }
 0xf35   :  { %v4767_v52 = vpop.permute.xlu0 %4766  ;;  %v4785_v16 = vmul.f32 0.2, %v4777_v19  ;;  %vm4781_vm7 = vcmp.ge.f32.partialorder %v4777_v19, 0.0 }
 0xf36   :  { %v4776_v40 = vadd.f32 %v4767_v52, %v4748_v55 }
 0xf37   :  { %v4789_v5 = vsel %vm4781_vm7, %v4777_v19, %v4785_v16 }
 0xf38   :  { %v4784_v41 = vmul.f32 0.2, %v4776_v40  ;;  %vm4780_vm8 = vcmp.ge.f32.partialorder %v4776_v40, 0.0  ;;  %v11452_v10 = vmul.f32 1.4142135, %v4789_v5 }
 0xf3a   :  { %v4788_v33 = vsel %vm4780_vm8, %v4776_v40, %v4784_v41 }
 0xf3b   :  { %v11454_v47 = vmul.f32 1.4142135, %v4788_v33 }
 0xf62   :  { %v4898_v25 = vpop.xlane.xlu0 %4897 }
 0xf63   :  { %v4902_v8 = vmul.f32 %v4898_v25, %v11452_v10  ;;  %v4895_v37 = vpop.xlane.xlu1 %4894 }
 0xf64   :  { %v4901_v39 = vmul.f32 %v4895_v37, %v11454_v47  ;;  %v9340_v37 = vld [vmem:[%s12402_s16 + $0x24] ss:$8 sps:$4 sm:$0xff]  }
 0xf66   :  { %v4904_v63 = vpack.c.bf16 %v4902_v8, %v4901_v39  ;;  %v4725_v12 = vpop.xlane.xlu0 %4724  ;;  %v9343_v39 = vld [vmem:[%s12402_s16 + $0x64] ss:$8 sps:$4 sm:$0xff]  }
 0xf67   :  { %v4728_v32 = vpop.xlane.xlu1 %4727  ;;  %v4735_v2 = vmul.f32 %v4725_v12, %v11413_v11  ;;  %v9355_v12 = vld [vmem:[%s12402_s16 + $0xc4] ss:$8 sps:$4 sm:$0xff]  }
 0xf68   :  { %9075 = vmatpush3.bf16.msra.mxu0 %v4904_v63  ;;  %v4736_v34 = vmul.f32 %v4728_v32, %v11415_v7  ;;  %v9346_v63 = vld [vmem:[%s12402_s16 + $0x34] ss:$8 sps:$4 sm:$0xff]   ;;  %v9347_v32 = vld [vmem:[%s12402_s16 + $0x70] ss:$8 sps:$4 sm:$0xff]  }
 0xf69   :  { %9086 = vmatprep.subr.msk.mxu0 %vm585_vm2, %v11460_v22  ;;  %v4746_v13 = vadd.f32 %v8027_v45, %v4735_v2 }
 0xf6a   :  { %v4747_v56 = vadd.f32 %v8027_v45, %v4736_v34  ;;  %v9337_v45 = vld [vmem:[%s12402_s16 + $0x54] ss:$8 sps:$4 sm:$0xff]  }
 0xf6b   :  { %9077 = vmatmul.mubr.msk.bf16.vlgmr.msra.gmra.mrb[140].mxu0 %vm746_vm3, %v4905_v3  ;;  %v4762_v49 = vpop.permute.xlu1 %4761 }
 0xf6c   :  { %9087 = vmatpush3.msk.msra.mxu0 %vm585_vm2, %v11460_v22  ;;  %9088 = vmatprep.mubr.msk.f32.mxu0 %vm560_vm1, %v11259_v38  ;;  %v4775_v14 = vadd.f32 %v4762_v49, %v4747_v56 }
 0xf6d   :  { %5323 = vmatprep.subr.bf16.mxu0 %v9331_v15 }
 0xf6e   :  { %v4757_v38 = vpop.permute.xlu0 %4756  ;;  %v4783_v42 = vmul.f32 0.2, %v4775_v14  ;;  %vm4779_vm9 = vcmp.ge.f32.partialorder %v4775_v14, 0.0 }
 0xf73   :  { %9089 = vmatmul.mubr.msk.f32.vlgmr.msra.gmra.mrb[144].mxu0 %vm560_vm1, %v11262_v6  ;;  %v4774_v6 = vadd.f32 %v4757_v38, %v4746_v13 }
 0xf74   :  { %9091 = vmatprep.mubr.msk.f32.mxu0 %vm560_vm1, %v11271_v9  ;;  %v4787_v9 = vsel %vm4779_vm9, %v4775_v14, %v4783_v42  ;;  %5324 = vmatpush1.bf16.msra.mxu0 %v9329_v17 }
 0xf75   :  { %v4782_v48 = vmul.f32 0.2, %v4774_v6  ;;  %vm4778_vm10 = vcmp.ge.f32.partialorder %v4774_v6, 0.0  ;;  %v11478_v57 = vmul.f32 1.4142135, %v4787_v9  ;;  %5325 = vmatprep.subr.bf16.mxu0 %v9337_v45 }
 0xf76   :  { %v9365_v45 = vld [vmem:[%s12402_s16 + $0xe0] ss:$8 sps:$4 sm:$0xff]  }
 0xf77   :  { %9092 = vmatmul.mubr.msk.f32.gmra.mrb[146].mxu0 %vm560_vm1, %v11274_v62  ;;  %v4786_v62 = vsel %vm4778_vm10, %v4774_v6, %v4782_v48 }
 0xf78   :  { %5355 = vmatprep.mubr.bf16.mxu0 %v12397_v26  ;;  %v11480_v54 = vmul.f32 1.4142135, %v4786_v62  ;;  %5326 = vmatpush1.bf16.msra.mxu0 %v9335_v35  ;;  %v9370_v35 = vld [vmem:[%s12402_s16 + $0xb4] ss:$8 sps:$4 sm:$0xff]  }
 0xf79   :  { %5327 = vmatprep.subr.bf16.mxu0 %v9343_v39  ;;  %v9398_v39 = vld [vmem:[%s12402_s16 + $0x180] ss:$8 sps:$4 sm:$0xff]  }
 0xf9b   :  { %v4892_v28 = vpop.xlane.xlu0 %4891 }
 0xf9c   :  { %v4900_v11 = vmul.f32 %v4892_v28, %v11478_v57  ;;  %v4889_v7 = vpop.xlane.xlu1 %4888 }
 0xf9d   :  { %v4899_v58 = vmul.f32 %v4889_v7, %v11480_v54  ;;  %v9350_v7 = vld [vmem:[%s12402_s16 + $0x80] ss:$8 sps:$4 sm:$0xff]  }
 0xf9f   :  { %v4903_v18 = vpack.c.bf16 %v4900_v11, %v4899_v58  ;;  %v9353_v58 = vld [vmem:[%s12402_s16 + $0xc0] ss:$8 sps:$4 sm:$0xff]  }
 0xfa1   :  { %9069 = vmatpush3.bf16.msra.mxu1 %v4903_v18 }
 0xfa2   :  { %9080 = vmatprep.subr.bf16.mxu1 %v12376_v59 }
 0xfa3   :  { %v2268_v27 = vpop.permute.xlu0 %2267 }
 0xfa4   :  { %9071 = vmatmul.mubr.msk.bf16.vlgmr.msra.gmra.mrb[152].mxu1 %vm746_vm3, %v4905_v3  ;;  %v2270_v36 = vadd.f32 %v2268_v27, %v11066_v46  ;;  %v9344_v3 = vld [vmem:[%s12402_s16 + $0x30] ss:$8 sps:$4 sm:$0xff]   ;;  %v9361_v27 = vld [vmem:[%s12402_s16 + $0xd4] ss:$8 sps:$4 sm:$0xff]  }
 0xfa5   :  { %9081 = vmatpush3.bf16.msra.mxu1 %v9325_v23  ;;  %9082 = vmatprep.mubr.msk.bf16.mxu1 %vm10056_vm4, %v12376_v59  ;;  %v9358_v23 = vld [vmem:[%s12402_s16 + $0x94] ss:$8 sps:$4 sm:$0xff]  }
 0xfa6   :  { %v5000_v61 = vpack.c.bf16 %v2270_v36, %v2270_v36  ;;  %5217 = vmatprep.subr.bf16.mxu1 %v9328_v24 }
 0xfac   :  { %9083 = vmatmul.mubr.msk.bf16.vlgmr.msra.gmra.mrb[156].mxu1 %vm746_vm3, %v5000_v61  ;;  %v9364_v61 = vld [vmem:[%s12402_s16 + $0xa4] ss:$8 sps:$4 sm:$0xff]  }
 0xfad   :  { %5249 = vmatprep.mubr.bf16.mxu1 %v12397_v26  ;;  %5218 = vmatpush1.bf16.msra.mxu1 %v9326_v21  ;;  %v9367_v21 = vld [vmem:[%s12402_s16 + $0xe4] ss:$8 sps:$4 sm:$0xff]  }
 0xfae   :  { %5219 = vmatprep.subr.bf16.mxu1 %v9334_v4  ;;  %v9362_v4 = vld [vmem:[%s12402_s16 + $0xa0] ss:$8 sps:$4 sm:$0xff]  }
 0xfb1   :  { %5220 = vmatpush1.bf16.msra.mxu1 %v9332_v60 }
 0xfb2   :  { %5221 = vmatprep.subr.bf16.mxu1 %v9340_v37  ;;  %v9400_v37 = vld [vmem:[%s12402_s16 + $0x184] ss:$8 sps:$4 sm:$0xff]  }
0x103e   :  { %v4983_v46 = vpop.f32.mrb[140].mxu0 }
0x103f   :  { %v9078_v1 = vpop.f32.mrb[141].mxu0  ;;  %v4990_v34 = vrot.slane %v4983_v46, 5  ;;  %v9373_v46 = vld [vmem:[%s12402_s16 + $0xf4] ss:$8 sps:$4 sm:$0xff]  }
0x1040   :  { %v4986_v52 = vpop.f32.mrb[142].mxu0  ;;  %v9376_v1 = vld [vmem:[%s12402_s16 + $0x104] ss:$8 sps:$4 sm:$0xff]  }
0x1041   :  { %v9079_v55 = vpop.f32.mrb[143].mxu0  ;;  %v9379_v52 = vld [vmem:[%s12402_s16 + $0x144] ss:$8 sps:$4 sm:$0xff]  }
0x1042   :  { %v9374_v55 = vld [vmem:[%s12402_s16 + $0x100] ss:$8 sps:$4 sm:$0xff]  }
0x1046   :  { %v9090_v19 = vpop.f32.mrb[144].mxu0 }
0x1047   :  { %v5142_v40 = vmul.f32 %v9090_v19, %v11297_v43  ;;  %v5122_v16 = vpop.f32.mrb[145].mxu0  ;;  %v9377_v19 = vld [vmem:[%s12402_s16 + $0x140] ss:$8 sps:$4 sm:$0xff]  }
0x1048   :  { %v5141_v5 = vmul.f32 %v5122_v16, %v11300_v31  ;;  %v9338_v31 = vld [vmem:[%s12402_s16 + $0x20] ss:$8 sps:$4 sm:$0xff]   ;;  %v9385_v16 = vld [vmem:[%s12402_s16 + $0x154] ss:$8 sps:$4 sm:$0xff]  }
0x1049   :  { %v5148_v41 = vsel %vm746_vm3, %v5142_v40, 0.0  ;;  %5222 = vmatpush1.bf16.msra.mxu1 %v9338_v31  ;;  %v9382_v40 = vld [vmem:[%s12402_s16 + $0x114] ss:$8 sps:$4 sm:$0xff]   ;;  %v9395_v31 = vld [vmem:[%s12402_s16 + $0x170] ss:$8 sps:$4 sm:$0xff]  }
0x104a   :  { %5149 = vadd.xlane.f32.xlu1 %v5148_v41  ;;  %v9093_v51 = vpop.f32.mrb[146].mxu0  ;;  %v5145_v50 = vsel %vm746_vm3, %v5141_v5, 0.0  ;;  %5223 = vmatprep.subr.bf16.mxu1 %v9346_v63  ;;  %v9380_v41 = vld [vmem:[%s12402_s16 + $0x110] ss:$8 sps:$4 sm:$0xff]   ;;  %v9401_v63 = vld [vmem:[%s12402_s16 + $0x1c0] ss:$8 sps:$4 sm:$0xff]  }
0x104b   :  { %v5132_v33 = vpop.f32.mrb[147].mxu0  ;;  %v5144_v44 = vmul.f32 %v9093_v51, %v11309_v20  ;;  %v9352_v20 = vld [vmem:[%s12402_s16 + $0x84] ss:$8 sps:$4 sm:$0xff]   ;;  %v9383_v5 = vld [vmem:[%s12402_s16 + $0x150] ss:$8 sps:$4 sm:$0xff]  }
0x104c   :  { %v5143_v25 = vmul.f32 %v5132_v33, %v11313_v29  ;;  %v9341_v29 = vld [vmem:[%s12402_s16 + $0x60] ss:$8 sps:$4 sm:$0xff]   ;;  %v9388_v51 = vld [vmem:[%s12402_s16 + $0x124] ss:$8 sps:$4 sm:$0xff]  }
0x104d   :  { %v5154_v8 = vsel %vm746_vm3, %v5144_v44, 0.0  ;;  %5328 = vmatpush1.bf16.msra.mxu0 %v9341_v29  ;;  %5224 = vmatpush1.bf16.msra.mxu1 %v9344_v3  ;;  %v9391_v33 = vld [vmem:[%s12402_s16 + $0x164] ss:$8 sps:$4 sm:$0xff]   ;;  %v9397_v44 = vld [vmem:[%s12402_s16 + $0x174] ss:$8 sps:$4 sm:$0xff]  }
0x104e   :  { %5146 = vadd.xlane.f32.xlu1 %v5145_v50  ;;  %v5151_v43 = vsel %vm746_vm3, %v5143_v25, 0.0  ;;  %5329 = vmatprep.subr.bf16.mxu0 %v9349_v0  ;;  %v9386_v25 = vld [vmem:[%s12402_s16 + $0x120] ss:$8 sps:$4 sm:$0xff]   ;;  %v9403_v29 = vld [vmem:[%s12402_s16 + $0x1c4] ss:$8 sps:$4 sm:$0xff]  }
0x104f   :  { %5429 = vmatprep.subr.bf16.mxu1 %v9352_v20  ;;  %v9389_v50 = vld [vmem:[%s12402_s16 + $0x160] ss:$8 sps:$4 sm:$0xff]   ;;  %v9406_v0 = vld [vmem:[%s12402_s16 + $0x194] ss:$8 sps:$4 sm:$0xff]   ;;  %v9407_v20 = vld [vmem:[%s12402_s16 + $0x1d0] ss:$8 sps:$4 sm:$0xff]  }
0x1050   :  { %v9409_v3 = vld [vmem:[%s12402_s16 + $0x1d4] ss:$8 sps:$4 sm:$0xff]  }
0x1051   :  { %5330 = vmatpush1.bf16.msra.mxu0 %v9347_v32  ;;  %v9404_v32 = vld [vmem:[%s12402_s16 + $0x190] ss:$8 sps:$4 sm:$0xff]  }
0x1052   :  { %5152 = vadd.xlane.f32.xlu1 %v5151_v43  ;;  %5535 = vmatprep.subr.bf16.mxu0 %v9355_v12  ;;  %v9394_v43 = vld [vmem:[%s12402_s16 + $0x134] ss:$8 sps:$4 sm:$0xff]   ;;  %v9412_v12 = vld [vmem:[%s12402_s16 + $0x1a4] ss:$8 sps:$4 sm:$0xff]  }
0x1056   :  { %5155 = vadd.xlane.f32.xlu1 %v5154_v8  ;;  %v9392_v8 = vld [vmem:[%s12402_s16 + $0x130] ss:$8 sps:$4 sm:$0xff]  }
0x1067   :  { %6495 = vrot.lane.b32.xlu1 %v11460_v22, %s10060_s22 }
0x1077   :  { %v4943_v2 = vpop.f32.mrb[152].mxu1 }
0x1078   :  { %v9072_v56 = vpop.f32.mrb[153].mxu1  ;;  %v11520_v49 = vsel %vm12324_vm13, %v4943_v2, %v4990_v34  ;;  %v9415_v34 = vld [vmem:[%s12402_s16 + $0x1e4] ss:$8 sps:$4 sm:$0xff]   ;;  %v9410_v2 = vld [vmem:[%s12402_s16 + $0x1a0] ss:$8 sps:$4 sm:$0xff]  }
0x1079   :  { %v4946_v38 = vpop.f32.mrb[154].mxu1  ;;  %v9413_v56 = vld [vmem:[%s12402_s16 + $0x1e0] ss:$8 sps:$4 sm:$0xff]  }
0x107a   :  { %v9073_v13 = vpop.f32.mrb[155].mxu1  ;;  %v9418_v38 = vld [vmem:[%s12402_s16 + $0x1b4] ss:$8 sps:$4 sm:$0xff]  }
0x107b   :  { %v9421_v13 = vld [vmem:[%s12402_s16 + $0x1f4] ss:$8 sps:$4 sm:$0xff]  }
0x107f   :  { %v11522_v14 = vpop.f32.mrb[156].mxu1 }
0x1080   :  { %v9084_v6 = vpop.f32.mrb[157].mxu1 }
0x1081   :  { %v5049_v42 = vpop.f32.mrb[158].mxu1  ;;  %v9416_v6 = vld [vmem:[%s12402_s16 + $0x1b0] ss:$8 sps:$4 sm:$0xff]  }
0x1082   :  { %v9085_v48 = vpop.f32.mrb[159].mxu1  ;;  %v9419_v42 = vld [vmem:[%s12402_s16 + $0x1f0] ss:$8 sps:$4 sm:$0xff]  }
0x1083   :  { %v9424_v48 = vld [vmem:[%s12402_s16 + $0x204] ss:$8 sps:$4 sm:$0xff]  }
0x10d7   :  { %v5150_v9 = vpop.xlane.xlu1 %5149 }
0x10d8   :  { %v5158_v28 = vmul.f32 %v5150_v9, %v11478_v57  ;;  %v9356_v57 = vld [vmem:[%s12402_s16 + $0x90] ss:$8 sps:$4 sm:$0xff]   ;;  %v9422_v9 = vld [vmem:[%s12402_s16 + $0x200] ss:$8 sps:$4 sm:$0xff]  }
0x10db   :  { %v5147_v62 = vpop.xlane.xlu1 %5146 }
0x10dc   :  { %v5157_v11 = vmul.f32 %v5147_v62, %v11480_v54  ;;  %v9359_v54 = vld [vmem:[%s12402_s16 + $0xd0] ss:$8 sps:$4 sm:$0xff]   ;;  %v9427_v62 = vld [vmem:[%s12402_s16 + $0x214] ss:$8 sps:$4 sm:$0xff]  }
0x10de   :  { %v11528_v18 = vpack.c.bf16 %v5158_v28, %v5157_v11  ;;  %v9425_v28 = vld [vmem:[%s12402_s16 + $0x210] ss:$8 sps:$4 sm:$0xff]   ;;  %v9430_v11 = vld [vmem:[%s12402_s16 + $0x224] ss:$8 sps:$4 sm:$0xff]  }
0x10df   :  { %v5153_v36 = vpop.xlane.xlu1 %5152 }
0x10e0   :  { %8050 = vmatmul.mubr.msk.bf16.vlgmr.msra.gmra.mrb[160].mxu1 %vm3728_vm0, %v11528_v18  ;;  %8068 = vmatmul.mubr.msk.bf16.vlgmr.msra.gmra.mrb[148].mxu0 %vm3728_vm0, %v11528_v18  ;;  %v5159_v17 = vmul.f32 %v5153_v36, %v11454_v47  ;;  %v9371_v47 = vld [vmem:[%s12402_s16 + $0xf0] ss:$8 sps:$4 sm:$0xff]  }
0x10e1   :  { %5430 = vmatpush1.bf16.msra.mxu1 %v9350_v7  ;;  %5536 = vmatpush1.bf16.msra.mxu0 %v9353_v58  ;;  %v9428_v7 = vld [vmem:[%s12402_s16 + $0x220] ss:$8 sps:$4 sm:$0xff]   ;;  %v9433_v58 = vld [vmem:[%s12402_s16 + $0x234] ss:$8 sps:$4 sm:$0xff]  }
0x10e2   :  { %5431 = vmatprep.subr.bf16.mxu1 %v9358_v23  ;;  %5537 = vmatprep.subr.bf16.mxu0 %v9361_v27  ;;  %v9431_v23 = vld [vmem:[%s12402_s16 + $0x230] ss:$8 sps:$4 sm:$0xff]  }
0x10e3   :  { %v5156_v24 = vpop.xlane.xlu1 %5155  ;;  %5259 = vmatprep.mubr.bf16.mxu1 %v12397_v26  ;;  %5365 = vmatprep.mubr.bf16.mxu0 %v12397_v26  ;;  %v9436_v27 = vld [vmem:[#allocation25 + $0x4] ss:$8 sps:$4 sm:$0xff]  }
0x10e4   :  { %v5160_v15 = vmul.f32 %v5156_v24, %v11452_v10  ;;  %v9368_v10 = vld [vmem:[%s12402_s16 + $0xb0] ss:$8 sps:$4 sm:$0xff]  }
0x10e5   :  { %5432 = vmatpush1.bf16.msra.mxu1 %v9356_v57  ;;  %5538 = vmatpush1.bf16.msra.mxu0 %v9359_v54 }
0x10e6   :  { %v11546_v60 = vpack.c.bf16 %v5160_v15, %v5159_v17  ;;  %5433 = vmatprep.subr.bf16.mxu1 %v9364_v61  ;;  %5539 = vmatprep.subr.bf16.mxu0 %v9367_v21 }
0x10e8   :  { %8051 = vmatmul.mubr.msk.bf16.gmra.mrb[164].mxu1 %vm3728_vm0, %v11546_v60  ;;  %8069 = vmatmul.mubr.msk.bf16.gmra.mrb[152].mxu0 %vm3728_vm0, %v11546_v60 }
0x10e9   :  { %5434 = vmatpush1.bf16.msra.mxu1 %v9362_v4  ;;  %5540 = vmatpush1.bf16.msra.mxu0 %v9365_v45 }
0x10ea   :  { %5435 = vmatprep.subr.bf16.mxu1 %v9370_v35  ;;  %5541 = vmatprep.subr.bf16.mxu0 %v9373_v46 }
0x10eb   :  { %5461 = vmatprep.mubr.bf16.mxu1 %v12397_v26  ;;  %5567 = vmatprep.mubr.bf16.mxu0 %v12397_v26 }
0x10ed   :  { %5436 = vmatpush1.bf16.msra.mxu1 %v9368_v10  ;;  %5542 = vmatpush1.bf16.msra.mxu0 %v9371_v47 }
0x10ee   :  { %5641 = vmatprep.subr.bf16.mxu1 %v9376_v1  ;;  %5747 = vmatprep.subr.bf16.mxu0 %v9379_v52 }
0x10f0   :  { %8086 = vmatmul.mubr.msk.bf16.vlgmr.msra.gmra.mrb[168].mxu1 %vm3728_vm0, %v11528_v18  ;;  %8104 = vmatmul.mubr.msk.bf16.vlgmr.msra.gmra.mrb[156].mxu0 %vm3728_vm0, %v11528_v18 }
0x10f1   :  { %5642 = vmatpush1.bf16.msra.mxu1 %v9374_v55  ;;  %5748 = vmatpush1.bf16.msra.mxu0 %v9377_v19 }
0x10f2   :  { %5643 = vmatprep.subr.bf16.mxu1 %v9382_v40  ;;  %5749 = vmatprep.subr.bf16.mxu0 %v9385_v16 }
0x10f3   :  { %5471 = vmatprep.mubr.bf16.mxu1 %v12397_v26  ;;  %5577 = vmatprep.mubr.bf16.mxu0 %v12397_v26 }
0x10f5   :  { %5644 = vmatpush1.bf16.msra.mxu1 %v9380_v41  ;;  %5750 = vmatpush1.bf16.msra.mxu0 %v9383_v5 }
0x10f6   :  { %5645 = vmatprep.subr.bf16.mxu1 %v9388_v51  ;;  %5751 = vmatprep.subr.bf16.mxu0 %v9391_v33 }
0x10f8   :  { %8087 = vmatmul.mubr.msk.bf16.gmra.mrb[172].mxu1 %vm3728_vm0, %v11546_v60  ;;  %8105 = vmatmul.mubr.msk.bf16.gmra.mrb[160].mxu0 %vm3728_vm0, %v11546_v60 }
0x10f9   :  { %5646 = vmatpush1.bf16.msra.mxu1 %v9386_v25  ;;  %5752 = vmatpush1.bf16.msra.mxu0 %v9389_v50 }
0x10fa   :  { %5647 = vmatprep.subr.bf16.mxu1 %v9394_v43  ;;  %5753 = vmatprep.subr.bf16.mxu0 %v9397_v44 }
0x10fb   :  { %5673 = vmatprep.mubr.bf16.mxu1 %v12397_v26  ;;  %5779 = vmatprep.mubr.bf16.mxu0 %v12397_v26 }
0x10fd   :  { %5648 = vmatpush1.bf16.msra.mxu1 %v9392_v8  ;;  %5754 = vmatpush1.bf16.msra.mxu0 %v9395_v31 }
0x10fe   :  { %5853 = vmatprep.subr.bf16.mxu1 %v9400_v37  ;;  %5959 = vmatprep.subr.bf16.mxu0 %v9403_v29 }
0x1100   :  { %8122 = vmatmul.mubr.msk.bf16.vlgmr.msra.gmra.mrb[176].mxu1 %vm3728_vm0, %v11528_v18  ;;  %8140 = vmatmul.mubr.msk.bf16.vlgmr.msra.gmra.mrb[164].mxu0 %vm3728_vm0, %v11528_v18 }
0x1101   :  { %5854 = vmatpush1.bf16.msra.mxu1 %v9398_v39  ;;  %5960 = vmatpush1.bf16.msra.mxu0 %v9401_v63 }
0x1102   :  { %5855 = vmatprep.subr.bf16.mxu1 %v9406_v0  ;;  %5961 = vmatprep.subr.bf16.mxu0 %v9409_v3 }
0x1103   :  { %5683 = vmatprep.mubr.bf16.mxu1 %v12397_v26  ;;  %5789 = vmatprep.mubr.bf16.mxu0 %v12397_v26 }
0x1105   :  { %5856 = vmatpush1.bf16.msra.mxu1 %v9404_v32  ;;  %5962 = vmatpush1.bf16.msra.mxu0 %v9407_v20 }
0x1106   :  { %5857 = vmatprep.subr.bf16.mxu1 %v9412_v12  ;;  %5963 = vmatprep.subr.bf16.mxu0 %v9415_v34 }
0x1108   :  { %8123 = vmatmul.mubr.msk.bf16.gmra.mrb[180].mxu1 %vm3728_vm0, %v11546_v60  ;;  %8141 = vmatmul.mubr.msk.bf16.gmra.mrb[168].mxu0 %vm3728_vm0, %v11546_v60 }
0x1109   :  { %5858 = vmatpush1.bf16.msra.mxu1 %v9410_v2  ;;  %5964 = vmatpush1.bf16.msra.mxu0 %v9413_v56 }
0x110a   :  { %5859 = vmatprep.subr.bf16.mxu1 %v9418_v38  ;;  %5965 = vmatprep.subr.bf16.mxu0 %v9421_v13 }
0x110b   :  { %5885 = vmatprep.mubr.bf16.mxu1 %v12397_v26  ;;  %5991 = vmatprep.mubr.bf16.mxu0 %v12397_v26 }
0x110d   :  { %5860 = vmatpush1.bf16.msra.mxu1 %v9416_v6  ;;  %5966 = vmatpush1.bf16.msra.mxu0 %v9419_v42 }
0x110e   :  { %6065 = vmatprep.subr.bf16.mxu1 %v9424_v48 }
0x1110   :  { %8158 = vmatmul.mubr.msk.bf16.vlgmr.msra.gmra.mrb[184].mxu1 %vm3728_vm0, %v11528_v18  ;;  %8176 = vmatmul.mubr.msk.bf16.vlgmr.msra.gmra.mrb[172].mxu0 %vm3728_vm0, %v11528_v18 }
0x1111   :  { %6066 = vmatpush1.bf16.msra.mxu1 %v9422_v9  ;;  %5895 = vmatprep.mubr.bf16.mxu1 %v12397_v26 }
0x1112   :  { %6067 = vmatprep.subr.bf16.mxu1 %v9427_v62  ;;  %6001 = vmatprep.mubr.bf16.mxu0 %v12397_v26 }
0x1115   :  { %6068 = vmatpush1.bf16.msra.mxu1 %v9425_v28 }
0x1116   :  { %6069 = vmatprep.subr.bf16.mxu1 %v9430_v11 }
0x1118   :  { %8159 = vmatmul.mubr.msk.bf16.gmra.mrb[188].mxu1 %vm3728_vm0, %v11546_v60  ;;  %8177 = vmatmul.mubr.msk.bf16.gmra.mrb[176].mxu0 %vm3728_vm0, %v11546_v60 }
0x1119   :  { %6070 = vmatpush1.bf16.msra.mxu1 %v9428_v7  ;;  %6097 = vmatprep.mubr.bf16.mxu1 %v12397_v26 }
0x111a   :  { %6071 = vmatprep.subr.bf16.mxu1 %v9433_v58  ;;  %8198 = vmatprep.mubr.msk.bf16.mxu0 %vm746_vm3, %v9436_v27 }
0x111d   :  { %6072 = vmatpush1.bf16.msra.mxu1 %v9431_v23 }
0x1120   :  { %8194 = vmatmul.mubr.msk.bf16.vlgmr.msra.gmra.mrb[192].mxu1 %vm3728_vm0, %v11528_v18 }
0x1121   :  { %6107 = vmatprep.mubr.bf16.mxu1 %v12397_v26 }
0x1128   :  { %8195 = vmatmul.mubr.msk.bf16.gmra.mrb[196].mxu1 %vm3728_vm0, %v11546_v60 }
0x1129   :  { %8199 = vmatprep.mubr.msk.bf16.mxu1 %vm746_vm3, %v9436_v27 }
0x11b3   :  { %v5251_v36 = vpop.f32.mrb[160].mxu1  ;;  %v5357_v57 = vpop.f32.mrb[148].mxu0 }
0x11b4   :  { %v5253_v54 = vpop.f32.mrb[161].mxu1  ;;  %v5359_v61 = vpop.f32.mrb[149].mxu0 }
0x11b5   :  { %v5255_v21 = vpop.f32.mrb[162].mxu1  ;;  %v5361_v24 = vpop.f32.mrb[150].mxu0 }
0x11b6   :  { %v5270_v17 = vpack.c.bf16 %v5255_v21, %v5251_v36  ;;  %v5376_v15 = vpack.c.bf16 %v5361_v24, %v5357_v57  ;;  %v5257_v4 = vpop.f32.mrb[163].mxu1  ;;  %v5363_v18 = vpop.f32.mrb[151].mxu0 }
0x11b7   :  { %v5271_v45 = vpack.c.bf16 %v5257_v4, %v5253_v54  ;;  %v5377_v35 = vpack.c.bf16 %v5363_v18, %v5359_v61 }
0x11b9   :  { %6136 = vmatprep.subr.bf16.mxu0 %v5271_v45 }
0x11ba   :  { %6137 = vmatpush1.bf16.msra.mxu0 %v5270_v17 }
0x11bb   :  { %v5261_v60 = vpop.f32.mrb[164].mxu1  ;;  %v5367_v46 = vpop.f32.mrb[152].mxu0  ;;  %6138 = vmatprep.subr.bf16.mxu0 %v5377_v35 }
0x11bc   :  { %v5263_v10 = vpop.f32.mrb[165].mxu1  ;;  %v5369_v47 = vpop.f32.mrb[153].mxu0 }
0x11bd   :  { %v5265_v1 = vpop.f32.mrb[166].mxu1  ;;  %v5371_v52 = vpop.f32.mrb[154].mxu0 }
0x11be   :  { %v5272_v55 = vpack.c.bf16 %v5265_v1, %v5261_v60  ;;  %v5378_v19 = vpack.c.bf16 %v5371_v52, %v5367_v46  ;;  %v5267_v40 = vpop.f32.mrb[167].mxu1  ;;  %v5373_v16 = vpop.f32.mrb[155].mxu0  ;;  %6139 = vmatpush1.bf16.msra.mxu0 %v5376_v15 }
0x11bf   :  { %v5273_v41 = vpack.c.bf16 %v5267_v40, %v5263_v10  ;;  %v5379_v5 = vpack.c.bf16 %v5373_v16, %v5369_v47 }
0x11c1   :  { %6179 = vmatprep.subr.bf16.mxu1 %v5273_v41 }
0x11c2   :  { %6180 = vmatpush1.bf16.msra.mxu1 %v5272_v55 }
0x11c3   :  { %v5463_v51 = vpop.f32.mrb[168].mxu1  ;;  %v5569_v33 = vpop.f32.mrb[156].mxu0  ;;  %6181 = vmatprep.subr.bf16.mxu1 %v5379_v5 }
0x11c4   :  { %v5465_v25 = vpop.f32.mrb[169].mxu1  ;;  %v5571_v50 = vpop.f32.mrb[157].mxu0 }
0x11c5   :  { %v5467_v43 = vpop.f32.mrb[170].mxu1  ;;  %v5573_v44 = vpop.f32.mrb[158].mxu0 }
0x11c6   :  { %v5482_v8 = vpack.c.bf16 %v5467_v43, %v5463_v51  ;;  %v5588_v31 = vpack.c.bf16 %v5573_v44, %v5569_v33  ;;  %v5469_v37 = vpop.f32.mrb[171].mxu1  ;;  %v5575_v29 = vpop.f32.mrb[159].mxu0  ;;  %6182 = vmatpush1.bf16.msra.mxu1 %v5378_v19 }
0x11c7   :  { %v5483_v39 = vpack.c.bf16 %v5469_v37, %v5465_v25  ;;  %v5589_v63 = vpack.c.bf16 %v5575_v29, %v5571_v50 }
0x11c9   :  { %6140 = vmatprep.subr.bf16.mxu0 %v5483_v39 }
0x11ca   :  { %6141 = vmatpush1.bf16.msra.mxu0 %v5482_v8 }
0x11cb   :  { %v5473_v0 = vpop.f32.mrb[172].mxu1  ;;  %v5579_v3 = vpop.f32.mrb[160].mxu0  ;;  %6142 = vmatprep.subr.bf16.mxu0 %v5589_v63 }
0x11cc   :  { %v5475_v32 = vpop.f32.mrb[173].mxu1  ;;  %v5581_v20 = vpop.f32.mrb[161].mxu0 }
0x11cd   :  { %v5477_v12 = vpop.f32.mrb[174].mxu1  ;;  %v5583_v34 = vpop.f32.mrb[162].mxu0 }
0x11ce   :  { %v5484_v2 = vpack.c.bf16 %v5477_v12, %v5473_v0  ;;  %v5590_v56 = vpack.c.bf16 %v5583_v34, %v5579_v3  ;;  %v5479_v38 = vpop.f32.mrb[175].mxu1  ;;  %v5585_v13 = vpop.f32.mrb[163].mxu0  ;;  %6143 = vmatpush1.bf16.msra.mxu0 %v5588_v31 }
0x11cf   :  { %v5485_v6 = vpack.c.bf16 %v5479_v38, %v5475_v32  ;;  %v5591_v42 = vpack.c.bf16 %v5585_v13, %v5581_v20  ;;  %v6223_v13 = vld [vmem:[#allocation26] sm:$0xff] }
0x11d1   :  { %6183 = vmatprep.subr.bf16.mxu1 %v5485_v6  ;;  %v6224_v6 = vld [vmem:[#allocation26 + $0x8] sm:$0xff] }
0x11d2   :  { %6184 = vmatpush1.bf16.msra.mxu1 %v5484_v2 }
0x11d3   :  { %v5675_v48 = vpop.f32.mrb[176].mxu1  ;;  %v5781_v9 = vpop.f32.mrb[164].mxu0  ;;  %6185 = vmatprep.subr.bf16.mxu1 %v5591_v42  ;;  %v9434_v42 = vld [vmem:[#allocation25] ss:$8 sps:$4 sm:$0xff]  }
0x11d4   :  { %v5677_v62 = vpop.f32.mrb[177].mxu1  ;;  %v5783_v28 = vpop.f32.mrb[165].mxu0 }
0x11d5   :  { %v5679_v11 = vpop.f32.mrb[178].mxu1  ;;  %v5785_v7 = vpop.f32.mrb[166].mxu0 }
0x11d6   :  { %v5694_v58 = vpack.c.bf16 %v5679_v11, %v5675_v48  ;;  %v5800_v23 = vpack.c.bf16 %v5785_v7, %v5781_v9  ;;  %v5681_v27 = vpop.f32.mrb[179].mxu1  ;;  %v5787_v36 = vpop.f32.mrb[167].mxu0  ;;  %6186 = vmatpush1.bf16.msra.mxu1 %v5590_v56  ;;  %v9164_v48 = vpack.c.bf16 %v6224_v6, %v6223_v13 }
0x11d7   :  { %v5695_v57 = vpack.c.bf16 %v5681_v27, %v5677_v62  ;;  %v5801_v54 = vpack.c.bf16 %v5787_v36, %v5783_v28  ;;  %v11646_v27 = vmul.f32 %v11460_v22, %v11460_v22  ;;  %v11652_v36 = vld [vmem:[%s12391_s3] sm:$0xff] }
0x11d9   :  { %6144 = vmatprep.subr.bf16.mxu0 %v5695_v57  ;;  %v11659_v57 = vld [vmem:[%s12391_s3 + $0x8] sm:$0xff] }
0x11da   :  { %6145 = vmatpush1.bf16.msra.mxu0 %v5694_v58 }
0x11db   :  { %v5685_v61 = vpop.f32.mrb[180].mxu1  ;;  %v5791_v21 = vpop.f32.mrb[168].mxu0  ;;  %6146 = vmatprep.subr.bf16.mxu0 %v5801_v54  ;;  %v11664_v54 = vld [vmem:[%s12391_s3 + $0x10] sm:$0xff] }
0x11dc   :  { %v5687_v24 = vpop.f32.mrb[181].mxu1  ;;  %v5793_v17 = vpop.f32.mrb[169].mxu0 }
0x11dd   :  { %v5689_v15 = vpop.f32.mrb[182].mxu1  ;;  %v5795_v4 = vpop.f32.mrb[170].mxu0 }
0x11de   :  { %v5696_v18 = vpack.c.bf16 %v5689_v15, %v5685_v61  ;;  %v5802_v45 = vpack.c.bf16 %v5795_v4, %v5791_v21  ;;  %v5691_v35 = vpop.f32.mrb[183].mxu1  ;;  %v5797_v60 = vpop.f32.mrb[171].mxu0  ;;  %6147 = vmatpush1.bf16.msra.mxu0 %v5800_v23  ;;  %v11669_v61 = vld [vmem:[%s12391_s3 + $0x18] sm:$0xff] }
0x11df   :  { %v5697_v46 = vpack.c.bf16 %v5691_v35, %v5687_v24  ;;  %v5803_v10 = vpack.c.bf16 %v5797_v60, %v5793_v17  ;;  %v6496_v23 = vpop.permute.xlu1 %6495 }
0x11e1   :  { %6187 = vmatprep.subr.bf16.mxu1 %v5697_v46 }
0x11e2   :  { %6188 = vmatpush1.bf16.msra.mxu1 %v5696_v18 }
0x11e3   :  { %v5887_v47 = vpop.f32.mrb[184].mxu1  ;;  %v5993_v1 = vpop.f32.mrb[172].mxu0  ;;  %6189 = vmatprep.subr.bf16.mxu1 %v5803_v10 }
0x11e4   :  { %v5889_v52 = vpop.f32.mrb[185].mxu1  ;;  %v5995_v55 = vpop.f32.mrb[173].mxu0 }
0x11e5   :  { %v5891_v19 = vpop.f32.mrb[186].mxu1  ;;  %v5997_v40 = vpop.f32.mrb[174].mxu0 }
0x11e6   :  { %v5906_v16 = vpack.c.bf16 %v5891_v19, %v5887_v47  ;;  %v6012_v41 = vpack.c.bf16 %v5997_v40, %v5993_v1  ;;  %v5893_v5 = vpop.f32.mrb[187].mxu1  ;;  %v5999_v51 = vpop.f32.mrb[175].mxu0  ;;  %6190 = vmatpush1.bf16.msra.mxu1 %v5802_v45  ;;  %v9467_v19 = vld [vmem:[%s12396_s15 + $0x8] sm:$0xff] }
0x11e7   :  { %v5907_v33 = vpack.c.bf16 %v5893_v5, %v5889_v52  ;;  %v6013_v25 = vpack.c.bf16 %v5999_v51, %v5995_v55 }
0x11e9   :  { %6148 = vmatprep.subr.bf16.mxu0 %v5907_v33 }
0x11ea   :  { %6149 = vmatpush1.bf16.msra.mxu0 %v5906_v16 }
0x11eb   :  { %v5897_v50 = vpop.f32.mrb[188].mxu1  ;;  %v6003_v43 = vpop.f32.mrb[176].mxu0  ;;  %6150 = vmatprep.subr.bf16.mxu0 %v6013_v25  ;;  %v6432_v25 = vld [vmem:[%s12403_s23 + $0x8] sm:$0xff] }
0x11ec   :  { %v5899_v44 = vpop.f32.mrb[189].mxu1  ;;  %v6005_v8 = vpop.f32.mrb[177].mxu0 }
0x11ed   :  { %v5901_v31 = vpop.f32.mrb[190].mxu1  ;;  %v6007_v37 = vpop.f32.mrb[178].mxu0 }
0x11ee   :  { %v5908_v29 = vpack.c.bf16 %v5901_v31, %v5897_v50  ;;  %v6014_v39 = vpack.c.bf16 %v6007_v37, %v6003_v43  ;;  %v5903_v63 = vpop.f32.mrb[191].mxu1  ;;  %v6009_v0 = vpop.f32.mrb[179].mxu0  ;;  %6151 = vmatpush1.bf16.msra.mxu0 %v6012_v41  ;;  %v9468_v41 = vld [vmem:[%s12396_s15] sm:$0xff] }
0x11ef   :  { %v5909_v3 = vpack.c.bf16 %v5903_v63, %v5899_v44  ;;  %v6015_v32 = vpack.c.bf16 %v6009_v0, %v6005_v8  ;;  %v6431_v50 = vld [vmem:[%s12403_s23] sm:$0xff] }
0x11f0   :  { %v6411_v63 = vld [vmem:[#allocation28] sm:$0x3] }
0x11f1   :  { %6191 = vmatprep.subr.bf16.mxu1 %v5909_v3 }
0x11f2   :  { %6192 = vmatpush1.bf16.msra.mxu1 %v5908_v29 }
0x11f3   :  { %v6099_v20 = vpop.f32.mrb[192].mxu1  ;;  %6193 = vmatprep.subr.bf16.mxu1 %v6015_v32 }
0x11f4   :  { %v6101_v12 = vpop.f32.mrb[193].mxu1 }
0x11f5   :  { %v6103_v34 = vpop.f32.mrb[194].mxu1 }
0x11f6   :  { %v6118_v2 = vpack.c.bf16 %v6103_v34, %v6099_v20  ;;  %v6105_v56 = vpop.f32.mrb[195].mxu1  ;;  %6194 = vmatpush1.bf16.msra.mxu1 %v6014_v39  ;;  %v12404_v20 = vld [vmem:[#allocation73_spill] sm:$0xff]  ;;  %v11705_v34 = vrot.slane %v6411_v63, %v11450_v30 }
0x11f7   :  { %v6119_v38 = vpack.c.bf16 %v6105_v56, %v6101_v12  ;;  %v11702_v12 = vrot.slane %v6411_v63, %v12404_v20 }
0x11f9   :  { %6152 = vmatprep.subr.bf16.mxu0 %v6119_v38 }
0x11fa   :  { %6153 = vmatpush1.bf16.msra.mxu0 %v6118_v2 }
0x11fb   :  { %v6109_v9 = vpop.f32.mrb[196].mxu1  ;;  %9163 = vmatprep.subr.bf16.mxu0 %v10055_v53 }
0x11fc   :  { %v6111_v62 = vpop.f32.mrb[197].mxu1 }
0x11fd   :  { %v6113_v28 = vpop.f32.mrb[198].mxu1  ;;  %6169 = vmatmul.mubr.bf16.vlgmr.msra.gmra.mrb[180].mxu0 %v9434_v42 }
0x11fe   :  { %v6120_v11 = vpack.c.bf16 %v6113_v28, %v6109_v9  ;;  %v6115_v7 = vpop.f32.mrb[199].mxu1  ;;  %9165 = vmatpush3.bf16.msra.mxu0 %v9164_v48  ;;  %9098 = vmatprep.mubr.msk.f32.mxu0 %vm10056_vm4, %v12376_v59 }
0x11ff   :  { %v6121_v58 = vpack.c.bf16 %v6115_v7, %v6111_v62 }
0x1201   :  { %6195 = vmatprep.subr.bf16.mxu1 %v6121_v58 }
0x1202   :  { %6196 = vmatpush1.bf16.msra.mxu1 %v6120_v11 }
0x1203   :  { %9109 = vmatprep.subr.msk.mxu1 %vm585_vm2, %v6496_v23 }
0x1205   :  { %9099 = vmatmul.mubr.msk.f32.vlgmr.msra.gmra.mrb[184].mxu0 %vm746_vm3, %v11646_v27  ;;  %6212 = vmatmul.mubr.bf16.vlgmr.msra.gmra.mrb[200].mxu1 %v9434_v42 }
0x1206   :  { %9110 = vmatpush3.msk.msra.mxu1 %vm585_vm2, %v6496_v23  ;;  %9103 = vmatprep.mubr.msk.f32.mxu0 %vm560_vm1, %v11652_v36 }
0x1207   :  { %9111 = vmatprep.mubr.msk.f32.mxu1 %vm560_vm1, %v11652_v36 }
0x120d   :  { %9112 = vmatmul.mubr.msk.f32.vlgmr.msra.gmra.mrb[204].mxu1 %vm560_vm1, %v11659_v57 }
0x120e   :  { %9114 = vmatprep.mubr.msk.f32.mxu1 %vm560_vm1, %v11664_v54 }
0x1211   :  { %9115 = vmatmul.mubr.msk.f32.gmra.mrb[206].mxu1 %vm560_vm1, %v11669_v61 }
0x12d0   :  { %v6170_v21 = vpop.f32.mrb[180].mxu0 }
0x12d1   :  { %v6172_v24 = vpop.f32.mrb[181].mxu0 }
0x12d2   :  { %v6174_v17 = vpop.f32.mrb[182].mxu0 }
0x12d3   :  { %v6176_v15 = vpop.f32.mrb[183].mxu0 }
0x12d8   :  { %v6294_v4 = vpop.f32.mrb[184].mxu0  ;;  %v11681_v60 = vpop.f32.mrb[200].mxu1 }
0x12d9   :  { %v6295_v18 = vadd.f32 1e-08, %v6294_v4  ;;  %v9100_v45 = vpop.f32.mrb[185].mxu0  ;;  %v11683_v46 = vpop.f32.mrb[201].mxu1 }
0x12da   :  { %v11685_v10 = vpop.f32.mrb[202].mxu1 }
0x12db   :  { %9458 = vrsqrt.f32 %v6295_v18  ;;  %v11687_v47 = vpop.f32.mrb[203].mxu1 }
0x12e0   :  { %v9113_v1 = vpop.f32.mrb[204].mxu1 }
0x12e1   :  { %v6565_v52 = vpop.f32.mrb[205].mxu1  ;;  %v6585_v43 = vmul.f32 %v9467_v19, %v9113_v1 }
0x12e2   :  { %v6584_v44 = vmul.f32 %v9468_v41, %v6565_v52 }
0x12e3   :  { %v6591_v8 = vsel %vm746_vm3, %v6585_v43, 0.0 }
0x12e4   :  { %v6588_v31 = vsel %vm746_vm3, %v6584_v44, 0.0  ;;  %v9116_v44 = vpop.f32.mrb[206].mxu1 }
0x12e5   :  { %v9459_v35 = vpop.eup %9458 }
0x12e6   :  { %9101 = vmatprep.subr.msk.mxu0 %vm585_vm2, %v9459_v35 }
0x12e7   :  { %9102 = vmatpush3.msk.msra.mxu0 %vm585_vm2, %v9459_v35 }
0x12e8   :  { %9104 = vmatmul.mubr.msk.f32.vlgmr.msra.gmra.mrb[186].mxu0 %vm560_vm1, %v11659_v57 }
0x12e9   :  { %9106 = vmatprep.mubr.msk.f32.mxu0 %vm560_vm1, %v11664_v54 }
0x12ec   :  { %9107 = vmatmul.mubr.msk.f32.gmra.mrb[188].mxu0 %vm560_vm1, %v11669_v61 }
0x13bb   :  { %v9105_v55 = vpop.f32.mrb[186].mxu0 }
0x13bc   :  { %v6388_v40 = vmul.f32 %v9467_v19, %v9105_v55  ;;  %v6368_v16 = vpop.f32.mrb[187].mxu0 }
0x13bd   :  { %v6387_v5 = vmul.f32 %v9468_v41, %v6368_v16 }
0x13be   :  { %v6394_v51 = vsel %vm746_vm3, %v6388_v40, 0.0 }
0x13bf   :  { %6395 = vadd.xlane.f32.xlu1 %v6394_v51  ;;  %v6391_v33 = vsel %vm746_vm3, %v6387_v5, 0.0  ;;  %v11697_v37 = vpop.f32.mrb[188].mxu0 }
0x13c0   :  { %6392 = vadd.xlane.f32.xlu0 %v6391_v33  ;;  %v11699_v29 = vpop.f32.mrb[189].mxu0 }
0x13d0   :  { %6442 = vperm.xlu1 %9255, %v6432_v25  }
0x13d6   :  { %6437 = vperm.xlu0 %9254, %v6431_v50  }
0x13f4   :  { %6592 = vadd.xlane.f32.xlu1 %v6591_v8  ;;  %v11745_v8 = vpop.f32.mrb[207].mxu1 }
0x13f5   :  { %6589 = vadd.xlane.f32.xlu0 %v6588_v31  ;;  %v9439_v31 = vld [vmem:[#allocation29 + $0x4] ss:$8 sps:$4 sm:$0xff]  }
0x13f6   :  { %8221 = vmatprep.mubr.msk.bf16.mxu0 %vm746_vm3, %v9439_v31  ;;  %8222 = vmatprep.mubr.msk.bf16.mxu1 %vm746_vm3, %v9439_v31 }
0x144c   :  { %v6396_v39 = vpop.xlane.xlu1 %6395 }
0x144d   :  { %v6405_v0 = vmul.f32 %v6396_v39, %v6174_v17  ;;  %v6406_v3 = vmul.f32 %v6396_v39, %v6176_v15  ;;  %v6393_v32 = vpop.xlane.xlu0 %6392  ;;  %v11785_v39 = vld [vmem:[%s12396_s15 + $0x18] sm:$0xff] }
0x144e   :  { %v6403_v2 = vmul.f32 %v6393_v32, %v6170_v21  ;;  %v6404_v6 = vmul.f32 %v6393_v32, %v6172_v24  ;;  %v11712_v24 = vld [vmem:[%s12405_s6 + $0x8] sm:$0x3]  ;;  %v6390_v63 = vmul.f32 %v11785_v39, %v11697_v37 }
0x144f   :  { %v6425_v56 = vadd.f32 %v11702_v12, %v6405_v0  ;;  %v6426_v38 = vadd.f32 %v11705_v34, %v6406_v3  ;;  %v11716_v1 = vrot.slane %v11712_v24, %v12404_v20  ;;  %v11791_v0 = vld [vmem:[%s12396_s15 + $0x10] sm:$0xff] }
0x1450   :  { %v6443_v13 = vpop.permute.xlu1 %6442  ;;  %v6423_v48 = vadd.f32 %v11702_v12, %v6403_v2  ;;  %v6424_v11 = vadd.f32 %v11705_v34, %v6404_v6  ;;  %v6389_v3 = vmul.f32 %v11791_v0, %v11699_v29  ;;  %v6434_v2 = vld [vmem:[%s12403_s23 + $0x18] sm:$0xff] }
0x1451   :  { %v6457_v9 = vadd.f32 %v6443_v13, %v6425_v56  ;;  %v6458_v62 = vadd.f32 %v6443_v13, %v6426_v38 }
0x1452   :  { %v6397_v32 = vsel %vm746_vm3, %v6389_v3, 0.0 }
0x1453   :  { %v6473_v7 = vmul.f32 0.2, %v6457_v9  ;;  %v6474_v58 = vmul.f32 0.2, %v6458_v62  ;;  %vm6465_vm11 = vcmp.ge.f32.partialorder %v6457_v9, 0.0  ;;  %vm6466_vm12 = vcmp.ge.f32.partialorder %v6458_v62, 0.0 }
0x1455   :  { %v6438_v42 = vpop.permute.xlu0 %6437  ;;  %v6481_v15 = vsel %vm6465_vm11, %v6457_v9, %v6473_v7  ;;  %v6482_v4 = vsel %vm6466_vm12, %v6458_v62, %v6474_v58 }
0x1456   :  { %v6455_v28 = vadd.f32 %v6438_v42, %v6423_v48  ;;  %v6456_v23 = vadd.f32 %v6438_v42, %v6424_v11  ;;  %v6489_v45 = vmul.f32 1.4142135, %v6481_v15  ;;  %v6490_v35 = vmul.f32 1.4142135, %v6482_v4  ;;  %v6433_v42 = vld [vmem:[%s12403_s23 + $0x10] sm:$0xff] }
0x1458   :  { %v6471_v17 = vmul.f32 0.2, %v6455_v28  ;;  %vm6463_vm14 = vcmp.ge.f32.partialorder %v6455_v28, 0.0  ;;  %v6472_v21 = vmul.f32 0.2, %v6456_v23  ;;  %vm6464_vm15 = vcmp.ge.f32.partialorder %v6456_v23, 0.0 }
0x145a   :  { %v6479_v18 = vsel %vm6463_vm14, %v6455_v28, %v6471_v17  ;;  %v6480_v55 = vsel %vm6464_vm15, %v6456_v23, %v6472_v21  ;;  %v6587_v17 = vmul.f32 %v11785_v39, %v9116_v44  ;;  %v12406_v21 = vlaneseq }
0x145b   :  { %v6487_v19 = vmul.f32 1.4142135, %v6479_v18  ;;  %v6488_v51 = vmul.f32 1.4142135, %v6480_v55 }
0x145c   :  { %v11812_v15 = vand.u32 127, %v12406_v21 }
0x145e   :  { %vm6626_vm5 = vcmp.lt.s32.totalorder %v11812_v15, 17  ;;  %vm6675_vm6 = vcmp.lt.s32.totalorder %v11812_v15, 16  ;;  %vm6725_vm7 = vcmp.lt.s32.totalorder %v11812_v15, 15  ;;  %vm6775_vm8 = vcmp.lt.s32.totalorder %v11812_v15, 1 }
0x145f   :  { %vm6850_vm9 = vcmp.lt.s32.totalorder %v11812_v15, 127  ;;  %vm6900_vm10 = vcmp.lt.s32.totalorder %v11812_v15, 113  ;;  %vm6950_vm11 = vcmp.lt.s32.totalorder %v11812_v15, 112  ;;  %vm7000_vm12 = vcmp.lt.s32.totalorder %v11812_v15, 111  ;;  %v9471_v15 = vld [vmem:[%s12391_s3] sm:$0xff] }
0x1481   :  { %v6593_v52 = vpop.xlane.xlu1 %6592 }
0x1482   :  { %v6602_v40 = vmul.f32 %v6593_v52, %v6489_v45  ;;  %v11718_v16 = vmul.f32 %v6593_v52, %v6490_v35  ;;  %v6590_v41 = vpop.xlane.xlu0 %6589  ;;  %v6597_v45 = vsel %vm746_vm3, %v6587_v17, 0.0  ;;  %v6635_v35 = vld [vmem:[%s12405_s6] sm:$0x3]  ;;  %v6586_v52 = vmul.f32 %v11791_v0, %v11745_v8 }
0x1483   :  { %v6600_v5 = vmul.f32 %v6590_v41, %v6487_v19  ;;  %v11729_v50 = vmul.f32 %v6590_v41, %v6488_v51  ;;  %v11824_v19 = vrot.slane %v6635_v35, %v12404_v20  ;;  %v11828_v41 = vrot.slane %v6635_v35, %v11450_v30 }
0x1484   :  { %6618 = vrot.lane.b32.xlu0 %v11718_v16, %s10061_s26  ;;  %6610 = vrot.lane.b32.xlu1 %v6602_v40, %s10061_s26  ;;  %v11724_v33 = vmul.f32 %v11716_v1, %v6602_v40  ;;  %v6594_v8 = vsel %vm746_vm3, %v6586_v52, 0.0 }
0x1485   :  { %v11727_v25 = vmul.f32 %v11716_v1, %v6600_v5 }
0x1487   :  { %v6830_v43 = vpack.c.bf16 %v11724_v33, %v11727_v25 }
0x1488   :  { %6661 = vrot.lane.b32.xlu0 %v6602_v40, %s10059_s13  ;;  %6667 = vrot.lane.b32.xlu1 %v11729_v50, %s10059_s13 }
0x148c   :  { %6669 = vrot.lane.b32.xlu0 %v11718_v16, %s10059_s13  ;;  %6709 = vrot.lane.b32.xlu1 %v6600_v5, %s10062_s5 }
0x1490   :  { %6711 = vrot.lane.b32.xlu0 %v6602_v40, %s10062_s5  ;;  %6717 = vrot.lane.b32.xlu1 %v11729_v50, %s10062_s5 }
0x1494   :  { %6719 = vrot.lane.b32.xlu0 %v11718_v16, %s10062_s5  ;;  %6759 = vrot.lane.b32.xlu1 %v6600_v5, %s10063_s28 }
0x1498   :  { %6761 = vrot.lane.b32.xlu0 %v6602_v40, %s10063_s28  ;;  %6767 = vrot.lane.b32.xlu1 %v11729_v50, %s10063_s28 }
0x149c   :  { %6769 = vrot.lane.b32.xlu0 %v11718_v16, %s10063_s28  ;;  %6834 = vrot.lane.b32.xlu1 %v6600_v5, %s10064_s2 }
0x14a0   :  { %6836 = vrot.lane.b32.xlu0 %v6602_v40, %s10064_s2  ;;  %6842 = vrot.lane.b32.xlu1 %v11729_v50, %s10064_s2 }
0x14a4   :  { %6608 = vrot.lane.b32.xlu0 %v6600_v5, %s10061_s26  ;;  %6884 = vrot.lane.b32.xlu1 %v6600_v5, %s10065_s12 }
0x14a8   :  { %6616 = vrot.lane.b32.xlu0 %v11729_v50, %s10061_s26  ;;  %6892 = vrot.lane.b32.xlu1 %v11729_v50, %s10065_s12 }
0x14ac   :  { %6659 = vrot.lane.b32.xlu0 %v6600_v5, %s10059_s13  ;;  %6934 = vrot.lane.b32.xlu1 %v6600_v5, %s10060_s22 }
0x14b0   :  { %6844 = vrot.lane.b32.xlu0 %v11718_v16, %s10064_s2  ;;  %6942 = vrot.lane.b32.xlu1 %v11729_v50, %s10060_s22 }
0x14b4   :  { %6886 = vrot.lane.b32.xlu0 %v6602_v40, %s10065_s12  ;;  %6984 = vrot.lane.b32.xlu1 %v6600_v5, %s10066_s8 }
0x14b8   :  { %6894 = vrot.lane.b32.xlu0 %v11718_v16, %s10065_s12  ;;  %6992 = vrot.lane.b32.xlu1 %v11729_v50, %s10066_s8 }
0x14bc   :  { %6936 = vrot.lane.b32.xlu0 %v6602_v40, %s10060_s22  ;;  %7136 = vrot.lane.b32.xlu1 %v11646_v27, %s10060_s22  ;;  %v6400_v27 = vsel %vm746_vm3, %v6390_v63, 0.0 }
0x14c0   :  { %6944 = vrot.lane.b32.xlu0 %v11718_v16, %s10060_s22 }
0x14c4   :  { %6986 = vrot.lane.b32.xlu0 %v6602_v40, %s10066_s8  ;;  %v8211_v40 = vld [vmem:[%s12405_s6 + $0x2] sm:$0x3] }
0x14c5   :  { %v11839_v31 = vrot.slane %v8211_v40, %v12404_v20  ;;  %v11842_v63 = vrot.slane %v8211_v40, %v11450_v30 }
0x14c8   :  { %6994 = vrot.lane.b32.xlu0 %v11718_v16, %s10066_s8 }
0x14e0   :  { %6401 = vadd.xlane.f32.xlu1 %v6400_v27  ;;  %v8212_v27 = vld [vmem:[%s12405_s6 + $0x4] sm:$0x3] }
0x14e1   :  { %v11859_v35 = vrot.slane %v8212_v27, %v11450_v30 }
0x14e7   :  { %6398 = vadd.xlane.f32.xlu0 %v6397_v32 }
0x14f1   :  { %6452 = vperm.xlu1 %9255, %v6434_v2  }
0x14f6   :  { %v6619_v56 = vpop.permute.xlu0 %6618  ;;  %v6611_v38 = vpop.permute.xlu1 %6610 }
0x14f7   :  { %v6632_v5 = vsel %vm6626_vm5, %v6619_v56, %v6611_v38  ;;  %v6628_v44 = vsel %vm6626_vm5, %v6611_v38, %v6619_v56 }
0x14f8   :  { %v6649_v32 = vmul.f32 %v11824_v19, %v6632_v5 }
0x14fa   :  { %v6662_v13 = vpop.permute.xlu0 %6661  ;;  %v6668_v6 = vpop.permute.xlu1 %6667 }
0x14fd   :  { %6447 = vperm.xlu0 %9254, %v6433_v42   ;;  %v6650_v42 = vmul.f32 %v11828_v41, %v6628_v44 }
0x14fe   :  { %v6670_v37 = vpop.permute.xlu0 %6669  ;;  %v11798_v48 = vpop.permute.xlu1 %6709 }
0x14ff   :  { %v6681_v2 = vsel %vm6675_vm6, %v6670_v37, %v6662_v13  ;;  %v6677_v17 = vsel %vm6675_vm6, %v6662_v13, %v6670_v37 }
0x1500   :  { %v6699_v40 = vmul.f32 %v11839_v31, %v6681_v2 }
0x1502   :  { %v6712_v9 = vpop.permute.xlu0 %6711  ;;  %v6718_v62 = vpop.permute.xlu1 %6717 }
0x1506   :  { %v6720_v28 = vpop.permute.xlu0 %6719  ;;  %v11800_v11 = vpop.permute.xlu1 %6759 }
0x1507   :  { %v6727_v52 = vsel %vm6725_vm7, %v6712_v9, %v6720_v28 }
0x150a   :  { %v11802_v29 = vpop.permute.xlu0 %6761  ;;  %v11804_v7 = vpop.permute.xlu1 %6767 }
0x150e   :  { %v11806_v58 = vpop.permute.xlu0 %6769  ;;  %v11808_v23 = vpop.permute.xlu1 %6834 }
0x1512   :  { %v11814_v4 = vpop.permute.xlu0 %6836  ;;  %v11816_v18 = vpop.permute.xlu1 %6842 }
0x1515   :  { %6598 = vadd.xlane.f32.xlu1 %v6597_v45 }
0x1516   :  { %v6609_v55 = vpop.permute.xlu0 %6608  ;;  %v11833_v51 = vpop.permute.xlu1 %6884 }
0x151a   :  { %v6617_v3 = vpop.permute.xlu0 %6616  ;;  %v11866_v44 = vpop.permute.xlu1 %6892 }
0x151b   :  { %v6627_v56 = vsel %vm6626_vm5, %v6609_v55, %v6617_v3  ;;  %v6631_v38 = vsel %vm6626_vm5, %v6617_v3, %v6609_v55  ;;  %v8213_v55 = vld [vmem:[%s12405_s6 + $0x6] sm:$0x3]  ;;  %v6700_v3 = vmul.f32 %v11842_v63, %v6677_v17  ;;  %v11882_v17 = vrot.slane %v8212_v27, %v12404_v20 }
0x151c   :  { %v6647_v21 = vmul.f32 %v11824_v19, %v6631_v38  ;;  %v6648_v45 = vmul.f32 %v11828_v41, %v6627_v56  ;;  %6595 = vadd.xlane.f32.xlu0 %v6594_v8  ;;  %v6726_v8 = vsel %vm6725_vm7, %v11798_v48, %v6718_v62  ;;  %v6731_v38 = vsel %vm6725_vm7, %v6720_v28, %v6712_v9 }
0x151d   :  { %v6730_v9 = vsel %vm6725_vm7, %v6718_v62, %v11798_v48  ;;  %v6748_v28 = vmul.f32 %v11859_v35, %v6726_v8  ;;  %v6749_v27 = vmul.f32 %v11882_v17, %v6731_v38 }
0x151e   :  { %v6655_v5 = vpack.c.bf16 %v6649_v32, %v6647_v21  ;;  %v6660_v13 = vpop.permute.xlu0 %6659  ;;  %v6656_v37 = vpack.c.bf16 %v6650_v42, %v6648_v45  ;;  %v6750_v32 = vmul.f32 %v11859_v35, %v6727_v52  ;;  %v11885_v45 = vrot.slane %v8213_v55, %v11450_v30  ;;  %v11905_v62 = vpop.permute.xlu1 %6934 }
0x151f   :  { %v6676_v56 = vsel %vm6675_vm6, %v6660_v13, %v6668_v6  ;;  %v6680_v2 = vsel %vm6675_vm6, %v6668_v6, %v6660_v13  ;;  %v6777_v6 = vsel %vm6775_vm8, %v11802_v29, %v11806_v58  ;;  %v6747_v8 = vmul.f32 %v11882_v17, %v6730_v9 }
0x1520   :  { %v6697_v21 = vmul.f32 %v11839_v31, %v6680_v2  ;;  %v6698_v42 = vmul.f32 %v11842_v63, %v6676_v56  ;;  %7048 = vmatprep.subr.bf16.mxu0 %v6656_v37  ;;  %v6776_v56 = vsel %vm6775_vm8, %v11800_v11, %v11804_v7  ;;  %v6800_v48 = vmul.f32 %v11885_v45, %v6777_v6 }
0x1521   :  { %7049 = vmatpush1.bf16.msra.mxu0 %v6655_v5  ;;  %v6781_v5 = vsel %vm6775_vm8, %v11806_v58, %v11802_v29  ;;  %v11913_v2 = vrot.slane %v8213_v55, %v12404_v20  ;;  %v6780_v29 = vsel %vm6775_vm8, %v11804_v7, %v11800_v11  ;;  %v6798_v58 = vmul.f32 %v11885_v45, %v6776_v56 }
0x1522   :  { %v6705_v52 = vpack.c.bf16 %v6699_v40, %v6697_v21  ;;  %v6845_v13 = vpop.permute.xlu0 %6844  ;;  %v6706_v37 = vpack.c.bf16 %v6700_v3, %v6698_v42  ;;  %v6756_v40 = vpack.c.bf16 %v6750_v32, %v6748_v28  ;;  %v11909_v3 = vrot.slane %v11712_v24, %v11450_v30  ;;  %v8215_v21 = vld [vmem:[%s12405_s6 + $0xa] sm:$0x3]  ;;  %v6943_v28 = vpop.permute.xlu1 %6942 }
0x1523   :  { %v6755_v32 = vpack.c.bf16 %v6749_v27, %v6747_v8  ;;  %v6799_v24 = vmul.f32 %v11913_v2, %v6781_v5  ;;  %v6806_v42 = vpack.c.bf16 %v6800_v48, %v6798_v58  ;;  %v6797_v11 = vmul.f32 %v11913_v2, %v6780_v29 }
0x1524   :  { %7050 = vmatprep.subr.bf16.mxu0 %v6706_v37  ;;  %v6823_v55 = vmul.f32 %v11909_v3, %v11729_v50  ;;  %v6825_v6 = vmul.f32 %v11909_v3, %v11718_v16  ;;  %v6856_v7 = vsel %vm6850_vm9, %v6845_v13, %v11814_v4  ;;  %v11932_v9 = vrot.slane %v8215_v21, %v11450_v30  ;;  %v8216_v16 = vld [vmem:[%s12405_s6 + $0xc] sm:$0x3] }
0x1525   :  { %7051 = vmatpush1.bf16.msra.mxu0 %v6705_v52  ;;  %v6805_v37 = vpack.c.bf16 %v6799_v24, %v6797_v11  ;;  %v6855_v50 = vsel %vm6850_vm9, %v11816_v18, %v11808_v23  ;;  %v6852_v27 = vsel %vm6850_vm9, %v11814_v4, %v6845_v13  ;;  %v11945_v48 = vrot.slane %v8215_v21, %v12404_v20  ;;  %v8217_v24 = vld [vmem:[%s12405_s6 + $0xe] sm:$0x3] }
0x1526   :  { %v6887_v38 = vpop.permute.xlu0 %6886  ;;  %7052 = vmatprep.subr.bf16.mxu0 %v6756_v40  ;;  %v6875_v56 = vmul.f32 %v11932_v9, %v6856_v7  ;;  %v6831_v5 = vpack.c.bf16 %v6825_v6, %v6823_v55  ;;  %v6851_v8 = vsel %vm6850_vm9, %v11808_v23, %v11816_v18  ;;  %v6873_v29 = vmul.f32 %v11932_v9, %v6855_v50  ;;  %v6985_v21 = vpop.permute.xlu1 %6984 }
0x1527   :  { %v11955_v58 = vrot.slane %v8216_v16, %v11450_v30  ;;  %v6905_v13 = vsel %vm6900_vm10, %v11866_v44, %v11833_v51  ;;  %v6872_v55 = vmul.f32 %v11945_v48, %v6851_v8  ;;  %v11969_v6 = vrot.slane %v8216_v16, %v12404_v20 }
0x1528   :  { %v6901_v11 = vsel %vm6900_vm10, %v11833_v51, %v11866_v44  ;;  %v11980_v7 = vrot.slane %v8217_v24, %v11450_v30  ;;  %v6955_v50 = vsel %vm6950_vm11, %v6943_v28, %v11905_v62 }
0x1529   :  { %7053 = vmatpush1.bf16.msra.mxu0 %v6755_v32  ;;  %v6874_v32 = vmul.f32 %v11945_v48, %v6852_v27  ;;  %v6922_v16 = vmul.f32 %v11969_v6, %v6901_v11  ;;  %v11993_v27 = vrot.slane %v8217_v24, %v12404_v20 }
0x152a   :  { %v6895_v52 = vpop.permute.xlu0 %6894  ;;  %7054 = vmatprep.subr.bf16.mxu0 %v6806_v42  ;;  %v6881_v42 = vpack.c.bf16 %v6875_v56, %v6873_v29  ;;  %v8218_v56 = vld [vmem:[%s12405_s6 + $0x10] sm:$0x3]  ;;  %v6993_v8 = vpop.permute.xlu1 %6992 }
0x152b   :  { %v6906_v40 = vsel %vm6900_vm10, %v6895_v52, %v6887_v38  ;;  %v6902_v23 = vsel %vm6900_vm10, %v6887_v38, %v6895_v52  ;;  %v6923_v38 = vmul.f32 %v11955_v58, %v6905_v13  ;;  %v12006_v24 = vrot.slane %v8218_v56, %v11450_v30 }
0x152c   :  { %v6925_v18 = vmul.f32 %v11955_v58, %v6906_v40  ;;  %v6924_v33 = vmul.f32 %v11969_v6, %v6902_v23  ;;  %v6973_v40 = vmul.f32 %v11980_v7, %v6955_v50 }
0x152d   :  { %7055 = vmatpush1.bf16.msra.mxu0 %v6805_v37  ;;  %v6880_v37 = vpack.c.bf16 %v6874_v32, %v6872_v55  ;;  %v12003_v32 = vrot.slane %v8218_v56, %v12404_v20 }
0x152e   :  { %v6937_v4 = vpop.permute.xlu0 %6936  ;;  %7056 = vmatprep.subr.bf16.mxu0 %v6831_v5  ;;  %v6931_v44 = vpack.c.bf16 %v6925_v18, %v6923_v38  ;;  %v6951_v5 = vsel %vm6950_vm11, %v11905_v62, %v6943_v28  ;;  %v7001_v62 = vsel %vm7000_vm12, %v6985_v21, %v6993_v8  ;;  %v7005_v28 = vsel %vm7000_vm12, %v6993_v8, %v6985_v21  ;;  %v7137_v56 = vpop.permute.xlu1 %7136 }
0x152f   :  { %v6972_v18 = vmul.f32 %v11993_v27, %v6951_v5 }
0x1531   :  { %7057 = vmatpush1.bf16.msra.mxu0 %v6830_v43 }
0x1532   :  { %v6945_v52 = vpop.permute.xlu0 %6944  ;;  %7058 = vmatprep.subr.bf16.mxu0 %v6881_v42 }
0x1533   :  { %v6956_v25 = vsel %vm6950_vm11, %v6945_v52, %v6937_v4  ;;  %v6952_v43 = vsel %vm6950_vm11, %v6937_v4, %v6945_v52  ;;  %v6930_v4 = vpack.c.bf16 %v6924_v33, %v6922_v16  ;;  %v7022_v52 = vmul.f32 %v12003_v32, %v7001_v62 }
0x1534   :  { %v6975_v51 = vmul.f32 %v11980_v7, %v6956_v25  ;;  %v6974_v13 = vmul.f32 %v11993_v27, %v6952_v43  ;;  %v7134_v43 = vld [vmem:[#allocation31] sm:$0xff] }
0x1535   :  { %7059 = vmatpush1.bf16.msra.mxu0 %v6880_v37  ;;  %v7023_v37 = vmul.f32 %v12006_v24, %v7005_v28 }
0x1536   :  { %v6987_v29 = vpop.permute.xlu0 %6986  ;;  %7060 = vmatprep.subr.bf16.mxu0 %v6931_v44  ;;  %v6981_v23 = vpack.c.bf16 %v6975_v51, %v6973_v40  ;;  %v6980_v55 = vpack.c.bf16 %v6974_v13, %v6972_v18  ;;  %v7135_v51 = vld [vmem:[#allocation31 + $0x8] sm:$0xff]  ;;  %v12021_v44 = vld [vmem:[#allocation29] ss:$8 sps:$4 sm:$0xff]  }
0x1537   :  { %v9167_v16 = vpack.c.bf16 %v7135_v51, %v7134_v43 }
0x1539   :  { %7061 = vmatpush1.bf16.msra.mxu0 %v6930_v4 }
0x153a   :  { %v6995_v42 = vpop.permute.xlu0 %6994  ;;  %7062 = vmatprep.subr.bf16.mxu0 %v6981_v23 }
0x153b   :  { %v7002_v11 = vsel %vm7000_vm12, %v6987_v29, %v6995_v42  ;;  %v7006_v38 = vsel %vm7000_vm12, %v6995_v42, %v6987_v29 }
0x153c   :  { %v7024_v50 = vmul.f32 %v12003_v32, %v7002_v11  ;;  %v7025_v33 = vmul.f32 %v12006_v24, %v7006_v38 }
0x153d   :  { %7063 = vmatpush1.bf16.msra.mxu0 %v6980_v55 }
0x153e   :  { %v7030_v21 = vpack.c.bf16 %v7024_v50, %v7022_v52  ;;  %v7031_v25 = vpack.c.bf16 %v7025_v33, %v7023_v37 }
0x1540   :  { %7064 = vmatprep.subr.bf16.mxu0 %v7031_v25 }
0x1541   :  { %7065 = vmatpush1.bf16.msra.mxu0 %v7030_v21 }
0x1542   :  { %9166 = vmatprep.subr.bf16.mxu0 %v10055_v53 }
0x1544   :  { %7081 = vmatmul.mubr.bf16.vlgmr.msra.gmra.mrb[192].mxu0 %v12021_v44 }
0x1545   :  { %9168 = vmatpush3.bf16.msra.mxu0 %v9167_v16  ;;  %9121 = vmatprep.mubr.msk.f32.mxu0 %vm10056_vm4, %v12376_v59 }
0x154c   :  { %9122 = vmatmul.mubr.msk.f32.vlgmr.msra.gmra.mrb[190].mxu0 %vm746_vm3, %v7137_v56 }
0x154d   :  { %9126 = vmatprep.mubr.msk.f32.mxu0 %vm560_vm1, %v11652_v36 }
0x156d   :  { %v6402_v5 = vpop.xlane.xlu1 %6401 }
0x156e   :  { %v6409_v40 = vmul.f32 %v6402_v5, %v11685_v10  ;;  %v6410_v8 = vmul.f32 %v6402_v5, %v11687_v47 }
0x1570   :  { %v6429_v29 = vadd.f32 %v11702_v12, %v6409_v40  ;;  %v6430_v13 = vadd.f32 %v11705_v34, %v6410_v8 }
0x1571   :  { %v6453_v53 = vpop.permute.xlu1 %6452 }
0x1572   :  { %v6461_v23 = vadd.f32 %v6453_v53, %v6429_v29  ;;  %v6462_v62 = vadd.f32 %v6453_v53, %v6430_v13 }
0x1574   :  { %v6399_v4 = vpop.xlane.xlu0 %6398  ;;  %v6477_v28 = vmul.f32 0.2, %v6461_v23  ;;  %vm6469_vm4 = vcmp.ge.f32.partialorder %v6461_v23, 0.0  ;;  %v6478_v11 = vmul.f32 0.2, %v6462_v62  ;;  %vm6470_vm14 = vcmp.ge.f32.partialorder %v6462_v62, 0.0 }
0x1575   :  { %v6407_v59 = vmul.f32 %v6399_v4, %v11681_v60  ;;  %v6408_v18 = vmul.f32 %v6399_v4, %v11683_v46 }
0x1576   :  { %v6485_v38 = vsel %vm6469_vm4, %v6461_v23, %v6477_v28  ;;  %v6486_v33 = vsel %vm6470_vm14, %v6462_v62, %v6478_v11  ;;  %v7345_v23 = vld [vmem:[%s12407_s30 + $0x10] sm:$0xff] }
0x1577   :  { %v6427_v36 = vadd.f32 %v11702_v12, %v6407_v59  ;;  %v6428_v10 = vadd.f32 %v11705_v34, %v6408_v18  ;;  %v6493_v50 = vmul.f32 1.4142135, %v6485_v38  ;;  %v6494_v21 = vmul.f32 1.4142135, %v6486_v33 }
0x157c   :  { %v6448_v42 = vpop.permute.xlu0 %6447 }
0x157d   :  { %v6459_v47 = vadd.f32 %v6448_v42, %v6427_v36  ;;  %v6460_v55 = vadd.f32 %v6448_v42, %v6428_v10 }
0x157f   :  { %v6475_v52 = vmul.f32 0.2, %v6459_v47  ;;  %v6476_v37 = vmul.f32 0.2, %v6460_v55  ;;  %vm6467_vm15 = vcmp.ge.f32.partialorder %v6459_v47, 0.0  ;;  %vm6468_vm13 = vcmp.ge.f32.partialorder %v6460_v55, 0.0 }
0x1581   :  { %v6483_v12 = vsel %vm6467_vm15, %v6459_v47, %v6475_v52  ;;  %v6484_v25 = vsel %vm6468_vm13, %v6460_v55, %v6476_v37 }
0x1582   :  { %v6491_v43 = vmul.f32 1.4142135, %v6483_v12  ;;  %v6492_v51 = vmul.f32 1.4142135, %v6484_v25 }
0x15a2   :  { %v6599_v60 = vpop.xlane.xlu1 %6598 }
0x15a3   :  { %v6606_v46 = vmul.f32 %v6599_v60, %v6493_v50  ;;  %v6607_v34 = vmul.f32 %v6599_v60, %v6494_v21 }
0x15a5   :  { %6614 = vrot.lane.b32.xlu1 %v6606_v46, %s10061_s26  ;;  %v12045_v8 = vmul.f32 %v11909_v3, %v6607_v34  ;;  %v12051_v53 = vmul.f32 %v11716_v1, %v6606_v46 }
0x15a9   :  { %v6596_v16 = vpop.xlane.xlu0 %6595  ;;  %6622 = vrot.lane.b32.xlu1 %v6607_v34, %s10061_s26 }
0x15aa   :  { %v6604_v56 = vmul.f32 %v6596_v16, %v6491_v43  ;;  %v6605_v5 = vmul.f32 %v6596_v16, %v6492_v51 }
0x15ac   :  { %6612 = vrot.lane.b32.xlu0 %v6604_v56, %s10061_s26  ;;  %v12042_v40 = vmul.f32 %v11909_v3, %v6605_v5  ;;  %v12048_v29 = vmul.f32 %v11716_v1, %v6604_v56  ;;  %v7344_v1 = vld [vmem:[%s12407_s30 + $0x8] sm:$0xff]  ;;  %v7343_v3 = vld [vmem:[%s12407_s30] sm:$0xff] }
0x15ad   :  { %6665 = vrot.lane.b32.xlu1 %v6606_v46, %s10059_s13 }
0x15ae   :  { %v6833_v4 = vpack.c.bf16 %v12045_v8, %v12042_v40  ;;  %v6832_v13 = vpack.c.bf16 %v12051_v53, %v12048_v29 }
0x15b0   :  { %6620 = vrot.lane.b32.xlu0 %v6605_v5, %s10061_s26 }
0x15b1   :  { %6673 = vrot.lane.b32.xlu1 %v6607_v34, %s10059_s13 }
0x15b4   :  { %6663 = vrot.lane.b32.xlu0 %v6604_v56, %s10059_s13 }
0x15b5   :  { %6715 = vrot.lane.b32.xlu1 %v6606_v46, %s10062_s5 }
0x15b8   :  { %6671 = vrot.lane.b32.xlu0 %v6605_v5, %s10059_s13 }
0x15b9   :  { %6723 = vrot.lane.b32.xlu1 %v6607_v34, %s10062_s5 }
0x15bc   :  { %6713 = vrot.lane.b32.xlu0 %v6604_v56, %s10062_s5 }
0x15bd   :  { %6765 = vrot.lane.b32.xlu1 %v6606_v46, %s10063_s28 }
0x15c0   :  { %6721 = vrot.lane.b32.xlu0 %v6605_v5, %s10062_s5 }
0x15c1   :  { %6773 = vrot.lane.b32.xlu1 %v6607_v34, %s10063_s28 }
0x15c4   :  { %6763 = vrot.lane.b32.xlu0 %v6604_v56, %s10063_s28 }
0x15c5   :  { %6840 = vrot.lane.b32.xlu1 %v6606_v46, %s10064_s2 }
0x15c8   :  { %6771 = vrot.lane.b32.xlu0 %v6605_v5, %s10063_s28 }
0x15c9   :  { %6848 = vrot.lane.b32.xlu1 %v6607_v34, %s10064_s2 }
0x15cc   :  { %6838 = vrot.lane.b32.xlu0 %v6604_v56, %s10064_s2 }
0x15cd   :  { %6890 = vrot.lane.b32.xlu1 %v6606_v46, %s10065_s12 }
0x15d0   :  { %6846 = vrot.lane.b32.xlu0 %v6605_v5, %s10064_s2 }
0x15d1   :  { %6898 = vrot.lane.b32.xlu1 %v6607_v34, %s10065_s12 }
0x15d4   :  { %6888 = vrot.lane.b32.xlu0 %v6604_v56, %s10065_s12 }
0x15d5   :  { %6940 = vrot.lane.b32.xlu1 %v6606_v46, %s10060_s22 }
0x15d8   :  { %6896 = vrot.lane.b32.xlu0 %v6605_v5, %s10065_s12 }
0x15d9   :  { %6948 = vrot.lane.b32.xlu1 %v6607_v34, %s10060_s22 }
0x15dc   :  { %6938 = vrot.lane.b32.xlu0 %v6604_v56, %s10060_s22 }
0x15dd   :  { %6990 = vrot.lane.b32.xlu1 %v6606_v46, %s10066_s8 }
0x15e0   :  { %6946 = vrot.lane.b32.xlu0 %v6605_v5, %s10060_s22 }
0x15e1   :  { %6998 = vrot.lane.b32.xlu1 %v6607_v34, %s10066_s8 }
0x15e4   :  { %6988 = vrot.lane.b32.xlu0 %v6604_v56, %s10066_s8 }
0x15e5   :  { %7354 = vperm.xlu1 %9255, %v7344_v1  }
0x15e8   :  { %6996 = vrot.lane.b32.xlu0 %v6605_v5, %s10066_s8 }
0x15ec   :  { %7407 = vrot.lane.b32.xlu0 %v11460_v22, %s10054_s10 }
0x15f0   :  { %7349 = vperm.xlu0 %9254, %v7343_v3  }
0x15f4   :  { %7359 = vperm.xlu0 %9254, %v7345_v23  }
0x1617   :  { %v6615_v59 = vpop.permute.xlu1 %6614  ;;  %v12091_v18 = vpop.f32.mrb[192].mxu0 }
0x1618   :  { %v12093_v62 = vpop.f32.mrb[193].mxu0 }
0x1619   :  { %v12095_v28 = vpop.f32.mrb[194].mxu0 }
0x161a   :  { %v12097_v42 = vpop.f32.mrb[195].mxu0 }
0x161b   :  { %v6623_v36 = vpop.permute.xlu1 %6622 }
0x161c   :  { %v6630_v22 = vsel %vm6626_vm5, %v6615_v59, %v6623_v36  ;;  %v6634_v52 = vsel %vm6626_vm5, %v6623_v36, %v6615_v59 }
0x161d   :  { %v6653_v46 = vmul.f32 %v11824_v19, %v6634_v52  ;;  %v6654_v21 = vmul.f32 %v11828_v41, %v6630_v22 }
0x161e   :  { %v6613_v10 = vpop.permute.xlu0 %6612 }
0x161f   :  { %v6666_v47 = vpop.permute.xlu1 %6665  ;;  %v7206_v55 = vpop.f32.mrb[190].mxu0 }
0x1620   :  { %v7207_v11 = vadd.f32 1e-08, %v7206_v55  ;;  %v9123_v38 = vpop.f32.mrb[191].mxu0 }
0x1622   :  { %9460 = vrsqrt.f32 %v7207_v11  ;;  %v6621_v37 = vpop.permute.xlu0 %6620 }
0x1623   :  { %v6629_v50 = vsel %vm6626_vm5, %v6613_v10, %v6621_v37  ;;  %v6633_v33 = vsel %vm6626_vm5, %v6621_v37, %v6613_v10  ;;  %v6674_v60 = vpop.permute.xlu1 %6673 }
0x1624   :  { %v6651_v12 = vmul.f32 %v11824_v19, %v6633_v33  ;;  %v6652_v25 = vmul.f32 %v11828_v41, %v6629_v50  ;;  %v6679_v56 = vsel %vm6675_vm6, %v6666_v47, %v6674_v60  ;;  %v6683_v5 = vsel %vm6675_vm6, %v6674_v60, %v6666_v47 }
0x1625   :  { %v6703_v59 = vmul.f32 %v11839_v31, %v6683_v5  ;;  %v6704_v36 = vmul.f32 %v11842_v63, %v6679_v56 }
0x1626   :  { %v6657_v34 = vpack.c.bf16 %v6653_v46, %v6651_v12  ;;  %v6664_v43 = vpop.permute.xlu0 %6663  ;;  %v6658_v51 = vpack.c.bf16 %v6654_v21, %v6652_v25 }
0x1627   :  { %v6716_v16 = vpop.permute.xlu1 %6715 }
0x1628   :  { %7091 = vmatprep.subr.bf16.mxu1 %v6658_v51 }
0x1629   :  { %7092 = vmatpush1.bf16.msra.mxu1 %v6657_v34 }
0x162a   :  { %v6672_v1 = vpop.permute.xlu0 %6671 }
0x162b   :  { %v6678_v3 = vsel %vm6675_vm6, %v6664_v43, %v6672_v1  ;;  %v6682_v19 = vsel %vm6675_vm6, %v6672_v1, %v6664_v43  ;;  %v6724_v41 = vpop.permute.xlu1 %6723 }
0x162c   :  { %v9461_v23 = vpop.eup %9460  ;;  %v6701_v10 = vmul.f32 %v11839_v31, %v6682_v19  ;;  %v6702_v55 = vmul.f32 %v11842_v63, %v6678_v3  ;;  %v6729_v31 = vsel %vm6725_vm7, %v6716_v16, %v6724_v41  ;;  %v6733_v63 = vsel %vm6725_vm7, %v6724_v41, %v6716_v16 }
0x162d   :  { %9124 = vmatprep.subr.msk.mxu0 %vm585_vm2, %v9461_v23 }
0x162e   :  { %v6707_v47 = vpack.c.bf16 %v6703_v59, %v6701_v10  ;;  %v6714_v11 = vpop.permute.xlu0 %6713  ;;  %9125 = vmatpush3.msk.msra.mxu0 %vm585_vm2, %v9461_v23  ;;  %v6708_v38 = vpack.c.bf16 %v6704_v36, %v6702_v55 }
0x162f   :  { %v6766_v22 = vpop.permute.xlu1 %6765  ;;  %9127 = vmatmul.mubr.msk.f32.vlgmr.msra.gmra.mrb[196].mxu0 %vm560_vm1, %v11659_v57  ;;  %v6753_v57 = vmul.f32 %v11882_v17, %v6733_v63 }
0x1630   :  { %7093 = vmatprep.subr.bf16.mxu1 %v6708_v38  ;;  %9129 = vmatprep.mubr.msk.f32.mxu0 %vm560_vm1, %v11664_v54  ;;  %v6754_v54 = vmul.f32 %v11859_v35, %v6729_v31 }
0x1631   :  { %7094 = vmatpush1.bf16.msra.mxu1 %v6707_v47 }
0x1632   :  { %v6722_v52 = vpop.permute.xlu0 %6721 }
0x1633   :  { %v6728_v37 = vsel %vm6725_vm7, %v6714_v11, %v6722_v52  ;;  %v6732_v50 = vsel %vm6725_vm7, %v6722_v52, %v6714_v11  ;;  %v6774_v33 = vpop.permute.xlu1 %6773  ;;  %9130 = vmatmul.mubr.msk.f32.gmra.mrb[198].mxu0 %vm560_vm1, %v11669_v61 }
0x1634   :  { %v6751_v60 = vmul.f32 %v11882_v17, %v6732_v50  ;;  %v6752_v46 = vmul.f32 %v11859_v35, %v6728_v37  ;;  %7560 = vmatprep.mubr.bf16.mxu0 %v12397_v26  ;;  %v6779_v43 = vsel %vm6775_vm8, %v6766_v22, %v6774_v33  ;;  %v6783_v61 = vsel %vm6775_vm8, %v6774_v33, %v6766_v22 }
0x1635   :  { %v6803_v56 = vmul.f32 %v11913_v2, %v6783_v61  ;;  %v6804_v5 = vmul.f32 %v11885_v45, %v6779_v43 }
0x1636   :  { %v6757_v21 = vpack.c.bf16 %v6753_v57, %v6751_v60  ;;  %v6764_v12 = vpop.permute.xlu0 %6763  ;;  %v6758_v25 = vpack.c.bf16 %v6754_v54, %v6752_v46 }
0x1637   :  { %v6841_v34 = vpop.permute.xlu1 %6840 }
0x1638   :  { %7095 = vmatprep.subr.bf16.mxu1 %v6758_v25 }
0x1639   :  { %7096 = vmatpush1.bf16.msra.mxu1 %v6757_v21 }
0x163a   :  { %v6772_v51 = vpop.permute.xlu0 %6771 }
0x163b   :  { %v6778_v17 = vsel %vm6775_vm8, %v6764_v12, %v6772_v51  ;;  %v6782_v35 = vsel %vm6775_vm8, %v6772_v51, %v6764_v12  ;;  %v6849_v16 = vpop.permute.xlu1 %6848 }
0x163c   :  { %v6801_v1 = vmul.f32 %v11913_v2, %v6782_v35  ;;  %v6802_v3 = vmul.f32 %v11885_v45, %v6778_v17  ;;  %v6854_v36 = vsel %vm6850_vm9, %v6841_v34, %v6849_v16  ;;  %v6858_v10 = vsel %vm6850_vm9, %v6849_v16, %v6841_v34 }
0x163d   :  { %v6878_v11 = vmul.f32 %v11945_v48, %v6854_v36  ;;  %v6879_v38 = vmul.f32 %v11932_v9, %v6858_v10 }
0x163e   :  { %v6807_v19 = vpack.c.bf16 %v6803_v56, %v6801_v1  ;;  %v6839_v41 = vpop.permute.xlu0 %6838  ;;  %v6808_v23 = vpack.c.bf16 %v6804_v5, %v6802_v3 }
0x163f   :  { %v6891_v59 = vpop.permute.xlu1 %6890 }
0x1640   :  { %7097 = vmatprep.subr.bf16.mxu1 %v6808_v23 }
0x1641   :  { %7098 = vmatpush1.bf16.msra.mxu1 %v6807_v19 }
0x1642   :  { %v6847_v55 = vpop.permute.xlu0 %6846  ;;  %7099 = vmatprep.subr.bf16.mxu1 %v6833_v4 }
0x1643   :  { %v6853_v45 = vsel %vm6850_vm9, %v6839_v41, %v6847_v55  ;;  %v6857_v2 = vsel %vm6850_vm9, %v6847_v55, %v6839_v41  ;;  %v6899_v47 = vpop.permute.xlu1 %6898 }
0x1644   :  { %v6876_v22 = vmul.f32 %v11945_v48, %v6853_v45  ;;  %v6877_v31 = vmul.f32 %v11932_v9, %v6857_v2  ;;  %v6904_v52 = vsel %vm6900_vm10, %v6891_v59, %v6899_v47  ;;  %v6908_v37 = vsel %vm6900_vm10, %v6899_v47, %v6891_v59  ;;  %v9472_v2 = vld [vmem:[%s12391_s3 + $0x8] sm:$0xff] }
0x1645   :  { %7100 = vmatpush1.bf16.msra.mxu1 %v6832_v13  ;;  %v6928_v53 = vmul.f32 %v11969_v6, %v6904_v52  ;;  %v6929_v13 = vmul.f32 %v11955_v58, %v6908_v37 }
0x1646   :  { %v6882_v40 = vpack.c.bf16 %v6878_v11, %v6876_v22  ;;  %v6889_v8 = vpop.permute.xlu0 %6888  ;;  %v6883_v4 = vpack.c.bf16 %v6879_v38, %v6877_v31 }
0x1647   :  { %v6941_v63 = vpop.permute.xlu1 %6940 }
0x1648   :  { %7101 = vmatprep.subr.bf16.mxu1 %v6883_v4 }
0x1649   :  { %7102 = vmatpush1.bf16.msra.mxu1 %v6882_v40 }
0x164a   :  { %v6897_v50 = vpop.permute.xlu0 %6896 }
0x164b   :  { %v6903_v9 = vsel %vm6900_vm10, %v6889_v8, %v6897_v50  ;;  %v6907_v48 = vsel %vm6900_vm10, %v6897_v50, %v6889_v8  ;;  %v6949_v29 = vpop.permute.xlu1 %6948 }
0x164c   :  { %v6926_v33 = vmul.f32 %v11969_v6, %v6903_v9  ;;  %v6927_v57 = vmul.f32 %v11955_v58, %v6907_v48  ;;  %v6954_v12 = vsel %vm6950_vm11, %v6941_v63, %v6949_v29  ;;  %v6958_v25 = vsel %vm6950_vm11, %v6949_v29, %v6941_v63  ;;  %v9475_v63 = vld [vmem:[%s12396_s15 + $0x8] sm:$0xff]  ;;  %v9476_v9 = vld [vmem:[%s12396_s15] sm:$0xff] }
0x164d   :  { %v6978_v58 = vmul.f32 %v11993_v27, %v6954_v12  ;;  %v6979_v61 = vmul.f32 %v11980_v7, %v6958_v25 }
0x164e   :  { %v6932_v54 = vpack.c.bf16 %v6928_v53, %v6926_v33  ;;  %v6939_v60 = vpop.permute.xlu0 %6938  ;;  %v6933_v46 = vpack.c.bf16 %v6929_v13, %v6927_v57 }
0x164f   :  { %v6991_v21 = vpop.permute.xlu1 %6990 }
0x1650   :  { %7103 = vmatprep.subr.bf16.mxu1 %v6933_v46 }
0x1651   :  { %7104 = vmatpush1.bf16.msra.mxu1 %v6932_v54 }
0x1652   :  { %v6947_v34 = vpop.permute.xlu0 %6946 }
0x1653   :  { %v6953_v43 = vsel %vm6950_vm11, %v6939_v60, %v6947_v34  ;;  %v6957_v6 = vsel %vm6950_vm11, %v6947_v34, %v6939_v60  ;;  %v6999_v16 = vpop.permute.xlu1 %6998 }
0x1654   :  { %v6976_v51 = vmul.f32 %v11993_v27, %v6953_v43  ;;  %v6977_v17 = vmul.f32 %v11980_v7, %v6957_v6  ;;  %v7004_v1 = vsel %vm7000_vm12, %v6991_v21, %v6999_v16  ;;  %v7008_v3 = vsel %vm7000_vm12, %v6999_v16, %v6991_v21  ;;  %v7346_v6 = vld [vmem:[%s12407_s30 + $0x18] sm:$0xff] }
0x1655   :  { %v7028_v27 = vmul.f32 %v12003_v32, %v7004_v1  ;;  %v7029_v23 = vmul.f32 %v12006_v24, %v7008_v3 }
0x1656   :  { %v6982_v35 = vpack.c.bf16 %v6978_v58, %v6976_v51  ;;  %v6989_v56 = vpop.permute.xlu0 %6988  ;;  %v6983_v5 = vpack.c.bf16 %v6979_v61, %v6977_v17  ;;  %v4993_v58 = vld [vmem:[%s12408_s27] sm:$0x3f] }
0x1657   :  { %v7618_v51 = vld [vmem:[%s10271_s25] sm:$0x3f]  ;;  %s10067_s25 = smov [#allocation35]  }
0x1658   :  { %7105 = vmatprep.subr.bf16.mxu1 %v6983_v5  ;;  %v7323_v5 = vld [vmem:[#allocation32] sm:$0x3] }
0x1659   :  { %7106 = vmatpush1.bf16.msra.mxu1 %v6982_v35  ;;  %v12250_v3 = vrot.slane %v7323_v5, %v12404_v20 }
0x165a   :  { %v6997_v19 = vpop.permute.xlu0 %6996 }
0x165b   :  { %v7003_v41 = vsel %vm7000_vm12, %v6989_v56, %v6997_v19  ;;  %v7007_v7 = vsel %vm7000_vm12, %v6997_v19, %v6989_v56  ;;  %v12253_v19 = vrot.slane %v7323_v5, %v11450_v30 }
0x165c   :  { %v7026_v59 = vmul.f32 %v12003_v32, %v7003_v41  ;;  %v7027_v36 = vmul.f32 %v12006_v24, %v7007_v7  ;;  %v9473_v32 = vld [vmem:[%s12391_s3 + $0x10] sm:$0xff]  ;;  %v9474_v24 = vld [vmem:[%s12391_s3 + $0x18] sm:$0xff] }
0x165e   :  { %v7032_v10 = vpack.c.bf16 %v7028_v27, %v7026_v59  ;;  %v7033_v55 = vpack.c.bf16 %v7029_v23, %v7027_v36  ;;  %v7408_v45 = vpop.permute.xlu0 %7407 }
0x1660   :  { %7107 = vmatprep.subr.bf16.mxu1 %v7033_v55 }
0x1661   :  { %7108 = vmatpush1.bf16.msra.mxu1 %v7032_v10 }
0x1662   :  { %9132 = vmatprep.subr.msk.mxu1 %vm585_vm2, %v7408_v45 }
0x1664   :  { %7124 = vmatmul.mubr.bf16.vlgmr.msra.gmra.mrb[208].mxu1 %v12021_v44  ;;  %v7355_v16 = vpop.permute.xlu1 %7354 }
0x1665   :  { %9133 = vmatpush3.msk.msra.mxu1 %vm585_vm2, %v7408_v45  ;;  %9134 = vmatprep.mubr.msk.f32.mxu1 %vm560_vm1, %v9471_v15 }
0x166c   :  { %9135 = vmatmul.mubr.msk.f32.vlgmr.msra.gmra.mrb[212].mxu1 %vm560_vm1, %v9472_v2 }
0x166d   :  { %9137 = vmatprep.mubr.msk.f32.mxu1 %vm560_vm1, %v9473_v32 }
0x166f   :  { %v7350_v17 = vpop.permute.xlu0 %7349 }
0x1670   :  { %9138 = vmatmul.mubr.msk.f32.gmra.mrb[214].mxu1 %vm560_vm1, %v9474_v24 }
0x1671   :  { %7601 = vmatprep.mubr.bf16.mxu1 %v12397_v26 }
0x1673   :  { %v12247_v35 = vpop.permute.xlu0 %7359 }
0x1702   :  { %v9128_v47 = vpop.f32.mrb[196].mxu0 }
0x1703   :  { %v7280_v44 = vpop.f32.mrb[197].mxu0  ;;  %v7300_v50 = vmul.f32 %v9475_v63, %v9128_v47 }
0x1704   :  { %v7299_v29 = vmul.f32 %v9476_v9, %v7280_v44 }
0x1705   :  { %v7306_v54 = vsel %vm746_vm3, %v7300_v50, 0.0 }
0x1706   :  { %v9131_v11 = vpop.f32.mrb[198].mxu0  ;;  %v7303_v46 = vsel %vm746_vm3, %v7299_v29, 0.0 }
0x1707   :  { %v7290_v38 = vpop.f32.mrb[199].mxu0  ;;  %v7302_v21 = vmul.f32 %v11785_v39, %v9131_v11 }
0x1708   :  { %v7301_v34 = vmul.f32 %v11791_v0, %v7290_v38 }
0x1709   :  { %v7312_v25 = vsel %vm746_vm3, %v7302_v21, 0.0  ;;  %v7524_v21 = vld [vmem:[%s10266_s4] sm:$0x3]  ;;  %s7729_s4 = sshll.u32 %s10067_s25, 4  ;;  %s7730_s4 = int_to_ptr.vmem [resolvable:$true] %s7729_s4 }
0x170a   :  { %v7309_v43 = vsel %vm746_vm3, %v7301_v34, 0.0  ;;  %v9448_v34 = vld [vmem:[#allocation34 + $0x24] ss:$8 sps:$4 sm:$0xff]   ;;  %s9939_s17 = scalar_lea.vmem %s7730_s4, 256  ;;  %p9944_p1 = scmp.lt.s32.totalorder %s7730_s4, %s7730_s4 }
0x170b   :  { %p9940_p0 = scmp.ne.s32.totalorder %s7730_s4, %s9939_s17  ;;  %p9945_p2 = scmp.lt.s32.totalorder %s9939_s17, %s9939_s17 }
0x170d   :  { %p9946_p3 = por %p9945_p2, %p9944_p1 }
0x170f   :  { %p9947_p4 = pnand %p9946_p3, %p9940_p0 }
0x1737   :  { %v12222_v22 = vpop.f32.mrb[208].mxu1 }
0x1738   :  { %v12224_v31 = vpop.f32.mrb[209].mxu1 }
0x1739   :  { %v12226_v40 = vpop.f32.mrb[210].mxu1 }
0x173a   :  { %v12228_v8 = vpop.f32.mrb[211].mxu1 }
0x173f   :  { %v9136_v4 = vpop.f32.mrb[212].mxu1 }
0x1740   :  { %v7497_v52 = vmul.f32 %v9475_v63, %v9136_v4  ;;  %v7477_v37 = vpop.f32.mrb[213].mxu1 }
0x1741   :  { %v7496_v48 = vmul.f32 %v9476_v9, %v7477_v37 }
0x1742   :  { %v7503_v53 = vsel %vm746_vm3, %v7497_v52, 0.0 }
0x1743   :  { %7504 = vadd.xlane.f32.xlu0 %v7503_v53  ;;  %v7500_v13 = vsel %vm746_vm3, %v7496_v48, 0.0  ;;  %v9139_v33 = vpop.f32.mrb[214].mxu1 }
0x1744   :  { %7501 = vadd.xlane.f32.xlu1 %v7500_v13  ;;  %v7499_v57 = vmul.f32 %v11785_v39, %v9139_v33  ;;  %v7487_v60 = vpop.f32.mrb[215].mxu1 }
0x1745   :  { %v7498_v39 = vmul.f32 %v11791_v0, %v7487_v60 }
0x1746   :  { %v7509_v12 = vsel %vm746_vm3, %v7499_v57, 0.0 }
0x1747   :  { %7307 = vadd.xlane.f32.xlu0 %v7306_v54  ;;  %v7506_v61 = vsel %vm746_vm3, %v7498_v39, 0.0  ;;  %v9442_v54 = vld [vmem:[#allocation34 + $0x4] ss:$8 sps:$4 sm:$0xff]  }
0x1748   :  { %7304 = vadd.xlane.f32.xlu1 %v7303_v46  ;;  %v9440_v46 = vld [vmem:[#allocation34] ss:$8 sps:$4 sm:$0xff]  }
0x174b   :  { %7510 = vadd.xlane.f32.xlu0 %v7509_v12  ;;  %v9445_v12 = vld [vmem:[#allocation34 + $0x14] ss:$8 sps:$4 sm:$0xff]  }
0x174c   :  { %7313 = vadd.xlane.f32.xlu1 %v7312_v25  ;;  %v9443_v25 = vld [vmem:[#allocation34 + $0x10] ss:$8 sps:$4 sm:$0xff]  }
0x174f   :  { %7310 = vadd.xlane.f32.xlu0 %v7309_v43  ;;  %v9451_v43 = vld [vmem:[#allocation34 + $0x34] ss:$8 sps:$4 sm:$0xff]  }
0x175d   :  { %7364 = vperm.xlu1 %9255, %v7346_v6  }
0x1765   :  { %4996 = vperm.xlu0 %9254, %v4993_v58  }
0x1781   :  { %7507 = vadd.xlane.f32.xlu1 %v7506_v61 }
0x1792   :  { %7621 = vperm.xlu1 %9255, %v7618_v51  }
0x17d0   :  { %v7505_v56 = vpop.xlane.xlu0 %7504 }
0x17d1   :  { %v7502_v1 = vpop.xlane.xlu1 %7501 }
0x17d4   :  { %v7308_v41 = vpop.xlane.xlu0 %7307 }
0x17d5   :  { %v7317_v0 = vmul.f32 %v7308_v41, %v12095_v28  ;;  %v7318_v7 = vmul.f32 %v7308_v41, %v12097_v42  ;;  %v7305_v27 = vpop.xlane.xlu1 %7304 }
0x17d6   :  { %v7315_v23 = vmul.f32 %v7305_v27, %v12091_v18  ;;  %v7316_v59 = vmul.f32 %v7305_v27, %v12093_v62 }
0x17d7   :  { %v7337_v36 = vadd.f32 %v12250_v3, %v7317_v0  ;;  %v7338_v10 = vadd.f32 %v12253_v19, %v7318_v7 }
0x17d8   :  { %v7335_v20 = vadd.f32 %v12250_v3, %v7315_v23  ;;  %v7336_v55 = vadd.f32 %v12253_v19, %v7316_v59  ;;  %v12263_v28 = vpop.xlane.xlu0 %7510 }
0x17d9   :  { %v7369_v30 = vadd.f32 %v7355_v16, %v7337_v36  ;;  %v7370_v45 = vadd.f32 %v7355_v16, %v7338_v10  ;;  %v7314_v6 = vpop.xlane.xlu1 %7313 }
0x17da   :  { %v7367_v15 = vadd.f32 %v7350_v17, %v7335_v20  ;;  %v7368_v2 = vadd.f32 %v7350_v17, %v7336_v55  ;;  %v7321_v58 = vmul.f32 %v7314_v6, %v12226_v40  ;;  %v7322_v39 = vmul.f32 %v7314_v6, %v12228_v8 }
0x17db   :  { %vm7377_vm1 = vcmp.ge.f32.partialorder %v7369_v30, 0.0  ;;  %v7385_v42 = vmul.f32 0.2, %v7369_v30  ;;  %v7386_v32 = vmul.f32 0.2, %v7370_v45  ;;  %vm7378_vm5 = vcmp.ge.f32.partialorder %v7370_v45, 0.0 }
0x17dc   :  { %vm7375_vm2 = vcmp.ge.f32.partialorder %v7367_v15, 0.0  ;;  %vm7376_vm13 = vcmp.ge.f32.partialorder %v7368_v2, 0.0  ;;  %v7383_v18 = vmul.f32 0.2, %v7367_v15  ;;  %v7384_v62 = vmul.f32 0.2, %v7368_v2  ;;  %v7311_v4 = vpop.xlane.xlu0 %7310 }
0x17dd   :  { %v7393_v24 = vsel %vm7377_vm1, %v7369_v30, %v7385_v42  ;;  %v7394_v63 = vsel %vm7378_vm5, %v7370_v45, %v7386_v32  ;;  %v7319_v61 = vmul.f32 %v7311_v4, %v12222_v22  ;;  %v7320_v51 = vmul.f32 %v7311_v4, %v12224_v31 }
0x17de   :  { %v7401_v47 = vmul.f32 1.4142135, %v7393_v24  ;;  %v7391_v44 = vsel %vm7375_vm2, %v7367_v15, %v7383_v18  ;;  %v7392_v11 = vsel %vm7376_vm13, %v7368_v2, %v7384_v62  ;;  %v7402_v50 = vmul.f32 1.4142135, %v7394_v63 }
0x17df   :  { %v7399_v38 = vmul.f32 1.4142135, %v7391_v44  ;;  %v7400_v52 = vmul.f32 1.4142135, %v7392_v11  ;;  %v7341_v17 = vadd.f32 %v12250_v3, %v7321_v58  ;;  %v7342_v16 = vadd.f32 %v12253_v19, %v7322_v39 }
0x17e0   :  { %v7514_v37 = vmul.f32 %v7505_v56, %v7401_v47  ;;  %v7515_v53 = vmul.f32 %v7505_v56, %v7402_v50  ;;  %v7365_v56 = vpop.permute.xlu1 %7364  ;;  %v7339_v5 = vadd.f32 %v12250_v3, %v7319_v61 }
0x17e1   :  { %v7513_v9 = vmul.f32 %v7502_v1, %v7400_v52  ;;  %v7512_v48 = vmul.f32 %v7502_v1, %v7399_v38  ;;  %v7340_v1 = vadd.f32 %v12253_v19, %v7320_v51  ;;  %v7373_v40 = vadd.f32 %v7365_v56, %v7341_v17 }
0x17e2   :  { %v7374_v41 = vadd.f32 %v7365_v56, %v7342_v16  ;;  %v7371_v8 = vadd.f32 %v12247_v35, %v7339_v5 }
0x17e3   :  { %v7520_v33 = vpack.c.bf16 %v7514_v37, %v7512_v48  ;;  %v7521_v57 = vpack.c.bf16 %v7515_v53, %v7513_v9  ;;  %v7372_v22 = vadd.f32 %v12247_v35, %v7340_v1  ;;  %v7389_v0 = vmul.f32 0.2, %v7373_v40 }
0x17e4   :  { %v4997_v29 = vpop.permute.xlu0 %4996  ;;  %v7390_v31 = vmul.f32 0.2, %v7374_v41  ;;  %vm7381_vm6 = vcmp.ge.f32.partialorder %v7373_v40, 0.0  ;;  %vm7382_vm7 = vcmp.ge.f32.partialorder %v7374_v41, 0.0  ;;  %v7387_v7 = vmul.f32 0.2, %v7371_v8 }
0x17e5   :  { %v4999_v13 = vadd.f32 %v4997_v29, %v11520_v49  ;;  %7528 = vmatprep.subr.bf16.mxu0 %v7521_v57  ;;  %v9446_v49 = vld [vmem:[#allocation34 + $0x20] ss:$8 sps:$4 sm:$0xff]   ;;  %v7388_v27 = vmul.f32 0.2, %v7372_v22  ;;  %vm7379_vm8 = vcmp.ge.f32.partialorder %v7371_v8, 0.0  ;;  %vm7380_vm9 = vcmp.ge.f32.partialorder %v7372_v22, 0.0 }
0x17e6   :  { %7529 = vmatpush1.bf16.msra.mxu0 %v7520_v33  ;;  %v7397_v23 = vsel %vm7381_vm6, %v7373_v40, %v7389_v0  ;;  %v7398_v59 = vsel %vm7382_vm7, %v7374_v41, %v7390_v31  ;;  %v7395_v36 = vsel %vm7379_vm8, %v7371_v8, %v7387_v7 }
0x17e7   :  { %v5052_v60 = vadd.f32 %v11522_v14, %v4999_v13  ;;  %7678 = vmatprep.subr.bf16.mxu0 %v9442_v54  ;;  %v9449_v14 = vld [vmem:[#allocation34 + $0x30] ss:$8 sps:$4 sm:$0xff]   ;;  %v7396_v3 = vsel %vm7380_vm9, %v7372_v22, %v7388_v27  ;;  %v7405_v10 = vmul.f32 1.4142135, %v7397_v23  ;;  %v7406_v19 = vmul.f32 1.4142135, %v7398_v59 }
0x17e8   :  { %v7403_v20 = vmul.f32 1.4142135, %v7395_v36  ;;  %v7404_v55 = vmul.f32 1.4142135, %v7396_v3 }
0x17e9   :  { %8234 = vmatmul.mubr.msk.bf16.vlgmr.msra.gmra.mrb[200].mxu0 %vm746_vm3, %v7524_v21  ;;  %v7518_v45 = vmul.f32 %v12263_v28, %v7405_v10  ;;  %v7519_v35 = vmul.f32 %v12263_v28, %v7406_v19 }
0x17ea   :  { %7679 = vmatpush1.bf16.msra.mxu0 %v9440_v46  ;;  %7710 = vmatprep.mubr.bf16.mxu0 %v12397_v26  ;;  %v7626_v26 = vpack.c.bf16 %v5052_v60, %v5052_v60 }
0x17eb   :  { %7680 = vmatprep.subr.bf16.mxu0 %v9445_v12 }
0x17ee   :  { %7681 = vmatpush1.bf16.msra.mxu0 %v9443_v25 }
0x17ef   :  { %7682 = vmatprep.subr.bf16.mxu0 %v9448_v34 }
0x17f2   :  { %7683 = vmatpush1.bf16.msra.mxu0 %v9446_v49 }
0x17f3   :  { %7684 = vmatprep.subr.bf16.mxu0 %v9451_v43 }
0x17f6   :  { %7685 = vmatpush1.bf16.msra.mxu0 %v9449_v14 }
0x17f9   :  { %8244 = vmatmul.mubr.msk.bf16.vlgmr.msra.gmra.mrb[204].mxu0 %vm3728_vm0, %v7626_v26  ;;  %vm12409_vm0 = vcmask 1042432  }
0x17fa   :  { %vm12410_vm10 = vmmov %vm12409_vm0 }
0x180e   :  { %v7508_v30 = vpop.xlane.xlu1 %7507 }
0x180f   :  { %v7516_v15 = vmul.f32 %v7508_v30, %v7403_v20  ;;  %v7517_v2 = vmul.f32 %v7508_v30, %v7404_v55 }
0x1811   :  { %v7522_v42 = vpack.c.bf16 %v7518_v45, %v7516_v15  ;;  %v7523_v32 = vpack.c.bf16 %v7519_v35, %v7517_v2 }
0x1812   :  { %v7622_v9 = vpop.permute.xlu1 %7621 }
0x1813   :  { %7569 = vmatprep.subr.bf16.mxu1 %v7523_v32 }
0x1814   :  { %7570 = vmatpush1.bf16.msra.mxu1 %v7522_v42 }
0x1817   :  { %8235 = vmatmul.mubr.msk.bf16.vlgmr.msra.gmra.mrb[216].mxu1 %vm746_vm3, %v7524_v21 }
0x18bc   :  { %v7562_v18 = vpop.f32.mrb[200].mxu0 }
0x18bd   :  { %v7564_v62 = vpop.f32.mrb[201].mxu0 }
0x18be   :  { %v7566_v24 = vpop.f32.mrb[202].mxu0 }
0x18bf   :  { %v7567_v47 = vpop.f32.mrb[203].mxu0 }
0x18cc   :  { %v7712_v44 = vpop.f32.mrb[204].mxu0 }
0x18cd   :  { %v7714_v11 = vpop.f32.mrb[205].mxu0 }
0x18ce   :  { %v7716_v38 = vpop.f32.mrb[206].mxu0 }
0x18cf   :  { %v7717_v4 = vpop.f32.mrb[207].mxu0 }
0x18ea   :  { %v7603_v63 = vpop.f32.mrb[216].mxu1 }
0x18eb   :  { %v7612_v52 = vrot.slane %v7603_v63, 5  ;;  %v7605_v37 = vpop.f32.mrb[217].mxu1 }
0x18ec   :  { %v7613_v28 = vrot.slane %v7605_v37, 5  ;;  %v7607_v50 = vpop.f32.mrb[218].mxu1 }
0x18ed   :  { %v7616_v48 = vsel %vm12409_vm0, %v7562_v18, %v7612_v52  ;;  %v7608_v29 = vpop.f32.mrb[219].mxu1 }
0x18ee   :  { %v7624_v53 = vadd.f32 %v7622_v9, %v7616_v48  ;;  %v7617_v13 = vsel %vm12410_vm10, %v7564_v62, %v7613_v28 }
0x18ef   :  { %v7625_v33 = vadd.f32 %v7622_v9, %v7617_v13 }
0x18f0   :  { %v7719_v57 = vadd.f32 %v7712_v44, %v7624_v53 }
0x18f1   :  { %v7720_v54 = vadd.f32 %v7714_v11, %v7625_v33 }
0x18f2   :  { %7721 = vst [vmem:[#allocation35] sm:$0x3f] %v7719_v57 }
0x18f3   :  { %7722 = vst [vmem:[#allocation35 + $0x8] sm:$0x3f] %v7720_v54 }
0x18f4   :  { %9950 = shalt.err (!%p9947_p4)
}
0x18f5   :  { %s9951_s21 = scalar_lea.hbm %s10281_s19, 256 }
0x18f6   :  { %p9952_p5 = scmp.ne.s32.totalorder %s10281_s19, %s9951_s21  ;;  %p9955_p6 = scmp.lt.u32.totalorder %s9951_s21, %s10281_s19 }
0x18f8   :  { %p9957_p7 = pnand %p9955_p6, %p9952_p5 }
0x18fa   :  { %9960 = shalt.err (!%p9957_p7)
}
0x18fb   :  { %7732 = dma.vmem_to_hbm [thread:$0]  %s7730_s4, 256, %s10281_s19, [#allocation4]  }
0x18fc   :  { %9983 = dma.done.wait [#allocation4], 256  }
0x18fd   :  { %9984 = vsyncadd [#allocation4], 4294967040 }
0x18fe   :  { %7736 = vsyncpa [#allocation3], 1 }
0x18ff   :  { %7737 = vsyncpa [#allocation6], 1 }
0x1900   :  { %7738 = vsyncpa [#allocation9], 1 }
0x1901   :  { %7739 = vsyncpa [#allocation12], 1 }
0x1902   :  { %7740 = vsyncpa [#allocation15], 1 }
0x1903   :  { %7741 = vsyncpa [#allocation18], 1 }
0x1904   :  { %7742 = vsyncpa [#allocation21], 1 }
0x1905   :  { %7743 = vsyncpa [#allocation24], 1 }
0x1906   :  { %7744 = vsyncpa [#allocation27], 1 }
0x1907   :  { %7745 = vsyncpa [#allocation30], 1 }
0x1908   :  { %7746 = vsyncpa [#allocation33], 1 }
0x1909   :  { %7747 = vsyncpa [#allocation4], 1 }

</bundles_post_ra>
